<compile_context>
chip_gen: v7x
topology: tpu7x:2x2x1
jax: 0.10.0
libtpu: 0.0.40
codegen_flags: <defaults>
</compile_context>

<pallas_src>
import functools

import jax
import jax.numpy as jnp
from jax.experimental import pallas as pl
from jax.experimental.pallas import tpu as pltpu

NEG_SLOPE = 0.01   # F.leaky_relu default negative_slope
BN_EPS = 1e-5      # nn.BatchNorm1d default eps


def _leaky_relu(x):
    return jnp.where(x >= 0, x, NEG_SLOPE * x)


def _round_up(x, m):
    return ((x + m - 1) // m) * m


def _tnet_kernel(x_ref,
                 w1, b1, w2, b2, w3, b3,
                 w4, b4, w5, b5, w6, b6,
                 out_ref, pool_ref,
                 *, n_points):
    """One (B-tile, N-tile) grid step of the fused TNet forward."""
    n_idx = pl.program_id(1)
    is_last = n_idx == pl.num_programs(1) - 1
    tb, k_in, tn = x_ref.shape
    c3 = w3.shape[1]

    # ---- running max-pool accumulator: init at the first N tile ------------
    @pl.when(n_idx == 0)
    def _():
        pool_ref[...] = jnp.full(pool_ref.shape, -jnp.inf, pool_ref.dtype)

    xv = x_ref[...]                       # (TB, k, TN), lane-dense on points
    w1v = w1[...]                         # (k, 32, 1)
    b1v = b1[...]                         # (32, 1)

    # ---- conv1: tiny k=2 contraction on the VPU, channel-major per batch
    #      row, then a small 2-D XLU transpose -> row-major (M, 32) slab.
    rows = []
    for b in range(tb):
        acc = xv[b, 0:1, :] * w1v[0]                       # (1,TN)*(32,1) -> (32, TN)
        for c in range(1, k_in):
            acc = acc + xv[b, c:c + 1, :] * w1v[c]
        acc = _leaky_relu(acc + b1v)                       # (32, TN)  f32
        rows.append(jnp.transpose(acc))                    # (TN, 32)
    h = jnp.concatenate(rows, axis=0).astype(jnp.bfloat16)  # (M, 32) bf16

    # ---- conv2 / conv3: bf16 MXU matmuls, f32 accumulate --------------------
    h = jnp.dot(h, w2[...], preferred_element_type=jnp.float32)       # (M, 64)
    h = _leaky_relu(h + b2[...]).astype(jnp.bfloat16)
    h = jnp.dot(h, w3[...], preferred_element_type=jnp.float32)       # (M, 256)
    h = _leaky_relu(h + b3[...])
    h = h.reshape(tb, tn, c3)

    # ---- max over this tile's points, folded into the running max ----------
    if n_points % tn != 0:
        # Padding only exists in the last N tile (N_pad = round_up(N, TN)),
        # so the compare+select over the big intermediate is gated there.
        @pl.when(jnp.logical_not(is_last))
        def _():
            pool_ref[...] = jnp.maximum(pool_ref[...], jnp.max(h, axis=1))

        @pl.when(is_last)
        def _():
            pt = n_idx * tn + jax.lax.broadcasted_iota(jnp.int32, (tb, tn, 1), 1)
            hm = jnp.where(pt < n_points, h, -jnp.inf)
            pool_ref[...] = jnp.maximum(pool_ref[...], jnp.max(hm, axis=1))
    else:
        pool_ref[...] = jnp.maximum(pool_ref[...], jnp.max(h, axis=1))

    # ---- FC tail: once per B tile, only on the last N tile (f32) -----------
    @pl.when(is_last)
    def _():
        g = pool_ref[...]                                              # (TB, 256)
        g = _leaky_relu(jnp.dot(g, w4[...],
                                preferred_element_type=jnp.float32) + b4[...])  # (TB, 512)
        g = _leaky_relu(jnp.dot(g, w5[...],
                                preferred_element_type=jnp.float32) + b5[...])  # (TB, 256)
        # fc3 bias already contains the flattened identity.
        out_ref[...] = jnp.dot(g, w6[...],
                               preferred_element_type=jnp.float32) + b6[...]    # (TB, k*k)


def init_params(key, k=2):
    """Deterministic synthetic parameters. BN layers are folded (eval mode)."""
    def bn_fold(key, conv_b, c):
        kg, kb, km, kv = jax.random.split(key, 4)
        gamma = 1.0 + 0.1 * jax.random.normal(kg, (c,), jnp.float32)
        beta = 0.1 * jax.random.normal(kb, (c,), jnp.float32)
        rmean = 0.05 * jax.random.normal(km, (c,), jnp.float32)
        rvar = 1.0 + 0.1 * jnp.abs(jax.random.normal(kv, (c,), jnp.float32))
        scale = gamma / jnp.sqrt(rvar + BN_EPS)
        bias = scale * (conv_b - rmean) + beta
        return scale, bias

    dims = [(k, 32), (32, 64), (64, 256), (256, 512), (512, 256), (256, k * k)]
    keys = jax.random.split(key, 3 * len(dims))
    params = []
    for i, (cin, cout) in enumerate(dims):
        kw, kb = keys[2 * i], keys[2 * i + 1]
        w = 0.1 * jax.random.normal(kw, (cin, cout), jnp.float32)
        b = 0.05 * jax.random.normal(kb, (cout,), jnp.float32)
        if i < 5:  # layers followed by a BatchNorm
            scale, bias = bn_fold(keys[2 * len(dims) + i], b, cout)
            params.extend([w, scale, bias])
        else:      # fc3: no BN
            params.extend([w, b])
    return params


@functools.partial(jax.jit, static_argnames=("k", "tb", "tn"))
def tnet_forward(x, params, k=2, tb=8, tn=1024):
    """x: (B, k, N) float32, PyTorch Conv1d layout.  Returns (B, k, k)."""
    (w1, s1, b1, w2, s2, b2, w3, s3, b3,
     w4, s4, b4, w5, s5, b5, w6, b6) = params
    B, kk, N = x.shape
    assert kk == k

    f32, bf16 = jnp.float32, jnp.bfloat16

    # Fold BN scales into the weights; fold the identity into the fc3 bias.
    # conv2/conv3 weights are pre-cast to bf16 (MXU operands, f32 accumulate).
    w1f = (w1 * s1[None, :]).astype(f32)                 # (k, 32)  VPU
    w2f = (w2 * s2[None, :]).astype(bf16)                # (32, 64)
    w3f = (w3 * s3[None, :]).astype(bf16)                # (64, 256)
    w4f = (w4 * s4[None, :]).astype(f32)
    w5f = (w5 * s5[None, :]).astype(f32)
    w6f = w6.astype(f32)
    b6f = (b6 + jnp.eye(k, dtype=f32).reshape(k * k)).astype(f32)

    def col(v):  # channel-major bias (C, 1)
        return v.reshape(-1, 1).astype(f32)

    def row(v):  # row-major bias (1, C)
        return v.reshape(1, -1).astype(f32)

    x = x.astype(f32)    # keep native (B, k, N) layout: points on lanes

    # ---- tile sizes ---------------------------------------------------------
    if B <= 8:
        TB = B                                   # single full-dim batch tile
    else:
        B8 = _round_up(B, 8)
        # multiple of 8 (out-block sublane constraint), capped so the batch
        # grid axis has >= 2 tiles (megacore / v7x dual TensorCore).
        TB = min(_round_up(min(tb, B), 8), max(8, (B8 // 2) // 8 * 8))
    B_pad = _round_up(B, TB)

    TN = min(max(tn, 128), _round_up(N, 128))
    TN = (TN // 128) * 128                       # lane-axis block: multiple of 128
    N_pad = _round_up(N, TN)

    if (B_pad, N_pad) != (B, N):
        x = jnp.pad(x, ((0, B_pad - B), (0, 0), (0, N_pad - N)))

    grid = (B_pad // TB, N_pad // TN)

    weights = (w1f.reshape(k, w1f.shape[1], 1), col(b1),
               w2f, row(b2), w3f, row(b3),
               w4f, row(b4), w5f, row(b5), w6f, row(b6f))
    # Full-array blocks with constant index_maps: weights stay VMEM-resident.
    weight_specs = [pl.BlockSpec(w.shape, lambda bi, ni, nd=w.ndim: (0,) * nd)
                    for w in weights]

    kernel = functools.partial(_tnet_kernel, n_points=N)

    out = pl.pallas_call(
        kernel,
        out_shape=jax.ShapeDtypeStruct((B_pad, k * k), jnp.float32),
        grid_spec=pltpu.PrefetchScalarGridSpec(
            num_scalar_prefetch=0,
            grid=grid,
            in_specs=[pl.BlockSpec((TB, k, TN), lambda bi, ni: (bi, 0, ni))]
                     + weight_specs,
            out_specs=pl.BlockSpec((TB, k * k), lambda bi, ni: (bi, 0)),
            scratch_shapes=[pltpu.VMEM((TB, w3f.shape[1]), jnp.float32)],
        ),
        compiler_params=pltpu.CompilerParams(
            dimension_semantics=("parallel", "arbitrary"),
            vmem_limit_bytes=48 * 1024 * 1024,   # safe for v7x (64 MiB VMEM)
        ),
    )(x, *weights)

    return out[:B].reshape(B, k, k)


def tnet_reference(x, params, k=2):
    """Pure-JAX reference (unfused, f32) for correctness checking."""
    (w1, s1, b1, w2, s2, b2, w3, s3, b3,
     w4, s4, b4, w5, s5, b5, w6, b6) = params
    h = jnp.transpose(x, (0, 2, 1)).astype(jnp.float32)
    h = _leaky_relu(jnp.einsum('bnc,cd->bnd', h, w1) * s1 + b1)
    h = _leaky_relu(jnp.einsum('bnc,cd->bnd', h, w2) * s2 + b2)
    h = _leaky_relu(jnp.einsum('bnc,cd->bnd', h, w3) * s3 + b3)
    g = jnp.max(h, axis=1)
    g = _leaky_relu(g @ w4 * s4 + b4)
    g = _leaky_relu(g @ w5 * s5 + b5)
    g = g @ w6 + b6
    g = g + jnp.eye(k, dtype=jnp.float32).reshape(1, k * k)
    return g.reshape(-1, k, k)


if __name__ == "__main__":
    K = 2            # TNet default k
    B, N = 12, 200   # small: B padding (->16, 2 B-tiles), 2 N-tiles + ragged mask

    key = jax.random.PRNGKey(0)
    kx, kp = jax.random.split(key)
    x = jax.random.normal(kx, (B, K, N), jnp.float32)   # (B, k, N) like PyTorch
    params = init_params(kp, k=K)

    out = tnet_forward(x, params, k=K, tb=8, tn=128)
    out = jax.block_until_ready(out)

    ref = tnet_reference(x, params, k=K)
    assert out.shape == (B, K, K)
    # bf16 MXU operands (f32 accumulate) -> relaxed tolerance vs f32 reference.
    assert jnp.allclose(out, ref, atol=5e-2, rtol=5e-2), "mismatch vs reference"

    print("KERNEL_OK")
</pallas_src>

<mosaic_0001>
module attributes {stable_mosaic.version = 11 : i64} {
  func.func @_tnet_kernel(%arg0: i32, %arg1: i32, %arg2: memref<8x2x128xf32, #tpu.memory_space<vmem>>, %arg3: memref<2x32x1xf32, #tpu.memory_space<vmem>>, %arg4: memref<32x1xf32, #tpu.memory_space<vmem>>, %arg5: memref<32x64xbf16, #tpu.memory_space<vmem>>, %arg6: memref<1x64xf32, #tpu.memory_space<vmem>>, %arg7: memref<64x256xbf16, #tpu.memory_space<vmem>>, %arg8: memref<1x256xf32, #tpu.memory_space<vmem>>, %arg9: memref<256x512xf32, #tpu.memory_space<vmem>>, %arg10: memref<1x512xf32, #tpu.memory_space<vmem>>, %arg11: memref<512x256xf32, #tpu.memory_space<vmem>>, %arg12: memref<1x256xf32, #tpu.memory_space<vmem>>, %arg13: memref<256x4xf32, #tpu.memory_space<vmem>>, %arg14: memref<1x4xf32, #tpu.memory_space<vmem>>, %arg15: memref<8x4xf32, #tpu.memory_space<vmem>>, %arg16: memref<8x256xf32, #tpu.memory_space<vmem>>) attributes {dimension_semantics = [#tpu.dimension_semantics<parallel>, #tpu.dimension_semantics<arbitrary>], iteration_bounds = array<i64: 2, 2>, scalar_prefetch = 0 : i64, scratch_operands = 1 : i64, tpu.core_type = #tpu.core_type<tc>, window_params = [{transform_indices = @transform_0, window_bounds = array<i64: 8, 2, 128>}, {pipeline_mode = #tpu.pipeline_mode<synchronous>, transform_indices = @transform_1, window_bounds = array<i64: 2, 32, 1>}, {pipeline_mode = #tpu.pipeline_mode<synchronous>, transform_indices = @transform_2, window_bounds = array<i64: 32, 1>}, {pipeline_mode = #tpu.pipeline_mode<synchronous>, transform_indices = @transform_3, window_bounds = array<i64: 32, 64>}, {pipeline_mode = #tpu.pipeline_mode<synchronous>, transform_indices = @transform_4, window_bounds = array<i64: 1, 64>}, {pipeline_mode = #tpu.pipeline_mode<synchronous>, transform_indices = @transform_5, window_bounds = array<i64: 64, 256>}, {pipeline_mode = #tpu.pipeline_mode<synchronous>, transform_indices = @transform_6, window_bounds = array<i64: 1, 256>}, {pipeline_mode = #tpu.pipeline_mode<synchronous>, transform_indices = @transform_7, window_bounds = array<i64: 256, 512>}, {pipeline_mode = #tpu.pipeline_mode<synchronous>, transform_indices = @transform_8, window_bounds = array<i64: 1, 512>}, {pipeline_mode = #tpu.pipeline_mode<synchronous>, transform_indices = @transform_9, window_bounds = array<i64: 512, 256>}, {pipeline_mode = #tpu.pipeline_mode<synchronous>, transform_indices = @transform_10, window_bounds = array<i64: 1, 256>}, {pipeline_mode = #tpu.pipeline_mode<synchronous>, transform_indices = @transform_11, window_bounds = array<i64: 256, 4>}, {pipeline_mode = #tpu.pipeline_mode<synchronous>, transform_indices = @transform_12, window_bounds = array<i64: 1, 4>}, {transform_indices = @transform_13, window_bounds = array<i64: 8, 4>}]} {
    %c1_i32 = arith.constant 1 : i32
    %0 = arith.cmpi eq, %arg1, %c1_i32 : i32
    %c0_i32 = arith.constant 0 : i32
    %1 = arith.cmpi eq, %arg1, %c0_i32 : i32
    %2 = arith.extui %1 : i1 to i32
    %c0_i32_0 = arith.constant 0 : i32
    %3 = arith.cmpi ne, %2, %c0_i32_0 : i32
    scf.if %3 {
      %cst_40 = arith.constant 0xFF800000 : f32
      %222 = vector.broadcast %cst_40 : f32 to vector<8x256xf32>
      %c0_41 = arith.constant 0 : index
      %c0_42 = arith.constant 0 : index
      %223 = vector.load %arg16[%c0_41, %c0_42] : memref<8x256xf32, #tpu.memory_space<vmem>>, vector<8x256xf32>
      tpu.vector_store %arg16[%c0_41, %c0_42], %222 {strides = array<i32>} : memref<8x256xf32, #tpu.memory_space<vmem>>, vector<8x256xf32>,
    } else {
    }
    %c0 = arith.constant 0 : index
    %c0_1 = arith.constant 0 : index
    %c0_2 = arith.constant 0 : index
    %4 = vector.load %arg2[%c0, %c0_1, %c0_2] : memref<8x2x128xf32, #tpu.memory_space<vmem>>, vector<8x2x128xf32>
    %c0_3 = arith.constant 0 : index
    %c0_4 = arith.constant 0 : index
    %c0_5 = arith.constant 0 : index
    %5 = vector.load %arg3[%c0_3, %c0_4, %c0_5] : memref<2x32x1xf32, #tpu.memory_space<vmem>>, vector<2x32x1xf32>
    %c0_6 = arith.constant 0 : index
    %c0_7 = arith.constant 0 : index
    %6 = vector.load %arg4[%c0_6, %c0_7] : memref<32x1xf32, #tpu.memory_space<vmem>>, vector<32x1xf32>
    %7 = vector.extract_strided_slice %4 {offsets = [0, 0, 0], sizes = [1, 1, 128], strides = [1, 1, 1]} : vector<8x2x128xf32> to vector<1x1x128xf32>
    %8 = vector.shape_cast %7 : vector<1x1x128xf32> to vector<1x128xf32>
    %9 = vector.extract_strided_slice %5 {offsets = [0, 0, 0], sizes = [1, 32, 1], strides = [1, 1, 1]} : vector<2x32x1xf32> to vector<1x32x1xf32>
    %10 = vector.shape_cast %9 : vector<1x32x1xf32> to vector<32x1xf32>
    %11 = vector.broadcast %8 : vector<1x128xf32> to vector<32x128xf32>
    %12 = vector.broadcast %10 : vector<32x1xf32> to vector<32x128xf32>
    %13 = arith.mulf %11, %12 : vector<32x128xf32>
    %14 = vector.extract_strided_slice %4 {offsets = [0, 1, 0], sizes = [1, 1, 128], strides = [1, 1, 1]} : vector<8x2x128xf32> to vector<1x1x128xf32>
    %15 = vector.shape_cast %14 : vector<1x1x128xf32> to vector<1x128xf32>
    %16 = vector.extract_strided_slice %5 {offsets = [1, 0, 0], sizes = [1, 32, 1], strides = [1, 1, 1]} : vector<2x32x1xf32> to vector<1x32x1xf32>
    %17 = vector.shape_cast %16 : vector<1x32x1xf32> to vector<32x1xf32>
    %18 = vector.broadcast %15 : vector<1x128xf32> to vector<32x128xf32>
    %19 = vector.broadcast %17 : vector<32x1xf32> to vector<32x128xf32>
    %20 = arith.mulf %18, %19 : vector<32x128xf32>
    %21 = arith.addf %13, %20 : vector<32x128xf32>
    %22 = vector.broadcast %6 : vector<32x1xf32> to vector<32x128xf32>
    %23 = arith.addf %21, %22 : vector<32x128xf32>
    %cst = arith.constant 0.000000e+00 : f32
    %24 = vector.broadcast %cst : f32 to vector<32x128xf32>
    %25 = arith.cmpf oge, %23, %24 : vector<32x128xf32>
    %cst_8 = arith.constant 0.00999999977 : f32
    %26 = vector.broadcast %cst_8 : f32 to vector<32x128xf32>
    %27 = arith.mulf %26, %23 : vector<32x128xf32>
    %28 = arith.select %25, %23, %27 : vector<32x128xi1>, vector<32x128xf32>
    %29 = tpu.transpose %28, [1, 0] : vector<32x128xf32> -> vector<128x32xf32>
    %30 = vector.extract_strided_slice %4 {offsets = [1, 0, 0], sizes = [1, 1, 128], strides = [1, 1, 1]} : vector<8x2x128xf32> to vector<1x1x128xf32>
    %31 = vector.shape_cast %30 : vector<1x1x128xf32> to vector<1x128xf32>
    %32 = vector.extract_strided_slice %5 {offsets = [0, 0, 0], sizes = [1, 32, 1], strides = [1, 1, 1]} : vector<2x32x1xf32> to vector<1x32x1xf32>
    %33 = vector.shape_cast %32 : vector<1x32x1xf32> to vector<32x1xf32>
    %34 = vector.broadcast %31 : vector<1x128xf32> to vector<32x128xf32>
    %35 = vector.broadcast %33 : vector<32x1xf32> to vector<32x128xf32>
    %36 = arith.mulf %34, %35 : vector<32x128xf32>
    %37 = vector.extract_strided_slice %4 {offsets = [1, 1, 0], sizes = [1, 1, 128], strides = [1, 1, 1]} : vector<8x2x128xf32> to vector<1x1x128xf32>
    %38 = vector.shape_cast %37 : vector<1x1x128xf32> to vector<1x128xf32>
    %39 = vector.extract_strided_slice %5 {offsets = [1, 0, 0], sizes = [1, 32, 1], strides = [1, 1, 1]} : vector<2x32x1xf32> to vector<1x32x1xf32>
    %40 = vector.shape_cast %39 : vector<1x32x1xf32> to vector<32x1xf32>
    %41 = vector.broadcast %38 : vector<1x128xf32> to vector<32x128xf32>
    %42 = vector.broadcast %40 : vector<32x1xf32> to vector<32x128xf32>
    %43 = arith.mulf %41, %42 : vector<32x128xf32>
    %44 = arith.addf %36, %43 : vector<32x128xf32>
    %45 = vector.broadcast %6 : vector<32x1xf32> to vector<32x128xf32>
    %46 = arith.addf %44, %45 : vector<32x128xf32>
    %cst_9 = arith.constant 0.000000e+00 : f32
    %47 = vector.broadcast %cst_9 : f32 to vector<32x128xf32>
    %48 = arith.cmpf oge, %46, %47 : vector<32x128xf32>
    %cst_10 = arith.constant 0.00999999977 : f32
    %49 = vector.broadcast %cst_10 : f32 to vector<32x128xf32>
    %50 = arith.mulf %49, %46 : vector<32x128xf32>
    %51 = arith.select %48, %46, %50 : vector<32x128xi1>, vector<32x128xf32>
    %52 = tpu.transpose %51, [1, 0] : vector<32x128xf32> -> vector<128x32xf32>
    %53 = vector.extract_strided_slice %4 {offsets = [2, 0, 0], sizes = [1, 1, 128], strides = [1, 1, 1]} : vector<8x2x128xf32> to vector<1x1x128xf32>
    %54 = vector.shape_cast %53 : vector<1x1x128xf32> to vector<1x128xf32>
    %55 = vector.extract_strided_slice %5 {offsets = [0, 0, 0], sizes = [1, 32, 1], strides = [1, 1, 1]} : vector<2x32x1xf32> to vector<1x32x1xf32>
    %56 = vector.shape_cast %55 : vector<1x32x1xf32> to vector<32x1xf32>
    %57 = vector.broadcast %54 : vector<1x128xf32> to vector<32x128xf32>
    %58 = vector.broadcast %56 : vector<32x1xf32> to vector<32x128xf32>
    %59 = arith.mulf %57, %58 : vector<32x128xf32>
    %60 = vector.extract_strided_slice %4 {offsets = [2, 1, 0], sizes = [1, 1, 128], strides = [1, 1, 1]} : vector<8x2x128xf32> to vector<1x1x128xf32>
    %61 = vector.shape_cast %60 : vector<1x1x128xf32> to vector<1x128xf32>
    %62 = vector.extract_strided_slice %5 {offsets = [1, 0, 0], sizes = [1, 32, 1], strides = [1, 1, 1]} : vector<2x32x1xf32> to vector<1x32x1xf32>
    %63 = vector.shape_cast %62 : vector<1x32x1xf32> to vector<32x1xf32>
    %64 = vector.broadcast %61 : vector<1x128xf32> to vector<32x128xf32>
    %65 = vector.broadcast %63 : vector<32x1xf32> to vector<32x128xf32>
    %66 = arith.mulf %64, %65 : vector<32x128xf32>
    %67 = arith.addf %59, %66 : vector<32x128xf32>
    %68 = vector.broadcast %6 : vector<32x1xf32> to vector<32x128xf32>
    %69 = arith.addf %67, %68 : vector<32x128xf32>
    %cst_11 = arith.constant 0.000000e+00 : f32
    %70 = vector.broadcast %cst_11 : f32 to vector<32x128xf32>
    %71 = arith.cmpf oge, %69, %70 : vector<32x128xf32>
    %cst_12 = arith.constant 0.00999999977 : f32
    %72 = vector.broadcast %cst_12 : f32 to vector<32x128xf32>
    %73 = arith.mulf %72, %69 : vector<32x128xf32>
    %74 = arith.select %71, %69, %73 : vector<32x128xi1>, vector<32x128xf32>
    %75 = tpu.transpose %74, [1, 0] : vector<32x128xf32> -> vector<128x32xf32>
    %76 = vector.extract_strided_slice %4 {offsets = [3, 0, 0], sizes = [1, 1, 128], strides = [1, 1, 1]} : vector<8x2x128xf32> to vector<1x1x128xf32>
    %77 = vector.shape_cast %76 : vector<1x1x128xf32> to vector<1x128xf32>
    %78 = vector.extract_strided_slice %5 {offsets = [0, 0, 0], sizes = [1, 32, 1], strides = [1, 1, 1]} : vector<2x32x1xf32> to vector<1x32x1xf32>
    %79 = vector.shape_cast %78 : vector<1x32x1xf32> to vector<32x1xf32>
    %80 = vector.broadcast %77 : vector<1x128xf32> to vector<32x128xf32>
    %81 = vector.broadcast %79 : vector<32x1xf32> to vector<32x128xf32>
    %82 = arith.mulf %80, %81 : vector<32x128xf32>
    %83 = vector.extract_strided_slice %4 {offsets = [3, 1, 0], sizes = [1, 1, 128], strides = [1, 1, 1]} : vector<8x2x128xf32> to vector<1x1x128xf32>
    %84 = vector.shape_cast %83 : vector<1x1x128xf32> to vector<1x128xf32>
    %85 = vector.extract_strided_slice %5 {offsets = [1, 0, 0], sizes = [1, 32, 1], strides = [1, 1, 1]} : vector<2x32x1xf32> to vector<1x32x1xf32>
    %86 = vector.shape_cast %85 : vector<1x32x1xf32> to vector<32x1xf32>
    %87 = vector.broadcast %84 : vector<1x128xf32> to vector<32x128xf32>
    %88 = vector.broadcast %86 : vector<32x1xf32> to vector<32x128xf32>
    %89 = arith.mulf %87, %88 : vector<32x128xf32>
    %90 = arith.addf %82, %89 : vector<32x128xf32>
    %91 = vector.broadcast %6 : vector<32x1xf32> to vector<32x128xf32>
    %92 = arith.addf %90, %91 : vector<32x128xf32>
    %cst_13 = arith.constant 0.000000e+00 : f32
    %93 = vector.broadcast %cst_13 : f32 to vector<32x128xf32>
    %94 = arith.cmpf oge, %92, %93 : vector<32x128xf32>
    %cst_14 = arith.constant 0.00999999977 : f32
    %95 = vector.broadcast %cst_14 : f32 to vector<32x128xf32>
    %96 = arith.mulf %95, %92 : vector<32x128xf32>
    %97 = arith.select %94, %92, %96 : vector<32x128xi1>, vector<32x128xf32>
    %98 = tpu.transpose %97, [1, 0] : vector<32x128xf32> -> vector<128x32xf32>
    %99 = vector.extract_strided_slice %4 {offsets = [4, 0, 0], sizes = [1, 1, 128], strides = [1, 1, 1]} : vector<8x2x128xf32> to vector<1x1x128xf32>
    %100 = vector.shape_cast %99 : vector<1x1x128xf32> to vector<1x128xf32>
    %101 = vector.extract_strided_slice %5 {offsets = [0, 0, 0], sizes = [1, 32, 1], strides = [1, 1, 1]} : vector<2x32x1xf32> to vector<1x32x1xf32>
    %102 = vector.shape_cast %101 : vector<1x32x1xf32> to vector<32x1xf32>
    %103 = vector.broadcast %100 : vector<1x128xf32> to vector<32x128xf32>
    %104 = vector.broadcast %102 : vector<32x1xf32> to vector<32x128xf32>
    %105 = arith.mulf %103, %104 : vector<32x128xf32>
    %106 = vector.extract_strided_slice %4 {offsets = [4, 1, 0], sizes = [1, 1, 128], strides = [1, 1, 1]} : vector<8x2x128xf32> to vector<1x1x128xf32>
    %107 = vector.shape_cast %106 : vector<1x1x128xf32> to vector<1x128xf32>
    %108 = vector.extract_strided_slice %5 {offsets = [1, 0, 0], sizes = [1, 32, 1], strides = [1, 1, 1]} : vector<2x32x1xf32> to vector<1x32x1xf32>
    %109 = vector.shape_cast %108 : vector<1x32x1xf32> to vector<32x1xf32>
    %110 = vector.broadcast %107 : vector<1x128xf32> to vector<32x128xf32>
    %111 = vector.broadcast %109 : vector<32x1xf32> to vector<32x128xf32>
    %112 = arith.mulf %110, %111 : vector<32x128xf32>
    %113 = arith.addf %105, %112 : vector<32x128xf32>
    %114 = vector.broadcast %6 : vector<32x1xf32> to vector<32x128xf32>
    %115 = arith.addf %113, %114 : vector<32x128xf32>
    %cst_15 = arith.constant 0.000000e+00 : f32
    %116 = vector.broadcast %cst_15 : f32 to vector<32x128xf32>
    %117 = arith.cmpf oge, %115, %116 : vector<32x128xf32>
    %cst_16 = arith.constant 0.00999999977 : f32
    %118 = vector.broadcast %cst_16 : f32 to vector<32x128xf32>
    %119 = arith.mulf %118, %115 : vector<32x128xf32>
    %120 = arith.select %117, %115, %119 : vector<32x128xi1>, vector<32x128xf32>
    %121 = tpu.transpose %120, [1, 0] : vector<32x128xf32> -> vector<128x32xf32>
    %122 = vector.extract_strided_slice %4 {offsets = [5, 0, 0], sizes = [1, 1, 128], strides = [1, 1, 1]} : vector<8x2x128xf32> to vector<1x1x128xf32>
    %123 = vector.shape_cast %122 : vector<1x1x128xf32> to vector<1x128xf32>
    %124 = vector.extract_strided_slice %5 {offsets = [0, 0, 0], sizes = [1, 32, 1], strides = [1, 1, 1]} : vector<2x32x1xf32> to vector<1x32x1xf32>
    %125 = vector.shape_cast %124 : vector<1x32x1xf32> to vector<32x1xf32>
    %126 = vector.broadcast %123 : vector<1x128xf32> to vector<32x128xf32>
    %127 = vector.broadcast %125 : vector<32x1xf32> to vector<32x128xf32>
    %128 = arith.mulf %126, %127 : vector<32x128xf32>
    %129 = vector.extract_strided_slice %4 {offsets = [5, 1, 0], sizes = [1, 1, 128], strides = [1, 1, 1]} : vector<8x2x128xf32> to vector<1x1x128xf32>
    %130 = vector.shape_cast %129 : vector<1x1x128xf32> to vector<1x128xf32>
    %131 = vector.extract_strided_slice %5 {offsets = [1, 0, 0], sizes = [1, 32, 1], strides = [1, 1, 1]} : vector<2x32x1xf32> to vector<1x32x1xf32>
    %132 = vector.shape_cast %131 : vector<1x32x1xf32> to vector<32x1xf32>
    %133 = vector.broadcast %130 : vector<1x128xf32> to vector<32x128xf32>
    %134 = vector.broadcast %132 : vector<32x1xf32> to vector<32x128xf32>
    %135 = arith.mulf %133, %134 : vector<32x128xf32>
    %136 = arith.addf %128, %135 : vector<32x128xf32>
    %137 = vector.broadcast %6 : vector<32x1xf32> to vector<32x128xf32>
    %138 = arith.addf %136, %137 : vector<32x128xf32>
    %cst_17 = arith.constant 0.000000e+00 : f32
    %139 = vector.broadcast %cst_17 : f32 to vector<32x128xf32>
    %140 = arith.cmpf oge, %138, %139 : vector<32x128xf32>
    %cst_18 = arith.constant 0.00999999977 : f32
    %141 = vector.broadcast %cst_18 : f32 to vector<32x128xf32>
    %142 = arith.mulf %141, %138 : vector<32x128xf32>
    %143 = arith.select %140, %138, %142 : vector<32x128xi1>, vector<32x128xf32>
    %144 = tpu.transpose %143, [1, 0] : vector<32x128xf32> -> vector<128x32xf32>
    %145 = vector.extract_strided_slice %4 {offsets = [6, 0, 0], sizes = [1, 1, 128], strides = [1, 1, 1]} : vector<8x2x128xf32> to vector<1x1x128xf32>
    %146 = vector.shape_cast %145 : vector<1x1x128xf32> to vector<1x128xf32>
    %147 = vector.extract_strided_slice %5 {offsets = [0, 0, 0], sizes = [1, 32, 1], strides = [1, 1, 1]} : vector<2x32x1xf32> to vector<1x32x1xf32>
    %148 = vector.shape_cast %147 : vector<1x32x1xf32> to vector<32x1xf32>
    %149 = vector.broadcast %146 : vector<1x128xf32> to vector<32x128xf32>
    %150 = vector.broadcast %148 : vector<32x1xf32> to vector<32x128xf32>
    %151 = arith.mulf %149, %150 : vector<32x128xf32>
    %152 = vector.extract_strided_slice %4 {offsets = [6, 1, 0], sizes = [1, 1, 128], strides = [1, 1, 1]} : vector<8x2x128xf32> to vector<1x1x128xf32>
    %153 = vector.shape_cast %152 : vector<1x1x128xf32> to vector<1x128xf32>
    %154 = vector.extract_strided_slice %5 {offsets = [1, 0, 0], sizes = [1, 32, 1], strides = [1, 1, 1]} : vector<2x32x1xf32> to vector<1x32x1xf32>
    %155 = vector.shape_cast %154 : vector<1x32x1xf32> to vector<32x1xf32>
    %156 = vector.broadcast %153 : vector<1x128xf32> to vector<32x128xf32>
    %157 = vector.broadcast %155 : vector<32x1xf32> to vector<32x128xf32>
    %158 = arith.mulf %156, %157 : vector<32x128xf32>
    %159 = arith.addf %151, %158 : vector<32x128xf32>
    %160 = vector.broadcast %6 : vector<32x1xf32> to vector<32x128xf32>
    %161 = arith.addf %159, %160 : vector<32x128xf32>
    %cst_19 = arith.constant 0.000000e+00 : f32
    %162 = vector.broadcast %cst_19 : f32 to vector<32x128xf32>
    %163 = arith.cmpf oge, %161, %162 : vector<32x128xf32>
    %cst_20 = arith.constant 0.00999999977 : f32
    %164 = vector.broadcast %cst_20 : f32 to vector<32x128xf32>
    %165 = arith.mulf %164, %161 : vector<32x128xf32>
    %166 = arith.select %163, %161, %165 : vector<32x128xi1>, vector<32x128xf32>
    %167 = tpu.transpose %166, [1, 0] : vector<32x128xf32> -> vector<128x32xf32>
    %168 = vector.extract_strided_slice %4 {offsets = [7, 0, 0], sizes = [1, 1, 128], strides = [1, 1, 1]} : vector<8x2x128xf32> to vector<1x1x128xf32>
    %169 = vector.shape_cast %168 : vector<1x1x128xf32> to vector<1x128xf32>
    %170 = vector.extract_strided_slice %5 {offsets = [0, 0, 0], sizes = [1, 32, 1], strides = [1, 1, 1]} : vector<2x32x1xf32> to vector<1x32x1xf32>
    %171 = vector.shape_cast %170 : vector<1x32x1xf32> to vector<32x1xf32>
    %172 = vector.broadcast %169 : vector<1x128xf32> to vector<32x128xf32>
    %173 = vector.broadcast %171 : vector<32x1xf32> to vector<32x128xf32>
    %174 = arith.mulf %172, %173 : vector<32x128xf32>
    %175 = vector.extract_strided_slice %4 {offsets = [7, 1, 0], sizes = [1, 1, 128], strides = [1, 1, 1]} : vector<8x2x128xf32> to vector<1x1x128xf32>
    %176 = vector.shape_cast %175 : vector<1x1x128xf32> to vector<1x128xf32>
    %177 = vector.extract_strided_slice %5 {offsets = [1, 0, 0], sizes = [1, 32, 1], strides = [1, 1, 1]} : vector<2x32x1xf32> to vector<1x32x1xf32>
    %178 = vector.shape_cast %177 : vector<1x32x1xf32> to vector<32x1xf32>
    %179 = vector.broadcast %176 : vector<1x128xf32> to vector<32x128xf32>
    %180 = vector.broadcast %178 : vector<32x1xf32> to vector<32x128xf32>
    %181 = arith.mulf %179, %180 : vector<32x128xf32>
    %182 = arith.addf %174, %181 : vector<32x128xf32>
    %183 = vector.broadcast %6 : vector<32x1xf32> to vector<32x128xf32>
    %184 = arith.addf %182, %183 : vector<32x128xf32>
    %cst_21 = arith.constant 0.000000e+00 : f32
    %185 = vector.broadcast %cst_21 : f32 to vector<32x128xf32>
    %186 = arith.cmpf oge, %184, %185 : vector<32x128xf32>
    %cst_22 = arith.constant 0.00999999977 : f32
    %187 = vector.broadcast %cst_22 : f32 to vector<32x128xf32>
    %188 = arith.mulf %187, %184 : vector<32x128xf32>
    %189 = arith.select %186, %184, %188 : vector<32x128xi1>, vector<32x128xf32>
    %190 = tpu.transpose %189, [1, 0] : vector<32x128xf32> -> vector<128x32xf32>
    %191 = tpu.concatenate %29, %52, %75, %98, %121, %144, %167, %190 in 0 : vector<128x32xf32>, vector<128x32xf32>, vector<128x32xf32>, vector<128x32xf32>, vector<128x32xf32>, vector<128x32xf32>, vector<128x32xf32>, vector<128x32xf32> -> vector<1024x32xf32>
    %192 = arith.truncf %191 : vector<1024x32xf32> to vector<1024x32xbf16>
    %c0_23 = arith.constant 0 : index
    %c0_24 = arith.constant 0 : index
    %193 = vector.load %arg5[%c0_23, %c0_24] : memref<32x64xbf16, #tpu.memory_space<vmem>>, vector<32x64xbf16>
    %cst_25 = arith.constant dense<0.000000e+00> : vector<1024x64xf32>
    %194 = tpu.matmul %192, %193, %cst_25 {dimension_numbers = #tpu.dot_dimension_numbers<[1], [0], [0], [1], [0, 0, 1, 1], [], []>} : vector<1024x32xbf16>, vector<32x64xbf16>, vector<1024x64xf32> -> vector<1024x64xf32>
    %c0_26 = arith.constant 0 : index
    %c0_27 = arith.constant 0 : index
    %195 = vector.load %arg6[%c0_26, %c0_27] : memref<1x64xf32, #tpu.memory_space<vmem>>, vector<1x64xf32>
    %196 = vector.broadcast %195 : vector<1x64xf32> to vector<1024x64xf32>
    %197 = arith.addf %194, %196 : vector<1024x64xf32>
    %cst_28 = arith.constant 0.000000e+00 : f32
    %198 = vector.broadcast %cst_28 : f32 to vector<1024x64xf32>
    %199 = arith.cmpf oge, %197, %198 : vector<1024x64xf32>
    %cst_29 = arith.constant 0.00999999977 : f32
    %200 = vector.broadcast %cst_29 : f32 to vector<1024x64xf32>
    %201 = arith.mulf %200, %197 : vector<1024x64xf32>
    %202 = arith.select %199, %197, %201 : vector<1024x64xi1>, vector<1024x64xf32>
    %203 = arith.truncf %202 : vector<1024x64xf32> to vector<1024x64xbf16>
    %c0_30 = arith.constant 0 : index
    %c0_31 = arith.constant 0 : index
    %204 = vector.load %arg7[%c0_30, %c0_31] : memref<64x256xbf16, #tpu.memory_space<vmem>>, vector<64x256xbf16>
    %cst_32 = arith.constant dense<0.000000e+00> : vector<1024x256xf32>
    %205 = tpu.matmul %203, %204, %cst_32 {dimension_numbers = #tpu.dot_dimension_numbers<[1], [0], [0], [1], [0, 0, 1, 1], [], []>} : vector<1024x64xbf16>, vector<64x256xbf16>, vector<1024x256xf32> -> vector<1024x256xf32>
    %c0_33 = arith.constant 0 : index
    %c0_34 = arith.constant 0 : index
    %206 = vector.load %arg8[%c0_33, %c0_34] : memref<1x256xf32, #tpu.memory_space<vmem>>, vector<1x256xf32>
    %207 = vector.broadcast %206 : vector<1x256xf32> to vector<1024x256xf32>
    %208 = arith.addf %205, %207 : vector<1024x256xf32>
    %cst_35 = arith.constant 0.000000e+00 : f32
    %209 = vector.broadcast %cst_35 : f32 to vector<1024x256xf32>
    %210 = arith.cmpf oge, %208, %209 : vector<1024x256xf32>
    %cst_36 = arith.constant 0.00999999977 : f32
    %211 = vector.broadcast %cst_36 : f32 to vector<1024x256xf32>
    %212 = arith.mulf %211, %208 : vector<1024x256xf32>
    %213 = arith.select %210, %208, %212 : vector<1024x256xi1>, vector<1024x256xf32>
    %214 = vector.shape_cast %213 : vector<1024x256xf32> to vector<8x128x256xf32>
    %true = arith.constant true
    %215 = arith.xori %0, %true : i1
    %216 = arith.extui %215 : i1 to i32
    %c0_i32_37 = arith.constant 0 : i32
    %217 = arith.cmpi ne, %216, %c0_i32_37 : i32
    scf.if %217 {
      %c0_40 = arith.constant 0 : index
      %c0_41 = arith.constant 0 : index
      %222 = vector.load %arg16[%c0_40, %c0_41] : memref<8x256xf32, #tpu.memory_space<vmem>>, vector<8x256xf32>
      %cst_42 = arith.constant dense<0xFF800000> : vector<8x256xf32>
      %223 = vector.multi_reduction <maximumf>, %214, %cst_42 [1] : vector<8x128x256xf32> to vector<8x256xf32>
      %224 = arith.maximumf %222, %223 : vector<8x256xf32>
      %c0_43 = arith.constant 0 : index
      %c0_44 = arith.constant 0 : index
      %225 = vector.load %arg16[%c0_43, %c0_44] : memref<8x256xf32, #tpu.memory_space<vmem>>, vector<8x256xf32>
      tpu.vector_store %arg16[%c0_43, %c0_44], %224 {strides = array<i32>} : memref<8x256xf32, #tpu.memory_space<vmem>>, vector<8x256xf32>,
    } else {
    }
    %218 = arith.extui %0 : i1 to i32
    %c0_i32_38 = arith.constant 0 : i32
    %219 = arith.cmpi ne, %218, %c0_i32_38 : i32
    scf.if %219 {
      %c128_i32 = arith.constant 128 : i32
      %222 = arith.muli %arg1, %c128_i32 : i32
      %223 = tpu.iota {dimensions = array<i32: 1>} : vector<8x128x1xi32>
      %224 = vector.broadcast %222 : i32 to vector<8x128x1xi32>
      %225 = arith.addi %224, %223 : vector<8x128x1xi32>
      %c200_i32 = arith.constant 200 : i32
      %226 = vector.broadcast %c200_i32 : i32 to vector<8x128x1xi32>
      %227 = arith.cmpi slt, %225, %226 : vector<8x128x1xi32>
      %cst_40 = arith.constant 0xFF800000 : f32
      %228 = vector.shape_cast %227 : vector<8x128x1xi1> to vector<8x128x1xi1>
      %229 = vector.broadcast %228 : vector<8x128x1xi1> to vector<8x128x256xi1>
      %230 = vector.broadcast %cst_40 : f32 to vector<8x128x256xf32>
      %231 = arith.select %229, %214, %230 : vector<8x128x256xi1>, vector<8x128x256xf32>
      %c0_41 = arith.constant 0 : index
      %c0_42 = arith.constant 0 : index
      %232 = vector.load %arg16[%c0_41, %c0_42] : memref<8x256xf32, #tpu.memory_space<vmem>>, vector<8x256xf32>
      %cst_43 = arith.constant dense<0xFF800000> : vector<8x256xf32>
      %233 = vector.multi_reduction <maximumf>, %231, %cst_43 [1] : vector<8x128x256xf32> to vector<8x256xf32>
      %234 = arith.maximumf %232, %233 : vector<8x256xf32>
      %c0_44 = arith.constant 0 : index
      %c0_45 = arith.constant 0 : index
      %235 = vector.load %arg16[%c0_44, %c0_45] : memref<8x256xf32, #tpu.memory_space<vmem>>, vector<8x256xf32>
      tpu.vector_store %arg16[%c0_44, %c0_45], %234 {strides = array<i32>} : memref<8x256xf32, #tpu.memory_space<vmem>>, vector<8x256xf32>,
    } else {
    }
    %220 = arith.extui %0 : i1 to i32
    %c0_i32_39 = arith.constant 0 : i32
    %221 = arith.cmpi ne, %220, %c0_i32_39 : i32
    scf.if %221 {
      %c0_40 = arith.constant 0 : index
      %c0_41 = arith.constant 0 : index
      %222 = vector.load %arg16[%c0_40, %c0_41] : memref<8x256xf32, #tpu.memory_space<vmem>>, vector<8x256xf32>
      %c0_42 = arith.constant 0 : index
      %c0_43 = arith.constant 0 : index
      %223 = vector.load %arg9[%c0_42, %c0_43] : memref<256x512xf32, #tpu.memory_space<vmem>>, vector<256x512xf32>
      %cst_44 = arith.constant dense<0.000000e+00> : vector<8x512xf32>
      %224 = tpu.matmul %222, %223, %cst_44 {dimension_numbers = #tpu.dot_dimension_numbers<[1], [0], [0], [1], [0, 0, 1, 1], [], []>} : vector<8x256xf32>, vector<256x512xf32>, vector<8x512xf32> -> vector<8x512xf32>
      %c0_45 = arith.constant 0 : index
      %c0_46 = arith.constant 0 : index
      %225 = vector.load %arg10[%c0_45, %c0_46] : memref<1x512xf32, #tpu.memory_space<vmem>>, vector<1x512xf32>
      %226 = vector.broadcast %225 : vector<1x512xf32> to vector<8x512xf32>
      %227 = arith.addf %224, %226 : vector<8x512xf32>
      %cst_47 = arith.constant 0.000000e+00 : f32
      %228 = vector.broadcast %cst_47 : f32 to vector<8x512xf32>
      %229 = arith.cmpf oge, %227, %228 : vector<8x512xf32>
      %cst_48 = arith.constant 0.00999999977 : f32
      %230 = vector.broadcast %cst_48 : f32 to vector<8x512xf32>
      %231 = arith.mulf %230, %227 : vector<8x512xf32>
      %232 = arith.select %229, %227, %231 : vector<8x512xi1>, vector<8x512xf32>
      %c0_49 = arith.constant 0 : index
      %c0_50 = arith.constant 0 : index
      %233 = vector.load %arg11[%c0_49, %c0_50] : memref<512x256xf32, #tpu.memory_space<vmem>>, vector<512x256xf32>
      %cst_51 = arith.constant dense<0.000000e+00> : vector<8x256xf32>
      %234 = tpu.matmul %232, %233, %cst_51 {dimension_numbers = #tpu.dot_dimension_numbers<[1], [0], [0], [1], [0, 0, 1, 1], [], []>} : vector<8x512xf32>, vector<512x256xf32>, vector<8x256xf32> -> vector<8x256xf32>
      %c0_52 = arith.constant 0 : index
      %c0_53 = arith.constant 0 : index
      %235 = vector.load %arg12[%c0_52, %c0_53] : memref<1x256xf32, #tpu.memory_space<vmem>>, vector<1x256xf32>
      %236 = vector.broadcast %235 : vector<1x256xf32> to vector<8x256xf32>
      %237 = arith.addf %234, %236 : vector<8x256xf32>
      %cst_54 = arith.constant 0.000000e+00 : f32
      %238 = vector.broadcast %cst_54 : f32 to vector<8x256xf32>
      %239 = arith.cmpf oge, %237, %238 : vector<8x256xf32>
      %cst_55 = arith.constant 0.00999999977 : f32
      %240 = vector.broadcast %cst_55 : f32 to vector<8x256xf32>
      %241 = arith.mulf %240, %237 : vector<8x256xf32>
      %242 = arith.select %239, %237, %241 : vector<8x256xi1>, vector<8x256xf32>
      %c0_56 = arith.constant 0 : index
      %c0_57 = arith.constant 0 : index
      %243 = vector.load %arg13[%c0_56, %c0_57] : memref<256x4xf32, #tpu.memory_space<vmem>>, vector<256x4xf32>
      %cst_58 = arith.constant dense<0.000000e+00> : vector<8x4xf32>
      %244 = tpu.matmul %242, %243, %cst_58 {dimension_numbers = #tpu.dot_dimension_numbers<[1], [0], [0], [1], [0, 0, 1, 1], [], []>} : vector<8x256xf32>, vector<256x4xf32>, vector<8x4xf32> -> vector<8x4xf32>
      %c0_59 = arith.constant 0 : index
      %c0_60 = arith.constant 0 : index
      %245 = vector.load %arg14[%c0_59, %c0_60] : memref<1x4xf32, #tpu.memory_space<vmem>>, vector<1x4xf32>
      %246 = vector.broadcast %245 : vector<1x4xf32> to vector<8x4xf32>
      %247 = arith.addf %244, %246 : vector<8x4xf32>
      %c0_61 = arith.constant 0 : index
      %c0_62 = arith.constant 0 : index
      %248 = vector.load %arg15[%c0_61, %c0_62] : memref<8x4xf32, #tpu.memory_space<vmem>>, vector<8x4xf32>
      tpu.vector_store %arg15[%c0_61, %c0_62], %247 {strides = array<i32>} : memref<8x4xf32, #tpu.memory_space<vmem>>, vector<8x4xf32>,
    } else {
    }
    return
  }
  func.func @transform_0(%arg0: i32, %arg1: i32) -> (i32, i32, i32) {
    %c0_i32 = arith.constant 0 : i32
    %c0_i32_0 = arith.constant 0 : i32
    return %arg0, %c0_i32, %arg1 : i32, i32, i32
  }
  func.func @transform_1(%arg0: i32, %arg1: i32) -> (i32, i32, i32) {
    %c0_i32 = arith.constant 0 : i32
    %c0_i32_0 = arith.constant 0 : i32
    %c0_i32_1 = arith.constant 0 : i32
    %c0_i32_2 = arith.constant 0 : i32
    return %c0_i32, %c0_i32_0, %c0_i32_1 : i32, i32, i32
  }
  func.func @transform_2(%arg0: i32, %arg1: i32) -> (i32, i32) {
    %c0_i32 = arith.constant 0 : i32
    %c0_i32_0 = arith.constant 0 : i32
    %c0_i32_1 = arith.constant 0 : i32
    return %c0_i32, %c0_i32_0 : i32, i32
  }
  func.func @transform_3(%arg0: i32, %arg1: i32) -> (i32, i32) {
    %c0_i32 = arith.constant 0 : i32
    %c0_i32_0 = arith.constant 0 : i32
    %c0_i32_1 = arith.constant 0 : i32
    return %c0_i32, %c0_i32_0 : i32, i32
  }
  func.func @transform_4(%arg0: i32, %arg1: i32) -> (i32, i32) {
    %c0_i32 = arith.constant 0 : i32
    %c0_i32_0 = arith.constant 0 : i32
    %c0_i32_1 = arith.constant 0 : i32
    return %c0_i32, %c0_i32_0 : i32, i32
  }
  func.func @transform_5(%arg0: i32, %arg1: i32) -> (i32, i32) {
    %c0_i32 = arith.constant 0 : i32
    %c0_i32_0 = arith.constant 0 : i32
    %c0_i32_1 = arith.constant 0 : i32
    return %c0_i32, %c0_i32_0 : i32, i32
  }
  func.func @transform_6(%arg0: i32, %arg1: i32) -> (i32, i32) {
    %c0_i32 = arith.constant 0 : i32
    %c0_i32_0 = arith.constant 0 : i32
    %c0_i32_1 = arith.constant 0 : i32
    return %c0_i32, %c0_i32_0 : i32, i32
  }
  func.func @transform_7(%arg0: i32, %arg1: i32) -> (i32, i32) {
    %c0_i32 = arith.constant 0 : i32
    %c0_i32_0 = arith.constant 0 : i32
    %c0_i32_1 = arith.constant 0 : i32
    return %c0_i32, %c0_i32_0 : i32, i32
  }
  func.func @transform_8(%arg0: i32, %arg1: i32) -> (i32, i32) {
    %c0_i32 = arith.constant 0 : i32
    %c0_i32_0 = arith.constant 0 : i32
    %c0_i32_1 = arith.constant 0 : i32
    return %c0_i32, %c0_i32_0 : i32, i32
  }
  func.func @transform_9(%arg0: i32, %arg1: i32) -> (i32, i32) {
    %c0_i32 = arith.constant 0 : i32
    %c0_i32_0 = arith.constant 0 : i32
    %c0_i32_1 = arith.constant 0 : i32
    return %c0_i32, %c0_i32_0 : i32, i32
  }
  func.func @transform_10(%arg0: i32, %arg1: i32) -> (i32, i32) {
    %c0_i32 = arith.constant 0 : i32
    %c0_i32_0 = arith.constant 0 : i32
    %c0_i32_1 = arith.constant 0 : i32
    return %c0_i32, %c0_i32_0 : i32, i32
  }
  func.func @transform_11(%arg0: i32, %arg1: i32) -> (i32, i32) {
    %c0_i32 = arith.constant 0 : i32
    %c0_i32_0 = arith.constant 0 : i32
    %c0_i32_1 = arith.constant 0 : i32
    return %c0_i32, %c0_i32_0 : i32, i32
  }
  func.func @transform_12(%arg0: i32, %arg1: i32) -> (i32, i32) {
    %c0_i32 = arith.constant 0 : i32
    %c0_i32_0 = arith.constant 0 : i32
    %c0_i32_1 = arith.constant 0 : i32
    return %c0_i32, %c0_i32_0 : i32, i32
  }
  func.func @transform_13(%arg0: i32, %arg1: i32) -> (i32, i32) {
    %c0_i32 = arith.constant 0 : i32
    %c0_i32_0 = arith.constant 0 : i32
    return %arg0, %c0_i32 : i32, i32
  }
}

</mosaic_0001>

<bundles_post_ra>
// kernel: tnet_forward.1
= control target key start
LH: loop header
LB: loop body
LE: loop exit
PB: predicated region body
PF: predicated region fallthrough
CT: control target
= control target key end

     0   :  { %s11668_s0 = inlined_call_operand.vmem [shape: f32[16,2,256], index: 0, kind: input, shape index: {}]   ;;  %s11669_s1 = inlined_call_operand.vmem [shape: f32[2,32,1], index: 1, kind: input, shape index: {}]   ;;  %s11670_s2 = inlined_call_operand.vmem [shape: f32[32,1], index: 2, kind: input, shape index: {}]   ;;  %s11671_s3 = inlined_call_operand.vmem [shape: bf16[32,64], index: 3, kind: input, shape index: {}]   ;;  %s11672_s4 = inlined_call_operand.vmem [shape: f32[1,64], index: 4, kind: input, shape index: {}]   ;;  %s11673_s5 = inlined_call_operand.vmem [shape: bf16[64,256], index: 5, kind: input, shape index: {}]   ;;  %s11674_s6 = inlined_call_operand.vmem [shape: f32[1,256], index: 6, kind: input, shape index: {}]   ;;  %s11675_s7 = inlined_call_operand.vmem [shape: f32[256,512], index: 7, kind: input, shape index: {}]   ;;  %s11676_s8 = inlined_call_operand.vmem [shape: f32[1,512], index: 8, kind: input, shape index: {}]   ;;  %s11677_s9 = inlined_call_operand.vmem [shape: f32[512,256], index: 9, kind: input, shape index: {}]   ;;  %s11678_s10 = inlined_call_operand.vmem [shape: f32[1,256], index: 10, kind: input, shape index: {}]   ;;  %s11679_s11 = inlined_call_operand.vmem [shape: f32[256,4], index: 11, kind: input, shape index: {}]   ;;  %s11680_s12 = inlined_call_operand.vmem [shape: f32[1,4], index: 12, kind: input, shape index: {}]   ;;  %s11681_s13 = inlined_call_operand.vmem [shape: f32[16,4], index: 13, kind: output, shape index: {}]  }
   0x1   :  { %11784 = sst [smem:[#allocation286_spill]] %s11676_s8 }
   0x2   :  { %11785 = sst [smem:[#allocation287_spill]] %s11678_s10 }
   0x3   :  { %11786 = sst [smem:[#allocation288_spill]] %s11680_s12 }
   0x4   :  { %s6905_s25 = smov 0   ;;  %s6907_s26 = smov 0  }
   0x5   :  { %s6909_s27 = smov 0   ;;  %s6911_s28 = smov 0  }
   0x6   :  { %s6913_s29 = smov 0   ;;  %s6915_s30 = smov 0  }
   0x7   :  { %s6917_s14 = smov 0  }
   0x8 LB: > { %s32_s15 = sadd.s32 1, %s6823_s29  ;;  %s35_s16 = sadd.s32 1, %s6827_s30  ;;  %s6831_s14 = sphi %s6917_s14, %s23_s14   ;;  %s6827_s30 = sphi %s6915_s30, %s12679_s30   ;;  %s6823_s29 = sphi %s6913_s29, %s12678_s29   ;;  %s6819_s28 = sphi %s6911_s28, %s12677_s28   ;;  %s6815_s27 = sphi %s6909_s27, %s12676_s27   ;;  %s6811_s26 = sphi %s6907_s26, %s12675_s26   ;;  %s6807_s25 = sphi %s6905_s25, %s12674_s25  }
   0x9   : > { %p33_p0 = scmp.ge.s32.totalorder %s32_s15, 2  ;;  %p51_p1 = scmp.ne.s32.totalorder %s6811_s26, %s6807_s25 }
   0xa   : > { %p52_p2 = scmp.eq.s32.totalorder %s6831_s14, 0  ;;  %s44_s20 = sadd.s32 1, %s6811_s26 }
   0xb   : > { %s12681_s15 = smov (%p33_p0, %s32_s15), 0  ;;  %s12683_s16 = smov (!%p33_p0, %s35_s16), %s6827_s30 }
   0xc   : > { %11787 = sst [smem:[#allocation4_spill]] %s12681_s15  ;;  %p53_p3 = por %p52_p2, %p51_p1 }
   0xd   : > { %p37_p4 = scmp.ge.s32.totalorder %s12683_s16, 2  ;;  %s40_s17 = ssub.s32 %s6823_s29, %s12681_s15 }
   0xe   : > { %p6013_p6 = scmp.ge.s32.totalorder %s6831_s14, 4 }
   0xf   : > { %s12685_s16 = smov (%p37_p4, %s12683_s16), 0 }
  0x10   : > { %s39_s18 = ssub.s32 %s6827_s30, %s12685_s16  ;;  %391 = sbr.rel (%p6013_p6) target bundleno = 34 (0x22), region = 64 }
  0x11   : > { %s41_s19 = sor.u32 %s40_s17, %s39_s18 }
  0x12   : > { %p42_p5 = scmp.eq.s32.totalorder %s41_s19, 0 }
  0x14   : > { %s6956_s21 = scalar_select %p42_p5, %s6811_s26, %s44_s20  }
  0x17   : > { %394 = sbr.rel (!%p53_p3) target bundleno = 34 (0x22), region = 68  ;;  %s396_s22 = sand.u32 (%p53_p3), 1, %s6811_s26  }
  0x18   : > { %s6167_s23 = sshll.u32 (%p53_p3), %s6827_s30, 4  ;;  %s6014_s24 = sshll.u32 (%p53_p3), %s396_s22, 4 }
  0x19   : > { %s401_s15 = sadd.s32 (%p53_p3), %s6823_s29, %s6167_s23  ;;  %s398_s18 = scalar_lea.vmem (%p53_p3), [#allocation3], %s6014_s24 }
  0x1a   : > { %s6017_s12 = sshll.u32 (%p53_p3), %s401_s15, 1 }
  0x1b   : > { %s403_s17 = scalar_lea.vmem (%p53_p3), %s11668_s0, %s6017_s12 }
  0x1c   : > { %v419_v0 = vld [vmem:[%s403_s17] sm:$0x3] (%p53_p3)  ;;  %v421_v1 = vld [vmem:[%s403_s17 + $0x4] sm:$0x3] (%p53_p3)  ;;  %v423_v2 = vld [vmem:[%s403_s17 + $0x8] sm:$0x3] (%p53_p3) }
  0x1d   : > { %420 = vst [vmem:[%s398_s18] sm:$0x3] (%p53_p3), %v419_v0  ;;  %422 = vst [vmem:[%s398_s18 + $0x2] sm:$0x3] (%p53_p3), %v421_v1  ;;  %v425_v3 = vld [vmem:[%s403_s17 + $0xc] sm:$0x3] (%p53_p3) }
  0x1e   : > { %424 = vst [vmem:[%s398_s18 + $0x4] sm:$0x3] %v423_v2  ;;  %v427_v4 = vld [vmem:[%s403_s17 + $0x10] sm:$0x3]  ;;  %v429_v5 = vld [vmem:[%s403_s17 + $0x14] sm:$0x3] }
  0x1f   : > { %426 = vst [vmem:[%s398_s18 + $0x6] sm:$0x3] %v425_v3  ;;  %428 = vst [vmem:[%s398_s18 + $0x8] sm:$0x3] %v427_v4  ;;  %v431_v6 = vld [vmem:[%s403_s17 + $0x18] sm:$0x3] }
  0x20   : > { %430 = vst [vmem:[%s398_s18 + $0xa] sm:$0x3] %v429_v5  ;;  %v433_v7 = vld [vmem:[%s403_s17 + $0x1c] sm:$0x3]  ;;  %432 = vst [vmem:[%s398_s18 + $0xc] sm:$0x3] %v431_v6 }
  0x21   : > { %434 = vst [vmem:[%s398_s18 + $0xe] sm:$0x3] %v433_v7 }
  0x22 PF: > { %p6018_p7 = scmp.ge.s32.totalorder %s6831_s14, 1  ;;  %p472_p8 = scmp.lt.s32.totalorder %s6831_s14, 5 }
  0x24   : > { %p473_p9 = pnand %p6018_p7, %p472_p8 }
  0x26   : > { %476 = sbr.rel (%p473_p9) target bundleno = 2297 (0x8f9), region = 109 }
  0x2d   : > { %s479_s8 = sand.u32 1, %s6807_s25   ;;  %p522_p10 = scmp.lt.s32.totalorder %s6819_s28, 1 }
  0x2e   : > { %s6019_s10 = sshll.u32 %s479_s8, 4  ;;  %p6021_p11 = scmp.ne.s32.totalorder %s6815_s27, 0 }
  0x2f   : > { %s12687_s28 = smov (!%p522_p10, %s6819_s28), 1  ;;  %s6975_s22 = scalar_lea.vmem [#allocation3], %s6019_s10  ;;  %v6833_v8 = vmov (!%p6021_p11), -inf  }
  0x30   : > { %s6020_s12 = sshll.u32 %s12687_s28, 3  ;;  %531 = sbr.rel (%p6021_p11) target bundleno = 55 (0x37), region = 117  ;;  %532 = vst [vmem:[#allocation2] sm:$0xff] (!%p6021_p11), %v6833_v8  ;;  %533 = vst [vmem:[#allocation2 + $0x8] sm:$0xff] (!%p6021_p11), %v6833_v8 }
  0x31   : > { %s6973_s20 = scalar_lea.vmem %s11681_s13, %s6020_s12 }
  0x37 PF: > { %v543_v9 = vld [vmem:[%s11669_s1 + $0x8] sm:$0xff]  ;;  %v542_v10 = vld [vmem:[%s11669_s1] sm:$0xff]  ;;  %v11683_v11 = vmov 0   ;;  %v548_v14 = vld [vmem:[%s11669_s1 + $0x30] sm:$0xff]  ;;  %v554_v22 = vlaneseq  ;;  %p6161_p12 = scmp.eq.s32.totalorder %s6815_s27, 1 }
  0x38   : > { %6761 = vset.pattern.permute.xlu1 %v11683_v11  ;;  %6760 = vset.pattern.permute.xlu0 %v11683_v11  ;;  %v547_v12 = vld [vmem:[%s11669_s1 + $0x28] sm:$0xff]  ;;  %v546_v13 = vld [vmem:[%s11669_s1 + $0x20] sm:$0xff]  ;;  %v544_v15 = vld [vmem:[%s11669_s1 + $0x10] sm:$0xff] }
  0x39   : > { %565 = vperm.xlu1 %6761, %v543_v9   ;;  %560 = vperm.xlu0 %6760, %v542_v10   ;;  %v545_v16 = vld [vmem:[%s11669_s1 + $0x18] sm:$0xff]  ;;  %v550_v17 = vld [vmem:[%s11670_s2] sm:$0xff]  ;;  %v551_v18 = vld [vmem:[%s11670_s2 + $0x8] sm:$0xff]  ;;  %v7017_v23 = vshrl.u32 %v554_v22, 7 }
  0x3a   : > { %2876 = vmatprep.mubr.bf16.mxu1 %v11683_v11  ;;  %v549_v19 = vld [vmem:[%s11669_s1 + $0x38] sm:$0xff]  ;;  %v552_v21 = vld [vmem:[%s11670_s2 + $0x10] sm:$0xff] }
  0x3b   : > { %v553_v20 = vld [vmem:[%s11670_s2 + $0x18] sm:$0xff]  ;;  %11788 = vst [vmem:[#allocation5_spill] sm:$0xff] %v7017_v23  ;;  %v7020_v24 = vsub.s32 0, %v7017_v23  ;;  %v7023_v25 = vsub.s32 1, %v7017_v23  ;;  %v537_v26 = vld [vmem:[%s6975_s22 + $0x6] sm:$0x3] }
  0x3c   : > { %v536_v27 = vld [vmem:[%s6975_s22 + $0x4] sm:$0x3]  ;;  %v535_v30 = vld [vmem:[%s6975_s22 + $0x2] sm:$0x3]  ;;  %v534_v31 = vld [vmem:[%s6975_s22] sm:$0x3] }
  0x3d   : > { %593 = vperm.xlu1 %6761, %v547_v12   ;;  %588 = vperm.xlu0 %6760, %v546_v13   ;;  %11789 = vst [vmem:[#allocation6_spill] sm:$0xff] %v7020_v24  ;;  %11790 = vst [vmem:[#allocation7_spill] sm:$0xff] %v7023_v25  ;;  %v7034_v32 = vrot.slane %v537_v26, %v7020_v24  ;;  %v7037_v33 = vrot.slane %v536_v27, %v7020_v24 }
  0x3e   : > { %v7040_v34 = vrot.slane %v537_v26, %v7023_v25  ;;  %v7043_v35 = vrot.slane %v536_v27, %v7023_v25  ;;  %v685_v36 = vrot.slane %v535_v30, %v7020_v24  ;;  %v693_v37 = vrot.slane %v535_v30, %v7023_v25 }
  0x3f   : > { %v557_v38 = vrot.slane %v534_v31, %v7020_v24  ;;  %v585_v39 = vrot.slane %v534_v31, %v7023_v25 }
  0x41   : > { %598 = vperm.xlu1 %6761, %v548_v14   ;;  %570 = vperm.xlu0 %6760, %v544_v15  }
  0x45   : > { %575 = vperm.xlu1 %6761, %v545_v16   ;;  %616 = vperm.xlu0 %6760, %v550_v17  }
  0x49   : > { %621 = vperm.xlu1 %6761, %v551_v18   ;;  %603 = vperm.xlu0 %6760, %v549_v19  }
  0x4d   : > { %631 = vperm.xlu1 %6761, %v553_v20   ;;  %626 = vperm.xlu0 %6760, %v552_v21  }
  0xb8   : > { %v7027_v28 = vpop.permute.xlu1 %565  ;;  %v7029_v29 = vpop.permute.xlu0 %560 }
  0xb9   : > { %v822_v42 = vmul.f32 %v7034_v32, %v7029_v29  ;;  %v754_v43 = vmul.f32 %v7037_v33, %v7029_v29  ;;  %v823_v44 = vmul.f32 %v7034_v32, %v7027_v28  ;;  %v755_v45 = vmul.f32 %v7037_v33, %v7027_v28 }
  0xba   : > { %v686_v50 = vmul.f32 %v685_v36, %v7029_v29  ;;  %v578_v52 = vmul.f32 %v7029_v29, %v557_v38  ;;  %v687_v60 = vmul.f32 %v685_v36, %v7027_v28  ;;  %v579_v62 = vmul.f32 %v7027_v28, %v557_v38 }
  0xbc   : > { %v7049_v40 = vpop.permute.xlu1 %593  ;;  %v7051_v41 = vpop.permute.xlu0 %588 }
  0xbd   : > { %v830_v46 = vmul.f32 %v7040_v34, %v7051_v41  ;;  %v762_v47 = vmul.f32 %v7043_v35, %v7051_v41  ;;  %v831_v48 = vmul.f32 %v7040_v34, %v7049_v40  ;;  %v763_v49 = vmul.f32 %v7043_v35, %v7049_v40 }
  0xbe   : > { %v694_v51 = vmul.f32 %v693_v37, %v7051_v41  ;;  %v606_v53 = vmul.f32 %v7051_v41, %v585_v39  ;;  %v695_v61 = vmul.f32 %v693_v37, %v7049_v40  ;;  %v607_v63 = vmul.f32 %v7049_v40, %v585_v39 }
  0xbf   : > { %v7077_v56 = vadd.f32 %v830_v46, %v822_v42  ;;  %v7079_v57 = vadd.f32 %v762_v47, %v754_v43  ;;  %v7081_v58 = vadd.f32 %v831_v48, %v823_v44  ;;  %v7083_v59 = vadd.f32 %v763_v49, %v755_v45  ;;  %v539_v45 = vld [vmem:[%s6975_s22 + $0xa] sm:$0x3] }
  0xc0   : > { %v7073_v54 = vpop.permute.xlu1 %598  ;;  %v7075_v55 = vpop.permute.xlu0 %570  ;;  %v698_v4 = vadd.f32 %v694_v51, %v686_v50  ;;  %v610_v5 = vadd.f32 %v606_v53, %v578_v52  ;;  %v699_v17 = vadd.f32 %v695_v61, %v687_v60  ;;  %v611_v18 = vadd.f32 %v607_v63, %v579_v62  ;;  %v538_v63 = vld [vmem:[%s6975_s22 + $0x8] sm:$0x3] }
  0xc1   : > { %v824_v0 = vmul.f32 %v7034_v32, %v7075_v55  ;;  %v832_v1 = vmul.f32 %v7040_v34, %v7073_v54  ;;  %v756_v2 = vmul.f32 %v7037_v33, %v7075_v55  ;;  %v764_v3 = vmul.f32 %v7043_v35, %v7073_v54 }
  0xc2   : > { %v688_v6 = vmul.f32 %v685_v36, %v7075_v55  ;;  %v696_v7 = vmul.f32 %v693_v37, %v7073_v54  ;;  %v580_v10 = vmul.f32 %v7075_v55, %v557_v38  ;;  %v608_v12 = vmul.f32 %v7073_v54, %v585_v39 }
  0xc3   : > { %v7105_v13 = vadd.f32 %v832_v1, %v824_v0  ;;  %v7107_v14 = vadd.f32 %v764_v3, %v756_v2  ;;  %v7127_v60 = vrot.slane %v539_v45, %v7020_v24  ;;  %v7138_v2 = vrot.slane %v538_v63, %v7023_v25 }
  0xc4   : > { %v7099_v8 = vpop.permute.xlu1 %575  ;;  %v7101_v9 = vpop.permute.xlu0 %616  ;;  %v700_v26 = vadd.f32 %v696_v7, %v688_v6  ;;  %v612_v27 = vadd.f32 %v608_v12, %v580_v10  ;;  %v7143_v6 = vrot.slane %v538_v63, %v7020_v24 }
  0xc5   : > { %v702_v15 = vadd.f32 %v698_v4, %v7101_v9  ;;  %v634_v16 = vadd.f32 %v7101_v9, %v610_v5  ;;  %v689_v30 = vmul.f32 %v685_v36, %v7099_v8  ;;  %v581_v47 = vmul.f32 %v7099_v8, %v557_v38 }
  0xc7   : > { %vm706_vm0 = vcmp.ge.f32.partialorder %v702_v15, 0.0  ;;  %v710_v19 = vmul.f32 0.01, %v702_v15  ;;  %vm638_vm1 = vcmp.ge.f32.partialorder %v634_v16, 0.0  ;;  %v642_v20 = vmul.f32 0.01, %v634_v16 }
  0xc8   : > { %v7111_v21 = vpop.permute.xlu1 %621  ;;  %v7113_v22 = vpop.permute.xlu0 %603 }
  0xc9   : > { %v714_v31 = vsel %vm706_vm0, %v702_v15, %v710_v19  ;;  %v646_v42 = vsel %vm638_vm1, %v634_v16, %v642_v20  ;;  %v703_v43 = vadd.f32 %v699_v17, %v7111_v21  ;;  %v635_v44 = vadd.f32 %v7111_v21, %v611_v18  ;;  %v6762_v16 = vld [vmem:[%s11671_s3] sm:$0xff]   ;;  %v6763_v18 = vld [vmem:[%s11671_s3 + $0x8] sm:$0xff]  }
  0xca   : > { %718 = vxpose.xlu1.b32.start [1/4] (short) %v714_v31, 128  ;;  %650 = vxpose.xlu0.b32.start [1/4] (short) %v646_v42, 128  ;;  %v697_v46 = vmul.f32 %v693_v37, %v7113_v22  ;;  %v609_v48 = vmul.f32 %v7113_v22, %v585_v39  ;;  %v7130_v37 = vrot.slane %v539_v45, %v7023_v25 }
  0xcb   : > { %vm707_vm2 = vcmp.ge.f32.partialorder %v703_v43, 0.0  ;;  %v711_v49 = vmul.f32 0.01, %v703_v43  ;;  %vm639_vm3 = vcmp.ge.f32.partialorder %v635_v44, 0.0  ;;  %v643_v36 = vmul.f32 0.01, %v635_v44  ;;  %6269 = vmatprep.subr.bf16.mxu0 %v6762_v16 }
  0xcc   : > { %v7122_v50 = vpop.permute.xlu1 %631  ;;  %v7124_v51 = vpop.permute.xlu0 %626  ;;  %v701_v52 = vadd.f32 %v697_v46, %v689_v30  ;;  %v613_v53 = vadd.f32 %v609_v48, %v581_v47  ;;  %v966_v5 = vmul.f32 %v7130_v37, %v7051_v41  ;;  %v958_v17 = vmul.f32 %v7127_v60, %v7029_v29  ;;  %6270 = vmatpush3.bf16.msra.mxu0 %v6762_v16 }
  0xcd   : > { %v715_v38 = vsel %vm707_vm2, %v703_v43, %v711_v49  ;;  %v647_v61 = vsel %vm639_vm3, %v635_v44, %v643_v36  ;;  %v704_v39 = vadd.f32 %v700_v26, %v7124_v51  ;;  %v636_v62 = vadd.f32 %v7124_v51, %v612_v27  ;;  %6271 = vmatprep.subr.bf16.mxu0 %v6763_v18  ;;  %v541_v49 = vld [vmem:[%s6975_s22 + $0xe] sm:$0x3]  ;;  %v540_v36 = vld [vmem:[%s6975_s22 + $0xc] sm:$0x3] }
  0xce   : > { %719 = vxpose.xlu1.b32.cont [2/4] (short) %v715_v38, 128  ;;  %651 = vxpose.xlu0.b32.cont [2/4] (short) %v647_v61, 128  ;;  %v705_v0 = vadd.f32 %v701_v52, %v7122_v50  ;;  %v637_v1 = vadd.f32 %v7122_v50, %v613_v53  ;;  %v898_v19 = vmul.f32 %v7138_v2, %v7051_v41 }
  0xcf   : > { %vm708_vm4 = vcmp.ge.f32.partialorder %v704_v39, 0.0  ;;  %v712_v3 = vmul.f32 0.01, %v704_v39  ;;  %vm640_vm5 = vcmp.ge.f32.partialorder %v636_v62, 0.0  ;;  %v644_v4 = vmul.f32 0.01, %v636_v62 }
  0xd0   : > { %v713_v12 = vmul.f32 0.01, %v705_v0  ;;  %v645_v15 = vmul.f32 0.01, %v637_v1  ;;  %vm709_vm6 = vcmp.ge.f32.partialorder %v705_v0, 0.0  ;;  %vm641_vm7 = vcmp.ge.f32.partialorder %v637_v1, 0.0  ;;  %6272 = vmatpush3.bf16.msra.mxu0 %v6763_v18 }
  0xd1   : > { %v716_v7 = vsel %vm708_vm4, %v704_v39, %v712_v3  ;;  %v648_v10 = vsel %vm640_vm5, %v636_v62, %v644_v4  ;;  %v967_v20 = vmul.f32 %v7130_v37, %v7049_v40  ;;  %v970_v26 = vadd.f32 %v966_v5, %v958_v17 }
  0xd2   : > { %720 = vxpose.xlu1.b32.cont [3/4] (short) %v716_v7, 128  ;;  %652 = vxpose.xlu0.b32.cont [3/4] (short) %v648_v10, 128  ;;  %v899_v27 = vmul.f32 %v7138_v2, %v7049_v40  ;;  %v717_v30 = vsel %vm709_vm6, %v705_v0, %v713_v12  ;;  %v649_v31 = vsel %vm641_vm7, %v637_v1, %v645_v15 }
  0xd3   : > { %v890_v42 = vmul.f32 %v7143_v6, %v7029_v29  ;;  %v959_v43 = vmul.f32 %v7127_v60, %v7027_v28  ;;  %v7164_v44 = vadd.f32 %v970_v26, %v7101_v9  ;;  %v891_v45 = vmul.f32 %v7143_v6, %v7027_v28 }
  0xd4   : > { %v7178_v53 = vrot.slane %v541_v49, %v7020_v24  ;;  %v7181_v38 = vrot.slane %v540_v36, %v7020_v24  ;;  %v7184_v61 = vrot.slane %v541_v49, %v7023_v25  ;;  %v7187_v39 = vrot.slane %v540_v36, %v7023_v25 }
  0xd5   : > { %v902_v46 = vadd.f32 %v898_v19, %v890_v42  ;;  %v7168_v47 = vadd.f32 %v967_v20, %v959_v43  ;;  %v7170_v48 = vadd.f32 %v899_v27, %v891_v45  ;;  %v960_v62 = vmul.f32 %v7127_v60, %v7075_v55 }
  0xd6   : > { %721 = vxpose.xlu1.b32.end [4/4] (short) %v717_v30, 128  ;;  %653 = vxpose.xlu0.b32.end [4/4] (short) %v649_v31, 128  ;;  %v968_v63 = vmul.f32 %v7130_v37, %v7073_v54  ;;  %v892_v0 = vmul.f32 %v7143_v6, %v7075_v55  ;;  %v900_v1 = vmul.f32 %v7138_v2, %v7073_v54  ;;  %vm978_vm0 = vcmp.ge.f32.partialorder %v7164_v44, 0.0 }
  0xd7   : > { %v7175_v52 = vadd.f32 %v902_v46, %v7101_v9  ;;  %v1094_v4 = vmul.f32 %v7178_v53, %v7029_v29  ;;  %v1026_v5 = vmul.f32 %v7181_v38, %v7029_v29  ;;  %v1095_v7 = vmul.f32 %v7178_v53, %v7027_v28 }
  0xd8   : > { %v7197_v3 = vadd.f32 %v968_v63, %v960_v62  ;;  %v7205_v10 = vadd.f32 %v900_v1, %v892_v0  ;;  %v1102_v12 = vmul.f32 %v7184_v61, %v7051_v41  ;;  %v1034_v15 = vmul.f32 %v7187_v39, %v7051_v41 }
  0xd9   : > { %v1103_v16 = vmul.f32 %v7184_v61, %v7049_v40  ;;  %v1035_v26 = vmul.f32 %v7187_v39, %v7049_v40  ;;  %v1027_v27 = vmul.f32 %v7181_v38, %v7027_v28  ;;  %v1096_v30 = vmul.f32 %v7178_v53, %v7075_v55 }
  0xda   : > { %v1106_v17 = vadd.f32 %v1102_v12, %v1094_v4  ;;  %v1038_v18 = vadd.f32 %v1034_v15, %v1026_v5  ;;  %v1104_v31 = vmul.f32 %v7184_v61, %v7073_v54  ;;  %v1028_v42 = vmul.f32 %v7181_v38, %v7075_v55 }
  0xdb   : > { %v7213_v19 = vadd.f32 %v1103_v16, %v1095_v7  ;;  %v7225_v41 = vadd.f32 %v1035_v26, %v1027_v27  ;;  %v1036_v43 = vmul.f32 %v7187_v39, %v7073_v54  ;;  %v838_v28 = vadd.f32 %v7077_v56, %v7101_v9 }
  0xdc   : > { %v7216_v29 = vadd.f32 %v1106_v17, %v7101_v9  ;;  %v7219_v20 = vadd.f32 %v1038_v18, %v7101_v9  ;;  %v7235_v45 = vadd.f32 %v1104_v31, %v1096_v30  ;;  %v770_v46 = vadd.f32 %v7079_v57, %v7101_v9 }
  0xdd   : > { %v7237_v40 = vadd.f32 %v1036_v43, %v1028_v42  ;;  %v846_v49 = vmul.f32 0.01, %v838_v28  ;;  %vm842_vm8 = vcmp.ge.f32.partialorder %v838_v28, 0.0  ;;  %v839_v62 = vadd.f32 %v7081_v58, %v7111_v21 }
  0xde   : > { %v778_v36 = vmul.f32 0.01, %v770_v46  ;;  %vm774_vm9 = vcmp.ge.f32.partialorder %v770_v46, 0.0  ;;  %v771_v54 = vadd.f32 %v7083_v59, %v7111_v21  ;;  %v833_v55 = vmul.f32 %v7040_v34, %v7113_v22 }
  0xdf   : > { %v765_v63 = vmul.f32 %v7043_v35, %v7113_v22  ;;  %v850_v56 = vsel %vm842_vm8, %v838_v28, %v846_v49  ;;  %v825_v57 = vmul.f32 %v7034_v32, %v7099_v8  ;;  %v757_v9 = vmul.f32 %v7037_v33, %v7099_v8 }
  0xe0   : > { %v782_v0 = vsel %vm774_vm9, %v770_v46, %v778_v36  ;;  %vm843_vm10 = vcmp.ge.f32.partialorder %v839_v62, 0.0  ;;  %v847_v58 = vmul.f32 0.01, %v839_v62  ;;  %v840_v1 = vadd.f32 %v7105_v13, %v7124_v51 }
  0xe1   : > { %v779_v59 = vmul.f32 0.01, %v771_v54  ;;  %v772_v34 = vadd.f32 %v7107_v14, %v7124_v51  ;;  %v837_v4 = vadd.f32 %v833_v55, %v825_v57  ;;  %v769_v5 = vadd.f32 %v765_v63, %v757_v9 }
  0xe2   : > { %vm775_vm11 = vcmp.ge.f32.partialorder %v771_v54, 0.0  ;;  %v851_v35 = vsel %vm843_vm10, %v839_v62, %v847_v58  ;;  %v848_v32 = vmul.f32 0.01, %v840_v1  ;;  %vm844_vm12 = vcmp.ge.f32.partialorder %v840_v1, 0.0 }
  0xe3   : > { %v783_v7 = vsel %vm775_vm11, %v771_v54, %v779_v59  ;;  %v780_v12 = vmul.f32 0.01, %v772_v34  ;;  %v841_v33 = vadd.f32 %v837_v4, %v7122_v50  ;;  %v773_v15 = vadd.f32 %v769_v5, %v7122_v50 }
  0xe4   : > { %vm776_vm13 = vcmp.ge.f32.partialorder %v772_v34, 0.0  ;;  %v852_v13 = vsel %vm844_vm12, %v840_v1, %v848_v32  ;;  %v982_v27 = vmul.f32 0.01, %v7164_v44  ;;  %v975_v30 = vadd.f32 %v7168_v47, %v7111_v21 }
  0xe5   : > { %v784_v16 = vsel %vm776_vm13, %v772_v34, %v780_v12  ;;  %v849_v14 = vmul.f32 0.01, %v841_v33  ;;  %v781_v17 = vmul.f32 0.01, %v773_v15  ;;  %vm845_vm14 = vcmp.ge.f32.partialorder %v841_v33, 0.0 }
  0xe6   : > { %vm777_vm15 = vcmp.ge.f32.partialorder %v773_v15, 0.0  ;;  %v914_v31 = vmul.f32 0.01, %v7175_v52  ;;  %v907_v42 = vadd.f32 %v7170_v48, %v7111_v21  ;;  %vm910_vm1 = vcmp.ge.f32.partialorder %v7175_v52, 0.0 }
  0xe7   : > { %v853_v18 = vsel %vm845_vm14, %v841_v33, %v849_v14  ;;  %v785_v26 = vsel %vm777_vm15, %v773_v15, %v781_v17  ;;  %v969_v43 = vmul.f32 %v7130_v37, %v7113_v22  ;;  %v901_v28 = vmul.f32 %v7138_v2, %v7113_v22 }
  0xe8   : > { %v986_v46 = vsel %vm978_vm0, %v7164_v44, %v982_v27  ;;  %vm979_vm2 = vcmp.ge.f32.partialorder %v975_v30, 0.0  ;;  %v961_v47 = vmul.f32 %v7127_v60, %v7099_v8  ;;  %v893_v49 = vmul.f32 %v7143_v6, %v7099_v8 }
  0xe9   : > { %v918_v36 = vsel %vm910_vm1, %v7175_v52, %v914_v31  ;;  %v983_v48 = vmul.f32 0.01, %v975_v30  ;;  %vm911_vm3 = vcmp.ge.f32.partialorder %v907_v42, 0.0  ;;  %v915_v62 = vmul.f32 0.01, %v907_v42 }
  0xea   : > { %v976_v37 = vadd.f32 %v7197_v3, %v7124_v51  ;;  %v908_v2 = vadd.f32 %v7205_v10, %v7124_v51  ;;  %v973_v54 = vadd.f32 %v969_v43, %v961_v47  ;;  %v905_v44 = vadd.f32 %v901_v28, %v893_v49 }
  0xeb   : > { %v987_v55 = vsel %vm979_vm2, %v975_v30, %v983_v48  ;;  %v919_v60 = vsel %vm911_vm3, %v907_v42, %v915_v62  ;;  %vm1245_vm8 = vcmask 261120   ;;  %vm1114_vm9 = vcmp.ge.f32.partialorder %v7216_v29, 0.0 }
  0xec   : > { %v984_v63 = vmul.f32 0.01, %v976_v37  ;;  %v977_v6 = vadd.f32 %v973_v54, %v7122_v50  ;;  %v909_v52 = vadd.f32 %v905_v44, %v7122_v50  ;;  %vm980_vm4 = vcmp.ge.f32.partialorder %v976_v37, 0.0 }
  0xed   : > { %vm912_vm5 = vcmp.ge.f32.partialorder %v908_v2, 0.0  ;;  %v1118_v44 = vmul.f32 0.01, %v7216_v29  ;;  %vm1046_vm10 = vcmp.ge.f32.partialorder %v7219_v20, 0.0 }
  0xee   : > { %v988_v10 = vsel %vm980_vm4, %v976_v37, %v984_v63  ;;  %v917_v58 = vmul.f32 0.01, %v909_v52  ;;  %vm981_vm6 = vcmp.ge.f32.partialorder %v977_v6, 0.0  ;;  %vm913_vm7 = vcmp.ge.f32.partialorder %v909_v52, 0.0 }
  0xef   : > { %v1043_v63 = vadd.f32 %v7225_v41, %v7111_v21 }
  0xf0   : > { %v921_v5 = vsel %vm913_vm7, %v909_v52, %v917_v58 }
  0xf1   : > { %vm1047_vm12 = vcmp.ge.f32.partialorder %v1043_v63, 0.0 }
 0x107   : > { %854 = vxpose.xlu1.b32.start [1/4] (short) %v850_v56, 128  ;;  %786 = vxpose.xlu0.b32.start [1/4] (short) %v782_v0, 128  ;;  %v916_v56 = vmul.f32 0.01, %v908_v2  ;;  %v985_v0 = vmul.f32 0.01, %v977_v6 }
 0x109   : > { %v920_v9 = vsel %vm912_vm5, %v908_v2, %v916_v56  ;;  %v989_v4 = vsel %vm981_vm6, %v977_v6, %v985_v0  ;;  %v1105_v56 = vmul.f32 %v7184_v61, %v7113_v22  ;;  %v1037_v6 = vmul.f32 %v7187_v39, %v7113_v22 }
 0x10a   : > { %v1051_v61 = vmul.f32 0.01, %v1043_v63  ;;  %v1112_v22 = vadd.f32 %v7235_v45, %v7124_v51  ;;  %v1044_v39 = vadd.f32 %v7237_v40, %v7124_v51 }
 0x10b   : > { %855 = vxpose.xlu1.b32.cont [2/4] (short) %v851_v35, 128  ;;  %787 = vxpose.xlu0.b32.cont [2/4] (short) %v783_v7, 128 }
 0x10c   : > { %vm1116_vm13 = vcmp.ge.f32.partialorder %v1112_v22, 0.0  ;;  %vm1048_vm14 = vcmp.ge.f32.partialorder %v1044_v39, 0.0 }
 0x10f   : > { %856 = vxpose.xlu1.b32.cont [3/4] (short) %v852_v13, 128  ;;  %788 = vxpose.xlu0.b32.cont [3/4] (short) %v784_v16, 128 }
 0x113   : > { %857 = vxpose.xlu1.b32.end [4/4] (short) %v853_v18, 128  ;;  %789 = vxpose.xlu0.b32.end [4/4] (short) %v785_v26, 128 }
 0x144   : > { %990 = vxpose.xlu1.b32.start [1/4] (short) %v986_v46, 128  ;;  %922 = vxpose.xlu0.b32.start [1/4] (short) %v918_v36, 128 }
 0x148   : > { %991 = vxpose.xlu1.b32.cont [2/4] (short) %v987_v55, 128  ;;  %923 = vxpose.xlu0.b32.cont [2/4] (short) %v919_v60, 128  ;;  %v1050_v55 = vmul.f32 0.01, %v7219_v20  ;;  %v1111_v60 = vadd.f32 %v7213_v19, %v7111_v21  ;;  %v1097_v19 = vmul.f32 %v7178_v53, %v7099_v8  ;;  %v1029_v21 = vmul.f32 %v7181_v38, %v7099_v8 }
 0x149   : > { %v1055_v38 = vsel %vm1047_vm12, %v1043_v63, %v1051_v61 }
 0x14a   : > { %v7285_v3 = vpop.trf.xlu1  ;;  %v666_v57 = vpop.trf.xlu0  ;;  %v1054_v0 = vsel %vm1046_vm10, %v7219_v20, %v1050_v55  ;;  %vm1115_vm11 = vcmp.ge.f32.partialorder %v1111_v60, 0.0  ;;  %v1119_v41 = vmul.f32 0.01, %v1111_v60  ;;  %v1041_v20 = vadd.f32 %v1037_v6, %v1029_v21 }
 0x14c   : > { %992 = vxpose.xlu1.b32.cont [3/4] (short) %v988_v10, 128  ;;  %924 = vxpose.xlu0.b32.cont [3/4] (short) %v920_v9, 128  ;;  %v1122_v10 = vsel %vm1114_vm9, %v7216_v29, %v1118_v44  ;;  %v1109_v29 = vadd.f32 %v1105_v56, %v1097_v19  ;;  %v1123_v8 = vsel %vm1115_vm11, %v1111_v60, %v1119_v41 }
 0x14e   : > { %v7287_v1 = vpop.trf.xlu1  ;;  %v667_v59 = vpop.trf.xlu0  ;;  %v1113_v45 = vadd.f32 %v1109_v29, %v7122_v50 }
 0x14f   : > { %v1158_v34 = vpack.c.bf16 %v667_v59, %v666_v57  ;;  %v1120_v59 = vmul.f32 0.01, %v1112_v22 }
 0x150   : > { %993 = vxpose.xlu1.b32.end [4/4] (short) %v989_v4, 128  ;;  %925 = vxpose.xlu0.b32.end [4/4] (short) %v921_v5, 128  ;;  %v1045_v4 = vadd.f32 %v1041_v20, %v7122_v50  ;;  %vm1117_vm15 = vcmp.ge.f32.partialorder %v1113_v45, 0.0 }
 0x151   : > { %6273 = vmatprep.mubr.msk.bf16.mxu0 %vm1245_vm8, %v1158_v34  ;;  %v1052_v34 = vmul.f32 0.01, %v1044_v39 }
 0x152   : > { %v7290_v35 = vpop.trf.xlu1  ;;  %v668_v32 = vpop.trf.xlu0  ;;  %vm1049_vm0 = vcmp.ge.f32.partialorder %v1045_v4, 0.0 }
 0x156   : > { %v7292_v7 = vpop.trf.xlu1  ;;  %v669_v12 = vpop.trf.xlu0 }
 0x157   : > { %v1159_v33 = vpack.c.bf16 %v669_v12, %v668_v32  ;;  %v1124_v32 = vsel %vm1116_vm13, %v1112_v22, %v1120_v59  ;;  %v1166_v12 = vpack.c.bf16 %v7287_v1, %v7285_v3  ;;  %v1167_v1 = vpack.c.bf16 %v7292_v7, %v7290_v35 }
 0x159   : > { %6274 = vmatmul.mubr.msk.bf16.vlgmr.msra.gmra.mrb[0].mxu0 %vm1245_vm8, %v1159_v33  ;;  %v1056_v33 = vsel %vm1048_vm14, %v1044_v39, %v1052_v34 }
 0x15a   : > { %v7295_v15 = vpop.trf.xlu1  ;;  %v670_v13 = vpop.trf.xlu0 }
 0x15e   : > { %v7297_v16 = vpop.trf.xlu1  ;;  %v671_v14 = vpop.trf.xlu0 }
 0x15f   : > { %v1160_v17 = vpack.c.bf16 %v671_v14, %v670_v13  ;;  %v1121_v13 = vmul.f32 0.01, %v1113_v45  ;;  %v1053_v14 = vmul.f32 0.01, %v1045_v4 }
 0x161   : > { %6277 = vmatprep.mubr.msk.bf16.mxu0 %vm1245_vm8, %v1160_v17 }
 0x162   : > { %v7300_v18 = vpop.trf.xlu1  ;;  %v672_v26 = vpop.trf.xlu0 }
 0x166   : > { %v7302_v27 = vpop.trf.xlu1  ;;  %v673_v30 = vpop.trf.xlu0 }
 0x167   : > { %v1161_v31 = vpack.c.bf16 %v673_v30, %v672_v26  ;;  %v1125_v26 = vsel %vm1117_vm15, %v1113_v45, %v1121_v13  ;;  %v1057_v30 = vsel %vm1049_vm0, %v1045_v4, %v1053_v14 }
 0x169   : > { %6278 = vmatmul.mubr.msk.bf16.gmra.mrb[4].mxu0 %vm1245_vm8, %v1161_v31 }
 0x16a   : > { %v7305_v42 = vpop.trf.xlu1  ;;  %v674_v43 = vpop.trf.xlu0 }
 0x16e   : > { %v7307_v28 = vpop.trf.xlu1  ;;  %v675_v46 = vpop.trf.xlu0 }
 0x16f   : > { %v1162_v47 = vpack.c.bf16 %v675_v46, %v674_v43  ;;  %v1168_v43 = vpack.c.bf16 %v7297_v16, %v7295_v15 }
 0x171   : > { %6281 = vmatprep.mubr.msk.bf16.mxu0 %vm1245_vm8, %v1162_v47 }
 0x172   : > { %v7310_v49 = vpop.trf.xlu1  ;;  %v676_v36 = vpop.trf.xlu0 }
 0x176   : > { %v7312_v48 = vpop.trf.xlu1  ;;  %v677_v62 = vpop.trf.xlu0 }
 0x177   : > { %v1163_v37 = vpack.c.bf16 %v677_v62, %v676_v36  ;;  %v1171_v44 = vpack.c.bf16 %v7312_v48, %v7310_v49 }
 0x179   : > { %6282 = vmatmul.mubr.msk.bf16.gmra.mrb[8].mxu0 %vm1245_vm8, %v1163_v37  ;;  %v1169_v37 = vpack.c.bf16 %v7302_v27, %v7300_v18 }
 0x17a   : > { %v7315_v2 = vpop.trf.xlu1  ;;  %v678_v54 = vpop.trf.xlu0 }
 0x17e   : > { %v7329_v52 = vpop.trf.xlu1  ;;  %v679_v57 = vpop.trf.xlu0 }
 0x17f   : > { %v1164_v9 = vpack.c.bf16 %v679_v57, %v678_v54  ;;  %v1170_v54 = vpack.c.bf16 %v7307_v28, %v7305_v42  ;;  %v1172_v55 = vpack.c.bf16 %v7329_v52, %v7315_v2 }
 0x181   : > { %6285 = vmatprep.mubr.msk.bf16.mxu0 %vm1245_vm8, %v1164_v9 }
 0x182   : > { %v7342_v58 = vpop.trf.xlu1  ;;  %1126 = vxpose.xlu1.b32.start [1/4] (short) %v1122_v10, 128  ;;  %v680_v53 = vpop.trf.xlu0  ;;  %1058 = vxpose.xlu0.b32.start [1/4] (short) %v1054_v0, 128 }
 0x186   : > { %1127 = vxpose.xlu1.b32.cont [2/4] (short) %v1123_v8, 128  ;;  %1059 = vxpose.xlu0.b32.cont [2/4] (short) %v1055_v38, 128  ;;  %v681_v5 = vpop.trf.xlu0  ;;  %v749_v51 = vpop.trf.xlu1 }
 0x187   : > { %v1165_v40 = vpack.c.bf16 %v681_v5, %v680_v53  ;;  %v1173_v60 = vpack.c.bf16 %v749_v51, %v7342_v58 }
 0x189   : > { %6286 = vmatmul.mubr.msk.bf16.gmra.mrb[12].mxu0 %vm1245_vm8, %v1165_v40 }
 0x18a   : > { %1128 = vxpose.xlu1.b32.cont [3/4] (short) %v1124_v32, 128  ;;  %1060 = vxpose.xlu0.b32.cont [3/4] (short) %v1056_v33, 128  ;;  %v802_v17 = vpop.trf.xlu0  ;;  %v7349_v50 = vpop.trf.xlu1 }
 0x18b   : > { %6289 = vmatprep.mubr.msk.bf16.mxu0 %vm1245_vm8, %v1166_v12 }
 0x18e   : > { %1129 = vxpose.xlu1.b32.end [4/4] (short) %v1125_v26, 128  ;;  %1061 = vxpose.xlu0.b32.end [4/4] (short) %v1057_v30, 128  ;;  %v803_v31 = vpop.trf.xlu0  ;;  %v871_v3 = vpop.trf.xlu1 }
 0x18f   : > { %v1174_v63 = vpack.c.bf16 %v803_v31, %v802_v17  ;;  %v1182_v8 = vpack.c.bf16 %v871_v3, %v7349_v50 }
 0x191   : > { %6290 = vmatmul.mubr.msk.bf16.gmra.mrb[16].mxu0 %vm1245_vm8, %v1167_v1 }
 0x192   : > { %6293 = vmatprep.mubr.msk.bf16.mxu0 %vm1245_vm8, %v1168_v43  ;;  %v804_v46 = vpop.trf.xlu0  ;;  %v872_v47 = vpop.trf.xlu1 }
 0x196   : > { %v805_v36 = vpop.trf.xlu0  ;;  %v873_v62 = vpop.trf.xlu1 }
 0x197   : > { %v1175_v52 = vpack.c.bf16 %v805_v36, %v804_v46  ;;  %v1183_v5 = vpack.c.bf16 %v873_v62, %v872_v47  ;;  %v6764_v62 = vld [vmem:[%s11673_s5] ss:$8 sps:$4 sm:$0xff]  }
 0x199   : > { %6294 = vmatmul.mubr.msk.bf16.gmra.mrb[20].mxu0 %vm1245_vm8, %v1169_v37  ;;  %v6766_v37 = vld [vmem:[%s11673_s5 + $0x4] ss:$8 sps:$4 sm:$0xff]  }
 0x19a   : > { %6297 = vmatprep.mubr.msk.bf16.mxu0 %vm1245_vm8, %v1170_v54  ;;  %v806_v35 = vpop.trf.xlu0  ;;  %v874_v7 = vpop.trf.xlu1  ;;  %2684 = vmatprep.subr.bf16.mxu0 %v6766_v37 }
 0x19b   : > { %6689 = vmatprep.subr.bf16.mxu1 %v6766_v37  ;;  %2685 = vmatpush1.bf16.msra.mxu0 %v6764_v62 }
 0x19c   : > { %6693 = vmatpush1.bf16.msra.mxu1 %v6764_v62 }
 0x19e   : > { %v807_v15 = vpop.trf.xlu0  ;;  %v875_v16 = vpop.trf.xlu1 }
 0x19f   : > { %v1176_v48 = vpack.c.bf16 %v807_v15, %v806_v35  ;;  %v1184_v51 = vpack.c.bf16 %v875_v16, %v874_v7 }
 0x1a1   : > { %6298 = vmatmul.mubr.msk.bf16.gmra.mrb[24].mxu0 %vm1245_vm8, %v1171_v44  ;;  %v6767_v44 = vld [vmem:[%s11673_s5 + $0x10] ss:$8 sps:$4 sm:$0xff]  }
 0x1a2   : > { %6301 = vmatprep.mubr.msk.bf16.mxu0 %vm1245_vm8, %v1172_v55  ;;  %v808_v18 = vpop.trf.xlu0  ;;  %v876_v27 = vpop.trf.xlu1  ;;  %v6769_v55 = vld [vmem:[%s11673_s5 + $0x14] ss:$8 sps:$4 sm:$0xff]  }
 0x1a3   : > { %2686 = vmatprep.subr.bf16.mxu0 %v6769_v55  ;;  %6690 = vmatprep.subr.bf16.mxu1 %v6769_v55 }
 0x1a4   : > { %2687 = vmatpush1.bf16.msra.mxu0 %v6767_v44  ;;  %6694 = vmatpush1.bf16.msra.mxu1 %v6767_v44 }
 0x1a6   : > { %v809_v42 = vpop.trf.xlu0  ;;  %v877_v28 = vpop.trf.xlu1 }
 0x1a7   : > { %v1177_v9 = vpack.c.bf16 %v809_v42, %v808_v18  ;;  %v1185_v13 = vpack.c.bf16 %v877_v28, %v876_v27  ;;  %v6772_v27 = vld [vmem:[%s11673_s5 + $0x24] ss:$8 sps:$4 sm:$0xff]  }
 0x1a8   : > { %2688 = vmatprep.subr.bf16.mxu0 %v6772_v27  ;;  %6691 = vmatprep.subr.bf16.mxu1 %v6772_v27 }
 0x1a9   : > { %6302 = vmatmul.mubr.msk.bf16.gmra.mrb[28].mxu0 %vm1245_vm8, %v1173_v60 }
 0x1aa   : > { %6305 = vmatprep.mubr.msk.bf16.mxu0 %vm1245_vm8, %v1174_v63  ;;  %v810_v56 = vpop.trf.xlu0  ;;  %v878_v49 = vpop.trf.xlu1  ;;  %v6770_v63 = vld [vmem:[%s11673_s5 + $0x20] ss:$8 sps:$4 sm:$0xff]  }
 0x1ab   : > { %6695 = vmatpush1.bf16.msra.mxu1 %v6770_v63  ;;  %2689 = vmatpush1.bf16.msra.mxu0 %v6770_v63 }
 0x1ae   : > { %v811_v6 = vpop.trf.xlu0  ;;  %v879_v2 = vpop.trf.xlu1 }
 0x1af   : > { %v1178_v0 = vpack.c.bf16 %v811_v6, %v810_v56  ;;  %v1186_v14 = vpack.c.bf16 %v879_v2, %v878_v49  ;;  %v6775_v6 = vld [vmem:[%s11673_s5 + $0x34] ss:$8 sps:$4 sm:$0xff]  }
 0x1b0   : > { %2690 = vmatprep.subr.bf16.mxu0 %v6775_v6  ;;  %6692 = vmatprep.subr.bf16.mxu1 %v6775_v6 }
 0x1b1   : > { %6306 = vmatmul.mubr.msk.bf16.gmra.mrb[32].mxu0 %vm1245_vm8, %v1175_v52 }
 0x1b2   : > { %v812_v57 = vpop.trf.xlu0  ;;  %6309 = vmatprep.mubr.msk.bf16.mxu0 %vm1245_vm8, %v1176_v48  ;;  %v880_v10 = vpop.trf.xlu1  ;;  %v6773_v48 = vld [vmem:[%s11673_s5 + $0x30] ss:$8 sps:$4 sm:$0xff]  }
 0x1b3   : > { %6696 = vmatpush1.bf16.msra.mxu1 %v6773_v48  ;;  %2691 = vmatpush1.bf16.msra.mxu0 %v6773_v48 }
 0x1b6   : > { %v813_v19 = vpop.trf.xlu0  ;;  %v881_v21 = vpop.trf.xlu1 }
 0x1b7   : > { %v1179_v22 = vpack.c.bf16 %v813_v19, %v812_v57  ;;  %v1187_v31 = vpack.c.bf16 %v881_v21, %v880_v10 }
 0x1b9   : > { %6310 = vmatmul.mubr.msk.bf16.gmra.mrb[36].mxu0 %vm1245_vm8, %v1177_v9 }
 0x1ba   : > { %v814_v41 = vpop.trf.xlu0  ;;  %6313 = vmatprep.mubr.msk.bf16.mxu0 %vm1245_vm8, %v1178_v0  ;;  %v882_v61 = vpop.trf.xlu1 }
 0x1be   : > { %v815_v39 = vpop.trf.xlu0  ;;  %v883_v29 = vpop.trf.xlu1 }
 0x1bf   : > { %v1180_v20 = vpack.c.bf16 %v815_v39, %v814_v41  ;;  %v1188_v3 = vpack.c.bf16 %v883_v29, %v882_v61 }
 0x1c1   : > { %6314 = vmatmul.mubr.msk.bf16.gmra.mrb[40].mxu0 %vm1245_vm8, %v1179_v22 }
 0x1c2   : > { %v816_v58 = vpop.trf.xlu0  ;;  %6317 = vmatprep.mubr.msk.bf16.mxu0 %vm1245_vm8, %v1180_v20  ;;  %v884_v53 = vpop.trf.xlu1 }
 0x1c6   : > { %v817_v38 = vpop.trf.xlu0  ;;  %v885_v59 = vpop.trf.xlu1 }
 0x1c7   : > { %v1181_v34 = vpack.c.bf16 %v817_v38, %v816_v58  ;;  %v1189_v36 = vpack.c.bf16 %v885_v59, %v884_v53 }
 0x1c9   : > { %6318 = vmatmul.mubr.msk.bf16.gmra.mrb[44].mxu0 %vm1245_vm8, %v1181_v34 }
 0x1ca   : > { %v938_v45 = vpop.trf.xlu0  ;;  %6321 = vmatprep.mubr.msk.bf16.mxu0 %vm1245_vm8, %v1182_v8  ;;  %v7382_v4 = vpop.trf.xlu1 }
 0x1ce   : > { %v939_v40 = vpop.trf.xlu0  ;;  %v7384_v32 = vpop.trf.xlu1 }
 0x1cf   : > { %v1190_v54 = vpack.c.bf16 %v939_v40, %v938_v45  ;;  %v1198_v29 = vpack.c.bf16 %v7384_v32, %v7382_v4 }
 0x1d1   : > { %6322 = vmatmul.mubr.msk.bf16.gmra.mrb[48].mxu0 %vm1245_vm8, %v1183_v5 }
 0x1d2   : > { %v940_v12 = vpop.trf.xlu0  ;;  %6325 = vmatprep.mubr.msk.bf16.mxu0 %vm1245_vm8, %v1184_v51  ;;  %v7388_v33 = vpop.trf.xlu1 }
 0x1d6   : > { %v941_v17 = vpop.trf.xlu0  ;;  %v7390_v50 = vpop.trf.xlu1 }
 0x1d7   : > { %v1191_v18 = vpack.c.bf16 %v941_v17, %v940_v12  ;;  %v1199_v59 = vpack.c.bf16 %v7390_v50, %v7388_v33 }
 0x1d9   : > { %6326 = vmatmul.mubr.msk.bf16.gmra.mrb[52].mxu0 %vm1245_vm8, %v1185_v13 }
 0x1da   : > { %v942_v26 = vpop.trf.xlu0  ;;  %6329 = vmatprep.mubr.msk.bf16.mxu0 %vm1245_vm8, %v1186_v14  ;;  %v7394_v30 = vpop.trf.xlu1 }
 0x1de   : > { %v943_v1 = vpop.trf.xlu0  ;;  %v7396_v43 = vpop.trf.xlu1 }
 0x1df   : > { %v1192_v42 = vpack.c.bf16 %v943_v1, %v942_v26  ;;  %v1200_v34 = vpack.c.bf16 %v7396_v43, %v7394_v30 }
 0x1e1   : > { %6330 = vmatmul.mubr.msk.bf16.gmra.mrb[56].mxu0 %vm1245_vm8, %v1187_v31 }
 0x1e2   : > { %v944_v46 = vpop.trf.xlu0  ;;  %6333 = vmatprep.mubr.msk.bf16.mxu0 %vm1245_vm8, %v1188_v3  ;;  %v7400_v47 = vpop.trf.xlu1 }
 0x1e6   : > { %v945_v35 = vpop.trf.xlu0  ;;  %v7408_v7 = vpop.trf.xlu1 }
 0x1e7   : > { %v1193_v2 = vpack.c.bf16 %v945_v35, %v944_v46  ;;  %v1201_v40 = vpack.c.bf16 %v7408_v7, %v7400_v47  ;;  %v7471_v47 = vld [vmem:[%s11672_s4] ss:$0 sm:$0xff] }
 0x1e9   : > { %6334 = vmatmul.mubr.msk.bf16.gmra.mrb[60].mxu0 %vm1245_vm8, %v1189_v36 }
 0x1ea   : > { %v946_v15 = vpop.trf.xlu0  ;;  %6337 = vmatprep.mubr.msk.bf16.mxu0 %vm1245_vm8, %v1190_v54  ;;  %v7412_v16 = vpop.trf.xlu1 }
 0x1ee   : > { %v947_v28 = vpop.trf.xlu0  ;;  %v1015_v60 = vpop.trf.xlu1 }
 0x1ef   : > { %v1194_v52 = vpack.c.bf16 %v947_v28, %v946_v15  ;;  %v1202_v32 = vpack.c.bf16 %v1015_v60, %v7412_v16 }
 0x1f1   : > { %6338 = vmatmul.mubr.msk.bf16.gmra.mrb[64].mxu0 %vm1245_vm8, %v1191_v18 }
 0x1f2   : > { %v948_v56 = vpop.trf.xlu0  ;;  %6341 = vmatprep.mubr.msk.bf16.mxu0 %vm1245_vm8, %v1192_v42  ;;  %v1016_v49 = vpop.trf.xlu1 }
 0x1f6   : > { %v949_v57 = vpop.trf.xlu0  ;;  %v1017_v10 = vpop.trf.xlu1 }
 0x1f7   : > { %v1195_v19 = vpack.c.bf16 %v949_v57, %v948_v56  ;;  %v1203_v14 = vpack.c.bf16 %v1017_v10, %v1016_v49 }
 0x1f9   : > { %6342 = vmatmul.mubr.msk.bf16.gmra.mrb[68].mxu0 %vm1245_vm8, %v1193_v2 }
 0x1fa   : > { %v950_v9 = vpop.trf.xlu0  ;;  %6345 = vmatprep.mubr.msk.bf16.mxu0 %vm1245_vm8, %v1194_v52  ;;  %v1018_v0 = vpop.trf.xlu1 }
 0x1fe   : > { %v951_v21 = vpop.trf.xlu0  ;;  %v1019_v41 = vpop.trf.xlu1 }
 0x1ff   : > { %v1196_v61 = vpack.c.bf16 %v951_v21, %v950_v9  ;;  %v1204_v17 = vpack.c.bf16 %v1019_v41, %v1018_v0 }
 0x201   : > { %6346 = vmatmul.mubr.msk.bf16.gmra.mrb[72].mxu0 %vm1245_vm8, %v1195_v19 }
 0x202   : > { %v952_v22 = vpop.trf.xlu0  ;;  %6349 = vmatprep.mubr.msk.bf16.mxu0 %vm1245_vm8, %v1196_v61  ;;  %v1020_v39 = vpop.trf.xlu1 }
 0x206   : > { %v953_v20 = vpop.trf.xlu0  ;;  %v1021_v58 = vpop.trf.xlu1 }
 0x207   : > { %v1197_v53 = vpack.c.bf16 %v953_v20, %v952_v22  ;;  %v1205_v31 = vpack.c.bf16 %v1021_v58, %v1020_v39 }
 0x209   : > { %6350 = vmatmul.mubr.msk.bf16.gmra.mrb[76].mxu0 %vm1245_vm8, %v1197_v53 }
 0x20a   : > { %v1074_v8 = vpop.trf.xlu0  ;;  %6353 = vmatprep.mubr.msk.bf16.mxu0 %vm1245_vm8, %v1198_v29  ;;  %v7442_v38 = vpop.trf.xlu1 }
 0x20e   : > { %v1075_v45 = vpop.trf.xlu0  ;;  %v7448_v5 = vpop.trf.xlu1 }
 0x20f   : > { %v1206_v1 = vpack.c.bf16 %v1075_v45, %v1074_v8 }
 0x211   : > { %6354 = vmatmul.mubr.msk.bf16.gmra.mrb[80].mxu0 %vm1245_vm8, %v1199_v59 }
 0x212   : > { %v1076_v4 = vpop.trf.xlu0  ;;  %6357 = vmatprep.mubr.msk.bf16.mxu0 %vm1245_vm8, %v1200_v34  ;;  %v7452_v51 = vpop.trf.xlu1 }
 0x216   : > { %v1077_v12 = vpop.trf.xlu0  ;;  %v7458_v33 = vpop.trf.xlu1 }
 0x217   : > { %v1207_v37 = vpack.c.bf16 %v1077_v12, %v1076_v4 }
 0x219   : > { %6358 = vmatmul.mubr.msk.bf16.gmra.mrb[84].mxu0 %vm1245_vm8, %v1201_v40 }
 0x21a   : > { %v1078_v13 = vpop.trf.xlu0  ;;  %6361 = vmatprep.mubr.msk.bf16.mxu0 %vm1245_vm8, %v1202_v32  ;;  %v7461_v26 = vpop.trf.xlu1 }
 0x21e   : > { %v1079_v50 = vpop.trf.xlu0  ;;  %v7465_v3 = vpop.trf.xlu1 }
 0x21f   : > { %v1208_v7 = vpack.c.bf16 %v1079_v50, %v1078_v13 }
 0x221   : > { %6362 = vmatmul.mubr.msk.bf16.gmra.mrb[88].mxu0 %vm1245_vm8, %v1203_v14 }
 0x222   : > { %v1080_v30 = vpop.trf.xlu0  ;;  %6365 = vmatprep.mubr.msk.bf16.mxu0 %vm1245_vm8, %v1204_v17  ;;  %v7474_v36 = vpop.trf.xlu1 }
 0x226   : > { %v1081_v43 = vpop.trf.xlu0  ;;  %v7481_v63 = vpop.trf.xlu1 }
 0x227   : > { %v1209_v10 = vpack.c.bf16 %v1081_v43, %v1080_v30 }
 0x229   : > { %6366 = vmatmul.mubr.msk.bf16.gmra.mrb[92].mxu0 %vm1245_vm8, %v1205_v31 }
 0x22a   : > { %v1082_v46 = vpop.trf.xlu0  ;;  %6369 = vmatprep.mubr.msk.bf16.mxu0 %vm1245_vm8, %v1206_v1  ;;  %v7496_v21 = vpop.trf.xlu1 }
 0x22c   : > { %v6275_v62 = vpop.f32.mrb[0].mxu0 }
 0x22d   : > { %v1481_v54 = vadd.f32 %v6275_v62, %v7471_v47  ;;  %v1472_v35 = vpop.f32.mrb[1].mxu0  ;;  %v1214_v62 = vpack.c.bf16 %v7448_v5, %v7442_v38 }
 0x22e   : > { %v1473_v15 = vadd.f32 %v7471_v47, %v1472_v35  ;;  %v6276_v16 = vpop.f32.mrb[2].mxu0  ;;  %v1083_v44 = vpop.trf.xlu0 }
 0x22f   : > { %v2113_v55 = vmul.f32 0.01, %v1481_v54  ;;  %v1484_v18 = vadd.f32 %v6276_v16, %v7471_v47  ;;  %v1475_v27 = vpop.f32.mrb[3].mxu0  ;;  %vm1985_vm1 = vcmp.ge.f32.partialorder %v1481_v54, 0.0  ;;  %v1210_v0 = vpack.c.bf16 %v1083_v44, %v1082_v46  ;;  %v7501_v20 = vpop.trf.xlu1 }
 0x230   : > { %v2111_v42 = vmul.f32 0.01, %v1473_v15  ;;  %v1476_v28 = vadd.f32 %v7471_v47, %v1475_v27  ;;  %vm1983_vm2 = vcmp.ge.f32.partialorder %v1473_v15, 0.0 }
 0x231   : > { %vm1986_vm3 = vcmp.ge.f32.partialorder %v1484_v18, 0.0  ;;  %v2114_v60 = vmul.f32 0.01, %v1484_v18  ;;  %6370 = vmatmul.mubr.msk.bf16.gmra.mrb[96].mxu0 %vm1245_vm8, %v1207_v37  ;;  %v7484_v48 = vsel %vm1985_vm1, %v1481_v54, %v2113_v55  ;;  %v1216_v55 = vpack.c.bf16 %v7465_v3, %v7461_v26 }
 0x232   : > { %vm1984_vm4 = vcmp.ge.f32.partialorder %v1476_v28, 0.0  ;;  %v2112_v56 = vmul.f32 0.01, %v1476_v28  ;;  %v1084_v49 = vpop.trf.xlu0  ;;  %6373 = vmatprep.mubr.msk.bf16.mxu0 %vm1245_vm8, %v1208_v7  ;;  %v7488_v2 = vsel %vm1983_vm2, %v1473_v15, %v2111_v42  ;;  %v1215_v15 = vpack.c.bf16 %v7458_v33, %v7452_v51 }
 0x233   : > { %v7486_v6 = vsel %vm1986_vm3, %v1484_v18, %v2114_v60  ;;  %v1152_v43 = vpop.trf.xlu1 }
 0x234   : > { %v2368_v52 = vpack.c.bf16 %v7486_v6, %v7484_v48  ;;  %v7492_v57 = vsel %vm1984_vm4, %v1476_v28, %v2112_v56 }
 0x235   : > { %v2367_v9 = vpack.c.bf16 %v7492_v57, %v7488_v2 }
 0x236   : > { %v1085_v19 = vpop.trf.xlu0 }
 0x237   : > { %v1211_v22 = vpack.c.bf16 %v1085_v19, %v1084_v49  ;;  %v1153_v35 = vpop.trf.xlu1  ;;  %v1217_v19 = vpack.c.bf16 %v7481_v63, %v7474_v36 }
 0x239   : > { %6374 = vmatmul.mubr.msk.bf16.gmra.mrb[100].mxu0 %vm1245_vm8, %v1209_v10 }
 0x23a   : > { %v1086_v41 = vpop.trf.xlu0  ;;  %6377 = vmatprep.mubr.msk.bf16.mxu0 %vm1245_vm8, %v1210_v0 }
 0x23b   : > { %v1154_v56 = vpop.trf.xlu1 }
 0x23c   : > { %v6279_v61 = vpop.f32.mrb[4].mxu0 }
 0x23d   : > { %v1497_v39 = vadd.f32 %v6279_v61, %v7471_v47  ;;  %v1488_v29 = vpop.f32.mrb[5].mxu0  ;;  %v1218_v61 = vpack.c.bf16 %v7501_v20, %v7496_v21 }
 0x23e   : > { %v1489_v58 = vadd.f32 %v7471_v47, %v1488_v29  ;;  %v6280_v53 = vpop.f32.mrb[6].mxu0  ;;  %v1087_v8 = vpop.trf.xlu0 }
 0x23f   : > { %v2117_v59 = vmul.f32 0.01, %v1497_v39  ;;  %v1500_v34 = vadd.f32 %v6280_v53, %v7471_v47  ;;  %v1212_v45 = vpack.c.bf16 %v1087_v8, %v1086_v41  ;;  %v1491_v4 = vpop.f32.mrb[7].mxu0  ;;  %vm1989_vm5 = vcmp.ge.f32.partialorder %v1497_v39, 0.0 }
 0x240   : > { %v2115_v40 = vmul.f32 0.01, %v1489_v58  ;;  %v1492_v32 = vadd.f32 %v7471_v47, %v1491_v4  ;;  %vm1987_vm6 = vcmp.ge.f32.partialorder %v1489_v58, 0.0 }
 0x241   : > { %vm1990_vm7 = vcmp.ge.f32.partialorder %v1500_v34, 0.0  ;;  %v2118_v12 = vmul.f32 0.01, %v1500_v34  ;;  %6378 = vmatmul.mubr.msk.bf16.gmra.mrb[104].mxu0 %vm1245_vm8, %v1211_v22  ;;  %v7508_v17 = vsel %vm1989_vm5, %v1497_v39, %v2117_v59  ;;  %v1155_v22 = vpop.trf.xlu1 }
 0x242   : > { %vm1988_vm9 = vcmp.ge.f32.partialorder %v1492_v32, 0.0  ;;  %v2116_v13 = vmul.f32 0.01, %v1492_v32  ;;  %v1088_v14 = vpop.trf.xlu0  ;;  %6381 = vmatprep.mubr.msk.bf16.mxu0 %vm1245_vm8, %v1212_v45  ;;  %v7512_v30 = vsel %vm1987_vm6, %v1489_v58, %v2115_v40  ;;  %v1219_v58 = vpack.c.bf16 %v1153_v35, %v1152_v43 }
 0x243   : > { %v7510_v50 = vsel %vm1990_vm7, %v1500_v34, %v2118_v12  ;;  %v1220_v36 = vpack.c.bf16 %v1155_v22, %v1154_v56 }
 0x244   : > { %v2370_v31 = vpack.c.bf16 %v7510_v50, %v7508_v17  ;;  %v7516_v1 = vsel %vm1988_vm9, %v1492_v32, %v2116_v13 }
 0x245   : > { %v2369_v46 = vpack.c.bf16 %v7516_v1, %v7512_v30  ;;  %v1156_v29 = vpop.trf.xlu1 }
 0x246   : > { %v1089_v37 = vpop.trf.xlu0 }
 0x247   : > { %v1213_v54 = vpack.c.bf16 %v1089_v37, %v1088_v14 }
 0x249   : > { %6382 = vmatmul.mubr.msk.bf16.gmra.mrb[108].mxu0 %vm1245_vm8, %v1213_v54  ;;  %v1157_v12 = vpop.trf.xlu1 }
 0x24a   : > { %6385 = vmatprep.mubr.msk.bf16.mxu0 %vm1245_vm8, %v1214_v62 }
 0x24c   : > { %v6283_v7 = vpop.f32.mrb[8].mxu0 }
 0x24d   : > { %v1513_v16 = vadd.f32 %v6283_v7, %v7471_v47  ;;  %v1504_v44 = vpop.f32.mrb[9].mxu0 }
 0x24e   : > { %v1505_v18 = vadd.f32 %v7471_v47, %v1504_v44  ;;  %v6284_v38 = vpop.f32.mrb[10].mxu0 }
 0x24f   : > { %v2121_v5 = vmul.f32 0.01, %v1513_v16  ;;  %v1516_v27 = vadd.f32 %v6284_v38, %v7471_v47  ;;  %v1507_v42 = vpop.f32.mrb[11].mxu0  ;;  %vm1993_vm10 = vcmp.ge.f32.partialorder %v1513_v16, 0.0 }
 0x250   : > { %v2119_v28 = vmul.f32 0.01, %v1505_v18  ;;  %v1508_v60 = vadd.f32 %v7471_v47, %v1507_v42  ;;  %vm1991_vm11 = vcmp.ge.f32.partialorder %v1505_v18, 0.0 }
 0x251   : > { %vm1994_vm12 = vcmp.ge.f32.partialorder %v1516_v27, 0.0  ;;  %v2122_v51 = vmul.f32 0.01, %v1516_v27  ;;  %6386 = vmatmul.mubr.msk.bf16.gmra.mrb[112].mxu0 %vm1245_vm8, %v1215_v15  ;;  %v7534_v26 = vsel %vm1993_vm10, %v1513_v16, %v2121_v5  ;;  %v1221_v16 = vpack.c.bf16 %v1157_v12, %v1156_v29 }
 0x252   : > { %vm1992_vm13 = vcmp.ge.f32.partialorder %v1508_v60, 0.0  ;;  %v2120_v33 = vmul.f32 0.01, %v1508_v60  ;;  %6389 = vmatprep.mubr.msk.bf16.mxu0 %vm1245_vm8, %v1216_v55  ;;  %v7538_v49 = vsel %vm1991_vm11, %v1505_v18, %v2119_v28 }
 0x253   : > { %v7536_v3 = vsel %vm1994_vm12, %v1516_v27, %v2122_v51 }
 0x254   : > { %v2372_v10 = vpack.c.bf16 %v7536_v3, %v7534_v26  ;;  %v7542_v0 = vsel %vm1992_vm13, %v1508_v60, %v2120_v33 }
 0x255   : > { %v2371_v41 = vpack.c.bf16 %v7542_v0, %v7538_v49 }
 0x259   : > { %6390 = vmatmul.mubr.msk.bf16.gmra.mrb[116].mxu0 %vm1245_vm8, %v1217_v19 }
 0x25a   : > { %6393 = vmatprep.mubr.msk.bf16.mxu0 %vm1245_vm8, %v1218_v61 }
 0x25c   : > { %v6287_v39 = vpop.f32.mrb[12].mxu0 }
 0x25d   : > { %v1529_v53 = vadd.f32 %v6287_v39, %v7471_v47  ;;  %v1520_v8 = vpop.f32.mrb[13].mxu0 }
 0x25e   : > { %v1521_v59 = vadd.f32 %v7471_v47, %v1520_v8  ;;  %v6288_v63 = vpop.f32.mrb[14].mxu0 }
 0x25f   : > { %v2125_v34 = vmul.f32 0.01, %v1529_v53  ;;  %v1532_v45 = vadd.f32 %v6288_v63, %v7471_v47  ;;  %v1523_v4 = vpop.f32.mrb[15].mxu0  ;;  %vm1997_vm14 = vcmp.ge.f32.partialorder %v1529_v53, 0.0 }
 0x260   : > { %v2123_v21 = vmul.f32 0.01, %v1521_v59  ;;  %v1524_v20 = vadd.f32 %v7471_v47, %v1523_v4  ;;  %vm1995_vm15 = vcmp.ge.f32.partialorder %v1521_v59, 0.0 }
 0x261   : > { %vm1998_vm0 = vcmp.ge.f32.partialorder %v1532_v45, 0.0  ;;  %v2126_v40 = vmul.f32 0.01, %v1532_v45  ;;  %6394 = vmatmul.mubr.msk.bf16.gmra.mrb[120].mxu0 %vm1245_vm8, %v1219_v58  ;;  %v7558_v13 = vsel %vm1997_vm14, %v1529_v53, %v2125_v34 }
 0x262   : > { %vm1996_vm1 = vcmp.ge.f32.partialorder %v1524_v20, 0.0  ;;  %v2124_v32 = vmul.f32 0.01, %v1524_v20  ;;  %6397 = vmatprep.mubr.msk.bf16.mxu0 %vm1245_vm8, %v1220_v36  ;;  %v7562_v43 = vsel %vm1995_vm15, %v1521_v59, %v2123_v21 }
 0x263   : > { %v7560_v14 = vsel %vm1998_vm0, %v1532_v45, %v2126_v40 }
 0x264   : > { %v2374_v62 = vpack.c.bf16 %v7560_v14, %v7558_v13  ;;  %v7566_v37 = vsel %vm1996_vm1, %v1524_v20, %v2124_v32  ;;  %v6291_v54 = vpop.f32.mrb[16].mxu0 }
 0x265   : > { %v2373_v35 = vpack.c.bf16 %v7566_v37, %v7562_v43  ;;  %v1545_v7 = vadd.f32 %v6291_v54, %v7471_v47  ;;  %v1536_v15 = vpop.f32.mrb[17].mxu0 }
 0x266   : > { %v1537_v44 = vadd.f32 %v7471_v47, %v1536_v15  ;;  %v6292_v55 = vpop.f32.mrb[18].mxu0 }
 0x267   : > { %v2129_v18 = vmul.f32 0.01, %v1545_v7  ;;  %v1548_v38 = vadd.f32 %v6292_v55, %v7471_v47  ;;  %v1539_v5 = vpop.f32.mrb[19].mxu0  ;;  %vm2001_vm2 = vcmp.ge.f32.partialorder %v1545_v7, 0.0 }
 0x268   : > { %v2127_v27 = vmul.f32 0.01, %v1537_v44  ;;  %v1540_v42 = vadd.f32 %v7471_v47, %v1539_v5  ;;  %vm1999_vm3 = vcmp.ge.f32.partialorder %v1537_v44, 0.0 }
 0x269   : > { %vm2002_vm4 = vcmp.ge.f32.partialorder %v1548_v38, 0.0  ;;  %v2130_v28 = vmul.f32 0.01, %v1548_v38  ;;  %6398 = vmatmul.mubr.msk.bf16.gmra.mrb[124].mxu0 %vm1245_vm8, %v1221_v16  ;;  %v7576_v56 = vsel %vm2001_vm2, %v1545_v7, %v2129_v18  ;;  %vm2491_vm8 = vcmask 523264  }
 0x26a   : > { %vm2000_vm5 = vcmp.ge.f32.partialorder %v1540_v42, 0.0  ;;  %v2128_v60 = vmul.f32 0.01, %v1540_v42  ;;  %2716 = vmatprep.mubr.bf16.mxu0 %v11683_v11  ;;  %v7580_v33 = vsel %vm1999_vm3, %v1537_v44, %v2127_v27 }
 0x26b   : > { %v7578_v51 = vsel %vm2002_vm4, %v1548_v38, %v2130_v28 }
 0x26c   : > { %v2376_v19 = vpack.c.bf16 %v7578_v51, %v7576_v56  ;;  %v7584_v61 = vsel %vm2000_vm5, %v1540_v42, %v2128_v60  ;;  %v6295_v22 = vpop.f32.mrb[20].mxu0 }
 0x26d   : > { %v2375_v39 = vpack.c.bf16 %v7584_v61, %v7580_v33  ;;  %v1561_v29 = vadd.f32 %v6295_v22, %v7471_v47  ;;  %v1552_v58 = vpop.f32.mrb[21].mxu0 }
 0x26e   : > { %v1553_v53 = vadd.f32 %v7471_v47, %v1552_v58  ;;  %v6296_v8 = vpop.f32.mrb[22].mxu0 }
 0x26f   : > { %v2133_v59 = vmul.f32 0.01, %v1561_v29  ;;  %v1564_v36 = vadd.f32 %v6296_v8, %v7471_v47  ;;  %v1555_v63 = vpop.f32.mrb[23].mxu0  ;;  %vm2005_vm6 = vcmp.ge.f32.partialorder %v1561_v29, 0.0 }
 0x270   : > { %v2131_v34 = vmul.f32 0.01, %v1553_v53  ;;  %v1556_v45 = vadd.f32 %v7471_v47, %v1555_v63  ;;  %vm2003_vm7 = vcmp.ge.f32.partialorder %v1553_v53, 0.0 }
 0x271   : > { %vm2006_vm9 = vcmp.ge.f32.partialorder %v1564_v36, 0.0  ;;  %v2134_v4 = vmul.f32 0.01, %v1564_v36  ;;  %6097 = vmatmul.mubr.msk.bf16.vlgmr.msra.gmra.mrb[128].mxu0 %vm2491_vm8, %v2367_v9  ;;  %v7597_v20 = vsel %vm2005_vm6, %v1561_v29, %v2133_v59 }
 0x272   : > { %vm2004_vm10 = vcmp.ge.f32.partialorder %v1556_v45, 0.0  ;;  %v2132_v21 = vmul.f32 0.01, %v1556_v45  ;;  %2726 = vmatprep.mubr.bf16.mxu0 %v11683_v11  ;;  %v7601_v32 = vsel %vm2003_vm7, %v1553_v53, %v2131_v34 }
 0x273   : > { %v7599_v40 = vsel %vm2006_vm9, %v1564_v36, %v2134_v4 }
 0x274   : > { %v2378_v12 = vpack.c.bf16 %v7599_v40, %v7597_v20  ;;  %v7605_v54 = vsel %vm2004_vm10, %v1556_v45, %v2132_v21  ;;  %v6299_v7 = vpop.f32.mrb[24].mxu0 }
 0x275   : > { %v2377_v2 = vpack.c.bf16 %v7605_v54, %v7601_v32  ;;  %v1577_v57 = vadd.f32 %v6299_v7, %v7471_v47  ;;  %v1568_v9 = vpop.f32.mrb[25].mxu0 }
 0x276   : > { %v1569_v15 = vadd.f32 %v7471_v47, %v1568_v9  ;;  %v6300_v16 = vpop.f32.mrb[26].mxu0 }
 0x277   : > { %v2137_v44 = vmul.f32 0.01, %v1577_v57  ;;  %v1580_v55 = vadd.f32 %v6300_v16, %v7471_v47  ;;  %v1571_v18 = vpop.f32.mrb[27].mxu0  ;;  %vm2009_vm11 = vcmp.ge.f32.partialorder %v1577_v57, 0.0 }
 0x278   : > { %v2135_v38 = vmul.f32 0.01, %v1569_v15  ;;  %v1572_v5 = vadd.f32 %v7471_v47, %v1571_v18  ;;  %vm2007_vm12 = vcmp.ge.f32.partialorder %v1569_v15, 0.0 }
 0x279   : > { %vm2010_vm13 = vcmp.ge.f32.partialorder %v1580_v55, 0.0  ;;  %v2138_v27 = vmul.f32 0.01, %v1580_v55  ;;  %6098 = vmatmul.mubr.msk.bf16.gmra.mrb[132].mxu0 %vm2491_vm8, %v2368_v52  ;;  %v7618_v28 = vsel %vm2009_vm11, %v1577_v57, %v2137_v44 }
 0x27a   : > { %vm2008_vm14 = vcmp.ge.f32.partialorder %v1572_v5, 0.0  ;;  %v2136_v42 = vmul.f32 0.01, %v1572_v5  ;;  %2736 = vmatprep.mubr.bf16.mxu0 %v11683_v11  ;;  %v7622_v22 = vsel %vm2007_vm12, %v1569_v15, %v2135_v38 }
 0x27b   : > { %v7620_v60 = vsel %vm2010_vm13, %v1580_v55, %v2138_v27 }
 0x27c   : > { %v2380_v29 = vpack.c.bf16 %v7620_v60, %v7618_v28  ;;  %v7626_v58 = vsel %vm2008_vm14, %v1572_v5, %v2136_v42  ;;  %v6303_v53 = vpop.f32.mrb[28].mxu0 }
 0x27d   : > { %v2379_v48 = vpack.c.bf16 %v7626_v58, %v7622_v22  ;;  %v1593_v6 = vadd.f32 %v6303_v53, %v7471_v47  ;;  %v1584_v52 = vpop.f32.mrb[29].mxu0 }
 0x27e   : > { %v1585_v8 = vadd.f32 %v7471_v47, %v1584_v52  ;;  %v6304_v59 = vpop.f32.mrb[30].mxu0 }
 0x27f   : > { %v2141_v36 = vmul.f32 0.01, %v1593_v6  ;;  %v1596_v63 = vadd.f32 %v6304_v59, %v7471_v47  ;;  %v1587_v34 = vpop.f32.mrb[31].mxu0  ;;  %vm2013_vm15 = vcmp.ge.f32.partialorder %v1593_v6, 0.0 }
 0x280   : > { %v2139_v45 = vmul.f32 0.01, %v1585_v8  ;;  %v1588_v4 = vadd.f32 %v7471_v47, %v1587_v34  ;;  %vm2011_vm0 = vcmp.ge.f32.partialorder %v1585_v8, 0.0 }
 0x281   : > { %vm2014_vm1 = vcmp.ge.f32.partialorder %v1596_v63, 0.0  ;;  %v2142_v21 = vmul.f32 0.01, %v1596_v63  ;;  %6099 = vmatmul.mubr.msk.bf16.gmra.mrb[136].mxu0 %vm2491_vm8, %v2369_v46  ;;  %v7639_v57 = vsel %vm2013_vm15, %v1593_v6, %v2141_v36 }
 0x282   : > { %vm2012_vm2 = vcmp.ge.f32.partialorder %v1588_v4, 0.0  ;;  %v2140_v7 = vmul.f32 0.01, %v1588_v4  ;;  %2746 = vmatprep.mubr.bf16.mxu0 %v11683_v11  ;;  %v7643_v15 = vsel %vm2011_vm0, %v1585_v8, %v2139_v45 }
 0x283   : > { %v7641_v9 = vsel %vm2014_vm1, %v1596_v63, %v2142_v21 }
 0x284   : > { %v2382_v16 = vpack.c.bf16 %v7641_v9, %v7639_v57  ;;  %v7647_v44 = vsel %vm2012_vm2, %v1588_v4, %v2140_v7  ;;  %v6307_v55 = vpop.f32.mrb[32].mxu0 }
 0x285   : > { %v2381_v30 = vpack.c.bf16 %v7647_v44, %v7643_v15  ;;  %v1609_v1 = vadd.f32 %v6307_v55, %v7471_v47  ;;  %v1600_v46 = vpop.f32.mrb[33].mxu0 }
 0x286   : > { %v1601_v18 = vadd.f32 %v7471_v47, %v1600_v46  ;;  %v6308_v38 = vpop.f32.mrb[34].mxu0 }
 0x287   : > { %v2145_v5 = vmul.f32 0.01, %v1609_v1  ;;  %v1612_v27 = vadd.f32 %v6308_v38, %v7471_v47  ;;  %v1603_v42 = vpop.f32.mrb[35].mxu0  ;;  %vm2017_vm3 = vcmp.ge.f32.partialorder %v1609_v1, 0.0 }
 0x288   : > { %v2143_v53 = vmul.f32 0.01, %v1601_v18  ;;  %v1604_v6 = vadd.f32 %v7471_v47, %v1603_v42  ;;  %vm2015_vm4 = vcmp.ge.f32.partialorder %v1601_v18, 0.0 }
 0x289   : > { %vm2018_vm5 = vcmp.ge.f32.partialorder %v1612_v27, 0.0  ;;  %v2146_v52 = vmul.f32 0.01, %v1612_v27  ;;  %6100 = vmatmul.mubr.msk.bf16.gmra.mrb[140].mxu0 %vm2491_vm8, %v2370_v31  ;;  %v2273_v59 = vsel %vm2017_vm3, %v1609_v1, %v2145_v5 }
 0x28a   : > { %vm2016_vm6 = vcmp.ge.f32.partialorder %v1604_v6, 0.0  ;;  %v2144_v8 = vmul.f32 0.01, %v1604_v6  ;;  %2756 = vmatprep.mubr.bf16.mxu0 %v11683_v11  ;;  %v2271_v63 = vsel %vm2015_vm4, %v1601_v18, %v2143_v53 }
 0x28b   : > { %v2274_v36 = vsel %vm2018_vm5, %v1612_v27, %v2146_v52 }
 0x28c   : > { %v2384_v34 = vpack.c.bf16 %v2274_v36, %v2273_v59  ;;  %v2272_v45 = vsel %vm2016_vm6, %v1604_v6, %v2144_v8  ;;  %v6311_v4 = vpop.f32.mrb[36].mxu0 }
 0x28d   : > { %v2383_v21 = vpack.c.bf16 %v2272_v45, %v2271_v63  ;;  %v1625_v7 = vadd.f32 %v6311_v4, %v7471_v47  ;;  %v1616_v55 = vpop.f32.mrb[37].mxu0 }
 0x28e   : > { %v1617_v46 = vadd.f32 %v7471_v47, %v1616_v55  ;;  %v6312_v38 = vpop.f32.mrb[38].mxu0 }
 0x28f   : > { %vm2021_vm7 = vcmp.ge.f32.partialorder %v1625_v7, 0.0  ;;  %v2149_v17 = vmul.f32 0.01, %v1625_v7  ;;  %v1628_v50 = vadd.f32 %v6312_v38, %v7471_v47  ;;  %v1619_v31 = vpop.f32.mrb[39].mxu0  ;;  %6113 = vmatmul.mubr.msk.bf16.vlgmr.msra.gmra.mrb[0].mxu1 %vm2491_vm8, %v2383_v21 }
 0x290   : > { %vm2019_vm9 = vcmp.ge.f32.partialorder %v1617_v46, 0.0  ;;  %v2147_v1 = vmul.f32 0.01, %v1617_v46  ;;  %v1620_v18 = vadd.f32 %v7471_v47, %v1619_v31  ;;  %2886 = vmatprep.mubr.bf16.mxu1 %v11683_v11 }
 0x291   : > { %v7666_v5 = vsel %vm2021_vm7, %v1625_v7, %v2149_v17  ;;  %vm2022_vm10 = vcmp.ge.f32.partialorder %v1628_v50, 0.0  ;;  %v2150_v27 = vmul.f32 0.01, %v1628_v50  ;;  %6101 = vmatmul.mubr.msk.bf16.gmra.mrb[144].mxu0 %vm2491_vm8, %v2371_v41 }
 0x292   : > { %v2275_v42 = vsel %vm2019_vm9, %v1617_v46, %v2147_v1  ;;  %vm2020_vm11 = vcmp.ge.f32.partialorder %v1620_v18, 0.0  ;;  %v2148_v53 = vmul.f32 0.01, %v1620_v18  ;;  %2766 = vmatprep.mubr.bf16.mxu0 %v11683_v11 }
 0x293   : > { %v2278_v6 = vsel %vm2022_vm10, %v1628_v50, %v2150_v27 }
 0x294   : > { %v2386_v52 = vpack.c.bf16 %v2278_v6, %v7666_v5  ;;  %v2276_v8 = vsel %vm2020_vm11, %v1620_v18, %v2148_v53  ;;  %v6315_v59 = vpop.f32.mrb[40].mxu0 }
 0x295   : > { %v2385_v36 = vpack.c.bf16 %v2276_v8, %v2275_v42  ;;  %v1641_v63 = vadd.f32 %v6315_v59, %v7471_v47  ;;  %v1632_v45 = vpop.f32.mrb[41].mxu0 }
 0x296   : > { %v1633_v4 = vadd.f32 %v7471_v47, %v1632_v45  ;;  %v6316_v21 = vpop.f32.mrb[42].mxu0 }
 0x297   : > { %6114 = vmatmul.mubr.msk.bf16.gmra.mrb[4].mxu1 %vm2491_vm8, %v2384_v34  ;;  %vm2025_vm12 = vcmp.ge.f32.partialorder %v1641_v63, 0.0  ;;  %v2153_v49 = vmul.f32 0.01, %v1641_v63  ;;  %v1644_v0 = vadd.f32 %v6316_v21, %v7471_v47  ;;  %v1635_v41 = vpop.f32.mrb[43].mxu0 }
 0x298   : > { %vm2023_vm13 = vcmp.ge.f32.partialorder %v1633_v4, 0.0  ;;  %v2151_v7 = vmul.f32 0.01, %v1633_v4  ;;  %v1636_v55 = vadd.f32 %v7471_v47, %v1635_v41  ;;  %2896 = vmatprep.mubr.bf16.mxu1 %v11683_v11 }
 0x299   : > { %6102 = vmatmul.mubr.msk.bf16.gmra.mrb[148].mxu0 %vm2491_vm8, %v2372_v10  ;;  %v7684_v46 = vsel %vm2025_vm12, %v1641_v63, %v2153_v49  ;;  %vm2026_vm14 = vcmp.ge.f32.partialorder %v1644_v0, 0.0  ;;  %v2154_v34 = vmul.f32 0.01, %v1644_v0 }
 0x29a   : > { %v7686_v38 = vsel %vm2023_vm13, %v1633_v4, %v2151_v7  ;;  %vm2024_vm15 = vcmp.ge.f32.partialorder %v1636_v55, 0.0  ;;  %v2152_v17 = vmul.f32 0.01, %v1636_v55  ;;  %2776 = vmatprep.mubr.bf16.mxu0 %v11683_v11 }
 0x29b   : > { %v7689_v50 = vsel %vm2026_vm14, %v1644_v0, %v2154_v34 }
 0x29c   : > { %v2388_v31 = vpack.c.bf16 %v7689_v50, %v7684_v46  ;;  %v2280_v1 = vsel %vm2024_vm15, %v1636_v55, %v2152_v17  ;;  %v6319_v18 = vpop.f32.mrb[44].mxu0 }
 0x29d   : > { %v2387_v26 = vpack.c.bf16 %v2280_v1, %v7686_v38  ;;  %v1657_v3 = vadd.f32 %v6319_v18, %v7471_v47  ;;  %v1648_v10 = vpop.f32.mrb[45].mxu0 }
 0x29e   : > { %v1649_v5 = vadd.f32 %v7471_v47, %v1648_v10  ;;  %v6320_v27 = vpop.f32.mrb[46].mxu0 }
 0x29f   : > { %6115 = vmatmul.mubr.msk.bf16.gmra.mrb[8].mxu1 %vm2491_vm8, %v2385_v36  ;;  %vm2029_vm0 = vcmp.ge.f32.partialorder %v1657_v3, 0.0  ;;  %v2157_v42 = vmul.f32 0.01, %v1657_v3  ;;  %v1660_v53 = vadd.f32 %v6320_v27, %v7471_v47  ;;  %v1651_v6 = vpop.f32.mrb[47].mxu0 }
 0x2a0   : > { %2906 = vmatprep.mubr.bf16.mxu1 %v11683_v11  ;;  %vm2027_vm1 = vcmp.ge.f32.partialorder %v1649_v5, 0.0  ;;  %v2155_v8 = vmul.f32 0.01, %v1649_v5  ;;  %v1652_v59 = vadd.f32 %v7471_v47, %v1651_v6 }
 0x2a1   : > { %6103 = vmatmul.mubr.msk.bf16.gmra.mrb[152].mxu0 %vm2491_vm8, %v2373_v35  ;;  %v7704_v63 = vsel %vm2029_vm0, %v1657_v3, %v2157_v42  ;;  %vm2030_vm2 = vcmp.ge.f32.partialorder %v1660_v53, 0.0  ;;  %v2158_v36 = vmul.f32 0.01, %v1660_v53 }
 0x2a2   : > { %2786 = vmatprep.mubr.bf16.mxu0 %v11683_v11  ;;  %v7707_v45 = vsel %vm2027_vm1, %v1649_v5, %v2155_v8  ;;  %vm2028_vm3 = vcmp.ge.f32.partialorder %v1652_v59, 0.0  ;;  %v2156_v4 = vmul.f32 0.01, %v1652_v59 }
 0x2a3   : > { %v7709_v21 = vsel %vm2030_vm2, %v1660_v53, %v2158_v36 }
 0x2a4   : > { %v2390_v49 = vpack.c.bf16 %v7709_v21, %v7704_v63  ;;  %v7713_v0 = vsel %vm2028_vm3, %v1652_v59, %v2156_v4  ;;  %v6323_v43 = vpop.f32.mrb[48].mxu0 }
 0x2a5   : > { %v2389_v37 = vpack.c.bf16 %v7713_v0, %v7707_v45  ;;  %v1673_v35 = vadd.f32 %v6323_v43, %v7471_v47  ;;  %v1664_v41 = vpop.f32.mrb[49].mxu0 }
 0x2a6   : > { %v1665_v7 = vadd.f32 %v7471_v47, %v1664_v41  ;;  %v6324_v55 = vpop.f32.mrb[50].mxu0 }
 0x2a7   : > { %6116 = vmatmul.mubr.msk.bf16.gmra.mrb[12].mxu1 %vm2491_vm8, %v2386_v52  ;;  %vm2033_vm4 = vcmp.ge.f32.partialorder %v1673_v35, 0.0  ;;  %v2161_v34 = vmul.f32 0.01, %v1673_v35  ;;  %v1676_v38 = vadd.f32 %v6324_v55, %v7471_v47  ;;  %v1667_v17 = vpop.f32.mrb[51].mxu0 }
 0x2a8   : > { %2916 = vmatprep.mubr.bf16.mxu1 %v11683_v11  ;;  %vm2031_vm5 = vcmp.ge.f32.partialorder %v1665_v7, 0.0  ;;  %v2159_v1 = vmul.f32 0.01, %v1665_v7  ;;  %v1668_v18 = vadd.f32 %v7471_v47, %v1667_v17 }
 0x2a9   : > { %6104 = vmatmul.mubr.msk.bf16.gmra.mrb[156].mxu0 %vm2491_vm8, %v2374_v62  ;;  %v7727_v3 = vsel %vm2033_vm4, %v1673_v35, %v2161_v34  ;;  %vm2034_vm6 = vcmp.ge.f32.partialorder %v1676_v38, 0.0  ;;  %v2162_v52 = vmul.f32 0.01, %v1676_v38 }
 0x2aa   : > { %2796 = vmatprep.mubr.bf16.mxu0 %v11683_v11  ;;  %v7730_v10 = vsel %vm2031_vm5, %v1665_v7, %v2159_v1  ;;  %vm2032_vm7 = vcmp.ge.f32.partialorder %v1668_v18, 0.0  ;;  %v2160_v5 = vmul.f32 0.01, %v1668_v18 }
 0x2ab   : > { %v7732_v27 = vsel %vm2034_vm6, %v1676_v38, %v2162_v52 }
 0x2ac   : > { %v2392_v42 = vpack.c.bf16 %v7732_v27, %v7727_v3  ;;  %v7736_v53 = vsel %vm2032_vm7, %v1668_v18, %v2160_v5  ;;  %v6327_v13 = vpop.f32.mrb[52].mxu0 }
 0x2ad   : > { %v2391_v14 = vpack.c.bf16 %v7736_v53, %v7730_v10  ;;  %v1689_v62 = vadd.f32 %v6327_v13, %v7471_v47  ;;  %v1680_v6 = vpop.f32.mrb[53].mxu0 }
 0x2ae   : > { %v1681_v8 = vadd.f32 %v7471_v47, %v1680_v6  ;;  %v6328_v59 = vpop.f32.mrb[54].mxu0 }
 0x2af   : > { %6117 = vmatmul.mubr.msk.bf16.gmra.mrb[16].mxu1 %vm2491_vm8, %v2387_v26  ;;  %vm2037_vm9 = vcmp.ge.f32.partialorder %v1689_v62, 0.0  ;;  %v2165_v36 = vmul.f32 0.01, %v1689_v62  ;;  %v1692_v4 = vadd.f32 %v6328_v59, %v7471_v47  ;;  %v1683_v43 = vpop.f32.mrb[55].mxu0 }
 0x2b0   : > { %2926 = vmatprep.mubr.bf16.mxu1 %v11683_v11  ;;  %vm2035_vm10 = vcmp.ge.f32.partialorder %v1681_v8, 0.0  ;;  %v2163_v35 = vmul.f32 0.01, %v1681_v8  ;;  %v1684_v41 = vadd.f32 %v7471_v47, %v1683_v43 }
 0x2b1   : > { %6105 = vmatmul.mubr.msk.bf16.gmra.mrb[160].mxu0 %vm2491_vm8, %v2375_v39  ;;  %v7750_v7 = vsel %vm2037_vm9, %v1689_v62, %v2165_v36  ;;  %vm2038_vm11 = vcmp.ge.f32.partialorder %v1692_v4, 0.0  ;;  %v2166_v26 = vmul.f32 0.01, %v1692_v4 }
 0x2b2   : > { %2806 = vmatprep.mubr.bf16.mxu0 %v11683_v11  ;;  %v7753_v55 = vsel %vm2035_vm10, %v1681_v8, %v2163_v35  ;;  %vm2036_vm12 = vcmp.ge.f32.partialorder %v1684_v41, 0.0  ;;  %v2164_v34 = vmul.f32 0.01, %v1684_v41 }
 0x2b3   : > { %v7755_v38 = vsel %vm2038_vm11, %v1692_v4, %v2166_v26 }
 0x2b4   : > { %v2394_v17 = vpack.c.bf16 %v7755_v38, %v7750_v7  ;;  %v7759_v1 = vsel %vm2036_vm12, %v1684_v41, %v2164_v34  ;;  %v6331_v33 = vpop.f32.mrb[56].mxu0 }
 0x2b5   : > { %v2393_v61 = vpack.c.bf16 %v7759_v1, %v7753_v55  ;;  %v1705_v39 = vadd.f32 %v6331_v33, %v7471_v47  ;;  %v1696_v18 = vpop.f32.mrb[57].mxu0 }
 0x2b6   : > { %v1697_v52 = vadd.f32 %v7471_v47, %v1696_v18  ;;  %v6332_v5 = vpop.f32.mrb[58].mxu0 }
 0x2b7   : > { %6118 = vmatmul.mubr.msk.bf16.gmra.mrb[20].mxu1 %vm2491_vm8, %v2388_v31  ;;  %vm2041_vm13 = vcmp.ge.f32.partialorder %v1705_v39, 0.0  ;;  %v2169_v13 = vmul.f32 0.01, %v1705_v39  ;;  %v1708_v62 = vadd.f32 %v6332_v5, %v7471_v47  ;;  %v1699_v6 = vpop.f32.mrb[59].mxu0 }
 0x2b8   : > { %2936 = vmatprep.mubr.bf16.mxu1 %v11683_v11  ;;  %vm2039_vm14 = vcmp.ge.f32.partialorder %v1697_v52, 0.0  ;;  %v2167_v8 = vmul.f32 0.01, %v1697_v52  ;;  %v1700_v59 = vadd.f32 %v7471_v47, %v1699_v6 }
 0x2b9   : > { %6106 = vmatmul.mubr.msk.bf16.gmra.mrb[164].mxu0 %vm2491_vm8, %v2376_v19  ;;  %v7776_v36 = vsel %vm2041_vm13, %v1705_v39, %v2169_v13  ;;  %vm2042_vm15 = vcmp.ge.f32.partialorder %v1708_v62, 0.0  ;;  %v2170_v46 = vmul.f32 0.01, %v1708_v62 }
 0x2ba   : > { %2816 = vmatprep.mubr.bf16.mxu0 %v11683_v11  ;;  %v7779_v50 = vsel %vm2039_vm14, %v1697_v52, %v2167_v8  ;;  %vm2040_vm0 = vcmp.ge.f32.partialorder %v1700_v59, 0.0  ;;  %v2168_v31 = vmul.f32 0.01, %v1700_v59 }
 0x2bb   : > { %v7781_v4 = vsel %vm2042_vm15, %v1708_v62, %v2170_v46 }
 0x2bc   : > { %v2396_v43 = vpack.c.bf16 %v7781_v4, %v7776_v36  ;;  %v7785_v35 = vsel %vm2040_vm0, %v1700_v59, %v2168_v31  ;;  %v6335_v56 = vpop.f32.mrb[60].mxu0 }
 0x2bd   : > { %v2395_v51 = vpack.c.bf16 %v7785_v35, %v7779_v50  ;;  %v1721_v19 = vadd.f32 %v6335_v56, %v7471_v47  ;;  %v1712_v41 = vpop.f32.mrb[61].mxu0 }
 0x2be   : > { %v1713_v26 = vadd.f32 %v7471_v47, %v1712_v41  ;;  %v6336_v34 = vpop.f32.mrb[62].mxu0 }
 0x2bf   : > { %6119 = vmatmul.mubr.msk.bf16.gmra.mrb[24].mxu1 %vm2491_vm8, %v2389_v37  ;;  %vm2045_vm1 = vcmp.ge.f32.partialorder %v1721_v19, 0.0  ;;  %v2173_v33 = vmul.f32 0.01, %v1721_v19  ;;  %v1724_v39 = vadd.f32 %v6336_v34, %v7471_v47  ;;  %v1715_v18 = vpop.f32.mrb[63].mxu0 }
 0x2c0   : > { %2946 = vmatprep.mubr.bf16.mxu1 %v11683_v11  ;;  %vm2043_vm2 = vcmp.ge.f32.partialorder %v1713_v26, 0.0  ;;  %v2171_v52 = vmul.f32 0.01, %v1713_v26  ;;  %v1716_v5 = vadd.f32 %v7471_v47, %v1715_v18 }
 0x2c1   : > { %6107 = vmatmul.mubr.msk.bf16.gmra.mrb[168].mxu0 %vm2491_vm8, %v2377_v2  ;;  %v7802_v13 = vsel %vm2045_vm1, %v1721_v19, %v2173_v33  ;;  %vm2046_vm3 = vcmp.ge.f32.partialorder %v1724_v39, 0.0  ;;  %v2174_v45 = vmul.f32 0.01, %v1724_v39 }
 0x2c2   : > { %2826 = vmatprep.mubr.bf16.mxu0 %v11683_v11  ;;  %v7805_v0 = vsel %vm2043_vm2, %v1713_v26, %v2171_v52  ;;  %vm2044_vm4 = vcmp.ge.f32.partialorder %v1716_v5, 0.0  ;;  %v2172_v37 = vmul.f32 0.01, %v1716_v5 }
 0x2c3   : > { %v7807_v62 = vsel %vm2046_vm3, %v1724_v39, %v2174_v45 }
 0x2c4   : > { %v2398_v6 = vpack.c.bf16 %v7807_v62, %v7802_v13  ;;  %v7811_v8 = vsel %vm2044_vm4, %v1716_v5, %v2172_v37  ;;  %v6339_v32 = vpop.f32.mrb[64].mxu0 }
 0x2c5   : > { %v2397_v54 = vpack.c.bf16 %v7811_v8, %v7805_v0  ;;  %v1737_v2 = vadd.f32 %v6339_v32, %v7471_v47  ;;  %v1728_v59 = vpop.f32.mrb[65].mxu0 }
 0x2c6   : > { %v1729_v46 = vadd.f32 %v7471_v47, %v1728_v59  ;;  %v6340_v31 = vpop.f32.mrb[66].mxu0 }
 0x2c7   : > { %6120 = vmatmul.mubr.msk.bf16.gmra.mrb[28].mxu1 %vm2491_vm8, %v2390_v49  ;;  %vm2049_vm5 = vcmp.ge.f32.partialorder %v1737_v2, 0.0  ;;  %v2177_v56 = vmul.f32 0.01, %v1737_v2  ;;  %v1740_v19 = vadd.f32 %v6340_v31, %v7471_v47  ;;  %v1731_v41 = vpop.f32.mrb[67].mxu0 }
 0x2c8   : > { %2956 = vmatprep.mubr.bf16.mxu1 %v11683_v11  ;;  %vm2047_vm6 = vcmp.ge.f32.partialorder %v1729_v46, 0.0  ;;  %v2175_v26 = vmul.f32 0.01, %v1729_v46  ;;  %v1732_v34 = vadd.f32 %v7471_v47, %v1731_v41 }
 0x2c9   : > { %6108 = vmatmul.mubr.msk.bf16.gmra.mrb[172].mxu0 %vm2491_vm8, %v2378_v12  ;;  %v7828_v33 = vsel %vm2049_vm5, %v1737_v2, %v2177_v56  ;;  %vm2050_vm7 = vcmp.ge.f32.partialorder %v1740_v19, 0.0  ;;  %v2178_v63 = vmul.f32 0.01, %v1740_v19 }
 0x2ca   : > { %2836 = vmatprep.mubr.bf16.mxu0 %v11683_v11  ;;  %v7831_v21 = vsel %vm2047_vm6, %v1729_v46, %v2175_v26  ;;  %vm2048_vm9 = vcmp.ge.f32.partialorder %v1732_v34, 0.0  ;;  %v2176_v49 = vmul.f32 0.01, %v1732_v34 }
 0x2cb   : > { %v7833_v39 = vsel %vm2050_vm7, %v1740_v19, %v2178_v63 }
 0x2cc   : > { %v2400_v18 = vpack.c.bf16 %v7833_v39, %v7828_v33  ;;  %v7837_v52 = vsel %vm2048_vm9, %v1732_v34, %v2176_v49  ;;  %v6343_v20 = vpop.f32.mrb[68].mxu0 }
 0x2cd   : > { %v2399_v40 = vpack.c.bf16 %v7837_v52, %v7831_v21  ;;  %v1753_v12 = vadd.f32 %v6343_v20, %v7471_v47  ;;  %v1744_v5 = vpop.f32.mrb[69].mxu0 }
 0x2ce   : > { %v1745_v45 = vadd.f32 %v7471_v47, %v1744_v5  ;;  %v6344_v37 = vpop.f32.mrb[70].mxu0 }
 0x2cf   : > { %6121 = vmatmul.mubr.msk.bf16.gmra.mrb[32].mxu1 %vm2491_vm8, %v2391_v14  ;;  %vm2053_vm10 = vcmp.ge.f32.partialorder %v1753_v12, 0.0  ;;  %v2181_v32 = vmul.f32 0.01, %v1753_v12  ;;  %v1756_v2 = vadd.f32 %v6344_v37, %v7471_v47  ;;  %v1747_v59 = vpop.f32.mrb[71].mxu0 }
 0x2d0   : > { %2966 = vmatprep.mubr.bf16.mxu1 %v11683_v11  ;;  %vm2051_vm11 = vcmp.ge.f32.partialorder %v1745_v45, 0.0  ;;  %v2179_v46 = vmul.f32 0.01, %v1745_v45  ;;  %v1748_v31 = vadd.f32 %v7471_v47, %v1747_v59 }
 0x2d1   : > { %6109 = vmatmul.mubr.msk.bf16.gmra.mrb[176].mxu0 %vm2491_vm8, %v2379_v48  ;;  %v7854_v56 = vsel %vm2053_vm10, %v1753_v12, %v2181_v32  ;;  %vm2054_vm12 = vcmp.ge.f32.partialorder %v1756_v2, 0.0  ;;  %v2182_v10 = vmul.f32 0.01, %v1756_v2 }
 0x2d2   : > { %2846 = vmatprep.mubr.bf16.mxu0 %v11683_v11  ;;  %v7857_v53 = vsel %vm2051_vm11, %v1745_v45, %v2179_v46  ;;  %vm2052_vm13 = vcmp.ge.f32.partialorder %v1748_v31, 0.0  ;;  %v2180_v14 = vmul.f32 0.01, %v1748_v31 }
 0x2d3   : > { %v7859_v19 = vsel %vm2054_vm12, %v1756_v2, %v2182_v10 }
 0x2d4   : > { %v2402_v41 = vpack.c.bf16 %v7859_v19, %v7854_v56  ;;  %v7863_v26 = vsel %vm2052_vm13, %v1748_v31, %v2180_v14  ;;  %v6347_v22 = vpop.f32.mrb[72].mxu0 }
 0x2d5   : > { %v2401_v58 = vpack.c.bf16 %v7863_v26, %v7857_v53  ;;  %v1769_v48 = vadd.f32 %v6347_v22, %v7471_v47  ;;  %v1760_v34 = vpop.f32.mrb[73].mxu0 }
 0x2d6   : > { %v1761_v63 = vadd.f32 %v7471_v47, %v1760_v34  ;;  %v6348_v49 = vpop.f32.mrb[74].mxu0 }
 0x2d7   : > { %6122 = vmatmul.mubr.msk.bf16.gmra.mrb[36].mxu1 %vm2491_vm8, %v2392_v42  ;;  %vm2057_vm14 = vcmp.ge.f32.partialorder %v1769_v48, 0.0  ;;  %v2185_v20 = vmul.f32 0.01, %v1769_v48  ;;  %v1772_v12 = vadd.f32 %v6348_v49, %v7471_v47  ;;  %v1763_v5 = vpop.f32.mrb[75].mxu0 }
 0x2d8   : > { %2976 = vmatprep.mubr.bf16.mxu1 %v11683_v11  ;;  %vm2055_vm15 = vcmp.ge.f32.partialorder %v1761_v63, 0.0  ;;  %v2183_v45 = vmul.f32 0.01, %v1761_v63  ;;  %v1764_v37 = vadd.f32 %v7471_v47, %v1763_v5 }
 0x2d9   : > { %6110 = vmatmul.mubr.msk.bf16.gmra.mrb[180].mxu0 %vm2491_vm8, %v2380_v29  ;;  %v7880_v32 = vsel %vm2057_vm14, %v1769_v48, %v2185_v20  ;;  %vm2058_vm0 = vcmp.ge.f32.partialorder %v1772_v12, 0.0  ;;  %v2186_v3 = vmul.f32 0.01, %v1772_v12  ;;  %v7896_v29 = vld [vmem:[%s11672_s4] ss:$0 sm:$0xff] }
 0x2da   : > { %2856 = vmatprep.mubr.bf16.mxu0 %v11683_v11  ;;  %v7883_v27 = vsel %vm2055_vm15, %v1761_v63, %v2183_v45  ;;  %vm2056_vm1 = vcmp.ge.f32.partialorder %v1764_v37, 0.0  ;;  %v2184_v42 = vmul.f32 0.01, %v1764_v37 }
 0x2db   : > { %v7885_v2 = vsel %vm2058_vm0, %v1772_v12, %v2186_v3 }
 0x2dc   : > { %v2404_v47 = vpack.c.bf16 %v7885_v2, %v7880_v32  ;;  %v7889_v59 = vsel %vm2056_vm1, %v1764_v37, %v2184_v42  ;;  %v6351_v28 = vpop.f32.mrb[76].mxu0 }
 0x2dd   : > { %v2403_v60 = vpack.c.bf16 %v7889_v59, %v7883_v27  ;;  %v1785_v46 = vadd.f32 %v7896_v29, %v6351_v28  ;;  %v1776_v31 = vpop.f32.mrb[77].mxu0 }
 0x2de   : > { %v1777_v10 = vadd.f32 %v7896_v29, %v1776_v31  ;;  %v6352_v14 = vpop.f32.mrb[78].mxu0 }
 0x2df   : > { %6123 = vmatmul.mubr.msk.bf16.gmra.mrb[40].mxu1 %vm2491_vm8, %v2393_v61  ;;  %vm2061_vm2 = vcmp.ge.f32.partialorder %v1785_v46, 0.0  ;;  %v2189_v22 = vmul.f32 0.01, %v1785_v46  ;;  %v1788_v48 = vadd.f32 %v7896_v29, %v6352_v14  ;;  %v1779_v34 = vpop.f32.mrb[79].mxu0 }
 0x2e0   : > { %2986 = vmatprep.mubr.bf16.mxu1 %v11683_v11  ;;  %vm2059_vm3 = vcmp.ge.f32.partialorder %v1777_v10, 0.0  ;;  %v2187_v63 = vmul.f32 0.01, %v1777_v10  ;;  %v1780_v49 = vadd.f32 %v7896_v29, %v1779_v34 }
 0x2e1   : > { %6111 = vmatmul.mubr.msk.bf16.gmra.mrb[184].mxu0 %vm2491_vm8, %v2381_v30  ;;  %v7911_v20 = vsel %vm2061_vm2, %v1785_v46, %v2189_v22  ;;  %vm2062_vm4 = vcmp.ge.f32.partialorder %v1788_v48, 0.0  ;;  %v2190_v55 = vmul.f32 0.01, %v1788_v48 }
 0x2e2   : > { %2866 = vmatprep.mubr.bf16.mxu0 %v11683_v11  ;;  %v7914_v1 = vsel %vm2059_vm3, %v1777_v10, %v2187_v63  ;;  %vm2060_vm5 = vcmp.ge.f32.partialorder %v1780_v49, 0.0  ;;  %v2188_v61 = vmul.f32 0.01, %v1780_v49 }
 0x2e3   : > { %v7916_v12 = vsel %vm2062_vm4, %v1788_v48, %v2190_v55 }
 0x2e4   : > { %v7920_v45 = vsel %vm2060_vm5, %v1780_v49, %v2188_v61  ;;  %v6355_v15 = vpop.f32.mrb[80].mxu0 }
 0x2e5   : > { %v1801_v30 = vadd.f32 %v7896_v29, %v6355_v15  ;;  %v1792_v37 = vpop.f32.mrb[81].mxu0 }
 0x2e6   : > { %v1793_v3 = vadd.f32 %v7896_v29, %v1792_v37  ;;  %v6356_v42 = vpop.f32.mrb[82].mxu0 }
 0x2e7   : > { %6124 = vmatmul.mubr.msk.bf16.gmra.mrb[44].mxu1 %vm2491_vm8, %v2394_v17  ;;  %vm2065_vm6 = vcmp.ge.f32.partialorder %v1801_v30, 0.0  ;;  %v2193_v28 = vmul.f32 0.01, %v1801_v30  ;;  %v1804_v46 = vadd.f32 %v7896_v29, %v6356_v42  ;;  %v1795_v31 = vpop.f32.mrb[83].mxu0 }
 0x2e8   : > { %2996 = vmatprep.mubr.bf16.mxu1 %v11683_v11  ;;  %vm2063_vm7 = vcmp.ge.f32.partialorder %v1793_v3, 0.0  ;;  %v2191_v10 = vmul.f32 0.01, %v1793_v3  ;;  %v1796_v14 = vadd.f32 %v7896_v29, %v1795_v31 }
 0x2e9   : > { %6112 = vmatmul.mubr.msk.bf16.gmra.mrb[188].mxu0 %vm2491_vm8, %v2382_v16  ;;  %v7937_v22 = vsel %vm2065_vm6, %v1801_v30, %v2193_v28  ;;  %vm2066_vm9 = vcmp.ge.f32.partialorder %v1804_v46, 0.0  ;;  %v2194_v7 = vmul.f32 0.01, %v1804_v46 }
 0x2ea   : > { %v7939_v38 = vsel %vm2063_vm7, %v1793_v3, %v2191_v10  ;;  %vm2064_vm10 = vcmp.ge.f32.partialorder %v1796_v14, 0.0  ;;  %v2192_v17 = vmul.f32 0.01, %v1796_v14 }
 0x2eb   : > { %v7941_v48 = vsel %vm2066_vm9, %v1804_v46, %v2194_v7 }
 0x2ec   : > { %v7945_v63 = vsel %vm2064_vm10, %v1796_v14, %v2192_v17  ;;  %v6359_v49 = vpop.f32.mrb[84].mxu0 }
 0x2ed   : > { %v1817_v9 = vadd.f32 %v7896_v29, %v6359_v49  ;;  %v1808_v16 = vpop.f32.mrb[85].mxu0 }
 0x2ee   : > { %v1809_v55 = vadd.f32 %v7896_v29, %v1808_v16  ;;  %v6360_v61 = vpop.f32.mrb[86].mxu0 }
 0x2ef   : > { %6125 = vmatmul.mubr.msk.bf16.gmra.mrb[48].mxu1 %vm2491_vm8, %v2395_v51  ;;  %vm2069_vm11 = vcmp.ge.f32.partialorder %v1817_v9, 0.0  ;;  %v2197_v15 = vmul.f32 0.01, %v1817_v9  ;;  %v1820_v30 = vadd.f32 %v7896_v29, %v6360_v61  ;;  %v1811_v37 = vpop.f32.mrb[87].mxu0 }
 0x2f0   : > { %3006 = vmatprep.mubr.bf16.mxu1 %v11683_v11  ;;  %vm2067_vm12 = vcmp.ge.f32.partialorder %v1809_v55, 0.0  ;;  %v2195_v3 = vmul.f32 0.01, %v1809_v55  ;;  %v1812_v42 = vadd.f32 %v7896_v29, %v1811_v37 }
 0x2f1   : > { %v7958_v28 = vsel %vm2069_vm11, %v1817_v9, %v2197_v15  ;;  %vm2070_vm13 = vcmp.ge.f32.partialorder %v1820_v30, 0.0  ;;  %v2198_v46 = vmul.f32 0.01, %v1820_v30 }
 0x2f2   : > { %v7960_v31 = vsel %vm2067_vm12, %v1809_v55, %v2195_v3  ;;  %vm2068_vm14 = vcmp.ge.f32.partialorder %v1812_v42, 0.0  ;;  %v2196_v50 = vmul.f32 0.01, %v1812_v42 }
 0x2f3   : > { %v7962_v35 = vsel %vm2070_vm13, %v1820_v30, %v2198_v46 }
 0x2f4   : > { %v7966_v10 = vsel %vm2068_vm14, %v1812_v42, %v2196_v50  ;;  %v6363_v14 = vpop.f32.mrb[88].mxu0 }
 0x2f5   : > { %v1833_v17 = vadd.f32 %v7896_v29, %v6363_v14  ;;  %v1824_v49 = vpop.f32.mrb[89].mxu0 }
 0x2f6   : > { %v1825_v9 = vadd.f32 %v7896_v29, %v1824_v49  ;;  %v6364_v16 = vpop.f32.mrb[90].mxu0 }
 0x2f7   : > { %6126 = vmatmul.mubr.msk.bf16.gmra.mrb[52].mxu1 %vm2491_vm8, %v2396_v43  ;;  %vm2073_vm15 = vcmp.ge.f32.partialorder %v1833_v17, 0.0  ;;  %v2201_v55 = vmul.f32 0.01, %v1833_v17  ;;  %v1836_v61 = vadd.f32 %v7896_v29, %v6364_v16  ;;  %v1827_v15 = vpop.f32.mrb[91].mxu0 }
 0x2f8   : > { %3016 = vmatprep.mubr.bf16.mxu1 %v11683_v11  ;;  %vm2071_vm0 = vcmp.ge.f32.partialorder %v1825_v9, 0.0  ;;  %v2199_v30 = vmul.f32 0.01, %v1825_v9  ;;  %v1828_v37 = vadd.f32 %v7896_v29, %v1827_v15 }
 0x2f9   : > { %v7979_v3 = vsel %vm2073_vm15, %v1833_v17, %v2201_v55  ;;  %vm2074_vm1 = vcmp.ge.f32.partialorder %v1836_v61, 0.0  ;;  %v2202_v42 = vmul.f32 0.01, %v1836_v61 }
 0x2fa   : > { %v7981_v46 = vsel %vm2071_vm0, %v1825_v9, %v2199_v30  ;;  %vm2072_vm2 = vcmp.ge.f32.partialorder %v1828_v37, 0.0  ;;  %v2200_v36 = vmul.f32 0.01, %v1828_v37 }
 0x2fb   : > { %v7983_v4 = vsel %vm2074_vm1, %v1836_v61, %v2202_v42 }
 0x2fc   : > { %v7987_v50 = vsel %vm2072_vm2, %v1828_v37, %v2200_v36  ;;  %v6367_v14 = vpop.f32.mrb[92].mxu0 }
 0x2fd   : > { %v1849_v17 = vadd.f32 %v7896_v29, %v6367_v14  ;;  %v1840_v16 = vpop.f32.mrb[93].mxu0 }
 0x2fe   : > { %v1841_v55 = vadd.f32 %v7896_v29, %v1840_v16  ;;  %v6368_v9 = vpop.f32.mrb[94].mxu0 }
 0x2ff   : > { %6127 = vmatmul.mubr.msk.bf16.gmra.mrb[56].mxu1 %vm2491_vm8, %v2397_v54  ;;  %vm2077_vm3 = vcmp.ge.f32.partialorder %v1849_v17, 0.0  ;;  %v2205_v61 = vmul.f32 0.01, %v1849_v17  ;;  %v1852_v15 = vadd.f32 %v7896_v29, %v6368_v9  ;;  %v1843_v30 = vpop.f32.mrb[95].mxu0 }
 0x300   : > { %3026 = vmatprep.mubr.bf16.mxu1 %v11683_v11  ;;  %vm2075_vm4 = vcmp.ge.f32.partialorder %v1841_v55, 0.0  ;;  %v2203_v37 = vmul.f32 0.01, %v1841_v55  ;;  %v1844_v42 = vadd.f32 %v7896_v29, %v1843_v30 }
 0x301   : > { %v8000_v36 = vsel %vm2077_vm3, %v1849_v17, %v2205_v61  ;;  %vm2078_vm5 = vcmp.ge.f32.partialorder %v1852_v15, 0.0  ;;  %v2206_v14 = vmul.f32 0.01, %v1852_v15 }
 0x302   : > { %v8002_v16 = vsel %vm2075_vm4, %v1841_v55, %v2203_v37  ;;  %vm2076_vm6 = vcmp.ge.f32.partialorder %v1844_v42, 0.0  ;;  %v2204_v0 = vmul.f32 0.01, %v1844_v42 }
 0x303   : > { %v8004_v8 = vsel %vm2078_vm5, %v1852_v15, %v2206_v14 }
 0x304   : > { %v8008_v9 = vsel %vm2076_vm6, %v1844_v42, %v2204_v0  ;;  %v6371_v43 = vpop.f32.mrb[96].mxu0 }
 0x305   : > { %v1865_v17 = vadd.f32 %v7896_v29, %v6371_v43  ;;  %v1856_v61 = vpop.f32.mrb[97].mxu0 }
 0x306   : > { %v1857_v30 = vadd.f32 %v7896_v29, %v1856_v61  ;;  %v6372_v55 = vpop.f32.mrb[98].mxu0 }
 0x307   : > { %6128 = vmatmul.mubr.msk.bf16.gmra.mrb[60].mxu1 %vm2491_vm8, %v2398_v6  ;;  %vm2081_vm7 = vcmp.ge.f32.partialorder %v1865_v17, 0.0  ;;  %v2209_v15 = vmul.f32 0.01, %v1865_v17  ;;  %v1868_v37 = vadd.f32 %v7896_v29, %v6372_v55  ;;  %v1859_v42 = vpop.f32.mrb[99].mxu0 }
 0x308   : > { %3036 = vmatprep.mubr.bf16.mxu1 %v11683_v11  ;;  %vm2079_vm9 = vcmp.ge.f32.partialorder %v1857_v30, 0.0  ;;  %v2207_v14 = vmul.f32 0.01, %v1857_v30  ;;  %v1860_v43 = vadd.f32 %v7896_v29, %v1859_v42 }
 0x309   : > { %v8021_v0 = vsel %vm2081_vm7, %v1865_v17, %v2209_v15  ;;  %vm2082_vm10 = vcmp.ge.f32.partialorder %v1868_v37, 0.0  ;;  %v2210_v61 = vmul.f32 0.01, %v1868_v37 }
 0x30a   : > { %v8023_v54 = vsel %vm2079_vm9, %v1857_v30, %v2207_v14  ;;  %vm2080_vm11 = vcmp.ge.f32.partialorder %v1860_v43, 0.0  ;;  %v2208_v13 = vmul.f32 0.01, %v1860_v43 }
 0x30b   : > { %v8025_v62 = vsel %vm2082_vm10, %v1868_v37, %v2210_v61 }
 0x30c   : > { %v8029_v55 = vsel %vm2080_vm11, %v1860_v43, %v2208_v13  ;;  %v6375_v49 = vpop.f32.mrb[100].mxu0 }
 0x30d   : > { %v1881_v17 = vadd.f32 %v7896_v29, %v6375_v49  ;;  %v1872_v15 = vpop.f32.mrb[101].mxu0 }
 0x30e   : > { %v1873_v42 = vadd.f32 %v7896_v29, %v1872_v15  ;;  %v6376_v30 = vpop.f32.mrb[102].mxu0 }
 0x30f   : > { %6129 = vmatmul.mubr.msk.bf16.gmra.mrb[64].mxu1 %vm2491_vm8, %v2399_v40  ;;  %vm2085_vm12 = vcmp.ge.f32.partialorder %v1881_v17, 0.0  ;;  %v2213_v37 = vmul.f32 0.01, %v1881_v17  ;;  %v1884_v14 = vadd.f32 %v7896_v29, %v6376_v30  ;;  %v1875_v43 = vpop.f32.mrb[103].mxu0 }
 0x310   : > { %3046 = vmatprep.mubr.bf16.mxu1 %v11683_v11  ;;  %vm2083_vm13 = vcmp.ge.f32.partialorder %v1873_v42, 0.0  ;;  %v2211_v61 = vmul.f32 0.01, %v1873_v42  ;;  %v1876_v49 = vadd.f32 %v7896_v29, %v1875_v43 }
 0x311   : > { %v8042_v13 = vsel %vm2085_vm12, %v1881_v17, %v2213_v37  ;;  %vm2086_vm14 = vcmp.ge.f32.partialorder %v1884_v14, 0.0  ;;  %v2214_v15 = vmul.f32 0.01, %v1884_v14 }
 0x312   : > { %v8044_v6 = vsel %vm2083_vm13, %v1873_v42, %v2211_v61  ;;  %vm2084_vm15 = vcmp.ge.f32.partialorder %v1876_v49, 0.0  ;;  %v2212_v21 = vmul.f32 0.01, %v1876_v49 }
 0x313   : > { %v8046_v52 = vsel %vm2086_vm14, %v1884_v14, %v2214_v15 }
 0x314   : > { %v8050_v30 = vsel %vm2084_vm15, %v1876_v49, %v2212_v21  ;;  %v6379_v51 = vpop.f32.mrb[104].mxu0 }
 0x315   : > { %v1897_v17 = vadd.f32 %v7896_v29, %v6379_v51  ;;  %v1888_v37 = vpop.f32.mrb[105].mxu0 }
 0x316   : > { %v1889_v43 = vadd.f32 %v7896_v29, %v1888_v37  ;;  %v6380_v42 = vpop.f32.mrb[106].mxu0 }
 0x317   : > { %6130 = vmatmul.mubr.msk.bf16.gmra.mrb[68].mxu1 %vm2491_vm8, %v2400_v18  ;;  %vm2089_vm0 = vcmp.ge.f32.partialorder %v1897_v17, 0.0  ;;  %v2217_v14 = vmul.f32 0.01, %v1897_v17  ;;  %v1900_v61 = vadd.f32 %v7896_v29, %v6380_v42  ;;  %v1891_v49 = vpop.f32.mrb[107].mxu0 }
 0x318   : > { %3056 = vmatprep.mubr.bf16.mxu1 %v11683_v11  ;;  %vm2087_vm1 = vcmp.ge.f32.partialorder %v1889_v43, 0.0  ;;  %v2215_v15 = vmul.f32 0.01, %v1889_v43  ;;  %v1892_v51 = vadd.f32 %v7896_v29, %v1891_v49 }
 0x319   : > { %v8063_v21 = vsel %vm2089_vm0, %v1897_v17, %v2217_v14  ;;  %vm2090_vm2 = vcmp.ge.f32.partialorder %v1900_v61, 0.0  ;;  %v2218_v37 = vmul.f32 0.01, %v1900_v61 }
 0x31a   : > { %v8065_v40 = vsel %vm2087_vm1, %v1889_v43, %v2215_v15  ;;  %vm2088_vm3 = vcmp.ge.f32.partialorder %v1892_v51, 0.0  ;;  %v2216_v33 = vmul.f32 0.01, %v1892_v51 }
 0x31b   : > { %v8067_v39 = vsel %vm2090_vm2, %v1900_v61, %v2218_v37 }
 0x31c   : > { %v8071_v42 = vsel %vm2088_vm3, %v1892_v51, %v2216_v33  ;;  %v6383_v7 = vpop.f32.mrb[108].mxu0 }
 0x31d   : > { %v1913_v17 = vadd.f32 %v7896_v29, %v6383_v7  ;;  %v1904_v14 = vpop.f32.mrb[109].mxu0 }
 0x31e   : > { %v1905_v49 = vadd.f32 %v7896_v29, %v1904_v14  ;;  %v6384_v43 = vpop.f32.mrb[110].mxu0 }
 0x31f   : > { %6131 = vmatmul.mubr.msk.bf16.gmra.mrb[72].mxu1 %vm2491_vm8, %v2401_v58  ;;  %vm2093_vm4 = vcmp.ge.f32.partialorder %v1913_v17, 0.0  ;;  %v2221_v61 = vmul.f32 0.01, %v1913_v17  ;;  %v1916_v15 = vadd.f32 %v7896_v29, %v6384_v43  ;;  %v1907_v51 = vpop.f32.mrb[111].mxu0 }
 0x320   : > { %3066 = vmatprep.mubr.bf16.mxu1 %v11683_v11  ;;  %vm2091_vm5 = vcmp.ge.f32.partialorder %v1905_v49, 0.0  ;;  %v2219_v37 = vmul.f32 0.01, %v1905_v49  ;;  %v1908_v7 = vadd.f32 %v7896_v29, %v1907_v51 }
 0x321   : > { %v8084_v33 = vsel %vm2093_vm4, %v1913_v17, %v2221_v61  ;;  %vm2094_vm6 = vcmp.ge.f32.partialorder %v1916_v15, 0.0  ;;  %v2222_v14 = vmul.f32 0.01, %v1916_v15 }
 0x322   : > { %v8086_v18 = vsel %vm2091_vm5, %v1905_v49, %v2219_v37  ;;  %vm2092_vm7 = vcmp.ge.f32.partialorder %v1908_v7, 0.0  ;;  %v2220_v53 = vmul.f32 0.01, %v1908_v7 }
 0x323   : > { %v8088_v26 = vsel %vm2094_vm6, %v1916_v15, %v2222_v14 }
 0x324   : > { %v8092_v43 = vsel %vm2092_vm7, %v1908_v7, %v2220_v53  ;;  %v6387_v34 = vpop.f32.mrb[112].mxu0 }
 0x325   : > { %v1929_v17 = vadd.f32 %v7896_v29, %v6387_v34  ;;  %v1920_v61 = vpop.f32.mrb[113].mxu0 }
 0x326   : > { %v1921_v51 = vadd.f32 %v7896_v29, %v1920_v61  ;;  %v6388_v49 = vpop.f32.mrb[114].mxu0 }
 0x327   : > { %6132 = vmatmul.mubr.msk.bf16.gmra.mrb[76].mxu1 %vm2491_vm8, %v2402_v41  ;;  %vm2097_vm9 = vcmp.ge.f32.partialorder %v1929_v17, 0.0  ;;  %v2225_v15 = vmul.f32 0.01, %v1929_v17  ;;  %v1932_v37 = vadd.f32 %v7896_v29, %v6388_v49  ;;  %v1923_v7 = vpop.f32.mrb[115].mxu0 }
 0x328   : > { %3076 = vmatprep.mubr.bf16.mxu1 %v11683_v11  ;;  %vm2095_vm10 = vcmp.ge.f32.partialorder %v1921_v51, 0.0  ;;  %v2223_v14 = vmul.f32 0.01, %v1921_v51  ;;  %v1924_v34 = vadd.f32 %v7896_v29, %v1923_v7 }
 0x329   : > { %v8105_v53 = vsel %vm2097_vm9, %v1929_v17, %v2225_v15  ;;  %vm2098_vm11 = vcmp.ge.f32.partialorder %v1932_v37, 0.0  ;;  %v2226_v61 = vmul.f32 0.01, %v1932_v37 }
 0x32a   : > { %v8107_v58 = vsel %vm2095_vm10, %v1921_v51, %v2223_v14  ;;  %vm2096_vm12 = vcmp.ge.f32.partialorder %v1924_v34, 0.0  ;;  %v2224_v56 = vmul.f32 0.01, %v1924_v34 }
 0x32b   : > { %v8109_v19 = vsel %vm2098_vm11, %v1932_v37, %v2226_v61 }
 0x32c   : > { %v8113_v49 = vsel %vm2096_vm12, %v1924_v34, %v2224_v56  ;;  %v6391_v57 = vpop.f32.mrb[116].mxu0 }
 0x32d   : > { %v1945_v17 = vadd.f32 %v7896_v29, %v6391_v57  ;;  %v1936_v15 = vpop.f32.mrb[117].mxu0 }
 0x32e   : > { %v1937_v7 = vadd.f32 %v7896_v29, %v1936_v15  ;;  %v6392_v51 = vpop.f32.mrb[118].mxu0 }
 0x32f   : > { %6133 = vmatmul.mubr.msk.bf16.gmra.mrb[80].mxu1 %vm2491_vm8, %v2403_v60  ;;  %vm2101_vm13 = vcmp.ge.f32.partialorder %v1945_v17, 0.0  ;;  %v2229_v37 = vmul.f32 0.01, %v1945_v17  ;;  %v1948_v14 = vadd.f32 %v7896_v29, %v6392_v51  ;;  %v1939_v34 = vpop.f32.mrb[119].mxu0 }
 0x330   : > { %3086 = vmatprep.mubr.bf16.mxu1 %v11683_v11  ;;  %vm2099_vm14 = vcmp.ge.f32.partialorder %v1937_v7, 0.0  ;;  %v2227_v61 = vmul.f32 0.01, %v1937_v7  ;;  %v1940_v57 = vadd.f32 %v7896_v29, %v1939_v34 }
 0x331   : > { %v8126_v56 = vsel %vm2101_vm13, %v1945_v17, %v2229_v37  ;;  %vm2102_vm15 = vcmp.ge.f32.partialorder %v1948_v14, 0.0  ;;  %v2230_v15 = vmul.f32 0.01, %v1948_v14 }
 0x332   : > { %v8128_v41 = vsel %vm2099_vm14, %v1937_v7, %v2227_v61  ;;  %vm2100_vm0 = vcmp.ge.f32.partialorder %v1940_v57, 0.0  ;;  %v2228_v27 = vmul.f32 0.01, %v1940_v57 }
 0x333   : > { %v8130_v59 = vsel %vm2102_vm15, %v1948_v14, %v2230_v15 }
 0x334   : > { %v8134_v51 = vsel %vm2100_vm0, %v1940_v57, %v2228_v27  ;;  %v6395_v5 = vpop.f32.mrb[120].mxu0 }
 0x335   : > { %v1961_v17 = vadd.f32 %v7896_v29, %v6395_v5  ;;  %v1952_v37 = vpop.f32.mrb[121].mxu0 }
 0x336   : > { %v1953_v34 = vadd.f32 %v7896_v29, %v1952_v37  ;;  %v6396_v7 = vpop.f32.mrb[122].mxu0 }
 0x337   : > { %6134 = vmatmul.mubr.msk.bf16.gmra.mrb[84].mxu1 %vm2491_vm8, %v2404_v47  ;;  %vm2105_vm1 = vcmp.ge.f32.partialorder %v1961_v17, 0.0  ;;  %v2233_v14 = vmul.f32 0.01, %v1961_v17  ;;  %v1964_v61 = vadd.f32 %v7896_v29, %v6396_v7  ;;  %v1955_v57 = vpop.f32.mrb[123].mxu0 }
 0x338   : > { %vm2103_vm2 = vcmp.ge.f32.partialorder %v1953_v34, 0.0  ;;  %v2231_v15 = vmul.f32 0.01, %v1953_v34  ;;  %3096 = vmatprep.mubr.bf16.mxu1 %v11683_v11  ;;  %v1956_v5 = vadd.f32 %v7896_v29, %v1955_v57 }
 0x339   : > { %v8147_v27 = vsel %vm2105_vm1, %v1961_v17, %v2233_v14  ;;  %vm2106_vm3 = vcmp.ge.f32.partialorder %v1964_v61, 0.0  ;;  %v2234_v37 = vmul.f32 0.01, %v1964_v61 }
 0x33a   : > { %11791 = vst [vmem:[#allocation8_spill] sm:$0xff] %v8147_v27  ;;  %v8149_v60 = vsel %vm2103_vm2, %v1953_v34, %v2231_v15  ;;  %vm2104_vm4 = vcmp.ge.f32.partialorder %v1956_v5, 0.0  ;;  %v2232_v32 = vmul.f32 0.01, %v1956_v5  ;;  %v11793_v15 = vpack.c.bf16 %v7920_v45, %v7914_v1 }
 0x33b   : > { %v8151_v2 = vsel %vm2106_vm3, %v1964_v61, %v2234_v37  ;;  %v2439_v61 = vld [vmem:[%s11674_s6] sm:$0x3] }
 0x33c   : > { %11792 = vst [vmem:[#allocation9_spill] sm:$0xff] %v8151_v2  ;;  %v8155_v7 = vsel %vm2104_vm4, %v1956_v5, %v2232_v32  ;;  %v6399_v44 = vpop.f32.mrb[124].mxu0  ;;  %v8174_v27 = vrot.slane %v2439_v61, %v7020_v24 }
 0x33d   : > { %v1977_v17 = vadd.f32 %v7896_v29, %v6399_v44  ;;  %v1968_v14 = vpop.f32.mrb[125].mxu0 }
 0x33e   : > { %v1969_v57 = vadd.f32 %v7896_v29, %v1968_v14  ;;  %v6400_v34 = vpop.f32.mrb[126].mxu0  ;;  %v11794_v14 = vmov 0  }
 0x33f   : > { %6135 = vmatmul.mubr.msk.bf16.gmra.mrb[88].mxu1 %vm2491_vm8, %v11793_v15  ;;  %vm2109_vm5 = vcmp.ge.f32.partialorder %v1977_v17, 0.0  ;;  %v2237_v5 = vmul.f32 0.01, %v1977_v17  ;;  %v1980_v37 = vadd.f32 %v7896_v29, %v6400_v34  ;;  %v1971_v32 = vpop.f32.mrb[127].mxu0  ;;  %v8179_v34 = vrot.slane %v2439_v61, %v7023_v25 }
 0x340   : > { %vm2107_vm6 = vcmp.ge.f32.partialorder %v1969_v57, 0.0  ;;  %v2235_v44 = vmul.f32 0.01, %v1969_v57  ;;  %v1972_v47 = vadd.f32 %v7896_v29, %v1971_v32  ;;  %3106 = vmatprep.mubr.bf16.mxu1 %v11794_v14  ;;  %v11797_v29 = vpack.c.bf16 %v7916_v12, %v7911_v20 }
 0x341   : > { %v8171_v11 = vsel %vm2109_vm5, %v1977_v17, %v2237_v5  ;;  %vm2110_vm7 = vcmp.ge.f32.partialorder %v1980_v37, 0.0  ;;  %v2238_v23 = vmul.f32 0.01, %v1980_v37 }
 0x342   : > { %11795 = vst [vmem:[#allocation10_spill] sm:$0xff] %v8171_v11  ;;  %v8176_v1 = vsel %vm2107_vm6, %v1969_v57, %v2235_v44  ;;  %vm2108_vm9 = vcmp.ge.f32.partialorder %v1972_v47, 0.0  ;;  %v2236_v45 = vmul.f32 0.01, %v1972_v47 }
 0x343   : > { %v8181_v15 = vsel %vm2110_vm7, %v1980_v37, %v2238_v23 }
 0x344   : > { %11796 = vst [vmem:[#allocation11_spill] sm:$0xff] %v8181_v15  ;;  %v8185_v32 = vsel %vm2108_vm9, %v1972_v47, %v2236_v45  ;;  %v2718_v17 = vpop.f32.mrb[128].mxu0 }
 0x345   : > { %v2719_v24 = vadd.f32 %v2718_v17, %v8174_v27  ;;  %v2720_v57 = vpop.f32.mrb[129].mxu0 }
 0x346   : > { %v2721_v44 = vadd.f32 %v2720_v57, %v8179_v34  ;;  %v2722_v2 = vpop.f32.mrb[130].mxu0 }
 0x347   : > { %vm3357_vm10 = vcmp.ge.f32.partialorder %v2719_v24, 0.0  ;;  %v3613_v61 = vmul.f32 0.01, %v2719_v24  ;;  %v2723_v23 = vadd.f32 %v2722_v2, %v8174_v27  ;;  %v2724_v37 = vpop.f32.mrb[131].mxu0  ;;  %6136 = vmatmul.mubr.msk.bf16.gmra.mrb[92].mxu1 %vm2491_vm8, %v11797_v29 }
 0x348   : > { %vm3358_vm11 = vcmp.ge.f32.partialorder %v2721_v44, 0.0  ;;  %v3614_v47 = vmul.f32 0.01, %v2721_v44  ;;  %v2725_v45 = vadd.f32 %v2724_v37, %v8179_v34  ;;  %3116 = vmatprep.mubr.bf16.mxu1 %v11794_v14 }
 0x349   : > { %v8198_v17 = vsel %vm3357_vm10, %v2719_v24, %v3613_v61  ;;  %vm3359_vm12 = vcmp.ge.f32.partialorder %v2723_v23, 0.0  ;;  %v3615_v57 = vmul.f32 0.01, %v2723_v23 }
 0x34a   : > { %11798 = vst [vmem:[#allocation12_spill] sm:$0xff] %v8198_v17  ;;  %v8200_v5 = vsel %vm3358_vm11, %v2721_v44, %v3614_v47  ;;  %vm3360_vm13 = vcmp.ge.f32.partialorder %v2725_v45, 0.0  ;;  %v3616_v2 = vmul.f32 0.01, %v2725_v45  ;;  %v11801_v44 = vpack.c.bf16 %v7945_v63, %v7939_v38 }
 0x34b   : > { %11799 = vst [vmem:[#allocation13_spill] sm:$0xff] %v8200_v5  ;;  %v8202_v25 = vsel %vm3359_vm12, %v2723_v23, %v3615_v57 }
 0x34c   : > { %11800 = vst [vmem:[#allocation14_spill] sm:$0xff] %v8202_v25  ;;  %v8204_v11 = vsel %vm3360_vm13, %v2725_v45, %v3616_v2  ;;  %v2728_v20 = vpop.f32.mrb[132].mxu0 }
 0x34d   : > { %v2729_v12 = vadd.f32 %v2728_v20, %v8174_v27  ;;  %v2730_v29 = vpop.f32.mrb[133].mxu0 }
 0x34e   : > { %v2731_v37 = vadd.f32 %v2730_v29, %v8179_v34  ;;  %v2732_v15 = vpop.f32.mrb[134].mxu0 }
 0x34f   : > { %vm3361_vm14 = vcmp.ge.f32.partialorder %v2729_v12, 0.0  ;;  %v3617_v24 = vmul.f32 0.01, %v2729_v12  ;;  %v2733_v61 = vadd.f32 %v2732_v15, %v8174_v27  ;;  %v2734_v17 = vpop.f32.mrb[135].mxu0  ;;  %6137 = vmatmul.mubr.msk.bf16.gmra.mrb[96].mxu1 %vm2491_vm8, %v11801_v44 }
 0x350   : > { %vm3362_vm15 = vcmp.ge.f32.partialorder %v2731_v37, 0.0  ;;  %v3618_v23 = vmul.f32 0.01, %v2731_v37  ;;  %v2735_v47 = vadd.f32 %v2734_v17, %v8179_v34  ;;  %3126 = vmatprep.mubr.bf16.mxu1 %v11794_v14 }
 0x351   : > { %v8215_v45 = vsel %vm3361_vm14, %v2729_v12, %v3617_v24  ;;  %vm3363_vm0 = vcmp.ge.f32.partialorder %v2733_v61, 0.0  ;;  %v3619_v57 = vmul.f32 0.01, %v2733_v61 }
 0x352   : > { %11802 = vst [vmem:[#allocation15_spill] sm:$0xff] %v8215_v45  ;;  %v8217_v2 = vsel %vm3362_vm15, %v2731_v37, %v3618_v23  ;;  %vm3364_vm1 = vcmp.ge.f32.partialorder %v2735_v47, 0.0  ;;  %v3620_v15 = vmul.f32 0.01, %v2735_v47  ;;  %v11806_v37 = vpack.c.bf16 %v7941_v48, %v7937_v22 }
 0x353   : > { %11803 = vst [vmem:[#allocation16_spill] sm:$0xff] %v8217_v2  ;;  %v8219_v20 = vsel %vm3363_vm0, %v2733_v61, %v3619_v57 }
 0x354   : > { %11804 = vst [vmem:[#allocation17_spill] sm:$0xff] %v8219_v20  ;;  %v8221_v29 = vsel %vm3364_vm1, %v2735_v47, %v3620_v15  ;;  %v2738_v38 = vpop.f32.mrb[136].mxu0 }
 0x355   : > { %11805 = vst [vmem:[#allocation18_spill] sm:$0xff] %v8221_v29  ;;  %v2739_v63 = vadd.f32 %v2738_v38, %v8174_v27  ;;  %v2740_v44 = vpop.f32.mrb[137].mxu0 }
 0x356   : > { %v2741_v17 = vadd.f32 %v2740_v44, %v8179_v34  ;;  %v2742_v5 = vpop.f32.mrb[138].mxu0 }
 0x357   : > { %vm3365_vm2 = vcmp.ge.f32.partialorder %v2739_v63, 0.0  ;;  %v3621_v12 = vmul.f32 0.01, %v2739_v63  ;;  %v2743_v24 = vadd.f32 %v2742_v5, %v8174_v27  ;;  %v2744_v45 = vpop.f32.mrb[139].mxu0  ;;  %6138 = vmatmul.mubr.msk.bf16.gmra.mrb[100].mxu1 %vm2491_vm8, %v11806_v37 }
 0x358   : > { %vm3366_vm3 = vcmp.ge.f32.partialorder %v2741_v17, 0.0  ;;  %v3622_v61 = vmul.f32 0.01, %v2741_v17  ;;  %v2745_v23 = vadd.f32 %v2744_v45, %v8179_v34  ;;  %3136 = vmatprep.mubr.bf16.mxu1 %v11794_v14 }
 0x359   : > { %v8232_v47 = vsel %vm3365_vm2, %v2739_v63, %v3621_v12  ;;  %vm3367_vm4 = vcmp.ge.f32.partialorder %v2743_v24, 0.0  ;;  %v3623_v57 = vmul.f32 0.01, %v2743_v24 }
 0x35a   : > { %11807 = vst [vmem:[#allocation19_spill] sm:$0xff] %v8232_v47  ;;  %v8234_v15 = vsel %vm3366_vm3, %v2741_v17, %v3622_v61  ;;  %vm3368_vm5 = vcmp.ge.f32.partialorder %v2745_v23, 0.0  ;;  %v3624_v5 = vmul.f32 0.01, %v2745_v23  ;;  %v11811_v17 = vpack.c.bf16 %v7966_v10, %v7960_v31 }
 0x35b   : > { %11808 = vst [vmem:[#allocation20_spill] sm:$0xff] %v8234_v15  ;;  %v8236_v38 = vsel %vm3367_vm4, %v2743_v24, %v3623_v57 }
 0x35c   : > { %11809 = vst [vmem:[#allocation21_spill] sm:$0xff] %v8236_v38  ;;  %v8238_v44 = vsel %vm3368_vm5, %v2745_v23, %v3624_v5  ;;  %v2748_v22 = vpop.f32.mrb[140].mxu0 }
 0x35d   : > { %11810 = vst [vmem:[#allocation22_spill] sm:$0xff] %v8238_v44  ;;  %v2749_v48 = vadd.f32 %v2748_v22, %v8174_v27  ;;  %v2750_v37 = vpop.f32.mrb[141].mxu0 }
 0x35e   : > { %v2751_v45 = vadd.f32 %v2750_v37, %v8179_v34  ;;  %v2752_v29 = vpop.f32.mrb[142].mxu0 }
 0x35f   : > { %vm3369_vm6 = vcmp.ge.f32.partialorder %v2749_v48, 0.0  ;;  %v3625_v63 = vmul.f32 0.01, %v2749_v48  ;;  %v2753_v12 = vadd.f32 %v2752_v29, %v8174_v27  ;;  %v2754_v47 = vpop.f32.mrb[143].mxu0  ;;  %6139 = vmatmul.mubr.msk.bf16.gmra.mrb[104].mxu1 %vm2491_vm8, %v11811_v17 }
 0x360   : > { %vm3370_vm7 = vcmp.ge.f32.partialorder %v2751_v45, 0.0  ;;  %v3626_v24 = vmul.f32 0.01, %v2751_v45  ;;  %v2755_v61 = vadd.f32 %v2754_v47, %v8179_v34  ;;  %3146 = vmatprep.mubr.bf16.mxu1 %v11794_v14 }
 0x361   : > { %v8249_v23 = vsel %vm3369_vm6, %v2749_v48, %v3625_v63  ;;  %vm3371_vm9 = vcmp.ge.f32.partialorder %v2753_v12, 0.0  ;;  %v3627_v57 = vmul.f32 0.01, %v2753_v12 }
 0x362   : > { %11812 = vst [vmem:[#allocation23_spill] sm:$0xff] %v8249_v23  ;;  %v8251_v5 = vsel %vm3370_vm7, %v2751_v45, %v3626_v24  ;;  %vm3372_vm10 = vcmp.ge.f32.partialorder %v2755_v61, 0.0  ;;  %v3628_v29 = vmul.f32 0.01, %v2755_v61  ;;  %v2878_v22 = vpop.f32.mrb[0].mxu1 }
 0x363   : > { %11813 = vst [vmem:[#allocation24_spill] sm:$0xff] %v8251_v5  ;;  %v8253_v37 = vsel %vm3371_vm9, %v2753_v12, %v3627_v57  ;;  %v2879_v31 = vadd.f32 %v2878_v22, %v8174_v27  ;;  %v2880_v10 = vpop.f32.mrb[1].mxu1 }
 0x364   : > { %11814 = vst [vmem:[#allocation25_spill] sm:$0xff] %v8253_v37  ;;  %v8256_v17 = vsel %vm3372_vm10, %v2755_v61, %v3628_v29  ;;  %v2881_v47 = vadd.f32 %v2880_v10, %v8179_v34  ;;  %v2758_v44 = vpop.f32.mrb[144].mxu0  ;;  %v2882_v38 = vpop.f32.mrb[2].mxu1 }
 0x365   : > { %11815 = vst [vmem:[#allocation26_spill] sm:$0xff] %v8256_v17  ;;  %vm3421_vm11 = vcmp.ge.f32.partialorder %v2879_v31, 0.0  ;;  %v3677_v48 = vmul.f32 0.01, %v2879_v31  ;;  %v2759_v63 = vadd.f32 %v2758_v44, %v8174_v27  ;;  %v2883_v45 = vadd.f32 %v2882_v38, %v8174_v27  ;;  %v2760_v24 = vpop.f32.mrb[145].mxu0  ;;  %v2884_v5 = vpop.f32.mrb[3].mxu1 }
 0x366   : > { %vm3422_vm12 = vcmp.ge.f32.partialorder %v2881_v47, 0.0  ;;  %v3678_v12 = vmul.f32 0.01, %v2881_v47  ;;  %v2761_v57 = vadd.f32 %v2760_v24, %v8179_v34  ;;  %v2885_v22 = vadd.f32 %v2884_v5, %v8179_v34  ;;  %v2762_v61 = vpop.f32.mrb[146].mxu0 }
 0x367   : > { %v8263_v29 = vsel %vm3421_vm11, %v2879_v31, %v3677_v48  ;;  %vm3373_vm13 = vcmp.ge.f32.partialorder %v2759_v63, 0.0  ;;  %v3629_v10 = vmul.f32 0.01, %v2759_v63  ;;  %vm3423_vm14 = vcmp.ge.f32.partialorder %v2883_v45, 0.0  ;;  %v2764_v17 = vpop.f32.mrb[147].mxu0 }
 0x368   : > { %11816 = vst [vmem:[#allocation27_spill] sm:$0xff] %v8263_v29  ;;  %v11817_v44 = vpack.c.bf16 %v7962_v35, %v7958_v28  ;;  %v8269_v38 = vsel %vm3422_vm12, %v2881_v47, %v3678_v12  ;;  %v3679_v37 = vmul.f32 0.01, %v2883_v45  ;;  %vm3374_vm15 = vcmp.ge.f32.partialorder %v2761_v57, 0.0 }
 0x369   : > { %11818 = vst [vmem:[#allocation28_spill] sm:$0xff] %v8269_v38  ;;  %v3630_v23 = vmul.f32 0.01, %v2761_v57  ;;  %v8272_v5 = vsel %vm3373_vm13, %v2759_v63, %v3629_v10  ;;  %vm3424_vm0 = vcmp.ge.f32.partialorder %v2885_v22, 0.0  ;;  %v3680_v31 = vmul.f32 0.01, %v2885_v22 }
 0x36a   : > { %6140 = vmatmul.mubr.msk.bf16.gmra.mrb[108].mxu1 %vm2491_vm8, %v11817_v44  ;;  %11819 = vst [vmem:[#allocation29_spill] sm:$0xff] %v8272_v5  ;;  %v2763_v48 = vadd.f32 %v2762_v61, %v8174_v27  ;;  %v8275_v24 = vsel %vm3423_vm14, %v2883_v45, %v3679_v37  ;;  %v2765_v28 = vadd.f32 %v2764_v17, %v8179_v34  ;;  %v2888_v35 = vpop.f32.mrb[4].mxu1 }
 0x36b   : > { %3156 = vmatprep.mubr.bf16.mxu1 %v11794_v14  ;;  %11820 = vst [vmem:[#allocation30_spill] sm:$0xff] %v8275_v24  ;;  %v8277_v15 = vsel %vm3374_vm15, %v2761_v57, %v3630_v23  ;;  %v8280_v47 = vsel %vm3424_vm0, %v2885_v22, %v3680_v31  ;;  %v2889_v44 = vadd.f32 %v2888_v35, %v8174_v27  ;;  %v2890_v20 = vpop.f32.mrb[5].mxu1 }
 0x36c   : > { %11821 = vst [vmem:[#allocation31_spill] sm:$0xff] %v8277_v15  ;;  %11822 = vst [vmem:[#allocation32_spill] sm:$0xff] %v8280_v47  ;;  %vm3375_vm1 = vcmp.ge.f32.partialorder %v2763_v48, 0.0  ;;  %v3631_v12 = vmul.f32 0.01, %v2763_v48  ;;  %vm3376_vm2 = vcmp.ge.f32.partialorder %v2765_v28, 0.0  ;;  %v2891_v10 = vadd.f32 %v2890_v20, %v8179_v34 }
 0x36d   : > { %v3632_v63 = vmul.f32 0.01, %v2765_v28  ;;  %v2768_v5 = vpop.f32.mrb[148].mxu0  ;;  %v2892_v61 = vpop.f32.mrb[6].mxu1  ;;  %vm3425_vm3 = vcmp.ge.f32.partialorder %v2889_v44, 0.0 }
 0x36e   : > { %v8284_v37 = vsel %vm3375_vm1, %v2763_v48, %v3631_v12  ;;  %v3681_v23 = vmul.f32 0.01, %v2889_v44  ;;  %v2769_v17 = vadd.f32 %v2768_v5, %v8174_v27  ;;  %v2770_v45 = vpop.f32.mrb[149].mxu0  ;;  %v2894_v57 = vpop.f32.mrb[7].mxu1  ;;  %vm3426_vm4 = vcmp.ge.f32.partialorder %v2891_v10, 0.0 }
 0x36f   : > { %11823 = vst [vmem:[#allocation33_spill] sm:$0xff] %v8284_v37  ;;  %v8287_v22 = vsel %vm3376_vm2, %v2765_v28, %v3632_v63  ;;  %v3682_v31 = vmul.f32 0.01, %v2891_v10  ;;  %v2893_v35 = vadd.f32 %v2892_v61, %v8174_v27  ;;  %v2772_v15 = vpop.f32.mrb[150].mxu0  ;;  %v2771_v48 = vadd.f32 %v2770_v45, %v8179_v34 }
 0x370   : > { %11824 = vst [vmem:[#allocation34_spill] sm:$0xff] %v8287_v22  ;;  %v8290_v2 = vsel %vm3425_vm3, %v2889_v44, %v3681_v23  ;;  %vm3377_vm5 = vcmp.ge.f32.partialorder %v2769_v17, 0.0  ;;  %v3633_v20 = vmul.f32 0.01, %v2769_v17  ;;  %v2774_v12 = vpop.f32.mrb[151].mxu0  ;;  %v11826_v37 = vpack.c.bf16 %v7987_v50, %v7981_v46 }
 0x371   : > { %11825 = vst [vmem:[#allocation35_spill] sm:$0xff] %v8290_v2  ;;  %v8297_v5 = vsel %vm3426_vm4, %v2891_v10, %v3682_v31  ;;  %vm3427_vm6 = vcmp.ge.f32.partialorder %v2893_v35, 0.0  ;;  %v3683_v28 = vmul.f32 0.01, %v2893_v35  ;;  %v2895_v63 = vadd.f32 %v2894_v57, %v8179_v34 }
 0x372   : > { %6141 = vmatmul.mubr.msk.bf16.gmra.mrb[112].mxu1 %vm2491_vm8, %v11826_v37  ;;  %v8301_v44 = vsel %vm3377_vm5, %v2769_v17, %v3633_v20  ;;  %vm3378_vm7 = vcmp.ge.f32.partialorder %v2771_v48, 0.0  ;;  %v3634_v61 = vmul.f32 0.01, %v2771_v48  ;;  %v2773_v23 = vadd.f32 %v2772_v15, %v8174_v27  ;;  %v2898_v10 = vpop.f32.mrb[8].mxu1 }
 0x373   : > { %3166 = vmatprep.mubr.bf16.mxu1 %v11794_v14  ;;  %11827 = vst [vmem:[#allocation36_spill] sm:$0xff] %v8301_v44  ;;  %v8304_v45 = vsel %vm3427_vm6, %v2893_v35, %v3683_v28  ;;  %vm3428_vm9 = vcmp.ge.f32.partialorder %v2895_v63, 0.0  ;;  %v3684_v46 = vmul.f32 0.01, %v2895_v63  ;;  %v2775_v50 = vadd.f32 %v2774_v12, %v8179_v34  ;;  %v2900_v22 = vpop.f32.mrb[9].mxu1 }
 0x374   : > { %11828 = vst [vmem:[#allocation37_spill] sm:$0xff] %v8304_v45  ;;  %v8307_v37 = vsel %vm3378_vm7, %v2771_v48, %v3634_v61  ;;  %vm3379_vm10 = vcmp.ge.f32.partialorder %v2773_v23, 0.0  ;;  %v3635_v31 = vmul.f32 0.01, %v2773_v23  ;;  %v2899_v57 = vadd.f32 %v2898_v10, %v8174_v27  ;;  %v2778_v35 = vpop.f32.mrb[152].mxu0  ;;  %v2902_v28 = vpop.f32.mrb[10].mxu1 }
 0x375   : > { %11829 = vst [vmem:[#allocation38_spill] sm:$0xff] %v8307_v37  ;;  %v8310_v17 = vsel %vm3428_vm9, %v2895_v63, %v3684_v46  ;;  %vm3380_vm11 = vcmp.ge.f32.partialorder %v2775_v50, 0.0  ;;  %v3636_v20 = vmul.f32 0.01, %v2775_v50  ;;  %v2901_v15 = vadd.f32 %v2900_v22, %v8179_v34  ;;  %v2780_v61 = vpop.f32.mrb[153].mxu0  ;;  %v2904_v37 = vpop.f32.mrb[11].mxu1 }
 0x376   : > { %11830 = vst [vmem:[#allocation39_spill] sm:$0xff] %v8310_v17  ;;  %v8313_v44 = vsel %vm3379_vm10, %v2773_v23, %v3635_v31  ;;  %vm3429_vm12 = vcmp.ge.f32.partialorder %v2899_v57, 0.0  ;;  %v3685_v12 = vmul.f32 0.01, %v2899_v57  ;;  %v2779_v48 = vadd.f32 %v2778_v35, %v8174_v27  ;;  %v2782_v46 = vpop.f32.mrb[154].mxu0 }
 0x377   : > { %11831 = vst [vmem:[#allocation40_spill] sm:$0xff] %v8313_v44  ;;  %v8316_v45 = vsel %vm3380_vm11, %v2775_v50, %v3636_v20  ;;  %vm3430_vm13 = vcmp.ge.f32.partialorder %v2901_v15, 0.0  ;;  %v3686_v10 = vmul.f32 0.01, %v2901_v15  ;;  %v2903_v63 = vadd.f32 %v2902_v28, %v8174_v27  ;;  %v2784_v31 = vpop.f32.mrb[155].mxu0 }
 0x378   : > { %11832 = vst [vmem:[#allocation41_spill] sm:$0xff] %v8316_v45  ;;  %v8319_v17 = vsel %vm3429_vm12, %v2899_v57, %v3685_v12  ;;  %vm3381_vm14 = vcmp.ge.f32.partialorder %v2779_v48, 0.0  ;;  %v3637_v22 = vmul.f32 0.01, %v2779_v48  ;;  %v2781_v23 = vadd.f32 %v2780_v61, %v8179_v34 }
 0x379   : > { %11833 = vst [vmem:[#allocation42_spill] sm:$0xff] %v8319_v17  ;;  %v11834_v44 = vpack.c.bf16 %v7983_v4, %v7979_v3  ;;  %v8326_v35 = vsel %vm3430_vm13, %v2901_v15, %v3686_v10  ;;  %vm3431_vm15 = vcmp.ge.f32.partialorder %v2903_v63, 0.0  ;;  %v3687_v50 = vmul.f32 0.01, %v2903_v63 }
 0x37a   : > { %11835 = vst [vmem:[#allocation43_spill] sm:$0xff] %v8326_v35  ;;  %v2905_v20 = vadd.f32 %v2904_v37, %v8179_v34  ;;  %v8330_v57 = vsel %vm3381_vm14, %v2779_v48, %v3637_v22  ;;  %vm3382_vm0 = vcmp.ge.f32.partialorder %v2781_v23, 0.0  ;;  %v3638_v28 = vmul.f32 0.01, %v2781_v23 }
 0x37b   : > { %6142 = vmatmul.mubr.msk.bf16.gmra.mrb[116].mxu1 %vm2491_vm8, %v11834_v44  ;;  %11836 = vst [vmem:[#allocation44_spill] sm:$0xff] %v8330_v57  ;;  %v2783_v12 = vadd.f32 %v2782_v46, %v8174_v27  ;;  %v8333_v61 = vsel %vm3431_vm15, %v2903_v63, %v3687_v50  ;;  %v2785_v4 = vadd.f32 %v2784_v31, %v8179_v34  ;;  %v2908_v44 = vpop.f32.mrb[12].mxu1 }
 0x37c   : > { %3176 = vmatprep.mubr.bf16.mxu1 %v11794_v14  ;;  %11837 = vst [vmem:[#allocation45_spill] sm:$0xff] %v8333_v61  ;;  %vm3432_vm1 = vcmp.ge.f32.partialorder %v2905_v20, 0.0  ;;  %v3688_v3 = vmul.f32 0.01, %v2905_v20  ;;  %v8336_v15 = vsel %vm3382_vm0, %v2781_v23, %v3638_v28  ;;  %v2909_v37 = vadd.f32 %v2908_v44, %v8174_v27  ;;  %v2910_v45 = vpop.f32.mrb[13].mxu1  ;;  %v2788_v63 = vpop.f32.mrb[156].mxu0 }
 0x37d   : > { %11838 = vst [vmem:[#allocation46_spill] sm:$0xff] %v8336_v15  ;;  %vm3383_vm2 = vcmp.ge.f32.partialorder %v2783_v12, 0.0  ;;  %v3639_v10 = vmul.f32 0.01, %v2783_v12  ;;  %vm3384_vm3 = vcmp.ge.f32.partialorder %v2785_v4, 0.0  ;;  %v2911_v46 = vadd.f32 %v2910_v45, %v8179_v34  ;;  %v2912_v50 = vpop.f32.mrb[14].mxu1 }
 0x37e   : > { %v8339_v48 = vsel %vm3432_vm1, %v2905_v20, %v3688_v3  ;;  %v3640_v22 = vmul.f32 0.01, %v2785_v4  ;;  %vm3433_vm4 = vcmp.ge.f32.partialorder %v2909_v37, 0.0  ;;  %v3689_v31 = vmul.f32 0.01, %v2909_v37  ;;  %v2790_v28 = vpop.f32.mrb[157].mxu0 }
 0x37f   : > { %11839 = vst [vmem:[#allocation47_spill] sm:$0xff] %v8339_v48  ;;  %v8342_v57 = vsel %vm3383_vm2, %v2783_v12, %v3639_v10  ;;  %v2789_v23 = vadd.f32 %v2788_v63, %v8174_v27  ;;  %v2914_v15 = vpop.f32.mrb[15].mxu1  ;;  %vm3434_vm5 = vcmp.ge.f32.partialorder %v2911_v46, 0.0  ;;  %v3690_v44 = vmul.f32 0.01, %v2911_v46  ;;  %v2792_v3 = vpop.f32.mrb[158].mxu0 }
 0x380   : > { %11840 = vst [vmem:[#allocation48_spill] sm:$0xff] %v8342_v57  ;;  %v8345_v61 = vsel %vm3384_vm3, %v2785_v4, %v3640_v22  ;;  %v2913_v20 = vadd.f32 %v2912_v50, %v8174_v27  ;;  %v8348_v48 = vsel %vm3433_vm4, %v2909_v37, %v3689_v31  ;;  %v2791_v12 = vadd.f32 %v2790_v28, %v8179_v34  ;;  %v2794_v10 = vpop.f32.mrb[159].mxu0 }
 0x381   : > { %11841 = vst [vmem:[#allocation49_spill] sm:$0xff] %v8345_v61  ;;  %11842 = vst [vmem:[#allocation50_spill] sm:$0xff] %v8348_v48  ;;  %vm3385_vm6 = vcmp.ge.f32.partialorder %v2789_v23, 0.0  ;;  %v3641_v45 = vmul.f32 0.01, %v2789_v23  ;;  %v11843_v57 = vpack.c.bf16 %v8008_v9, %v8002_v16  ;;  %v8355_v63 = vsel %vm3434_vm5, %v2911_v46, %v3690_v44 }
 0x382   : > { %11844 = vst [vmem:[#allocation51_spill] sm:$0xff] %v8355_v63  ;;  %vm3435_vm7 = vcmp.ge.f32.partialorder %v2913_v20, 0.0  ;;  %v3691_v4 = vmul.f32 0.01, %v2913_v20  ;;  %v2915_v22 = vadd.f32 %v2914_v15, %v8179_v34  ;;  %vm3386_vm9 = vcmp.ge.f32.partialorder %v2791_v12, 0.0 }
 0x383   : > { %6143 = vmatmul.mubr.msk.bf16.gmra.mrb[120].mxu1 %vm2491_vm8, %v11843_v57  ;;  %v8359_v37 = vsel %vm3385_vm6, %v2789_v23, %v3641_v45  ;;  %v3642_v50 = vmul.f32 0.01, %v2791_v12  ;;  %v2793_v31 = vadd.f32 %v2792_v3, %v8174_v27  ;;  %v2795_v9 = vadd.f32 %v2794_v10, %v8179_v34  ;;  %v2918_v57 = vpop.f32.mrb[16].mxu1 }
 0x384   : > { %3186 = vmatprep.mubr.bf16.mxu1 %v11794_v14  ;;  %11845 = vst [vmem:[#allocation52_spill] sm:$0xff] %v8359_v37  ;;  %v8362_v28 = vsel %vm3435_vm7, %v2913_v20, %v3691_v4  ;;  %vm3436_vm10 = vcmp.ge.f32.partialorder %v2915_v22, 0.0  ;;  %v3692_v16 = vmul.f32 0.01, %v2915_v22  ;;  %v2919_v15 = vadd.f32 %v2918_v57, %v8174_v27  ;;  %v2920_v61 = vpop.f32.mrb[17].mxu1  ;;  %v2798_v20 = vpop.f32.mrb[160].mxu0 }
 0x385   : > { %11846 = vst [vmem:[#allocation53_spill] sm:$0xff] %v8362_v28  ;;  %v8365_v46 = vsel %vm3386_vm9, %v2791_v12, %v3642_v50  ;;  %vm3387_vm11 = vcmp.ge.f32.partialorder %v2793_v31, 0.0  ;;  %v3643_v44 = vmul.f32 0.01, %v2793_v31  ;;  %vm3388_vm12 = vcmp.ge.f32.partialorder %v2795_v9, 0.0  ;;  %v2922_v4 = vpop.f32.mrb[18].mxu1 }
 0x386   : > { %11847 = vst [vmem:[#allocation54_spill] sm:$0xff] %v8365_v46  ;;  %v8368_v23 = vsel %vm3436_vm10, %v2915_v22, %v3692_v16  ;;  %v3644_v45 = vmul.f32 0.01, %v2795_v9  ;;  %v2921_v3 = vadd.f32 %v2920_v61, %v8179_v34  ;;  %vm3437_vm13 = vcmp.ge.f32.partialorder %v2919_v15, 0.0  ;;  %v2800_v50 = vpop.f32.mrb[161].mxu0  ;;  %v2924_v46 = vpop.f32.mrb[19].mxu1 }
 0x387   : > { %11848 = vst [vmem:[#allocation55_spill] sm:$0xff] %v8368_v23  ;;  %v8371_v37 = vsel %vm3387_vm11, %v2793_v31, %v3643_v44  ;;  %v3693_v10 = vmul.f32 0.01, %v2919_v15  ;;  %v2799_v12 = vadd.f32 %v2798_v20, %v8174_v27  ;;  %v2923_v22 = vadd.f32 %v2922_v4, %v8174_v27  ;;  %v2802_v16 = vpop.f32.mrb[162].mxu0 }
 0x388   : > { %11849 = vst [vmem:[#allocation56_spill] sm:$0xff] %v8371_v37  ;;  %v8374_v28 = vsel %vm3388_vm12, %v2795_v9, %v3644_v45  ;;  %vm3438_vm14 = vcmp.ge.f32.partialorder %v2921_v3, 0.0  ;;  %v3694_v57 = vmul.f32 0.01, %v2921_v3  ;;  %v2801_v31 = vadd.f32 %v2800_v50, %v8179_v34  ;;  %v2804_v44 = vpop.f32.mrb[163].mxu0 }
 0x389   : > { %11850 = vst [vmem:[#allocation57_spill] sm:$0xff] %v8374_v28  ;;  %v8377_v23 = vsel %vm3437_vm13, %v2919_v15, %v3693_v10  ;;  %vm3389_vm15 = vcmp.ge.f32.partialorder %v2799_v12, 0.0  ;;  %v3645_v61 = vmul.f32 0.01, %v2799_v12  ;;  %v11852_v37 = vpack.c.bf16 %v8004_v8, %v8000_v36 }
 0x38a   : > { %11851 = vst [vmem:[#allocation58_spill] sm:$0xff] %v8377_v23  ;;  %v8384_v20 = vsel %vm3438_vm14, %v2921_v3, %v3694_v57  ;;  %vm3439_vm0 = vcmp.ge.f32.partialorder %v2923_v22, 0.0  ;;  %v3695_v9 = vmul.f32 0.01, %v2923_v22  ;;  %v2925_v45 = vadd.f32 %v2924_v46, %v8179_v34 }
 0x38b   : > { %6144 = vmatmul.mubr.msk.bf16.gmra.mrb[124].mxu1 %vm2491_vm8, %v11852_v37  ;;  %11853 = vst [vmem:[#allocation59_spill] sm:$0xff] %v8384_v20  ;;  %v8388_v15 = vsel %vm3389_vm15, %v2799_v12, %v3645_v61  ;;  %vm3390_vm1 = vcmp.ge.f32.partialorder %v2801_v31, 0.0  ;;  %v3646_v4 = vmul.f32 0.01, %v2801_v31  ;;  %v2803_v10 = vadd.f32 %v2802_v16, %v8174_v27  ;;  %v2928_v37 = vpop.f32.mrb[20].mxu1 }
 0x38c   : > { %3196 = vmatprep.mubr.bf16.mxu1 %v11794_v14  ;;  %11854 = vst [vmem:[#allocation60_spill] sm:$0xff] %v8388_v15  ;;  %v8391_v50 = vsel %vm3439_vm0, %v2923_v22, %v3695_v9  ;;  %vm3440_vm2 = vcmp.ge.f32.partialorder %v2925_v45, 0.0  ;;  %v3696_v36 = vmul.f32 0.01, %v2925_v45  ;;  %v2805_v8 = vadd.f32 %v2804_v44, %v8179_v34  ;;  %v2930_v28 = vpop.f32.mrb[21].mxu1  ;;  %v2808_v22 = vpop.f32.mrb[164].mxu0 }
 0x38d   : > { %11855 = vst [vmem:[#allocation61_spill] sm:$0xff] %v8391_v50  ;;  %v8394_v3 = vsel %vm3390_vm1, %v2801_v31, %v3646_v4  ;;  %vm3391_vm3 = vcmp.ge.f32.partialorder %v2803_v10, 0.0  ;;  %v3647_v57 = vmul.f32 0.01, %v2803_v10  ;;  %v2929_v46 = vadd.f32 %v2928_v37, %v8174_v27  ;;  %v2932_v9 = vpop.f32.mrb[22].mxu1  ;;  %v2810_v4 = vpop.f32.mrb[165].mxu0 }
 0x38e   : > { %v8397_v12 = vsel %vm3440_vm2, %v2925_v45, %v3696_v36  ;;  %vm3392_vm4 = vcmp.ge.f32.partialorder %v2805_v8, 0.0  ;;  %v3648_v61 = vmul.f32 0.01, %v2805_v8  ;;  %v2931_v16 = vadd.f32 %v2930_v28, %v8179_v34  ;;  %v2934_v20 = vpop.f32.mrb[23].mxu1  ;;  %v2812_v36 = vpop.f32.mrb[166].mxu0 }
 0x38f   : > { %11856 = vst [vmem:[#allocation62_spill] sm:$0xff] %v8397_v12  ;;  %v8400_v50 = vsel %vm3391_vm3, %v2803_v10, %v3647_v57  ;;  %vm3441_vm5 = vcmp.ge.f32.partialorder %v2929_v46, 0.0  ;;  %v3697_v44 = vmul.f32 0.01, %v2929_v46  ;;  %v2809_v31 = vadd.f32 %v2808_v22, %v8174_v27  ;;  %v2814_v57 = vpop.f32.mrb[167].mxu0 }
 0x390   : > { %11857 = vst [vmem:[#allocation63_spill] sm:$0xff] %v8400_v50  ;;  %v8403_v23 = vsel %vm3392_vm4, %v2805_v8, %v3648_v61  ;;  %vm3442_vm6 = vcmp.ge.f32.partialorder %v2931_v16, 0.0  ;;  %v3698_v37 = vmul.f32 0.01, %v2931_v16  ;;  %v2933_v45 = vadd.f32 %v2932_v9, %v8174_v27 }
 0x391   : > { %v8406_v12 = vsel %vm3441_vm5, %v2929_v46, %v3697_v44  ;;  %vm3393_vm7 = vcmp.ge.f32.partialorder %v2809_v31, 0.0  ;;  %v3649_v28 = vmul.f32 0.01, %v2809_v31  ;;  %v2811_v10 = vadd.f32 %v2810_v4, %v8179_v34 }
 0x392   : > { %11858 = vst [vmem:[#allocation64_spill] sm:$0xff] %v8406_v12  ;;  %v11859_v63 = vpack.c.bf16 %v8029_v55, %v8023_v54  ;;  %v8413_v22 = vsel %vm3442_vm6, %v2931_v16, %v3698_v37  ;;  %vm3443_vm9 = vcmp.ge.f32.partialorder %v2933_v45, 0.0  ;;  %v3699_v8 = vmul.f32 0.01, %v2933_v45 }
 0x393   : > { %11860 = vst [vmem:[#allocation65_spill] sm:$0xff] %v8413_v22  ;;  %v2935_v61 = vadd.f32 %v2934_v20, %v8179_v34  ;;  %v8417_v46 = vsel %vm3393_vm7, %v2809_v31, %v3649_v28  ;;  %vm3394_vm10 = vcmp.ge.f32.partialorder %v2811_v10, 0.0  ;;  %v3650_v9 = vmul.f32 0.01, %v2811_v10 }
 0x394   : > { %6145 = vmatmul.mubr.msk.bf16.gmra.mrb[128].mxu1 %vm2491_vm8, %v11859_v63  ;;  %11861 = vst [vmem:[#allocation66_spill] sm:$0xff] %v8417_v46  ;;  %v2813_v44 = vadd.f32 %v2812_v36, %v8174_v27  ;;  %v8420_v4 = vsel %vm3443_vm9, %v2933_v45, %v3699_v8  ;;  %v2815_v55 = vadd.f32 %v2814_v57, %v8179_v34  ;;  %v2938_v63 = vpop.f32.mrb[24].mxu1  ;;  %v2818_v45 = vpop.f32.mrb[168].mxu0 }
 0x395   : > { %3206 = vmatprep.mubr.bf16.mxu1 %v11794_v14  ;;  %11862 = vst [vmem:[#allocation67_spill] sm:$0xff] %v8420_v4  ;;  %vm3444_vm11 = vcmp.ge.f32.partialorder %v2935_v61, 0.0  ;;  %v3700_v54 = vmul.f32 0.01, %v2935_v61  ;;  %v8423_v16 = vsel %vm3394_vm10, %v2811_v10, %v3650_v9  ;;  %v2939_v20 = vadd.f32 %v2938_v63, %v8174_v27  ;;  %v2940_v22 = vpop.f32.mrb[25].mxu1  ;;  %v2820_v9 = vpop.f32.mrb[169].mxu0 }
 0x396   : > { %vm3395_vm12 = vcmp.ge.f32.partialorder %v2813_v44, 0.0  ;;  %v3651_v37 = vmul.f32 0.01, %v2813_v44  ;;  %vm3396_vm13 = vcmp.ge.f32.partialorder %v2815_v55, 0.0  ;;  %v3652_v28 = vmul.f32 0.01, %v2815_v55 }
 0x397   : > { %v8426_v31 = vsel %vm3444_vm11, %v2935_v61, %v3700_v54  ;;  %v2941_v36 = vadd.f32 %v2940_v22, %v8179_v34  ;;  %v2942_v8 = vpop.f32.mrb[26].mxu1  ;;  %vm3445_vm14 = vcmp.ge.f32.partialorder %v2939_v20, 0.0  ;;  %v3701_v57 = vmul.f32 0.01, %v2939_v20  ;;  %v2822_v54 = vpop.f32.mrb[170].mxu0 }
 0x398   : > { %11863 = vst [vmem:[#allocation68_spill] sm:$0xff] %v8426_v31  ;;  %v8429_v4 = vsel %vm3395_vm12, %v2813_v44, %v3651_v37  ;;  %v2819_v10 = vadd.f32 %v2818_v45, %v8174_v27  ;;  %v2944_v12 = vpop.f32.mrb[27].mxu1  ;;  %v8432_v48 = vsel %vm3396_vm13, %v2815_v55, %v3652_v28  ;;  %v2943_v61 = vadd.f32 %v2942_v8, %v8174_v27  ;;  %v2824_v37 = vpop.f32.mrb[171].mxu0 }
 0x399   : > { %11864 = vst [vmem:[#allocation69_spill] sm:$0xff] %v8429_v4  ;;  %vm3446_vm15 = vcmp.ge.f32.partialorder %v2941_v36, 0.0  ;;  %v3702_v63 = vmul.f32 0.01, %v2941_v36  ;;  %v8435_v31 = vsel %vm3445_vm14, %v2939_v20, %v3701_v57  ;;  %v2821_v44 = vadd.f32 %v2820_v9, %v8179_v34 }
 0x39a   : > { %11865 = vst [vmem:[#allocation70_spill] sm:$0xff] %v8435_v31  ;;  %vm3397_vm0 = vcmp.ge.f32.partialorder %v2819_v10, 0.0  ;;  %v3653_v22 = vmul.f32 0.01, %v2819_v10  ;;  %v11866_v35 = vpack.c.bf16 %v8025_v62, %v8021_v0  ;;  %vm3447_vm1 = vcmp.ge.f32.partialorder %v2943_v61, 0.0 }
 0x39b   : > { %v8442_v45 = vsel %vm3446_vm15, %v2941_v36, %v3702_v63  ;;  %v3703_v55 = vmul.f32 0.01, %v2943_v61  ;;  %v2945_v28 = vadd.f32 %v2944_v12, %v8179_v34  ;;  %vm3398_vm2 = vcmp.ge.f32.partialorder %v2821_v44, 0.0 }
 0x39c   : > { %6146 = vmatmul.mubr.msk.bf16.gmra.mrb[132].mxu1 %vm2491_vm8, %v11866_v35  ;;  %11867 = vst [vmem:[#allocation71_spill] sm:$0xff] %v8442_v45  ;;  %v8446_v20 = vsel %vm3397_vm0, %v2819_v10, %v3653_v22  ;;  %v3654_v8 = vmul.f32 0.01, %v2821_v44  ;;  %v2823_v57 = vadd.f32 %v2822_v54, %v8174_v27  ;;  %v2825_v62 = vadd.f32 %v2824_v37, %v8179_v34  ;;  %v2948_v35 = vpop.f32.mrb[28].mxu1 }
 0x39d   : > { %3216 = vmatprep.mubr.bf16.mxu1 %v11794_v14  ;;  %11868 = vst [vmem:[#allocation72_spill] sm:$0xff] %v8446_v20  ;;  %v8449_v9 = vsel %vm3447_vm1, %v2943_v61, %v3703_v55  ;;  %vm3448_vm3 = vcmp.ge.f32.partialorder %v2945_v28, 0.0  ;;  %v3704_v0 = vmul.f32 0.01, %v2945_v28  ;;  %v2949_v12 = vadd.f32 %v2948_v35, %v8174_v27  ;;  %v2950_v45 = vpop.f32.mrb[29].mxu1  ;;  %v2828_v61 = vpop.f32.mrb[172].mxu0 }
 0x39e   : > { %11869 = vst [vmem:[#allocation73_spill] sm:$0xff] %v8449_v9  ;;  %v8452_v36 = vsel %vm3398_vm2, %v2821_v44, %v3654_v8  ;;  %vm3399_vm4 = vcmp.ge.f32.partialorder %v2823_v57, 0.0  ;;  %v3655_v63 = vmul.f32 0.01, %v2823_v57  ;;  %vm3400_vm5 = vcmp.ge.f32.partialorder %v2825_v62, 0.0  ;;  %v2952_v55 = vpop.f32.mrb[30].mxu1 }
 0x39f   : > { %11870 = vst [vmem:[#allocation74_spill] sm:$0xff] %v8452_v36  ;;  %v8455_v10 = vsel %vm3448_vm3, %v2945_v28, %v3704_v0  ;;  %v3656_v22 = vmul.f32 0.01, %v2825_v62  ;;  %v2951_v54 = vadd.f32 %v2950_v45, %v8179_v34  ;;  %vm3449_vm6 = vcmp.ge.f32.partialorder %v2949_v12, 0.0  ;;  %v2830_v8 = vpop.f32.mrb[173].mxu0  ;;  %v2954_v31 = vpop.f32.mrb[31].mxu1 }
 0x3a0   : > { %11871 = vst [vmem:[#allocation75_spill] sm:$0xff] %v8455_v10  ;;  %v8458_v9 = vsel %vm3399_vm4, %v2823_v57, %v3655_v63  ;;  %v3705_v37 = vmul.f32 0.01, %v2949_v12  ;;  %v2829_v44 = vadd.f32 %v2828_v61, %v8174_v27  ;;  %v2953_v28 = vadd.f32 %v2952_v55, %v8174_v27  ;;  %v2832_v0 = vpop.f32.mrb[174].mxu0 }
 0x3a1   : > { %11872 = vst [vmem:[#allocation76_spill] sm:$0xff] %v8458_v9  ;;  %v8461_v17 = vsel %vm3400_vm5, %v2825_v62, %v3656_v22  ;;  %vm3450_vm7 = vcmp.ge.f32.partialorder %v2951_v54, 0.0  ;;  %v3706_v35 = vmul.f32 0.01, %v2951_v54  ;;  %v2831_v57 = vadd.f32 %v2830_v8, %v8179_v34  ;;  %v2834_v63 = vpop.f32.mrb[175].mxu0 }
 0x3a2   : > { %11873 = vst [vmem:[#allocation77_spill] sm:$0xff] %v8461_v17  ;;  %v8464_v10 = vsel %vm3449_vm6, %v2949_v12, %v3705_v37  ;;  %vm3401_vm9 = vcmp.ge.f32.partialorder %v2829_v44, 0.0  ;;  %v3657_v45 = vmul.f32 0.01, %v2829_v44  ;;  %v11875_v9 = vpack.c.bf16 %v8050_v30, %v8044_v6 }
 0x3a3   : > { %11874 = vst [vmem:[#allocation78_spill] sm:$0xff] %v8464_v10  ;;  %v8471_v61 = vsel %vm3450_vm7, %v2951_v54, %v3706_v35  ;;  %vm3451_vm10 = vcmp.ge.f32.partialorder %v2953_v28, 0.0  ;;  %v3707_v62 = vmul.f32 0.01, %v2953_v28  ;;  %v2955_v22 = vadd.f32 %v2954_v31, %v8179_v34 }
 0x3a4   : > { %6147 = vmatmul.mubr.msk.bf16.gmra.mrb[136].mxu1 %vm2491_vm8, %v11875_v9  ;;  %11876 = vst [vmem:[#allocation79_spill] sm:$0xff] %v8471_v61  ;;  %v8475_v12 = vsel %vm3401_vm9, %v2829_v44, %v3657_v45  ;;  %vm3402_vm11 = vcmp.ge.f32.partialorder %v2831_v57, 0.0  ;;  %v3658_v55 = vmul.f32 0.01, %v2831_v57  ;;  %v2833_v37 = vadd.f32 %v2832_v0, %v8174_v27  ;;  %v2958_v9 = vpop.f32.mrb[32].mxu1 }
 0x3a5   : > { %3226 = vmatprep.mubr.bf16.mxu1 %v11794_v14  ;;  %11877 = vst [vmem:[#allocation80_spill] sm:$0xff] %v8475_v12  ;;  %v8478_v8 = vsel %vm3451_vm10, %v2953_v28, %v3707_v62  ;;  %vm3452_vm12 = vcmp.ge.f32.partialorder %v2955_v22, 0.0  ;;  %v3708_v6 = vmul.f32 0.01, %v2955_v22  ;;  %v2835_v30 = vadd.f32 %v2834_v63, %v8179_v34  ;;  %v2960_v61 = vpop.f32.mrb[33].mxu1  ;;  %v2838_v28 = vpop.f32.mrb[176].mxu0 }
 0x3a6   : > { %11878 = vst [vmem:[#allocation81_spill] sm:$0xff] %v8478_v8  ;;  %v8481_v54 = vsel %vm3402_vm11, %v2831_v57, %v3658_v55  ;;  %vm3403_vm13 = vcmp.ge.f32.partialorder %v2833_v37, 0.0  ;;  %v3659_v35 = vmul.f32 0.01, %v2833_v37  ;;  %v2959_v31 = vadd.f32 %v2958_v9, %v8174_v27  ;;  %v2962_v62 = vpop.f32.mrb[34].mxu1  ;;  %v2840_v55 = vpop.f32.mrb[177].mxu0 }
 0x3a7   : > { %11879 = vst [vmem:[#allocation82_spill] sm:$0xff] %v8481_v54  ;;  %v8484_v44 = vsel %vm3452_vm12, %v2955_v22, %v3708_v6  ;;  %vm3404_vm14 = vcmp.ge.f32.partialorder %v2835_v30, 0.0  ;;  %v3660_v45 = vmul.f32 0.01, %v2835_v30  ;;  %v2961_v0 = vadd.f32 %v2960_v61, %v8179_v34  ;;  %v2964_v10 = vpop.f32.mrb[35].mxu1  ;;  %v2842_v6 = vpop.f32.mrb[178].mxu0 }
 0x3a8   : > { %11880 = vst [vmem:[#allocation83_spill] sm:$0xff] %v8484_v44  ;;  %v8487_v8 = vsel %vm3403_vm13, %v2833_v37, %v3659_v35  ;;  %vm3453_vm15 = vcmp.ge.f32.partialorder %v2959_v31, 0.0  ;;  %v3709_v63 = vmul.f32 0.01, %v2959_v31  ;;  %v2839_v57 = vadd.f32 %v2838_v28, %v8174_v27  ;;  %v2844_v35 = vpop.f32.mrb[179].mxu0 }
 0x3a9   : > { %11881 = vst [vmem:[#allocation84_spill] sm:$0xff] %v8487_v8  ;;  %v8490_v54 = vsel %vm3404_vm14, %v2835_v30, %v3660_v45  ;;  %vm3454_vm0 = vcmp.ge.f32.partialorder %v2961_v0, 0.0  ;;  %v3710_v9 = vmul.f32 0.01, %v2961_v0  ;;  %v2963_v22 = vadd.f32 %v2962_v62, %v8174_v27 }
 0x3aa   : > { %11882 = vst [vmem:[#allocation85_spill] sm:$0xff] %v8490_v54  ;;  %v8493_v44 = vsel %vm3453_vm15, %v2959_v31, %v3709_v63  ;;  %vm3405_vm1 = vcmp.ge.f32.partialorder %v2839_v57, 0.0  ;;  %v3661_v61 = vmul.f32 0.01, %v2839_v57  ;;  %v2841_v37 = vadd.f32 %v2840_v55, %v8179_v34 }
 0x3ab   : > { %11883 = vst [vmem:[#allocation86_spill] sm:$0xff] %v8493_v44  ;;  %v11884_v8 = vpack.c.bf16 %v8046_v52, %v8042_v13  ;;  %v8500_v28 = vsel %vm3454_vm0, %v2961_v0, %v3710_v9  ;;  %vm3455_vm2 = vcmp.ge.f32.partialorder %v2963_v22, 0.0  ;;  %v3711_v30 = vmul.f32 0.01, %v2963_v22 }
 0x3ac   : > { %11885 = vst [vmem:[#allocation87_spill] sm:$0xff] %v8500_v28  ;;  %v2965_v45 = vadd.f32 %v2964_v10, %v8179_v34  ;;  %v8504_v31 = vsel %vm3405_vm1, %v2839_v57, %v3661_v61  ;;  %vm3406_vm3 = vcmp.ge.f32.partialorder %v2841_v37, 0.0  ;;  %v3662_v62 = vmul.f32 0.01, %v2841_v37 }
 0x3ad   : > { %6148 = vmatmul.mubr.msk.bf16.gmra.mrb[140].mxu1 %vm2491_vm8, %v11884_v8  ;;  %11886 = vst [vmem:[#allocation88_spill] sm:$0xff] %v8504_v31  ;;  %v2843_v63 = vadd.f32 %v2842_v6, %v8174_v27  ;;  %v8507_v55 = vsel %vm3455_vm2, %v2963_v22, %v3711_v30  ;;  %v2845_v52 = vadd.f32 %v2844_v35, %v8179_v34  ;;  %v2968_v8 = vpop.f32.mrb[36].mxu1  ;;  %v2848_v22 = vpop.f32.mrb[180].mxu0 }
 0x3ae   : > { %3236 = vmatprep.mubr.bf16.mxu1 %v11794_v14  ;;  %11887 = vst [vmem:[#allocation89_spill] sm:$0xff] %v8507_v55  ;;  %vm3456_vm4 = vcmp.ge.f32.partialorder %v2965_v45, 0.0  ;;  %v3712_v13 = vmul.f32 0.01, %v2965_v45  ;;  %v8510_v0 = vsel %vm3406_vm3, %v2841_v37, %v3662_v62  ;;  %v2969_v10 = vadd.f32 %v2968_v8, %v8174_v27  ;;  %v2970_v54 = vpop.f32.mrb[37].mxu1  ;;  %v2850_v62 = vpop.f32.mrb[181].mxu0 }
 0x3af   : > { %11888 = vst [vmem:[#allocation90_spill] sm:$0xff] %v8510_v0  ;;  %vm3407_vm5 = vcmp.ge.f32.partialorder %v2843_v63, 0.0  ;;  %v3663_v9 = vmul.f32 0.01, %v2843_v63  ;;  %vm3408_vm6 = vcmp.ge.f32.partialorder %v2845_v52, 0.0  ;;  %v2971_v6 = vadd.f32 %v2970_v54, %v8179_v34  ;;  %v2972_v30 = vpop.f32.mrb[38].mxu1 }
 0x3b0   : > { %v8513_v57 = vsel %vm3456_vm4, %v2965_v45, %v3712_v13  ;;  %v3664_v61 = vmul.f32 0.01, %v2845_v52  ;;  %vm3457_vm7 = vcmp.ge.f32.partialorder %v2969_v10, 0.0  ;;  %v3713_v35 = vmul.f32 0.01, %v2969_v10  ;;  %v2974_v0 = vpop.f32.mrb[39].mxu1 }
 0x3b1   : > { %11889 = vst [vmem:[#allocation91_spill] sm:$0xff] %v8513_v57  ;;  %v8516_v31 = vsel %vm3407_vm5, %v2843_v63, %v3663_v9  ;;  %v2849_v37 = vadd.f32 %v2848_v22, %v8174_v27  ;;  %vm3458_vm9 = vcmp.ge.f32.partialorder %v2971_v6, 0.0  ;;  %v3714_v8 = vmul.f32 0.01, %v2971_v6  ;;  %v2852_v13 = vpop.f32.mrb[182].mxu0 }
 0x3b2   : > { %11890 = vst [vmem:[#allocation92_spill] sm:$0xff] %v8516_v31  ;;  %v8519_v12 = vsel %vm3408_vm6, %v2845_v52, %v3664_v61  ;;  %v2973_v45 = vadd.f32 %v2972_v30, %v8174_v27  ;;  %v8522_v17 = vsel %vm3457_vm7, %v2969_v10, %v3713_v35  ;;  %v2851_v63 = vadd.f32 %v2850_v62, %v8179_v34  ;;  %v2854_v9 = vpop.f32.mrb[183].mxu0 }
 0x3b3   : > { %11891 = vst [vmem:[#allocation93_spill] sm:$0xff] %v8519_v12  ;;  %11892 = vst [vmem:[#allocation94_spill] sm:$0xff] %v8522_v17  ;;  %vm3409_vm10 = vcmp.ge.f32.partialorder %v2849_v37, 0.0  ;;  %v3665_v54 = vmul.f32 0.01, %v2849_v37  ;;  %v11893_v31 = vpack.c.bf16 %v8071_v42, %v8065_v40  ;;  %v8529_v22 = vsel %vm3458_vm9, %v2971_v6, %v3714_v8 }
 0x3b4   : > { %vm3459_vm11 = vcmp.ge.f32.partialorder %v2973_v45, 0.0  ;;  %v3715_v52 = vmul.f32 0.01, %v2973_v45  ;;  %v2975_v61 = vadd.f32 %v2974_v0, %v8179_v34  ;;  %vm3410_vm12 = vcmp.ge.f32.partialorder %v2851_v63, 0.0 }
 0x3b5   : > { %6149 = vmatmul.mubr.msk.bf16.gmra.mrb[144].mxu1 %vm2491_vm8, %v11893_v31  ;;  %v8533_v10 = vsel %vm3409_vm10, %v2849_v37, %v3665_v54  ;;  %v3666_v30 = vmul.f32 0.01, %v2851_v63  ;;  %v2853_v35 = vadd.f32 %v2852_v13, %v8174_v27  ;;  %v2855_v42 = vadd.f32 %v2854_v9, %v8179_v34  ;;  %v2978_v31 = vpop.f32.mrb[40].mxu1 }
 0x3b6   : > { %3246 = vmatprep.mubr.bf16.mxu1 %v11794_v14  ;;  %11894 = vst [vmem:[#allocation95_spill] sm:$0xff] %v8533_v10  ;;  %v8536_v62 = vsel %vm3459_vm11, %v2973_v45, %v3715_v52  ;;  %vm3460_vm13 = vcmp.ge.f32.partialorder %v2975_v61, 0.0  ;;  %v3716_v40 = vmul.f32 0.01, %v2975_v61  ;;  %v2979_v0 = vadd.f32 %v2978_v31, %v8174_v27  ;;  %v2980_v12 = vpop.f32.mrb[41].mxu1  ;;  %v2858_v45 = vpop.f32.mrb[184].mxu0 }
 0x3b7   : > { %11895 = vst [vmem:[#allocation96_spill] sm:$0xff] %v8536_v62  ;;  %v8539_v6 = vsel %vm3410_vm12, %v2851_v63, %v3666_v30  ;;  %vm3411_vm14 = vcmp.ge.f32.partialorder %v2853_v35, 0.0  ;;  %v3667_v8 = vmul.f32 0.01, %v2853_v35  ;;  %vm3412_vm15 = vcmp.ge.f32.partialorder %v2855_v42, 0.0  ;;  %v2982_v52 = vpop.f32.mrb[42].mxu1 }
 0x3b8   : > { %11896 = vst [vmem:[#allocation97_spill] sm:$0xff] %v8539_v6  ;;  %v8542_v37 = vsel %vm3460_vm13, %v2975_v61, %v3716_v40  ;;  %v3668_v54 = vmul.f32 0.01, %v2855_v42  ;;  %v2981_v13 = vadd.f32 %v2980_v12, %v8179_v34  ;;  %vm3461_vm0 = vcmp.ge.f32.partialorder %v2979_v0, 0.0  ;;  %v2860_v30 = vpop.f32.mrb[185].mxu0  ;;  %v2984_v6 = vpop.f32.mrb[43].mxu1 }
 0x3b9   : > { %v8545_v10 = vsel %vm3411_vm14, %v2853_v35, %v3667_v8  ;;  %v3717_v9 = vmul.f32 0.01, %v2979_v0  ;;  %v2859_v63 = vadd.f32 %v2858_v45, %v8174_v27  ;;  %v2983_v61 = vadd.f32 %v2982_v52, %v8174_v27  ;;  %v2862_v40 = vpop.f32.mrb[186].mxu0 }
 0x3ba   : > { %11897 = vst [vmem:[#allocation98_spill] sm:$0xff] %v8545_v10  ;;  %v8548_v36 = vsel %vm3412_vm15, %v2855_v42, %v3668_v54  ;;  %vm3462_vm1 = vcmp.ge.f32.partialorder %v2981_v13, 0.0  ;;  %v3718_v31 = vmul.f32 0.01, %v2981_v13  ;;  %v2861_v35 = vadd.f32 %v2860_v30, %v8179_v34  ;;  %v2864_v8 = vpop.f32.mrb[187].mxu0 }
 0x3bb   : > { %11898 = vst [vmem:[#allocation99_spill] sm:$0xff] %v8548_v36  ;;  %v8551_v20 = vsel %vm3461_vm0, %v2979_v0, %v3717_v9  ;;  %vm3413_vm2 = vcmp.ge.f32.partialorder %v2859_v63, 0.0  ;;  %v3669_v12 = vmul.f32 0.01, %v2859_v63  ;;  %v11900_v10 = vpack.c.bf16 %v8067_v39, %v8063_v21 }
 0x3bc   : > { %11899 = vst [vmem:[#allocation100_spill] sm:$0xff] %v8551_v20  ;;  %v8558_v45 = vsel %vm3462_vm1, %v2981_v13, %v3718_v31  ;;  %vm3463_vm3 = vcmp.ge.f32.partialorder %v2983_v61, 0.0  ;;  %v3719_v42 = vmul.f32 0.01, %v2983_v61  ;;  %v2985_v54 = vadd.f32 %v2984_v6, %v8179_v34 }
 0x3bd   : > { %6150 = vmatmul.mubr.msk.bf16.gmra.mrb[148].mxu1 %vm2491_vm8, %v11900_v10  ;;  %v8562_v0 = vsel %vm3413_vm2, %v2859_v63, %v3669_v12  ;;  %vm3414_vm4 = vcmp.ge.f32.partialorder %v2861_v35, 0.0  ;;  %v3670_v52 = vmul.f32 0.01, %v2861_v35  ;;  %v2863_v9 = vadd.f32 %v2862_v40, %v8174_v27  ;;  %v2988_v10 = vpop.f32.mrb[44].mxu1 }
 0x3be   : > { %3256 = vmatprep.mubr.bf16.mxu1 %v11794_v14  ;;  %11901 = vst [vmem:[#allocation101_spill] sm:$0xff] %v8562_v0  ;;  %v8565_v30 = vsel %vm3463_vm3, %v2983_v61, %v3719_v42  ;;  %vm3464_vm5 = vcmp.ge.f32.partialorder %v2985_v54, 0.0  ;;  %v3720_v21 = vmul.f32 0.01, %v2985_v54  ;;  %v2865_v39 = vadd.f32 %v2864_v8, %v8179_v34  ;;  %v2990_v36 = vpop.f32.mrb[45].mxu1  ;;  %v2868_v61 = vpop.f32.mrb[188].mxu0 }
 0x3bf   : > { %11902 = vst [vmem:[#allocation102_spill] sm:$0xff] %v8565_v30  ;;  %v8568_v13 = vsel %vm3414_vm4, %v2861_v35, %v3670_v52  ;;  %vm3415_vm6 = vcmp.ge.f32.partialorder %v2863_v9, 0.0  ;;  %v3671_v31 = vmul.f32 0.01, %v2863_v9  ;;  %v2989_v6 = vadd.f32 %v2988_v10, %v8174_v27  ;;  %v2992_v42 = vpop.f32.mrb[46].mxu1  ;;  %v2870_v52 = vpop.f32.mrb[189].mxu0 }
 0x3c0   : > { %11903 = vst [vmem:[#allocation103_spill] sm:$0xff] %v8568_v13  ;;  %v8571_v63 = vsel %vm3464_vm5, %v2985_v54, %v3720_v21  ;;  %vm3416_vm7 = vcmp.ge.f32.partialorder %v2865_v39, 0.0  ;;  %v3672_v12 = vmul.f32 0.01, %v2865_v39  ;;  %v2991_v40 = vadd.f32 %v2990_v36, %v8179_v34  ;;  %v2994_v13 = vpop.f32.mrb[47].mxu1  ;;  %v2872_v21 = vpop.f32.mrb[190].mxu0 }
 0x3c1   : > { %11904 = vst [vmem:[#allocation104_spill] sm:$0xff] %v8571_v63  ;;  %v8574_v0 = vsel %vm3415_vm6, %v2863_v9, %v3671_v31  ;;  %vm3465_vm9 = vcmp.ge.f32.partialorder %v2989_v6, 0.0  ;;  %v3721_v8 = vmul.f32 0.01, %v2989_v6  ;;  %v2869_v35 = vadd.f32 %v2868_v61, %v8174_v27  ;;  %v2874_v31 = vpop.f32.mrb[191].mxu0 }
 0x3c2   : > { %11905 = vst [vmem:[#allocation105_spill] sm:$0xff] %v8574_v0  ;;  %v8577_v30 = vsel %vm3416_vm7, %v2865_v39, %v3672_v12  ;;  %vm3466_vm10 = vcmp.ge.f32.partialorder %v2991_v40, 0.0  ;;  %v3722_v10 = vmul.f32 0.01, %v2991_v40  ;;  %v2993_v54 = vadd.f32 %v2992_v42, %v8174_v27 }
 0x3c3   : > { %11906 = vst [vmem:[#allocation106_spill] sm:$0xff] %v8577_v30  ;;  %v8580_v63 = vsel %vm3465_vm9, %v2989_v6, %v3721_v8  ;;  %vm3417_vm11 = vcmp.ge.f32.partialorder %v2869_v35, 0.0  ;;  %v3673_v36 = vmul.f32 0.01, %v2869_v35  ;;  %v2871_v9 = vadd.f32 %v2870_v52, %v8179_v34 }
 0x3c4   : > { %11907 = vst [vmem:[#allocation107_spill] sm:$0xff] %v8580_v63  ;;  %v11908_v0 = vpack.c.bf16 %v8092_v43, %v8086_v18  ;;  %v8587_v61 = vsel %vm3466_vm10, %v2991_v40, %v3722_v10  ;;  %vm3467_vm12 = vcmp.ge.f32.partialorder %v2993_v54, 0.0  ;;  %v3723_v39 = vmul.f32 0.01, %v2993_v54 }
 0x3c5   : > { %v2995_v12 = vadd.f32 %v2994_v13, %v8179_v34  ;;  %v8591_v6 = vsel %vm3417_vm11, %v2869_v35, %v3673_v36  ;;  %vm3418_vm13 = vcmp.ge.f32.partialorder %v2871_v9, 0.0  ;;  %v3674_v42 = vmul.f32 0.01, %v2871_v9 }
 0x3c6   : > { %6151 = vmatmul.mubr.msk.bf16.gmra.mrb[152].mxu1 %vm2491_vm8, %v11908_v0  ;;  %11909 = vst [vmem:[#allocation108_spill] sm:$0xff] %v8591_v6  ;;  %v2873_v8 = vadd.f32 %v2872_v21, %v8174_v27  ;;  %v8594_v52 = vsel %vm3467_vm12, %v2993_v54, %v3723_v39  ;;  %v2875_v43 = vadd.f32 %v2874_v31, %v8179_v34  ;;  %v2998_v0 = vpop.f32.mrb[48].mxu1 }
 0x3c7   : > { %3266 = vmatprep.mubr.bf16.mxu1 %v11794_v14  ;;  %11910 = vst [vmem:[#allocation109_spill] sm:$0xff] %v8594_v52  ;;  %vm3468_vm14 = vcmp.ge.f32.partialorder %v2995_v12, 0.0  ;;  %v3724_v18 = vmul.f32 0.01, %v2995_v12  ;;  %v8597_v40 = vsel %vm3418_vm13, %v2871_v9, %v3674_v42  ;;  %v2999_v13 = vadd.f32 %v2998_v0, %v8174_v27  ;;  %v3000_v30 = vpop.f32.mrb[49].mxu1 }
 0x3c8   : > { %11911 = vst [vmem:[#allocation110_spill] sm:$0xff] %v8597_v40  ;;  %vm3419_vm15 = vcmp.ge.f32.partialorder %v2873_v8, 0.0  ;;  %v3675_v10 = vmul.f32 0.01, %v2873_v8  ;;  %vm3420_vm0 = vcmp.ge.f32.partialorder %v2875_v43, 0.0  ;;  %v3001_v21 = vadd.f32 %v3000_v30, %v8179_v34  ;;  %v3002_v54 = vpop.f32.mrb[50].mxu1 }
 0x3c9   : > { %v8600_v35 = vsel %vm3468_vm14, %v2995_v12, %v3724_v18  ;;  %v3676_v36 = vmul.f32 0.01, %v2875_v43  ;;  %vm3469_vm1 = vcmp.ge.f32.partialorder %v2999_v13, 0.0  ;;  %v3725_v6 = vmul.f32 0.01, %v2999_v13  ;;  %v3004_v9 = vpop.f32.mrb[51].mxu1 }
 0x3ca   : > { %v8603_v39 = vsel %vm3419_vm15, %v2873_v8, %v3675_v10  ;;  %v3003_v31 = vadd.f32 %v3002_v54, %v8174_v27  ;;  %vm3470_vm2 = vcmp.ge.f32.partialorder %v3001_v21, 0.0  ;;  %v3726_v40 = vmul.f32 0.01, %v3001_v21  ;;  %v3008_v54 = vpop.f32.mrb[52].mxu1 }
 0x3cb   : > { %11912 = vst [vmem:[#allocation111_spill] sm:$0xff] %v8603_v39  ;;  %v8606_v42 = vsel %vm3420_vm0, %v2875_v43, %v3676_v36  ;;  %v3005_v0 = vadd.f32 %v3004_v9, %v8179_v34  ;;  %v8609_v12 = vsel %vm3469_vm1, %v2999_v13, %v3725_v6  ;;  %v11915_v30 = vpack.c.bf16 %v8088_v26, %v8084_v33  ;;  %v3010_v13 = vpop.f32.mrb[53].mxu1 }
 0x3cc   : > { %11913 = vst [vmem:[#allocation112_spill] sm:$0xff] %v8606_v42  ;;  %11914 = vst [vmem:[#allocation113_spill] sm:$0xff] %v8609_v12  ;;  %vm3471_vm3 = vcmp.ge.f32.partialorder %v3003_v31, 0.0  ;;  %v3727_v18 = vmul.f32 0.01, %v3003_v31  ;;  %v8615_v8 = vsel %vm3470_vm2, %v3001_v21, %v3726_v40  ;;  %v3009_v6 = vadd.f32 %v3008_v54, %v8174_v27  ;;  %v3012_v42 = vpop.f32.mrb[54].mxu1 }
 0x3cd   : > { %11916 = vst [vmem:[#allocation114_spill] sm:$0xff] %v8615_v8  ;;  %vm3472_vm4 = vcmp.ge.f32.partialorder %v3005_v0, 0.0  ;;  %v3728_v10 = vmul.f32 0.01, %v3005_v0  ;;  %v3011_v9 = vadd.f32 %v3010_v13, %v8179_v34  ;;  %v3013_v26 = vadd.f32 %v3012_v42, %v8174_v27  ;;  %v3014_v40 = vpop.f32.mrb[55].mxu1 }
 0x3ce   : > { %6152 = vmatmul.mubr.msk.bf16.gmra.mrb[156].mxu1 %vm2491_vm8, %v11915_v30  ;;  %v8618_v43 = vsel %vm3471_vm3, %v3003_v31, %v3727_v18  ;;  %vm3473_vm5 = vcmp.ge.f32.partialorder %v3009_v6, 0.0  ;;  %v3729_v33 = vmul.f32 0.01, %v3009_v6  ;;  %v3015_v30 = vadd.f32 %v3014_v40, %v8179_v34 }
 0x3cf   : > { %3276 = vmatprep.mubr.bf16.mxu1 %v11794_v14  ;;  %11917 = vst [vmem:[#allocation115_spill] sm:$0xff] %v8618_v43  ;;  %v8620_v36 = vsel %vm3472_vm4, %v3005_v0, %v3728_v10  ;;  %vm3474_vm6 = vcmp.ge.f32.partialorder %v3011_v9, 0.0  ;;  %v3730_v21 = vmul.f32 0.01, %v3011_v9  ;;  %vm3475_vm7 = vcmp.ge.f32.partialorder %v3013_v26, 0.0 }
 0x3d0   : > { %11918 = vst [vmem:[#allocation116_spill] sm:$0xff] %v8620_v36  ;;  %v8626_v31 = vsel %vm3473_vm5, %v3009_v6, %v3729_v33  ;;  %v3731_v0 = vmul.f32 0.01, %v3013_v26  ;;  %v11920_v18 = vpack.c.bf16 %v8113_v49, %v8107_v58  ;;  %vm3476_vm9 = vcmp.ge.f32.partialorder %v3015_v30, 0.0 }
 0x3d1   : > { %11919 = vst [vmem:[#allocation117_spill] sm:$0xff] %v8626_v31  ;;  %v8632_v10 = vsel %vm3474_vm6, %v3011_v9, %v3730_v21  ;;  %v3732_v54 = vmul.f32 0.01, %v3015_v30 }
 0x3d2   : > { %11921 = vst [vmem:[#allocation118_spill] sm:$0xff] %v8632_v10  ;;  %v8635_v42 = vsel %vm3475_vm7, %v3013_v26, %v3731_v0  ;;  %v3018_v40 = vpop.f32.mrb[56].mxu1  ;;  %v11925_v0 = vpack.c.bf16 %v8109_v19, %v8105_v53 }
 0x3d3   : > { %11922 = vst [vmem:[#allocation119_spill] sm:$0xff] %v8635_v42  ;;  %v8637_v13 = vsel %vm3476_vm9, %v3015_v30, %v3732_v54  ;;  %v3019_v6 = vadd.f32 %v3018_v40, %v8174_v27  ;;  %v3020_v33 = vpop.f32.mrb[57].mxu1 }
 0x3d4   : > { %11923 = vst [vmem:[#allocation120_spill] sm:$0xff] %v8637_v13  ;;  %v3021_v39 = vadd.f32 %v3020_v33, %v8179_v34  ;;  %v3022_v31 = vpop.f32.mrb[58].mxu1 }
 0x3d5   : > { %vm3477_vm10 = vcmp.ge.f32.partialorder %v3019_v6, 0.0  ;;  %v3733_v58 = vmul.f32 0.01, %v3019_v6  ;;  %v3023_v49 = vadd.f32 %v3022_v31, %v8174_v27  ;;  %v3024_v9 = vpop.f32.mrb[59].mxu1 }
 0x3d6   : > { %6153 = vmatmul.mubr.msk.bf16.gmra.mrb[160].mxu1 %vm2491_vm8, %v11920_v18  ;;  %vm3478_vm11 = vcmp.ge.f32.partialorder %v3021_v39, 0.0  ;;  %v3734_v21 = vmul.f32 0.01, %v3021_v39  ;;  %v3025_v18 = vadd.f32 %v3024_v9, %v8179_v34 }
 0x3d7   : > { %3286 = vmatprep.mubr.bf16.mxu1 %v11794_v14  ;;  %v8643_v26 = vsel %vm3477_vm10, %v3019_v6, %v3733_v58  ;;  %vm3479_vm12 = vcmp.ge.f32.partialorder %v3023_v49, 0.0  ;;  %v3735_v30 = vmul.f32 0.01, %v3023_v49 }
 0x3d8   : > { %11924 = vst [vmem:[#allocation121_spill] sm:$0xff] %v8643_v26  ;;  %v8649_v54 = vsel %vm3478_vm11, %v3021_v39, %v3734_v21  ;;  %vm3480_vm13 = vcmp.ge.f32.partialorder %v3025_v18, 0.0  ;;  %v3736_v40 = vmul.f32 0.01, %v3025_v18 }
 0x3d9   : > { %11926 = vst [vmem:[#allocation122_spill] sm:$0xff] %v8649_v54  ;;  %v8652_v31 = vsel %vm3479_vm12, %v3023_v49, %v3735_v30  ;;  %v11930_v30 = vpack.c.bf16 %v8134_v51, %v8128_v41 }
 0x3da   : > { %11927 = vst [vmem:[#allocation123_spill] sm:$0xff] %v8652_v31  ;;  %v8654_v33 = vsel %vm3480_vm13, %v3025_v18, %v3736_v40  ;;  %v3028_v9 = vpop.f32.mrb[60].mxu1 }
 0x3db   : > { %11928 = vst [vmem:[#allocation124_spill] sm:$0xff] %v8654_v33  ;;  %v3029_v6 = vadd.f32 %v3028_v9, %v8174_v27  ;;  %v3030_v58 = vpop.f32.mrb[61].mxu1 }
 0x3dc   : > { %v3031_v26 = vadd.f32 %v3030_v58, %v8179_v34  ;;  %v3032_v13 = vpop.f32.mrb[62].mxu1 }
 0x3dd   : > { %vm3481_vm14 = vcmp.ge.f32.partialorder %v3029_v6, 0.0  ;;  %v3737_v53 = vmul.f32 0.01, %v3029_v6  ;;  %v3033_v19 = vadd.f32 %v3032_v13, %v8174_v27  ;;  %v3034_v39 = vpop.f32.mrb[63].mxu1 }
 0x3de   : > { %6154 = vmatmul.mubr.msk.bf16.gmra.mrb[164].mxu1 %vm2491_vm8, %v11925_v0  ;;  %vm3482_vm15 = vcmp.ge.f32.partialorder %v3031_v26, 0.0  ;;  %v3738_v21 = vmul.f32 0.01, %v3031_v26  ;;  %v3035_v0 = vadd.f32 %v3034_v39, %v8179_v34 }
 0x3df   : > { %3296 = vmatprep.mubr.bf16.mxu1 %v11794_v14  ;;  %v8660_v49 = vsel %vm3481_vm14, %v3029_v6, %v3737_v53  ;;  %vm3483_vm0 = vcmp.ge.f32.partialorder %v3033_v19, 0.0  ;;  %v3739_v18 = vmul.f32 0.01, %v3033_v19 }
 0x3e0   : > { %11929 = vst [vmem:[#allocation125_spill] sm:$0xff] %v8660_v49  ;;  %v8666_v40 = vsel %vm3482_vm15, %v3031_v26, %v3738_v21  ;;  %vm3484_vm1 = vcmp.ge.f32.partialorder %v3035_v0, 0.0  ;;  %v3740_v9 = vmul.f32 0.01, %v3035_v0 }
 0x3e1   : > { %11931 = vst [vmem:[#allocation126_spill] sm:$0xff] %v8666_v40  ;;  %v8669_v13 = vsel %vm3483_vm0, %v3033_v19, %v3739_v18  ;;  %v11935_v18 = vpack.c.bf16 %v8130_v59, %v8126_v56 }
 0x3e2   : > { %11932 = vst [vmem:[#allocation127_spill] sm:$0xff] %v8669_v13  ;;  %v8671_v58 = vsel %vm3484_vm1, %v3035_v0, %v3740_v9  ;;  %v3038_v39 = vpop.f32.mrb[64].mxu1 }
 0x3e3   : > { %11933 = vst [vmem:[#allocation128_spill] sm:$0xff] %v8671_v58  ;;  %v3039_v6 = vadd.f32 %v3038_v39, %v8174_v27  ;;  %v3040_v53 = vpop.f32.mrb[65].mxu1 }
 0x3e4   : > { %v3041_v49 = vadd.f32 %v3040_v53, %v8179_v34  ;;  %v3042_v33 = vpop.f32.mrb[66].mxu1 }
 0x3e5   : > { %vm3485_vm2 = vcmp.ge.f32.partialorder %v3039_v6, 0.0  ;;  %v3741_v41 = vmul.f32 0.01, %v3039_v6  ;;  %v3043_v51 = vadd.f32 %v3042_v33, %v8174_v27  ;;  %v3044_v26 = vpop.f32.mrb[67].mxu1 }
 0x3e6   : > { %6155 = vmatmul.mubr.msk.bf16.gmra.mrb[168].mxu1 %vm2491_vm8, %v11930_v30  ;;  %vm3486_vm3 = vcmp.ge.f32.partialorder %v3041_v49, 0.0  ;;  %v3742_v21 = vmul.f32 0.01, %v3041_v49  ;;  %v3045_v30 = vadd.f32 %v3044_v26, %v8179_v34 }
 0x3e7   : > { %3306 = vmatprep.mubr.bf16.mxu1 %v11794_v14  ;;  %v8677_v19 = vsel %vm3485_vm2, %v3039_v6, %v3741_v41  ;;  %vm3487_vm4 = vcmp.ge.f32.partialorder %v3043_v51, 0.0  ;;  %v3743_v0 = vmul.f32 0.01, %v3043_v51 }
 0x3e8   : > { %11934 = vst [vmem:[#allocation129_spill] sm:$0xff] %v8677_v19  ;;  %v8683_v9 = vsel %vm3486_vm3, %v3041_v49, %v3742_v21  ;;  %vm3488_vm5 = vcmp.ge.f32.partialorder %v3045_v30, 0.0  ;;  %v3744_v39 = vmul.f32 0.01, %v3045_v30 }
 0x3e9   : > { %11936 = vst [vmem:[#allocation130_spill] sm:$0xff] %v8683_v9  ;;  %v8686_v33 = vsel %vm3487_vm4, %v3043_v51, %v3743_v0  ;;  %v11940_v0 = vpack.c.bf16 %v8155_v7, %v8149_v60 }
 0x3ea   : > { %11937 = vst [vmem:[#allocation131_spill] sm:$0xff] %v8686_v33  ;;  %v8688_v53 = vsel %vm3488_vm5, %v3045_v30, %v3744_v39  ;;  %v3048_v26 = vpop.f32.mrb[68].mxu1 }
 0x3eb   : > { %11938 = vst [vmem:[#allocation132_spill] sm:$0xff] %v8688_v53  ;;  %v3049_v6 = vadd.f32 %v3048_v26, %v8174_v27  ;;  %v3050_v41 = vpop.f32.mrb[69].mxu1 }
 0x3ec   : > { %v3051_v19 = vadd.f32 %v3050_v41, %v8179_v34  ;;  %v3052_v58 = vpop.f32.mrb[70].mxu1 }
 0x3ed   : > { %vm3489_vm6 = vcmp.ge.f32.partialorder %v3049_v6, 0.0  ;;  %v3745_v56 = vmul.f32 0.01, %v3049_v6  ;;  %v3053_v59 = vadd.f32 %v3052_v58, %v8174_v27  ;;  %v3054_v49 = vpop.f32.mrb[71].mxu1 }
 0x3ee   : > { %6156 = vmatmul.mubr.msk.bf16.gmra.mrb[172].mxu1 %vm2491_vm8, %v11935_v18  ;;  %vm3490_vm7 = vcmp.ge.f32.partialorder %v3051_v19, 0.0  ;;  %v3746_v21 = vmul.f32 0.01, %v3051_v19  ;;  %v3055_v18 = vadd.f32 %v3054_v49, %v8179_v34 }
 0x3ef   : > { %3316 = vmatprep.mubr.bf16.mxu1 %v11794_v14  ;;  %v8694_v51 = vsel %vm3489_vm6, %v3049_v6, %v3745_v56  ;;  %vm3491_vm9 = vcmp.ge.f32.partialorder %v3053_v59, 0.0  ;;  %v3747_v30 = vmul.f32 0.01, %v3053_v59 }
 0x3f0   : > { %11939 = vst [vmem:[#allocation133_spill] sm:$0xff] %v8694_v51  ;;  %v8700_v39 = vsel %vm3490_vm7, %v3051_v19, %v3746_v21  ;;  %vm3492_vm10 = vcmp.ge.f32.partialorder %v3055_v18, 0.0  ;;  %v3748_v26 = vmul.f32 0.01, %v3055_v18 }
 0x3f1   : > { %11941 = vst [vmem:[#allocation134_spill] sm:$0xff] %v8700_v39  ;;  %v8703_v58 = vsel %vm3491_vm9, %v3053_v59, %v3747_v30  ;;  %v11945_v30 = vld [vmem:[#allocation9_spill] sm:$0xff] }
 0x3f2   : > { %11942 = vst [vmem:[#allocation135_spill] sm:$0xff] %v8703_v58  ;;  %v8705_v41 = vsel %vm3492_vm10, %v3055_v18, %v3748_v26  ;;  %v3058_v49 = vpop.f32.mrb[72].mxu1  ;;  %v11946_v26 = vld [vmem:[#allocation8_spill] sm:$0xff] }
 0x3f3   : > { %11943 = vst [vmem:[#allocation136_spill] sm:$0xff] %v8705_v41  ;;  %v3059_v6 = vadd.f32 %v3058_v49, %v8174_v27  ;;  %v3060_v56 = vpop.f32.mrb[73].mxu1  ;;  %v11947_v49 = vpack.c.bf16 %v11945_v30, %v11946_v26 }
 0x3f4   : > { %v3061_v51 = vadd.f32 %v3060_v56, %v8179_v34  ;;  %v3062_v9 = vpop.f32.mrb[74].mxu1 }
 0x3f5   : > { %vm3493_vm11 = vcmp.ge.f32.partialorder %v3059_v6, 0.0  ;;  %v3749_v60 = vmul.f32 0.01, %v3059_v6  ;;  %v3063_v7 = vadd.f32 %v3062_v9, %v8174_v27  ;;  %v3064_v19 = vpop.f32.mrb[75].mxu1 }
 0x3f6   : > { %6157 = vmatmul.mubr.msk.bf16.gmra.mrb[176].mxu1 %vm2491_vm8, %v11940_v0  ;;  %vm3494_vm12 = vcmp.ge.f32.partialorder %v3061_v51, 0.0  ;;  %v3750_v21 = vmul.f32 0.01, %v3061_v51  ;;  %v3065_v0 = vadd.f32 %v3064_v19, %v8179_v34 }
 0x3f7   : > { %3326 = vmatprep.mubr.bf16.mxu1 %v11794_v14  ;;  %v8711_v59 = vsel %vm3493_vm11, %v3059_v6, %v3749_v60  ;;  %vm3495_vm13 = vcmp.ge.f32.partialorder %v3063_v7, 0.0  ;;  %v3751_v18 = vmul.f32 0.01, %v3063_v7 }
 0x3f8   : > { %11944 = vst [vmem:[#allocation137_spill] sm:$0xff] %v8711_v59  ;;  %v8717_v56 = vsel %vm3494_vm12, %v3061_v51, %v3750_v21  ;;  %vm3496_vm14 = vcmp.ge.f32.partialorder %v3065_v0, 0.0  ;;  %v3752_v41 = vmul.f32 0.01, %v3065_v0 }
 0x3f9   : > { %11948 = vst [vmem:[#allocation9_spill] sm:$0xff] %v8717_v56  ;;  %v8720_v9 = vsel %vm3495_vm13, %v3063_v7, %v3751_v18 }
 0x3fa   : > { %11949 = vst [vmem:[#allocation8_spill] sm:$0xff] %v8720_v9  ;;  %v8722_v58 = vsel %vm3496_vm14, %v3065_v0, %v3752_v41  ;;  %v3068_v19 = vpop.f32.mrb[76].mxu1  ;;  %v11952_v0 = vpack.c.bf16 %v8185_v32, %v8176_v1 }
 0x3fb   : > { %11950 = vst [vmem:[#allocation138_spill] sm:$0xff] %v8722_v58  ;;  %v3069_v6 = vadd.f32 %v3068_v19, %v8174_v27  ;;  %v3070_v60 = vpop.f32.mrb[77].mxu1 }
 0x3fc   : > { %v3071_v59 = vadd.f32 %v3070_v60, %v8179_v34  ;;  %v3072_v39 = vpop.f32.mrb[78].mxu1 }
 0x3fd   : > { %vm3497_vm15 = vcmp.ge.f32.partialorder %v3069_v6, 0.0  ;;  %v3753_v30 = vmul.f32 0.01, %v3069_v6  ;;  %v3073_v51 = vadd.f32 %v3072_v39, %v8174_v27  ;;  %v3074_v21 = vpop.f32.mrb[79].mxu1 }
 0x3fe   : > { %6158 = vmatmul.mubr.msk.bf16.gmra.mrb[180].mxu1 %vm2491_vm8, %v11947_v49  ;;  %vm3498_vm0 = vcmp.ge.f32.partialorder %v3071_v59, 0.0  ;;  %v3754_v26 = vmul.f32 0.01, %v3071_v59  ;;  %v3075_v49 = vadd.f32 %v3074_v21, %v8179_v34 }
 0x3ff   : > { %3336 = vmatprep.mubr.bf16.mxu1 %v11794_v14  ;;  %v8728_v7 = vsel %vm3497_vm15, %v3069_v6, %v3753_v30  ;;  %vm3499_vm1 = vcmp.ge.f32.partialorder %v3073_v51, 0.0  ;;  %v3755_v41 = vmul.f32 0.01, %v3073_v51 }
 0x400   : > { %11951 = vst [vmem:[#allocation139_spill] sm:$0xff] %v8728_v7  ;;  %v8734_v18 = vsel %vm3498_vm0, %v3071_v59, %v3754_v26  ;;  %vm3500_vm2 = vcmp.ge.f32.partialorder %v3075_v49, 0.0  ;;  %v3756_v19 = vmul.f32 0.01, %v3075_v49 }
 0x401   : > { %11953 = vst [vmem:[#allocation140_spill] sm:$0xff] %v8734_v18  ;;  %v8737_v39 = vsel %vm3499_vm1, %v3073_v51, %v3755_v41  ;;  %v11957_v41 = vld [vmem:[#allocation11_spill] sm:$0xff] }
 0x402   : > { %11954 = vst [vmem:[#allocation141_spill] sm:$0xff] %v8737_v39  ;;  %v8739_v60 = vsel %vm3500_vm2, %v3075_v49, %v3756_v19  ;;  %v3078_v21 = vpop.f32.mrb[80].mxu1 }
 0x403   : > { %11955 = vst [vmem:[#allocation142_spill] sm:$0xff] %v8739_v60  ;;  %v3079_v6 = vadd.f32 %v3078_v21, %v8174_v27  ;;  %v3080_v30 = vpop.f32.mrb[81].mxu1 }
 0x404   : > { %v3081_v7 = vadd.f32 %v3080_v30, %v8179_v34  ;;  %v3082_v58 = vpop.f32.mrb[82].mxu1 }
 0x405   : > { %vm3501_vm3 = vcmp.ge.f32.partialorder %v3079_v6, 0.0  ;;  %v3757_v1 = vmul.f32 0.01, %v3079_v6  ;;  %v3083_v32 = vadd.f32 %v3082_v58, %v8174_v27  ;;  %v3084_v59 = vpop.f32.mrb[83].mxu1 }
 0x406   : > { %6159 = vmatmul.mubr.msk.bf16.gmra.mrb[184].mxu1 %vm2491_vm8, %v11952_v0  ;;  %vm3502_vm4 = vcmp.ge.f32.partialorder %v3081_v7, 0.0  ;;  %v3758_v26 = vmul.f32 0.01, %v3081_v7  ;;  %v11958_v0 = vld [vmem:[#allocation10_spill] sm:$0xff] }
 0x407   : > { %3346 = vmatprep.mubr.bf16.mxu1 %v11794_v14  ;;  %v3085_v14 = vadd.f32 %v3084_v59, %v8179_v34  ;;  %v8745_v51 = vsel %vm3501_vm3, %v3079_v6, %v3757_v1  ;;  %vm3503_vm5 = vcmp.ge.f32.partialorder %v3083_v32, 0.0  ;;  %v3759_v49 = vmul.f32 0.01, %v3083_v32 }
 0x408   : > { %11956 = vst [vmem:[#allocation143_spill] sm:$0xff] %v8745_v51  ;;  %v11959_v19 = vpack.c.bf16 %v11957_v41, %v11958_v0  ;;  %v8751_v21 = vsel %vm3502_vm4, %v3081_v7, %v3758_v26 }
 0x409   : > { %11960 = vst [vmem:[#allocation11_spill] sm:$0xff] %v8751_v21  ;;  %vm3504_vm6 = vcmp.ge.f32.partialorder %v3085_v14, 0.0  ;;  %v3760_v30 = vmul.f32 0.01, %v3085_v14  ;;  %v8753_v60 = vsel %vm3503_vm5, %v3083_v32, %v3759_v49 }
 0x40a   : > { %11961 = vst [vmem:[#allocation10_spill] sm:$0xff] %v8753_v60  ;;  %v3088_v39 = vpop.f32.mrb[84].mxu1 }
 0x40b   : > { %v8755_v58 = vsel %vm3504_vm6, %v3085_v14, %v3760_v30  ;;  %v3089_v59 = vadd.f32 %v3088_v39, %v8174_v27  ;;  %v3090_v6 = vpop.f32.mrb[85].mxu1 }
 0x40c   : > { %11962 = vst [vmem:[#allocation144_spill] sm:$0xff] %v8755_v58  ;;  %v3091_v1 = vadd.f32 %v3090_v6, %v8179_v34  ;;  %v3092_v51 = vpop.f32.mrb[86].mxu1 }
 0x40d   : > { %vm3505_vm7 = vcmp.ge.f32.partialorder %v3089_v59, 0.0  ;;  %v3761_v18 = vmul.f32 0.01, %v3089_v59  ;;  %v3093_v41 = vadd.f32 %v3092_v51, %v8174_v27  ;;  %v3094_v0 = vpop.f32.mrb[87].mxu1 }
 0x40e   : > { %6160 = vmatmul.mubr.msk.bf16.gmra.mrb[188].mxu1 %vm2491_vm8, %v11959_v19  ;;  %vm3506_vm8 = vcmp.ge.f32.partialorder %v3091_v1, 0.0  ;;  %v3762_v7 = vmul.f32 0.01, %v3091_v1  ;;  %v3095_v26 = vadd.f32 %v3094_v0, %v8179_v34 }
 0x40f   : > { %v8761_v32 = vsel %vm3505_vm7, %v3089_v59, %v3761_v18  ;;  %vm3507_vm9 = vcmp.ge.f32.partialorder %v3093_v41, 0.0  ;;  %v3763_v14 = vmul.f32 0.01, %v3093_v41 }
 0x410   : > { %11963 = vst [vmem:[#allocation145_spill] sm:$0xff] %v8761_v32  ;;  %v8763_v49 = vsel %vm3506_vm8, %v3091_v1, %v3762_v7  ;;  %vm3508_vm10 = vcmp.ge.f32.partialorder %v3095_v26, 0.0  ;;  %v3764_v39 = vmul.f32 0.01, %v3095_v26 }
 0x411   : > { %11964 = vst [vmem:[#allocation146_spill] sm:$0xff] %v8763_v49  ;;  %v8765_v19 = vsel %vm3507_vm9, %v3093_v41, %v3763_v14 }
 0x412   : > { %11965 = vst [vmem:[#allocation147_spill] sm:$0xff] %v8765_v19  ;;  %v8767_v30 = vsel %vm3508_vm10, %v3095_v26, %v3764_v39  ;;  %v3098_v6 = vpop.f32.mrb[88].mxu1 }
 0x413   : > { %11966 = vst [vmem:[#allocation148_spill] sm:$0xff] %v8767_v30  ;;  %v3099_v51 = vadd.f32 %v3098_v6, %v8174_v27  ;;  %v3100_v58 = vpop.f32.mrb[89].mxu1 }
 0x414   : > { %v3101_v60 = vadd.f32 %v3100_v58, %v8179_v34  ;;  %v3102_v21 = vpop.f32.mrb[90].mxu1 }
 0x415   : > { %vm3509_vm11 = vcmp.ge.f32.partialorder %v3099_v51, 0.0  ;;  %v3765_v18 = vmul.f32 0.01, %v3099_v51  ;;  %v3103_v59 = vadd.f32 %v3102_v21, %v8174_v27  ;;  %v3104_v0 = vpop.f32.mrb[91].mxu1 }
 0x416   : > { %vm3510_vm12 = vcmp.ge.f32.partialorder %v3101_v60, 0.0  ;;  %v3766_v1 = vmul.f32 0.01, %v3101_v60  ;;  %v3105_v7 = vadd.f32 %v3104_v0, %v8179_v34 }
 0x417   : > { %v8773_v41 = vsel %vm3509_vm11, %v3099_v51, %v3765_v18  ;;  %vm3511_vm13 = vcmp.ge.f32.partialorder %v3103_v59, 0.0  ;;  %v3767_v26 = vmul.f32 0.01, %v3103_v59 }
 0x418   : > { %11967 = vst [vmem:[#allocation149_spill] sm:$0xff] %v8773_v41  ;;  %v8775_v14 = vsel %vm3510_vm12, %v3101_v60, %v3766_v1  ;;  %vm3512_vm14 = vcmp.ge.f32.partialorder %v3105_v7, 0.0  ;;  %v3768_v39 = vmul.f32 0.01, %v3105_v7 }
 0x419   : > { %11968 = vst [vmem:[#allocation150_spill] sm:$0xff] %v8775_v14  ;;  %v8777_v6 = vsel %vm3511_vm13, %v3103_v59, %v3767_v26 }
 0x41a   : > { %11969 = vst [vmem:[#allocation151_spill] sm:$0xff] %v8777_v6  ;;  %v8779_v58 = vsel %vm3512_vm14, %v3105_v7, %v3768_v39  ;;  %v3108_v30 = vpop.f32.mrb[92].mxu1 }
 0x41b   : > { %11970 = vst [vmem:[#allocation152_spill] sm:$0xff] %v8779_v58  ;;  %v3109_v21 = vadd.f32 %v3108_v30, %v8174_v27  ;;  %v3110_v19 = vpop.f32.mrb[93].mxu1 }
 0x41c   : > { %v3111_v49 = vadd.f32 %v3110_v19, %v8179_v34  ;;  %v3112_v32 = vpop.f32.mrb[94].mxu1 }
 0x41d   : > { %vm3513_vm15 = vcmp.ge.f32.partialorder %v3109_v21, 0.0  ;;  %v3769_v51 = vmul.f32 0.01, %v3109_v21  ;;  %v3113_v18 = vadd.f32 %v3112_v32, %v8174_v27  ;;  %v3114_v0 = vpop.f32.mrb[95].mxu1 }
 0x41e   : > { %vm3514_vm0 = vcmp.ge.f32.partialorder %v3111_v49, 0.0  ;;  %v3770_v60 = vmul.f32 0.01, %v3111_v49  ;;  %v3115_v1 = vadd.f32 %v3114_v0, %v8179_v34 }
 0x41f   : > { %v8785_v59 = vsel %vm3513_vm15, %v3109_v21, %v3769_v51  ;;  %vm3515_vm1 = vcmp.ge.f32.partialorder %v3113_v18, 0.0  ;;  %v3771_v7 = vmul.f32 0.01, %v3113_v18 }
 0x420   : > { %11971 = vst [vmem:[#allocation153_spill] sm:$0xff] %v8785_v59  ;;  %v8787_v26 = vsel %vm3514_vm0, %v3111_v49, %v3770_v60  ;;  %vm3516_vm2 = vcmp.ge.f32.partialorder %v3115_v1, 0.0  ;;  %v3772_v30 = vmul.f32 0.01, %v3115_v1 }
 0x421   : > { %11972 = vst [vmem:[#allocation154_spill] sm:$0xff] %v8787_v26  ;;  %v8789_v39 = vsel %vm3515_vm1, %v3113_v18, %v3771_v7 }
 0x422   : > { %11973 = vst [vmem:[#allocation155_spill] sm:$0xff] %v8789_v39  ;;  %v8791_v19 = vsel %vm3516_vm2, %v3115_v1, %v3772_v30  ;;  %v3118_v58 = vpop.f32.mrb[96].mxu1 }
 0x423   : > { %11974 = vst [vmem:[#allocation156_spill] sm:$0xff] %v8791_v19  ;;  %v3119_v32 = vadd.f32 %v3118_v58, %v8174_v27  ;;  %v3120_v6 = vpop.f32.mrb[97].mxu1 }
 0x424   : > { %v3121_v14 = vadd.f32 %v3120_v6, %v8179_v34  ;;  %v3122_v41 = vpop.f32.mrb[98].mxu1 }
 0x425   : > { %vm3517_vm3 = vcmp.ge.f32.partialorder %v3119_v32, 0.0  ;;  %v3773_v21 = vmul.f32 0.01, %v3119_v32  ;;  %v3123_v51 = vadd.f32 %v3122_v41, %v8174_v27  ;;  %v3124_v0 = vpop.f32.mrb[99].mxu1 }
 0x426   : > { %vm3518_vm4 = vcmp.ge.f32.partialorder %v3121_v14, 0.0  ;;  %v3774_v49 = vmul.f32 0.01, %v3121_v14  ;;  %v3125_v60 = vadd.f32 %v3124_v0, %v8179_v34 }
 0x427   : > { %v8797_v18 = vsel %vm3517_vm3, %v3119_v32, %v3773_v21  ;;  %vm3519_vm5 = vcmp.ge.f32.partialorder %v3123_v51, 0.0  ;;  %v3775_v1 = vmul.f32 0.01, %v3123_v51 }
 0x428   : > { %11975 = vst [vmem:[#allocation157_spill] sm:$0xff] %v8797_v18  ;;  %v8799_v7 = vsel %vm3518_vm4, %v3121_v14, %v3774_v49  ;;  %vm3520_vm6 = vcmp.ge.f32.partialorder %v3125_v60, 0.0  ;;  %v3776_v58 = vmul.f32 0.01, %v3125_v60 }
 0x429   : > { %11976 = vst [vmem:[#allocation158_spill] sm:$0xff] %v8799_v7  ;;  %v8801_v30 = vsel %vm3519_vm5, %v3123_v51, %v3775_v1 }
 0x42a   : > { %11977 = vst [vmem:[#allocation159_spill] sm:$0xff] %v8801_v30  ;;  %v8803_v6 = vsel %vm3520_vm6, %v3125_v60, %v3776_v58  ;;  %v3128_v19 = vpop.f32.mrb[100].mxu1 }
 0x42b   : > { %11978 = vst [vmem:[#allocation160_spill] sm:$0xff] %v8803_v6  ;;  %v3129_v41 = vadd.f32 %v3128_v19, %v8174_v27  ;;  %v3130_v39 = vpop.f32.mrb[101].mxu1 }
 0x42c   : > { %v3131_v26 = vadd.f32 %v3130_v39, %v8179_v34  ;;  %v3132_v59 = vpop.f32.mrb[102].mxu1 }
 0x42d   : > { %vm3521_vm7 = vcmp.ge.f32.partialorder %v3129_v41, 0.0  ;;  %v3777_v32 = vmul.f32 0.01, %v3129_v41  ;;  %v3133_v21 = vadd.f32 %v3132_v59, %v8174_v27  ;;  %v3134_v0 = vpop.f32.mrb[103].mxu1 }
 0x42e   : > { %vm3522_vm8 = vcmp.ge.f32.partialorder %v3131_v26, 0.0  ;;  %v3778_v14 = vmul.f32 0.01, %v3131_v26  ;;  %v3135_v49 = vadd.f32 %v3134_v0, %v8179_v34 }
 0x42f   : > { %v8809_v51 = vsel %vm3521_vm7, %v3129_v41, %v3777_v32  ;;  %vm3523_vm9 = vcmp.ge.f32.partialorder %v3133_v21, 0.0  ;;  %v3779_v60 = vmul.f32 0.01, %v3133_v21 }
 0x430   : > { %11979 = vst [vmem:[#allocation161_spill] sm:$0xff] %v8809_v51  ;;  %v8811_v1 = vsel %vm3522_vm8, %v3131_v26, %v3778_v14  ;;  %vm3524_vm10 = vcmp.ge.f32.partialorder %v3135_v49, 0.0  ;;  %v3780_v19 = vmul.f32 0.01, %v3135_v49 }
 0x431   : > { %11980 = vst [vmem:[#allocation162_spill] sm:$0xff] %v8811_v1  ;;  %v8813_v58 = vsel %vm3523_vm9, %v3133_v21, %v3779_v60 }
 0x432   : > { %11981 = vst [vmem:[#allocation163_spill] sm:$0xff] %v8813_v58  ;;  %v8815_v39 = vsel %vm3524_vm10, %v3135_v49, %v3780_v19  ;;  %v3138_v9 = vpop.f32.mrb[104].mxu1 }
 0x433   : > { %11982 = vst [vmem:[#allocation164_spill] sm:$0xff] %v8815_v39  ;;  %v3139_v59 = vadd.f32 %v3138_v9, %v8174_v27  ;;  %v3140_v56 = vpop.f32.mrb[105].mxu1 }
 0x434   : > { %v3141_v7 = vadd.f32 %v3140_v56, %v8179_v34  ;;  %v3142_v6 = vpop.f32.mrb[106].mxu1 }
 0x435   : > { %vm3525_vm11 = vcmp.ge.f32.partialorder %v3139_v59, 0.0  ;;  %v3781_v41 = vmul.f32 0.01, %v3139_v59  ;;  %v3143_v32 = vadd.f32 %v3142_v6, %v8174_v27  ;;  %v3144_v0 = vpop.f32.mrb[107].mxu1 }
 0x436   : > { %vm3526_vm12 = vcmp.ge.f32.partialorder %v3141_v7, 0.0  ;;  %v3782_v26 = vmul.f32 0.01, %v3141_v7  ;;  %v3145_v14 = vadd.f32 %v3144_v0, %v8179_v34 }
 0x437   : > { %v8821_v21 = vsel %vm3525_vm11, %v3139_v59, %v3781_v41  ;;  %vm3527_vm13 = vcmp.ge.f32.partialorder %v3143_v32, 0.0  ;;  %v3783_v49 = vmul.f32 0.01, %v3143_v32 }
 0x438   : > { %11983 = vst [vmem:[#allocation165_spill] sm:$0xff] %v8821_v21  ;;  %v8823_v60 = vsel %vm3526_vm12, %v3141_v7, %v3782_v26  ;;  %vm3528_vm14 = vcmp.ge.f32.partialorder %v3145_v14, 0.0  ;;  %v3784_v9 = vmul.f32 0.01, %v3145_v14 }
 0x439   : > { %11984 = vst [vmem:[#allocation166_spill] sm:$0xff] %v8823_v60  ;;  %v8825_v19 = vsel %vm3527_vm13, %v3143_v32, %v3783_v49 }
 0x43a   : > { %11985 = vst [vmem:[#allocation167_spill] sm:$0xff] %v8825_v19  ;;  %v8827_v56 = vsel %vm3528_vm14, %v3145_v14, %v3784_v9 }
 0x43b   : > { %11986 = vst [vmem:[#allocation168_spill] sm:$0xff] %v8827_v56 }
 0x43d   : > { %v3148_v39 = vpop.f32.mrb[108].mxu1 }
 0x43e   : > { %v3149_v6 = vadd.f32 %v3148_v39, %v8174_v27  ;;  %v3150_v58 = vpop.f32.mrb[109].mxu1 }
 0x43f   : > { %v3151_v1 = vadd.f32 %v3150_v58, %v8179_v34  ;;  %v3152_v51 = vpop.f32.mrb[110].mxu1 }
 0x440   : > { %vm3529_vm15 = vcmp.ge.f32.partialorder %v3149_v6, 0.0  ;;  %v3785_v59 = vmul.f32 0.01, %v3149_v6  ;;  %v3153_v41 = vadd.f32 %v3152_v51, %v8174_v27  ;;  %v3154_v0 = vpop.f32.mrb[111].mxu1 }
 0x441   : > { %vm3530_vm0 = vcmp.ge.f32.partialorder %v3151_v1, 0.0  ;;  %v3786_v7 = vmul.f32 0.01, %v3151_v1  ;;  %v3155_v26 = vadd.f32 %v3154_v0, %v8179_v34 }
 0x442   : > { %v8833_v32 = vsel %vm3529_vm15, %v3149_v6, %v3785_v59  ;;  %vm3531_vm1 = vcmp.ge.f32.partialorder %v3153_v41, 0.0  ;;  %v3787_v14 = vmul.f32 0.01, %v3153_v41 }
 0x443   : > { %11987 = vst [vmem:[#allocation169_spill] sm:$0xff] %v8833_v32  ;;  %v8835_v49 = vsel %vm3530_vm0, %v3151_v1, %v3786_v7  ;;  %vm3532_vm2 = vcmp.ge.f32.partialorder %v3155_v26, 0.0  ;;  %v3788_v39 = vmul.f32 0.01, %v3155_v26 }
 0x444   : > { %11988 = vst [vmem:[#allocation170_spill] sm:$0xff] %v8835_v49  ;;  %v8837_v9 = vsel %vm3531_vm1, %v3153_v41, %v3787_v14 }
 0x445   : > { %11989 = vst [vmem:[#allocation171_spill] sm:$0xff] %v8837_v9  ;;  %v8839_v58 = vsel %vm3532_vm2, %v3155_v26, %v3788_v39  ;;  %v3158_v56 = vpop.f32.mrb[112].mxu1 }
 0x446   : > { %11990 = vst [vmem:[#allocation172_spill] sm:$0xff] %v8839_v58  ;;  %v3159_v51 = vadd.f32 %v3158_v56, %v8174_v27  ;;  %v3160_v19 = vpop.f32.mrb[113].mxu1 }
 0x447   : > { %v3161_v60 = vadd.f32 %v3160_v19, %v8179_v34  ;;  %v3162_v21 = vpop.f32.mrb[114].mxu1 }
 0x448   : > { %vm3533_vm3 = vcmp.ge.f32.partialorder %v3159_v51, 0.0  ;;  %v3789_v6 = vmul.f32 0.01, %v3159_v51  ;;  %v3163_v59 = vadd.f32 %v3162_v21, %v8174_v27  ;;  %v3164_v0 = vpop.f32.mrb[115].mxu1 }
 0x449   : > { %vm3534_vm4 = vcmp.ge.f32.partialorder %v3161_v60, 0.0  ;;  %v3790_v1 = vmul.f32 0.01, %v3161_v60  ;;  %v3165_v7 = vadd.f32 %v3164_v0, %v8179_v34 }
 0x44a   : > { %v8845_v41 = vsel %vm3533_vm3, %v3159_v51, %v3789_v6  ;;  %vm3535_vm5 = vcmp.ge.f32.partialorder %v3163_v59, 0.0  ;;  %v3791_v26 = vmul.f32 0.01, %v3163_v59 }
 0x44b   : > { %11991 = vst [vmem:[#allocation173_spill] sm:$0xff] %v8845_v41  ;;  %v8847_v14 = vsel %vm3534_vm4, %v3161_v60, %v3790_v1  ;;  %vm3536_vm6 = vcmp.ge.f32.partialorder %v3165_v7, 0.0  ;;  %v3792_v56 = vmul.f32 0.01, %v3165_v7 }
 0x44c   : > { %11992 = vst [vmem:[#allocation174_spill] sm:$0xff] %v8847_v14  ;;  %v8849_v39 = vsel %vm3535_vm5, %v3163_v59, %v3791_v26 }
 0x44d   : > { %11993 = vst [vmem:[#allocation175_spill] sm:$0xff] %v8849_v39  ;;  %v8851_v19 = vsel %vm3536_vm6, %v3165_v7, %v3792_v56 }
 0x44e   : > { %11994 = vst [vmem:[#allocation176_spill] sm:$0xff] %v8851_v19  ;;  %v3168_v58 = vpop.f32.mrb[116].mxu1 }
 0x44f   : > { %v3169_v21 = vadd.f32 %v3168_v58, %v8174_v27  ;;  %v3170_v9 = vpop.f32.mrb[117].mxu1 }
 0x450   : > { %v3171_v49 = vadd.f32 %v3170_v9, %v8179_v34  ;;  %v3172_v32 = vpop.f32.mrb[118].mxu1 }
 0x451   : > { %vm3537_vm7 = vcmp.ge.f32.partialorder %v3169_v21, 0.0  ;;  %v3793_v51 = vmul.f32 0.01, %v3169_v21  ;;  %v3173_v6 = vadd.f32 %v3172_v32, %v8174_v27  ;;  %v3174_v0 = vpop.f32.mrb[119].mxu1 }
 0x452   : > { %vm3538_vm8 = vcmp.ge.f32.partialorder %v3171_v49, 0.0  ;;  %v3794_v60 = vmul.f32 0.01, %v3171_v49  ;;  %v3175_v1 = vadd.f32 %v3174_v0, %v8179_v34 }
 0x453   : > { %v8857_v59 = vsel %vm3537_vm7, %v3169_v21, %v3793_v51  ;;  %vm3539_vm9 = vcmp.ge.f32.partialorder %v3173_v6, 0.0  ;;  %v3795_v7 = vmul.f32 0.01, %v3173_v6 }
 0x454   : > { %11995 = vst [vmem:[#allocation177_spill] sm:$0xff] %v8857_v59  ;;  %v8859_v26 = vsel %vm3538_vm8, %v3171_v49, %v3794_v60  ;;  %vm3540_vm10 = vcmp.ge.f32.partialorder %v3175_v1, 0.0  ;;  %v3796_v58 = vmul.f32 0.01, %v3175_v1 }
 0x455   : > { %11996 = vst [vmem:[#allocation178_spill] sm:$0xff] %v8859_v26  ;;  %v8861_v56 = vsel %vm3539_vm9, %v3173_v6, %v3795_v7 }
 0x456   : > { %11997 = vst [vmem:[#allocation179_spill] sm:$0xff] %v8861_v56  ;;  %v8863_v9 = vsel %vm3540_vm10, %v3175_v1, %v3796_v58  ;;  %v3178_v19 = vpop.f32.mrb[120].mxu1 }
 0x457   : > { %11998 = vst [vmem:[#allocation180_spill] sm:$0xff] %v8863_v9  ;;  %v3179_v32 = vadd.f32 %v3178_v19, %v8174_v27  ;;  %v3180_v39 = vpop.f32.mrb[121].mxu1 }
 0x458   : > { %v3181_v14 = vadd.f32 %v3180_v39, %v8179_v34  ;;  %v3182_v41 = vpop.f32.mrb[122].mxu1 }
 0x459   : > { %vm3541_vm11 = vcmp.ge.f32.partialorder %v3179_v32, 0.0  ;;  %v3797_v21 = vmul.f32 0.01, %v3179_v32  ;;  %v3183_v51 = vadd.f32 %v3182_v41, %v8174_v27  ;;  %v3184_v0 = vpop.f32.mrb[123].mxu1 }
 0x45a   : > { %vm3542_vm12 = vcmp.ge.f32.partialorder %v3181_v14, 0.0  ;;  %v3798_v49 = vmul.f32 0.01, %v3181_v14  ;;  %v3185_v60 = vadd.f32 %v3184_v0, %v8179_v34 }
 0x45b   : > { %v8869_v6 = vsel %vm3541_vm11, %v3179_v32, %v3797_v21  ;;  %vm3543_vm13 = vcmp.ge.f32.partialorder %v3183_v51, 0.0  ;;  %v3799_v1 = vmul.f32 0.01, %v3183_v51 }
 0x45c   : > { %11999 = vst [vmem:[#allocation181_spill] sm:$0xff] %v8869_v6  ;;  %v8871_v7 = vsel %vm3542_vm12, %v3181_v14, %v3798_v49  ;;  %vm3544_vm14 = vcmp.ge.f32.partialorder %v3185_v60, 0.0  ;;  %v3800_v19 = vmul.f32 0.01, %v3185_v60 }
 0x45d   : > { %12000 = vst [vmem:[#allocation182_spill] sm:$0xff] %v8871_v7  ;;  %v8873_v58 = vsel %vm3543_vm13, %v3183_v51, %v3799_v1 }
 0x45e   : > { %12001 = vst [vmem:[#allocation183_spill] sm:$0xff] %v8873_v58  ;;  %v8875_v39 = vsel %vm3544_vm14, %v3185_v60, %v3800_v19  ;;  %v3188_v9 = vpop.f32.mrb[124].mxu1 }
 0x45f   : > { %12002 = vst [vmem:[#allocation184_spill] sm:$0xff] %v8875_v39  ;;  %v3189_v41 = vadd.f32 %v3188_v9, %v8174_v27  ;;  %v3190_v56 = vpop.f32.mrb[125].mxu1 }
 0x460   : > { %v3191_v26 = vadd.f32 %v3190_v56, %v8179_v34  ;;  %v3192_v59 = vpop.f32.mrb[126].mxu1 }
 0x461   : > { %vm3545_vm15 = vcmp.ge.f32.partialorder %v3189_v41, 0.0  ;;  %v3801_v32 = vmul.f32 0.01, %v3189_v41  ;;  %v3193_v21 = vadd.f32 %v3192_v59, %v8174_v27  ;;  %v3194_v0 = vpop.f32.mrb[127].mxu1 }
 0x462   : > { %vm3546_vm0 = vcmp.ge.f32.partialorder %v3191_v26, 0.0  ;;  %v3802_v14 = vmul.f32 0.01, %v3191_v26  ;;  %v3195_v49 = vadd.f32 %v3194_v0, %v8179_v34 }
 0x463   : > { %v8881_v51 = vsel %vm3545_vm15, %v3189_v41, %v3801_v32  ;;  %vm3547_vm1 = vcmp.ge.f32.partialorder %v3193_v21, 0.0  ;;  %v3803_v60 = vmul.f32 0.01, %v3193_v21 }
 0x464   : > { %12003 = vst [vmem:[#allocation185_spill] sm:$0xff] %v8881_v51  ;;  %v8883_v1 = vsel %vm3546_vm0, %v3191_v26, %v3802_v14  ;;  %vm3548_vm2 = vcmp.ge.f32.partialorder %v3195_v49, 0.0  ;;  %v3804_v9 = vmul.f32 0.01, %v3195_v49 }
 0x465   : > { %12004 = vst [vmem:[#allocation186_spill] sm:$0xff] %v8883_v1  ;;  %v8885_v19 = vsel %vm3547_vm1, %v3193_v21, %v3803_v60 }
 0x466   : > { %12005 = vst [vmem:[#allocation187_spill] sm:$0xff] %v8885_v19  ;;  %v8887_v56 = vsel %vm3548_vm2, %v3195_v49, %v3804_v9 }
 0x467   : > { %12006 = vst [vmem:[#allocation188_spill] sm:$0xff] %v8887_v56  ;;  %v3198_v39 = vpop.f32.mrb[128].mxu1 }
 0x468   : > { %v3199_v59 = vadd.f32 %v3198_v39, %v8174_v27  ;;  %v3200_v58 = vpop.f32.mrb[129].mxu1 }
 0x469   : > { %v3201_v7 = vadd.f32 %v3200_v58, %v8179_v34  ;;  %v3202_v6 = vpop.f32.mrb[130].mxu1 }
 0x46a   : > { %vm3549_vm3 = vcmp.ge.f32.partialorder %v3199_v59, 0.0  ;;  %v3805_v41 = vmul.f32 0.01, %v3199_v59  ;;  %v3203_v32 = vadd.f32 %v3202_v6, %v8174_v27  ;;  %v3204_v0 = vpop.f32.mrb[131].mxu1 }
 0x46b   : > { %vm3550_vm4 = vcmp.ge.f32.partialorder %v3201_v7, 0.0  ;;  %v3806_v26 = vmul.f32 0.01, %v3201_v7  ;;  %v3205_v14 = vadd.f32 %v3204_v0, %v8179_v34 }
 0x46c   : > { %v8893_v21 = vsel %vm3549_vm3, %v3199_v59, %v3805_v41  ;;  %vm3551_vm5 = vcmp.ge.f32.partialorder %v3203_v32, 0.0  ;;  %v3807_v49 = vmul.f32 0.01, %v3203_v32 }
 0x46d   : > { %12007 = vst [vmem:[#allocation189_spill] sm:$0xff] %v8893_v21  ;;  %v8895_v60 = vsel %vm3550_vm4, %v3201_v7, %v3806_v26  ;;  %vm3552_vm6 = vcmp.ge.f32.partialorder %v3205_v14, 0.0  ;;  %v3808_v39 = vmul.f32 0.01, %v3205_v14 }
 0x46e   : > { %12008 = vst [vmem:[#allocation190_spill] sm:$0xff] %v8895_v60  ;;  %v8897_v9 = vsel %vm3551_vm5, %v3203_v32, %v3807_v49 }
 0x46f   : > { %12009 = vst [vmem:[#allocation191_spill] sm:$0xff] %v8897_v9  ;;  %v8899_v58 = vsel %vm3552_vm6, %v3205_v14, %v3808_v39  ;;  %v3208_v56 = vpop.f32.mrb[132].mxu1 }
 0x470   : > { %12010 = vst [vmem:[#allocation192_spill] sm:$0xff] %v8899_v58  ;;  %v3209_v6 = vadd.f32 %v3208_v56, %v8174_v27  ;;  %v3210_v19 = vpop.f32.mrb[133].mxu1 }
 0x471   : > { %v3211_v1 = vadd.f32 %v3210_v19, %v8179_v34  ;;  %v3212_v51 = vpop.f32.mrb[134].mxu1 }
 0x472   : > { %vm3553_vm7 = vcmp.ge.f32.partialorder %v3209_v6, 0.0  ;;  %v3809_v59 = vmul.f32 0.01, %v3209_v6  ;;  %v3213_v41 = vadd.f32 %v3212_v51, %v8174_v27  ;;  %v3214_v0 = vpop.f32.mrb[135].mxu1 }
 0x473   : > { %vm3554_vm8 = vcmp.ge.f32.partialorder %v3211_v1, 0.0  ;;  %v3810_v7 = vmul.f32 0.01, %v3211_v1  ;;  %v3215_v26 = vadd.f32 %v3214_v0, %v8179_v34 }
 0x474   : > { %v8905_v32 = vsel %vm3553_vm7, %v3209_v6, %v3809_v59  ;;  %vm3555_vm9 = vcmp.ge.f32.partialorder %v3213_v41, 0.0  ;;  %v3811_v14 = vmul.f32 0.01, %v3213_v41 }
 0x475   : > { %12011 = vst [vmem:[#allocation193_spill] sm:$0xff] %v8905_v32  ;;  %v8907_v49 = vsel %vm3554_vm8, %v3211_v1, %v3810_v7  ;;  %vm3556_vm10 = vcmp.ge.f32.partialorder %v3215_v26, 0.0  ;;  %v3812_v56 = vmul.f32 0.01, %v3215_v26 }
 0x476   : > { %12012 = vst [vmem:[#allocation194_spill] sm:$0xff] %v8907_v49  ;;  %v8909_v39 = vsel %vm3555_vm9, %v3213_v41, %v3811_v14 }
 0x477   : > { %12013 = vst [vmem:[#allocation195_spill] sm:$0xff] %v8909_v39  ;;  %v8911_v19 = vsel %vm3556_vm10, %v3215_v26, %v3812_v56  ;;  %v3218_v60 = vpop.f32.mrb[136].mxu1 }
 0x478   : > { %12014 = vst [vmem:[#allocation196_spill] sm:$0xff] %v8911_v19  ;;  %v3219_v51 = vadd.f32 %v3218_v60, %v8174_v27  ;;  %v3220_v58 = vpop.f32.mrb[137].mxu1 }
 0x479   : > { %v3221_v21 = vadd.f32 %v3220_v58, %v8179_v34  ;;  %v3222_v9 = vpop.f32.mrb[138].mxu1 }
 0x47a   : > { %vm3557_vm11 = vcmp.ge.f32.partialorder %v3219_v51, 0.0  ;;  %v3813_v6 = vmul.f32 0.01, %v3219_v51  ;;  %v3223_v59 = vadd.f32 %v3222_v9, %v8174_v27  ;;  %v3224_v0 = vpop.f32.mrb[139].mxu1 }
 0x47b   : > { %vm3558_vm12 = vcmp.ge.f32.partialorder %v3221_v21, 0.0  ;;  %v3814_v1 = vmul.f32 0.01, %v3221_v21  ;;  %v3225_v7 = vadd.f32 %v3224_v0, %v8179_v34 }
 0x47c   : > { %v8917_v41 = vsel %vm3557_vm11, %v3219_v51, %v3813_v6  ;;  %vm3559_vm13 = vcmp.ge.f32.partialorder %v3223_v59, 0.0  ;;  %v3815_v26 = vmul.f32 0.01, %v3223_v59 }
 0x47d   : > { %12015 = vst [vmem:[#allocation197_spill] sm:$0xff] %v8917_v41  ;;  %v8919_v14 = vsel %vm3558_vm12, %v3221_v21, %v3814_v1  ;;  %vm3560_vm14 = vcmp.ge.f32.partialorder %v3225_v7, 0.0  ;;  %v3816_v60 = vmul.f32 0.01, %v3225_v7 }
 0x47e   : > { %12016 = vst [vmem:[#allocation198_spill] sm:$0xff] %v8919_v14  ;;  %v8921_v56 = vsel %vm3559_vm13, %v3223_v59, %v3815_v26 }
 0x47f   : > { %12017 = vst [vmem:[#allocation199_spill] sm:$0xff] %v8921_v56  ;;  %v8923_v58 = vsel %vm3560_vm14, %v3225_v7, %v3816_v60 }
 0x480   : > { %12018 = vst [vmem:[#allocation200_spill] sm:$0xff] %v8923_v58  ;;  %v3228_v19 = vpop.f32.mrb[140].mxu1 }
 0x481   : > { %v3229_v9 = vadd.f32 %v3228_v19, %v8174_v27  ;;  %v3230_v39 = vpop.f32.mrb[141].mxu1 }
 0x482   : > { %v3231_v49 = vadd.f32 %v3230_v39, %v8179_v34  ;;  %v3232_v32 = vpop.f32.mrb[142].mxu1 }
 0x483   : > { %vm3561_vm15 = vcmp.ge.f32.partialorder %v3229_v9, 0.0  ;;  %v3817_v51 = vmul.f32 0.01, %v3229_v9  ;;  %v3233_v6 = vadd.f32 %v3232_v32, %v8174_v27  ;;  %v3234_v0 = vpop.f32.mrb[143].mxu1 }
 0x484   : > { %vm3562_vm0 = vcmp.ge.f32.partialorder %v3231_v49, 0.0  ;;  %v3818_v21 = vmul.f32 0.01, %v3231_v49  ;;  %v3235_v1 = vadd.f32 %v3234_v0, %v8179_v34 }
 0x485   : > { %v8929_v59 = vsel %vm3561_vm15, %v3229_v9, %v3817_v51  ;;  %vm3563_vm1 = vcmp.ge.f32.partialorder %v3233_v6, 0.0  ;;  %v3819_v7 = vmul.f32 0.01, %v3233_v6 }
 0x486   : > { %12019 = vst [vmem:[#allocation201_spill] sm:$0xff] %v8929_v59  ;;  %v8931_v26 = vsel %vm3562_vm0, %v3231_v49, %v3818_v21  ;;  %vm3564_vm2 = vcmp.ge.f32.partialorder %v3235_v1, 0.0  ;;  %v3820_v19 = vmul.f32 0.01, %v3235_v1 }
 0x487   : > { %12020 = vst [vmem:[#allocation202_spill] sm:$0xff] %v8931_v26  ;;  %v8933_v60 = vsel %vm3563_vm1, %v3233_v6, %v3819_v7 }
 0x488   : > { %12021 = vst [vmem:[#allocation203_spill] sm:$0xff] %v8933_v60  ;;  %v8935_v39 = vsel %vm3564_vm2, %v3235_v1, %v3820_v19  ;;  %v3238_v58 = vpop.f32.mrb[144].mxu1 }
 0x489   : > { %12022 = vst [vmem:[#allocation204_spill] sm:$0xff] %v8935_v39  ;;  %v3239_v32 = vadd.f32 %v3238_v58, %v8174_v27  ;;  %v3240_v56 = vpop.f32.mrb[145].mxu1 }
 0x48a   : > { %v3241_v14 = vadd.f32 %v3240_v56, %v8179_v34  ;;  %v3242_v41 = vpop.f32.mrb[146].mxu1 }
 0x48b   : > { %vm3565_vm3 = vcmp.ge.f32.partialorder %v3239_v32, 0.0  ;;  %v3821_v9 = vmul.f32 0.01, %v3239_v32  ;;  %v3243_v51 = vadd.f32 %v3242_v41, %v8174_v27  ;;  %v3244_v0 = vpop.f32.mrb[147].mxu1 }
 0x48c   : > { %vm3566_vm4 = vcmp.ge.f32.partialorder %v3241_v14, 0.0  ;;  %v3822_v49 = vmul.f32 0.01, %v3241_v14  ;;  %v3245_v21 = vadd.f32 %v3244_v0, %v8179_v34 }
 0x48d   : > { %v8941_v6 = vsel %vm3565_vm3, %v3239_v32, %v3821_v9  ;;  %vm3567_vm5 = vcmp.ge.f32.partialorder %v3243_v51, 0.0  ;;  %v3823_v1 = vmul.f32 0.01, %v3243_v51 }
 0x48e   : > { %12023 = vst [vmem:[#allocation205_spill] sm:$0xff] %v8941_v6  ;;  %v8943_v7 = vsel %vm3566_vm4, %v3241_v14, %v3822_v49  ;;  %vm3568_vm6 = vcmp.ge.f32.partialorder %v3245_v21, 0.0  ;;  %v3824_v58 = vmul.f32 0.01, %v3245_v21 }
 0x48f   : > { %12024 = vst [vmem:[#allocation206_spill] sm:$0xff] %v8943_v7  ;;  %v8945_v19 = vsel %vm3567_vm5, %v3243_v51, %v3823_v1 }
 0x490   : > { %12025 = vst [vmem:[#allocation207_spill] sm:$0xff] %v8945_v19  ;;  %v8947_v56 = vsel %vm3568_vm6, %v3245_v21, %v3824_v58  ;;  %v3248_v39 = vpop.f32.mrb[148].mxu1 }
 0x491   : > { %12026 = vst [vmem:[#allocation208_spill] sm:$0xff] %v8947_v56  ;;  %v3249_v41 = vadd.f32 %v3248_v39, %v8174_v27  ;;  %v3250_v60 = vpop.f32.mrb[149].mxu1 }
 0x492   : > { %v3251_v26 = vadd.f32 %v3250_v60, %v8179_v34  ;;  %v3252_v59 = vpop.f32.mrb[150].mxu1 }
 0x493   : > { %vm3569_vm7 = vcmp.ge.f32.partialorder %v3249_v41, 0.0  ;;  %v3825_v32 = vmul.f32 0.01, %v3249_v41  ;;  %v3253_v9 = vadd.f32 %v3252_v59, %v8174_v27  ;;  %v3254_v0 = vpop.f32.mrb[151].mxu1 }
 0x494   : > { %vm3570_vm8 = vcmp.ge.f32.partialorder %v3251_v26, 0.0  ;;  %v3826_v14 = vmul.f32 0.01, %v3251_v26  ;;  %v3255_v49 = vadd.f32 %v3254_v0, %v8179_v34 }
 0x495   : > { %v8953_v51 = vsel %vm3569_vm7, %v3249_v41, %v3825_v32  ;;  %vm3571_vm9 = vcmp.ge.f32.partialorder %v3253_v9, 0.0  ;;  %v3827_v21 = vmul.f32 0.01, %v3253_v9 }
 0x496   : > { %12027 = vst [vmem:[#allocation209_spill] sm:$0xff] %v8953_v51  ;;  %v8955_v1 = vsel %vm3570_vm8, %v3251_v26, %v3826_v14  ;;  %vm3572_vm10 = vcmp.ge.f32.partialorder %v3255_v49, 0.0  ;;  %v3828_v39 = vmul.f32 0.01, %v3255_v49 }
 0x497   : > { %12028 = vst [vmem:[#allocation210_spill] sm:$0xff] %v8955_v1  ;;  %v8957_v58 = vsel %vm3571_vm9, %v3253_v9, %v3827_v21 }
 0x498   : > { %12029 = vst [vmem:[#allocation211_spill] sm:$0xff] %v8957_v58  ;;  %v8959_v60 = vsel %vm3572_vm10, %v3255_v49, %v3828_v39 }
 0x499   : > { %12030 = vst [vmem:[#allocation212_spill] sm:$0xff] %v8959_v60  ;;  %v3258_v56 = vpop.f32.mrb[152].mxu1 }
 0x49a   : > { %v3259_v59 = vadd.f32 %v3258_v56, %v8174_v27  ;;  %v3260_v19 = vpop.f32.mrb[153].mxu1 }
 0x49b   : > { %v3261_v7 = vadd.f32 %v3260_v19, %v8179_v34  ;;  %v3262_v6 = vpop.f32.mrb[154].mxu1 }
 0x49c   : > { %vm3573_vm11 = vcmp.ge.f32.partialorder %v3259_v59, 0.0  ;;  %v3829_v41 = vmul.f32 0.01, %v3259_v59  ;;  %v3263_v32 = vadd.f32 %v3262_v6, %v8174_v27  ;;  %v3264_v0 = vpop.f32.mrb[155].mxu1 }
 0x49d   : > { %vm3574_vm12 = vcmp.ge.f32.partialorder %v3261_v7, 0.0  ;;  %v3830_v26 = vmul.f32 0.01, %v3261_v7  ;;  %v3265_v14 = vadd.f32 %v3264_v0, %v8179_v34 }
 0x49e   : > { %v8965_v9 = vsel %vm3573_vm11, %v3259_v59, %v3829_v41  ;;  %vm3575_vm13 = vcmp.ge.f32.partialorder %v3263_v32, 0.0  ;;  %v3831_v49 = vmul.f32 0.01, %v3263_v32 }
 0x49f   : > { %12031 = vst [vmem:[#allocation213_spill] sm:$0xff] %v8965_v9  ;;  %v8967_v21 = vsel %vm3574_vm12, %v3261_v7, %v3830_v26  ;;  %vm3576_vm14 = vcmp.ge.f32.partialorder %v3265_v14, 0.0  ;;  %v3832_v56 = vmul.f32 0.01, %v3265_v14 }
 0x4a0   : > { %12032 = vst [vmem:[#allocation214_spill] sm:$0xff] %v8967_v21  ;;  %v8969_v39 = vsel %vm3575_vm13, %v3263_v32, %v3831_v49 }
 0x4a1   : > { %12033 = vst [vmem:[#allocation215_spill] sm:$0xff] %v8969_v39  ;;  %v8971_v19 = vsel %vm3576_vm14, %v3265_v14, %v3832_v56  ;;  %v3268_v60 = vpop.f32.mrb[156].mxu1 }
 0x4a2   : > { %12034 = vst [vmem:[#allocation216_spill] sm:$0xff] %v8971_v19  ;;  %v3269_v6 = vadd.f32 %v3268_v60, %v8174_v27  ;;  %v3270_v58 = vpop.f32.mrb[157].mxu1 }
 0x4a3   : > { %v3271_v1 = vadd.f32 %v3270_v58, %v8179_v34  ;;  %v3272_v51 = vpop.f32.mrb[158].mxu1 }
 0x4a4   : > { %vm3577_vm15 = vcmp.ge.f32.partialorder %v3269_v6, 0.0  ;;  %v3833_v59 = vmul.f32 0.01, %v3269_v6  ;;  %v3273_v41 = vadd.f32 %v3272_v51, %v8174_v27  ;;  %v3274_v0 = vpop.f32.mrb[159].mxu1 }
 0x4a5   : > { %vm3578_vm0 = vcmp.ge.f32.partialorder %v3271_v1, 0.0  ;;  %v3834_v7 = vmul.f32 0.01, %v3271_v1  ;;  %v3275_v26 = vadd.f32 %v3274_v0, %v8179_v34 }
 0x4a6   : > { %v8977_v32 = vsel %vm3577_vm15, %v3269_v6, %v3833_v59  ;;  %vm3579_vm1 = vcmp.ge.f32.partialorder %v3273_v41, 0.0  ;;  %v3835_v14 = vmul.f32 0.01, %v3273_v41 }
 0x4a7   : > { %12035 = vst [vmem:[#allocation217_spill] sm:$0xff] %v8977_v32  ;;  %v8979_v49 = vsel %vm3578_vm0, %v3271_v1, %v3834_v7  ;;  %vm3580_vm2 = vcmp.ge.f32.partialorder %v3275_v26, 0.0  ;;  %v3836_v60 = vmul.f32 0.01, %v3275_v26 }
 0x4a8   : > { %12036 = vst [vmem:[#allocation218_spill] sm:$0xff] %v8979_v49  ;;  %v8981_v56 = vsel %vm3579_vm1, %v3273_v41, %v3835_v14 }
 0x4a9   : > { %12037 = vst [vmem:[#allocation219_spill] sm:$0xff] %v8981_v56  ;;  %v8983_v58 = vsel %vm3580_vm2, %v3275_v26, %v3836_v60  ;;  %v3278_v19 = vpop.f32.mrb[160].mxu1 }
 0x4aa   : > { %12038 = vst [vmem:[#allocation220_spill] sm:$0xff] %v8983_v58  ;;  %v3279_v51 = vadd.f32 %v3278_v19, %v8174_v27  ;;  %v3280_v39 = vpop.f32.mrb[161].mxu1 }
 0x4ab   : > { %v3281_v21 = vadd.f32 %v3280_v39, %v8179_v34  ;;  %v3282_v9 = vpop.f32.mrb[162].mxu1 }
 0x4ac   : > { %vm3581_vm3 = vcmp.ge.f32.partialorder %v3279_v51, 0.0  ;;  %v3837_v6 = vmul.f32 0.01, %v3279_v51  ;;  %v3283_v59 = vadd.f32 %v3282_v9, %v8174_v27  ;;  %v3284_v0 = vpop.f32.mrb[163].mxu1 }
 0x4ad   : > { %vm3582_vm4 = vcmp.ge.f32.partialorder %v3281_v21, 0.0  ;;  %v3838_v1 = vmul.f32 0.01, %v3281_v21  ;;  %v3285_v7 = vadd.f32 %v3284_v0, %v8179_v34 }
 0x4ae   : > { %v8989_v41 = vsel %vm3581_vm3, %v3279_v51, %v3837_v6  ;;  %vm3583_vm5 = vcmp.ge.f32.partialorder %v3283_v59, 0.0  ;;  %v3839_v26 = vmul.f32 0.01, %v3283_v59 }
 0x4af   : > { %12039 = vst [vmem:[#allocation221_spill] sm:$0xff] %v8989_v41  ;;  %v8991_v14 = vsel %vm3582_vm4, %v3281_v21, %v3838_v1  ;;  %vm3584_vm6 = vcmp.ge.f32.partialorder %v3285_v7, 0.0  ;;  %v3840_v19 = vmul.f32 0.01, %v3285_v7 }
 0x4b0   : > { %12040 = vst [vmem:[#allocation222_spill] sm:$0xff] %v8991_v14  ;;  %v8993_v60 = vsel %vm3583_vm5, %v3283_v59, %v3839_v26 }
 0x4b1   : > { %12041 = vst [vmem:[#allocation223_spill] sm:$0xff] %v8993_v60  ;;  %v8995_v39 = vsel %vm3584_vm6, %v3285_v7, %v3840_v19  ;;  %v3288_v58 = vpop.f32.mrb[164].mxu1 }
 0x4b2   : > { %12042 = vst [vmem:[#allocation224_spill] sm:$0xff] %v8995_v39  ;;  %v3289_v9 = vadd.f32 %v3288_v58, %v8174_v27  ;;  %v3290_v56 = vpop.f32.mrb[165].mxu1 }
 0x4b3   : > { %v3291_v49 = vadd.f32 %v3290_v56, %v8179_v34  ;;  %v3292_v32 = vpop.f32.mrb[166].mxu1 }
 0x4b4   : > { %vm3585_vm7 = vcmp.ge.f32.partialorder %v3289_v9, 0.0  ;;  %v3841_v51 = vmul.f32 0.01, %v3289_v9  ;;  %v3293_v6 = vadd.f32 %v3292_v32, %v8174_v27  ;;  %v3294_v0 = vpop.f32.mrb[167].mxu1 }
 0x4b5   : > { %vm3586_vm8 = vcmp.ge.f32.partialorder %v3291_v49, 0.0  ;;  %v3842_v21 = vmul.f32 0.01, %v3291_v49  ;;  %v3295_v1 = vadd.f32 %v3294_v0, %v8179_v34 }
 0x4b6   : > { %v9001_v59 = vsel %vm3585_vm7, %v3289_v9, %v3841_v51  ;;  %vm3587_vm9 = vcmp.ge.f32.partialorder %v3293_v6, 0.0  ;;  %v3843_v7 = vmul.f32 0.01, %v3293_v6 }
 0x4b7   : > { %12043 = vst [vmem:[#allocation225_spill] sm:$0xff] %v9001_v59  ;;  %v9003_v26 = vsel %vm3586_vm8, %v3291_v49, %v3842_v21  ;;  %vm3588_vm10 = vcmp.ge.f32.partialorder %v3295_v1, 0.0  ;;  %v3844_v58 = vmul.f32 0.01, %v3295_v1 }
 0x4b8   : > { %12044 = vst [vmem:[#allocation226_spill] sm:$0xff] %v9003_v26  ;;  %v9005_v19 = vsel %vm3587_vm9, %v3293_v6, %v3843_v7 }
 0x4b9   : > { %12045 = vst [vmem:[#allocation227_spill] sm:$0xff] %v9005_v19  ;;  %v9007_v56 = vsel %vm3588_vm10, %v3295_v1, %v3844_v58  ;;  %v3298_v14 = vpop.f32.mrb[168].mxu1 }
 0x4ba   : > { %12046 = vst [vmem:[#allocation228_spill] sm:$0xff] %v9007_v56  ;;  %v3299_v32 = vadd.f32 %v3298_v14, %v8174_v27  ;;  %v3300_v39 = vpop.f32.mrb[169].mxu1 }
 0x4bb   : > { %v3301_v41 = vadd.f32 %v3300_v39, %v8179_v34  ;;  %v3302_v60 = vpop.f32.mrb[170].mxu1 }
 0x4bc   : > { %vm3589_vm11 = vcmp.ge.f32.partialorder %v3299_v32, 0.0  ;;  %v3845_v9 = vmul.f32 0.01, %v3299_v32  ;;  %v3303_v51 = vadd.f32 %v3302_v60, %v8174_v27  ;;  %v3304_v0 = vpop.f32.mrb[171].mxu1 }
 0x4bd   : > { %vm3590_vm12 = vcmp.ge.f32.partialorder %v3301_v41, 0.0  ;;  %v3846_v49 = vmul.f32 0.01, %v3301_v41  ;;  %v3305_v21 = vadd.f32 %v3304_v0, %v8179_v34 }
 0x4be   : > { %v9013_v6 = vsel %vm3589_vm11, %v3299_v32, %v3845_v9  ;;  %vm3591_vm13 = vcmp.ge.f32.partialorder %v3303_v51, 0.0  ;;  %v3847_v1 = vmul.f32 0.01, %v3303_v51 }
 0x4bf   : > { %12047 = vst [vmem:[#allocation229_spill] sm:$0xff] %v9013_v6  ;;  %v9015_v7 = vsel %vm3590_vm12, %v3301_v41, %v3846_v49  ;;  %vm3592_vm14 = vcmp.ge.f32.partialorder %v3305_v21, 0.0  ;;  %v3848_v14 = vmul.f32 0.01, %v3305_v21 }
 0x4c0   : > { %12048 = vst [vmem:[#allocation230_spill] sm:$0xff] %v9015_v7  ;;  %v9017_v58 = vsel %vm3591_vm13, %v3303_v51, %v3847_v1 }
 0x4c1   : > { %12049 = vst [vmem:[#allocation231_spill] sm:$0xff] %v9017_v58  ;;  %v9019_v39 = vsel %vm3592_vm14, %v3305_v21, %v3848_v14  ;;  %v3308_v56 = vpop.f32.mrb[172].mxu1 }
 0x4c2   : > { %12050 = vst [vmem:[#allocation232_spill] sm:$0xff] %v9019_v39  ;;  %v3309_v60 = vadd.f32 %v3308_v56, %v8174_v27  ;;  %v3310_v19 = vpop.f32.mrb[173].mxu1 }
 0x4c3   : > { %v3311_v26 = vadd.f32 %v3310_v19, %v8179_v34  ;;  %v3312_v59 = vpop.f32.mrb[174].mxu1 }
 0x4c4   : > { %vm3593_vm15 = vcmp.ge.f32.partialorder %v3309_v60, 0.0  ;;  %v3849_v32 = vmul.f32 0.01, %v3309_v60  ;;  %v3313_v9 = vadd.f32 %v3312_v59, %v8174_v27  ;;  %v3314_v0 = vpop.f32.mrb[175].mxu1 }
 0x4c5   : > { %vm3594_vm0 = vcmp.ge.f32.partialorder %v3311_v26, 0.0  ;;  %v3850_v41 = vmul.f32 0.01, %v3311_v26  ;;  %v3315_v49 = vadd.f32 %v3314_v0, %v8179_v34 }
 0x4c6   : > { %v9025_v51 = vsel %vm3593_vm15, %v3309_v60, %v3849_v32  ;;  %vm3595_vm1 = vcmp.ge.f32.partialorder %v3313_v9, 0.0  ;;  %v3851_v21 = vmul.f32 0.01, %v3313_v9 }
 0x4c7   : > { %12051 = vst [vmem:[#allocation233_spill] sm:$0xff] %v9025_v51  ;;  %v9027_v1 = vsel %vm3594_vm0, %v3311_v26, %v3850_v41  ;;  %vm3596_vm2 = vcmp.ge.f32.partialorder %v3315_v49, 0.0  ;;  %v3852_v56 = vmul.f32 0.01, %v3315_v49 }
 0x4c8   : > { %12052 = vst [vmem:[#allocation234_spill] sm:$0xff] %v9027_v1  ;;  %v9029_v14 = vsel %vm3595_vm1, %v3313_v9, %v3851_v21 }
 0x4c9   : > { %12053 = vst [vmem:[#allocation235_spill] sm:$0xff] %v9029_v14  ;;  %v9031_v19 = vsel %vm3596_vm2, %v3315_v49, %v3852_v56  ;;  %v3318_v39 = vpop.f32.mrb[176].mxu1 }
 0x4ca   : > { %12054 = vst [vmem:[#allocation236_spill] sm:$0xff] %v9031_v19  ;;  %v3319_v59 = vadd.f32 %v3318_v39, %v8174_v27  ;;  %v3320_v58 = vpop.f32.mrb[177].mxu1 }
 0x4cb   : > { %v3321_v7 = vadd.f32 %v3320_v58, %v8179_v34  ;;  %v3322_v6 = vpop.f32.mrb[178].mxu1 }
 0x4cc   : > { %vm3597_vm3 = vcmp.ge.f32.partialorder %v3319_v59, 0.0  ;;  %v3853_v60 = vmul.f32 0.01, %v3319_v59  ;;  %v3323_v32 = vadd.f32 %v3322_v6, %v8174_v27  ;;  %v3324_v0 = vpop.f32.mrb[179].mxu1 }
 0x4cd   : > { %vm3598_vm4 = vcmp.ge.f32.partialorder %v3321_v7, 0.0  ;;  %v3854_v26 = vmul.f32 0.01, %v3321_v7  ;;  %v3325_v41 = vadd.f32 %v3324_v0, %v8179_v34 }
 0x4ce   : > { %v9037_v9 = vsel %vm3597_vm3, %v3319_v59, %v3853_v60  ;;  %vm3599_vm5 = vcmp.ge.f32.partialorder %v3323_v32, 0.0  ;;  %v3855_v49 = vmul.f32 0.01, %v3323_v32  ;;  %vm4483_vm3 = vcmask (!%p6161_p12), 1041409  }
 0x4cf   : > { %12055 = vst [vmem:[#allocation237_spill] sm:$0xff] %v9037_v9  ;;  %v9039_v21 = vsel %vm3598_vm4, %v3321_v7, %v3854_v26  ;;  %vm3600_vm6 = vcmp.ge.f32.partialorder %v3325_v41, 0.0  ;;  %v3856_v39 = vmul.f32 0.01, %v3325_v41  ;;  %vm4485_vm4 = vcmask (!%p6161_p12), 1042434  }
 0x4d0   : > { %12056 = vst [vmem:[#allocation238_spill] sm:$0xff] %v9039_v21  ;;  %v9041_v56 = vsel %vm3599_vm5, %v3323_v32, %v3855_v49  ;;  %vm4487_vm5 = vcmask (!%p6161_p12), 1043459  }
 0x4d1   : > { %12057 = vst [vmem:[#allocation239_spill] sm:$0xff] %v9041_v56  ;;  %v9043_v58 = vsel %vm3600_vm6, %v3325_v41, %v3856_v39  ;;  %v3328_v19 = vpop.f32.mrb[180].mxu1  ;;  %vm4489_vm6 = vcmask (!%p6161_p12), 1044484  }
 0x4d2   : > { %12058 = vst [vmem:[#allocation240_spill] sm:$0xff] %v9043_v58  ;;  %v3329_v6 = vadd.f32 %v3328_v19, %v8174_v27  ;;  %v3330_v14 = vpop.f32.mrb[181].mxu1 }
 0x4d3   : > { %v3331_v1 = vadd.f32 %v3330_v14, %v8179_v34  ;;  %v3332_v51 = vpop.f32.mrb[182].mxu1 }
 0x4d4   : > { %vm3601_vm7 = vcmp.ge.f32.partialorder %v3329_v6, 0.0  ;;  %v3857_v59 = vmul.f32 0.01, %v3329_v6  ;;  %v3333_v60 = vadd.f32 %v3332_v51, %v8174_v27  ;;  %v3334_v0 = vpop.f32.mrb[183].mxu1 }
 0x4d5   : > { %vm3602_vm8 = vcmp.ge.f32.partialorder %v3331_v1, 0.0  ;;  %v3858_v7 = vmul.f32 0.01, %v3331_v1  ;;  %v3335_v26 = vadd.f32 %v3334_v0, %v8179_v34 }
 0x4d6   : > { %v9049_v32 = vsel %vm3601_vm7, %v3329_v6, %v3857_v59  ;;  %vm3603_vm9 = vcmp.ge.f32.partialorder %v3333_v60, 0.0  ;;  %v3859_v41 = vmul.f32 0.01, %v3333_v60  ;;  %vm4491_vm7 = vcmask (!%p6161_p12), 1045509  }
 0x4d7   : > { %12059 = vst [vmem:[#allocation241_spill] sm:$0xff] %v9049_v32  ;;  %v9051_v49 = vsel %vm3602_vm8, %v3331_v1, %v3858_v7  ;;  %vm3604_vm10 = vcmp.ge.f32.partialorder %v3335_v26, 0.0  ;;  %v3860_v19 = vmul.f32 0.01, %v3335_v26  ;;  %vm4493_vm8 = vcmask (!%p6161_p12), 1046534  }
 0x4d8   : > { %12060 = vst [vmem:[#allocation242_spill] sm:$0xff] %v9051_v49  ;;  %v9053_v39 = vsel %vm3603_vm9, %v3333_v60, %v3859_v41  ;;  %vm4495_vm9 = vcmask (!%p6161_p12), 1047559  }
 0x4d9   : > { %12061 = vst [vmem:[#allocation243_spill] sm:$0xff] %v9053_v39  ;;  %v9055_v14 = vsel %vm3604_vm10, %v3335_v26, %v3860_v19  ;;  %v3338_v58 = vpop.f32.mrb[184].mxu1 }
 0x4da   : > { %12062 = vst [vmem:[#allocation244_spill] sm:$0xff] %v9055_v14  ;;  %v3339_v51 = vadd.f32 %v3338_v58, %v8174_v27  ;;  %v3340_v56 = vpop.f32.mrb[185].mxu1 }
 0x4db   : > { %v3341_v21 = vadd.f32 %v3340_v56, %v8179_v34  ;;  %v3342_v9 = vpop.f32.mrb[186].mxu1 }
 0x4dc   : > { %vm3605_vm11 = vcmp.ge.f32.partialorder %v3339_v51, 0.0  ;;  %v3861_v6 = vmul.f32 0.01, %v3339_v51  ;;  %v3343_v59 = vadd.f32 %v3342_v9, %v8174_v27  ;;  %v3344_v0 = vpop.f32.mrb[187].mxu1 }
 0x4dd   : > { %vm3606_vm12 = vcmp.ge.f32.partialorder %v3341_v21, 0.0  ;;  %v3862_v1 = vmul.f32 0.01, %v3341_v21  ;;  %v3345_v7 = vadd.f32 %v3344_v0, %v8179_v34 }
 0x4de   : > { %v9061_v60 = vsel %vm3605_vm11, %v3339_v51, %v3861_v6  ;;  %vm3607_vm13 = vcmp.ge.f32.partialorder %v3343_v59, 0.0  ;;  %v3863_v26 = vmul.f32 0.01, %v3343_v59 }
 0x4df   : > { %12063 = vst [vmem:[#allocation245_spill] sm:$0xff] %v9061_v60  ;;  %v9063_v41 = vsel %vm3606_vm12, %v3341_v21, %v3862_v1  ;;  %vm3608_vm14 = vcmp.ge.f32.partialorder %v3345_v7, 0.0  ;;  %v3864_v58 = vmul.f32 0.01, %v3345_v7 }
 0x4e0   : > { %12064 = vst [vmem:[#allocation246_spill] sm:$0xff] %v9063_v41  ;;  %v9065_v19 = vsel %vm3607_vm13, %v3343_v59, %v3863_v26 }
 0x4e1   : > { %12065 = vst [vmem:[#allocation247_spill] sm:$0xff] %v9065_v19  ;;  %v9067_v56 = vsel %vm3608_vm14, %v3345_v7, %v3864_v58  ;;  %v3348_v14 = vpop.f32.mrb[188].mxu1 }
 0x4e2   : > { %12066 = vst [vmem:[#allocation248_spill] sm:$0xff] %v9067_v56  ;;  %v3349_v9 = vadd.f32 %v3348_v14, %v8174_v27  ;;  %v3350_v39 = vpop.f32.mrb[189].mxu1 }
 0x4e3   : > { %v3351_v49 = vadd.f32 %v3350_v39, %v8179_v34  ;;  %v3352_v32 = vpop.f32.mrb[190].mxu1 }
 0x4e4   : > { %vm3609_vm15 = vcmp.ge.f32.partialorder %v3349_v9, 0.0  ;;  %v3865_v51 = vmul.f32 0.01, %v3349_v9  ;;  %v3353_v6 = vadd.f32 %v3352_v32, %v8174_v27  ;;  %v3354_v0 = vpop.f32.mrb[191].mxu1  ;;  %4128 = sbr.rel (%p6161_p12) target bundleno = 1356 (0x54c), region = 121  ;;  %v12071_v27 = vld [vmem:[#allocation12_spill] sm:$0xff] (!%p6161_p12) }
 0x4e5   : > { %vm3610_vm0 = vcmp.ge.f32.partialorder %v3351_v49, 0.0  ;;  %v3866_v21 = vmul.f32 0.01, %v3351_v49  ;;  %v3355_v1 = vadd.f32 %v3354_v0, %v8179_v34  ;;  %v4131_v32 = vmax.f32 (!%p6161_p12), %v12071_v27, %v8202_v25  ;;  %v12072_v34 = vld [vmem:[#allocation13_spill] sm:$0xff] (!%p6161_p12)  ;;  %v12074_v27 = vld [vmem:[#allocation16_spill] sm:$0xff] (!%p6161_p12) }
 0x4e6   : > { %v9073_v59 = vsel %vm3609_vm15, %v3349_v9, %v3865_v51  ;;  %vm3611_vm1 = vcmp.ge.f32.partialorder %v3353_v6, 0.0  ;;  %v3867_v7 = vmul.f32 0.01, %v3353_v6  ;;  %v4152_v9 = vmax.f32 (!%p6161_p12), %v12072_v34, %v8204_v11 }
 0x4e7   : > { %12067 = vst [vmem:[#allocation249_spill] sm:$0xff] %v9073_v59  ;;  %v9075_v26 = vsel %vm3610_vm0, %v3351_v49, %v3866_v21  ;;  %vm3612_vm2 = vcmp.ge.f32.partialorder %v3355_v1, 0.0  ;;  %v3868_v14 = vmul.f32 0.01, %v3355_v1  ;;  %v4173_v51 = vmax.f32 (!%p6161_p12), %v8388_v15, %v8400_v50 }
 0x4e8   : > { %12068 = vst [vmem:[#allocation250_spill] sm:$0xff] %v9075_v26  ;;  %v9077_v58 = vsel %vm3611_vm1, %v3353_v6, %v3867_v7  ;;  %v4194_v49 = vmax.f32 (!%p6161_p12), %v8394_v3, %v8403_v23  ;;  %v4215_v6 = vmax.f32 (!%p6161_p12), %v8263_v29, %v8275_v24  ;;  %v4236_v0 = vmax.f32 (!%p6161_p12), %v8269_v38, %v8280_v47  ;;  %v12073_v7 = vld [vmem:[#allocation15_spill] sm:$0xff] (!%p6161_p12)  ;;  %v12076_v38 = vld [vmem:[#allocation18_spill] sm:$0xff] (!%p6161_p12) }
 0x4e9   : > { %12069 = vst [vmem:[#allocation251_spill] sm:$0xff] %v9077_v58  ;;  %v9079_v39 = vsel %vm3612_vm2, %v3355_v1, %v3868_v14  ;;  %v4257_v21 = vmax.f32 (!%p6161_p12), %v8493_v44, %v8507_v55  ;;  %v4278_v1 = vmax.f32 (!%p6161_p12), %v8500_v28, %v8513_v57  ;;  %v4132_v14 = vmax.f32 (!%p6161_p12), %v4131_v32, %v12073_v7  ;;  %v12075_v55 = vld [vmem:[#allocation17_spill] sm:$0xff] (!%p6161_p12)  ;;  %v12095_v28 = vld [vmem:[#allocation80_spill] sm:$0xff] (!%p6161_p12) }
 0x4ea   : > { %12070 = vst [vmem:[#allocation252_spill] sm:$0xff] %v9079_v39  ;;  %v4153_v34 = vmax.f32 (!%p6161_p12), %v4152_v9, %v12074_v27  ;;  %v4174_v50 = vmax.f32 (!%p6161_p12), %v4173_v51, %v8417_v46  ;;  %v4195_v15 = vmax.f32 (!%p6161_p12), %v4194_v49, %v8423_v16  ;;  %v4216_v25 = vmax.f32 (!%p6161_p12), %v4215_v6, %v8290_v2  ;;  %v12077_v7 = vld [vmem:[#allocation37_spill] sm:$0xff] (!%p6161_p12)  ;;  %v12078_v27 = vld [vmem:[#allocation39_spill] sm:$0xff] (!%p6161_p12)  ;;  %v12081_v46 = vld [vmem:[#allocation72_spill] sm:$0xff] (!%p6161_p12) }
 0x4eb   : > { %v4237_v24 = vmax.f32 %v4236_v0, %v8297_v5  ;;  %v4258_v29 = vmax.f32 %v4257_v21, %v8522_v17  ;;  %v4279_v47 = vmax.f32 %v4278_v1, %v8529_v22  ;;  %v4133_v44 = vmax.f32 %v4132_v14, %v12075_v55  ;;  %v12079_v2 = vld [vmem:[#allocation19_spill] sm:$0xff]  ;;  %v12080_v17 = vld [vmem:[#allocation20_spill] sm:$0xff]  ;;  %v12082_v14 = vld [vmem:[#allocation74_spill] sm:$0xff] }
 0x4ec   : > { %v4154_v57 = vmax.f32 %v4153_v34, %v12076_v38  ;;  %v4175_v32 = vmax.f32 %v4174_v50, %v8429_v4  ;;  %v4196_v9 = vmax.f32 %v4195_v15, %v8432_v48  ;;  %v4217_v51 = vmax.f32 %v4216_v25, %v12077_v7  ;;  %v12083_v34 = vld [vmem:[#allocation42_spill] sm:$0xff]  ;;  %v12084_v4 = vld [vmem:[#allocation43_spill] sm:$0xff]  ;;  %v12085_v7 = vld [vmem:[#allocation21_spill] sm:$0xff] }
 0x4ed   : > { %v4238_v49 = vmax.f32 %v4237_v24, %v12078_v27  ;;  %v4259_v6 = vmax.f32 %v4258_v29, %v8536_v62  ;;  %v4280_v0 = vmax.f32 %v4279_v47, %v8542_v37  ;;  %v4134_v21 = vmax.f32 %v4133_v44, %v12079_v2  ;;  %v12086_v27 = vld [vmem:[#allocation22_spill] sm:$0xff]  ;;  %v12087_v62 = vld [vmem:[#allocation76_spill] sm:$0xff]  ;;  %v12088_v44 = vld [vmem:[#allocation77_spill] sm:$0xff] }
 0x4ee   : > { %v4155_v1 = vmax.f32 %v4154_v57, %v12080_v17  ;;  %v4176_v55 = vmax.f32 %v4175_v32, %v12081_v46  ;;  %v4197_v38 = vmax.f32 %v4196_v9, %v12082_v14  ;;  %v4218_v50 = vmax.f32 %v4217_v51, %v12083_v34  ;;  %v12089_v57 = vld [vmem:[#allocation45_spill] sm:$0xff]  ;;  %v12090_v32 = vld [vmem:[#allocation47_spill] sm:$0xff]  ;;  %v12091_v14 = vld [vmem:[#allocation102_spill] sm:$0xff] }
 0x4ef   : > { %v4239_v15 = vmax.f32 %v4238_v49, %v12084_v4  ;;  %v4260_v25 = vmax.f32 %v4259_v6, %v8551_v20  ;;  %v4281_v24 = vmax.f32 %v4280_v0, %v8558_v45  ;;  %v4135_v29 = vmax.f32 %v4134_v21, %v12085_v7  ;;  %v12092_v34 = vld [vmem:[#allocation104_spill] sm:$0xff]  ;;  %v12093_v49 = vld [vmem:[#allocation23_spill] sm:$0xff]  ;;  %v12096_v7 = vld [vmem:[#allocation82_spill] sm:$0xff] }
 0x4f0   : > { %v4156_v47 = vmax.f32 %v4155_v1, %v12086_v27  ;;  %v4177_v2 = vmax.f32 %v4176_v55, %v12087_v62  ;;  %v4198_v17 = vmax.f32 %v4197_v38, %v12088_v44  ;;  %v4219_v46 = vmax.f32 %v4218_v50, %v12089_v57  ;;  %v12094_v20 = vld [vmem:[#allocation24_spill] sm:$0xff]  ;;  %v12097_v27 = vld [vmem:[#allocation50_spill] sm:$0xff]  ;;  %v12098_v55 = vld [vmem:[#allocation51_spill] sm:$0xff] }
 0x4f1   : > { %v4240_v9 = vmax.f32 %v4239_v15, %v12090_v32  ;;  %v4261_v51 = vmax.f32 %v4260_v25, %v12091_v14  ;;  %v4282_v4 = vmax.f32 %v4281_v24, %v12092_v34  ;;  %v4136_v6 = vmax.f32 %v4135_v29, %v12093_v49  ;;  %v12099_v44 = vld [vmem:[#allocation25_spill] sm:$0xff]  ;;  %v12100_v57 = vld [vmem:[#allocation26_spill] sm:$0xff]  ;;  %v12101_v32 = vld [vmem:[#allocation84_spill] sm:$0xff] }
 0x4f2   : > { %v4157_v0 = vmax.f32 %v4156_v47, %v12094_v20  ;;  %v4178_v21 = vmax.f32 %v4177_v2, %v12095_v28  ;;  %v4199_v1 = vmax.f32 %v4198_v17, %v12096_v7  ;;  %v4220_v62 = vmax.f32 %v4219_v46, %v12097_v27  ;;  %v12102_v14 = vld [vmem:[#allocation85_spill] sm:$0xff]  ;;  %v12104_v2 = vld [vmem:[#allocation55_spill] sm:$0xff]  ;;  %v12107_v7 = vld [vmem:[#allocation88_spill] sm:$0xff] }
 0x4f3   : > { %v4241_v38 = vmax.f32 %v4240_v9, %v12098_v55  ;;  %v4262_v50 = vmax.f32 %v4261_v51, %v8580_v63  ;;  %v4283_v15 = vmax.f32 %v4282_v4, %v8587_v61  ;;  %v4137_v25 = vmax.f32 %v4136_v6, %v12099_v44  ;;  %v12103_v47 = vld [vmem:[#allocation53_spill] sm:$0xff]  ;;  %v12106_v49 = vld [vmem:[#allocation31_spill] sm:$0xff]  ;;  %v12108_v27 = vld [vmem:[#allocation90_spill] sm:$0xff] }
 0x4f4   : > { %v4158_v24 = vmax.f32 %v4157_v0, %v12100_v57  ;;  %v4179_v29 = vmax.f32 %v4178_v21, %v12101_v32  ;;  %v4200_v20 = vmax.f32 %v4199_v1, %v12102_v14  ;;  %v4221_v28 = vmax.f32 %v4220_v62, %v12103_v47  ;;  %v12105_v34 = vld [vmem:[#allocation29_spill] sm:$0xff]  ;;  %v12109_v55 = vld [vmem:[#allocation58_spill] sm:$0xff]  ;;  %v12110_v44 = vld [vmem:[#allocation59_spill] sm:$0xff] }
 0x4f5   : > { %v4242_v17 = vmax.f32 %v4241_v38, %v12104_v2  ;;  %v4263_v46 = vmax.f32 %v4262_v50, %v8594_v52  ;;  %v4284_v9 = vmax.f32 %v4283_v15, %v8600_v35  ;;  %v4138_v51 = vmax.f32 %v4137_v25, %v12105_v34  ;;  %v12111_v57 = vld [vmem:[#allocation33_spill] sm:$0xff]  ;;  %v12112_v32 = vld [vmem:[#allocation34_spill] sm:$0xff]  ;;  %v12113_v14 = vld [vmem:[#allocation92_spill] sm:$0xff] }
 0x4f6   : > { %v4159_v4 = vmax.f32 %v4158_v24, %v12106_v49  ;;  %v4180_v6 = vmax.f32 %v4179_v29, %v12107_v7  ;;  %v4201_v0 = vmax.f32 %v4200_v20, %v12108_v27  ;;  %v4222_v21 = vmax.f32 %v4221_v28, %v12109_v55  ;;  %v12114_v47 = vld [vmem:[#allocation93_spill] sm:$0xff]  ;;  %v12116_v34 = vld [vmem:[#allocation62_spill] sm:$0xff]  ;;  %v12117_v49 = vld [vmem:[#allocation36_spill] sm:$0xff] }
 0x4f7   : > { %v4243_v1 = vmax.f32 %v4242_v17, %v12110_v44  ;;  %v4264_v62 = vmax.f32 %v4263_v46, %v8609_v12  ;;  %v4285_v38 = vmax.f32 %v4284_v9, %v8615_v8  ;;  %v4139_v50 = vmax.f32 %v4138_v51, %v12111_v57  ;;  %v12115_v2 = vld [vmem:[#allocation61_spill] sm:$0xff]  ;;  %v12118_v7 = vld [vmem:[#allocation38_spill] sm:$0xff]  ;;  %v12119_v27 = vld [vmem:[#allocation95_spill] sm:$0xff] }
 0x4f8   : > { %v4160_v15 = vmax.f32 %v4159_v4, %v12112_v32  ;;  %v4181_v25 = vmax.f32 %v4180_v6, %v12113_v14  ;;  %v4202_v24 = vmax.f32 %v4201_v0, %v12114_v47  ;;  %v4223_v29 = vmax.f32 %v4222_v21, %v12115_v2  ;;  %v12120_v55 = vld [vmem:[#allocation97_spill] sm:$0xff]  ;;  %v12121_v44 = vld [vmem:[#allocation64_spill] sm:$0xff]  ;;  %v12126_v2 = vld [vmem:[#allocation98_spill] sm:$0xff] }
 0x4f9   : > { %v4244_v20 = vmax.f32 %v4243_v1, %v12116_v34  ;;  %v4265_v28 = vmax.f32 %v4264_v62, %v8618_v43  ;;  %v4286_v17 = vmax.f32 %v4285_v38, %v8620_v36  ;;  %v4140_v46 = vmax.f32 %v4139_v50, %v12117_v49  ;;  %v12122_v57 = vld [vmem:[#allocation65_spill] sm:$0xff]  ;;  %v12124_v14 = vld [vmem:[#allocation40_spill] sm:$0xff]  ;;  %v12127_v34 = vld [vmem:[#allocation99_spill] sm:$0xff] }
 0x4fa   : > { %v4161_v9 = vmax.f32 %v4160_v15, %v12118_v7  ;;  %v4182_v51 = vmax.f32 %v4181_v25, %v12119_v27  ;;  %v4203_v4 = vmax.f32 %v4202_v24, %v12120_v55  ;;  %v4224_v6 = vmax.f32 %v4223_v29, %v12121_v44  ;;  %v12123_v32 = vld [vmem:[#allocation117_spill] sm:$0xff]  ;;  %v12128_v49 = vld [vmem:[#allocation67_spill] sm:$0xff]  ;;  %v12129_v7 = vld [vmem:[#allocation68_spill] sm:$0xff] }
 0x4fb   : > { %v4245_v0 = vmax.f32 %v4244_v20, %v12122_v57  ;;  %v4266_v21 = vmax.f32 %v4265_v28, %v12123_v32  ;;  %v4287_v1 = vmax.f32 %v4286_v17, %v8632_v10  ;;  %v4141_v62 = vmax.f32 %v4140_v46, %v12124_v14  ;;  %v12125_v47 = vld [vmem:[#allocation41_spill] sm:$0xff]  ;;  %v12130_v27 = vld [vmem:[#allocation120_spill] sm:$0xff]  ;;  %v12132_v44 = vld [vmem:[#allocation46_spill] sm:$0xff] }
 0x4fc   : > { %v4162_v38 = vmax.f32 %v4161_v9, %v12125_v47  ;;  %v4183_v50 = vmax.f32 %v4182_v51, %v12126_v2  ;;  %v4204_v15 = vmax.f32 %v4203_v4, %v12127_v34  ;;  %v4225_v25 = vmax.f32 %v4224_v6, %v12128_v49  ;;  %v12131_v55 = vld [vmem:[#allocation44_spill] sm:$0xff]  ;;  %v12133_v57 = vld [vmem:[#allocation101_spill] sm:$0xff]  ;;  %v12134_v32 = vld [vmem:[#allocation103_spill] sm:$0xff] }
 0x4fd   : > { %v4246_v24 = vmax.f32 %v4245_v0, %v12129_v7  ;;  %v4267_v29 = vmax.f32 %v4266_v21, %v8635_v42  ;;  %v4288_v20 = vmax.f32 %v4287_v1, %v12130_v27  ;;  %v4142_v28 = vmax.f32 %v4141_v62, %v12131_v55  ;;  %v12135_v14 = vld [vmem:[#allocation70_spill] sm:$0xff]  ;;  %v12136_v47 = vld [vmem:[#allocation71_spill] sm:$0xff]  ;;  %v12137_v2 = vld [vmem:[#allocation121_spill] sm:$0xff] }
 0x4fe   : > { %v4163_v17 = vmax.f32 %v4162_v38, %v12132_v44  ;;  %v4184_v46 = vmax.f32 %v4183_v50, %v12133_v57  ;;  %v4205_v9 = vmax.f32 %v4204_v15, %v12134_v32  ;;  %v4226_v51 = vmax.f32 %v4225_v25, %v12135_v14  ;;  %v12138_v34 = vld [vmem:[#allocation48_spill] sm:$0xff]  ;;  %v12139_v49 = vld [vmem:[#allocation49_spill] sm:$0xff]  ;;  %v12141_v27 = vld [vmem:[#allocation106_spill] sm:$0xff] }
 0x4ff   : > { %v4247_v4 = vmax.f32 %v4246_v24, %v12136_v47  ;;  %v4268_v6 = vmax.f32 %v4267_v29, %v12137_v2  ;;  %v4289_v0 = vmax.f32 %v4288_v20, %v8649_v54  ;;  %v4143_v21 = vmax.f32 %v4142_v28, %v12138_v34  ;;  %v12140_v7 = vld [vmem:[#allocation105_spill] sm:$0xff]  ;;  %v12143_v44 = vld [vmem:[#allocation75_spill] sm:$0xff]  ;;  %v12144_v57 = vld [vmem:[#allocation124_spill] sm:$0xff] }
 0x500   : > { %v4164_v1 = vmax.f32 %v4163_v17, %v12139_v49  ;;  %v4185_v62 = vmax.f32 %v4184_v46, %v12140_v7  ;;  %v4206_v38 = vmax.f32 %v4205_v9, %v12141_v27  ;;  %v12142_v55 = vld [vmem:[#allocation73_spill] sm:$0xff]  ;;  %v12145_v32 = vld [vmem:[#allocation52_spill] sm:$0xff]  ;;  %v12146_v14 = vld [vmem:[#allocation54_spill] sm:$0xff] }
 0x501   : > { %v4227_v50 = vmax.f32 %v4226_v51, %v12142_v55  ;;  %v4248_v15 = vmax.f32 %v4247_v4, %v12143_v44  ;;  %v4269_v25 = vmax.f32 %v4268_v6, %v8652_v31  ;;  %v4290_v24 = vmax.f32 %v4289_v0, %v12144_v57  ;;  %v12147_v47 = vld [vmem:[#allocation108_spill] sm:$0xff]  ;;  %v12148_v2 = vld [vmem:[#allocation110_spill] sm:$0xff]  ;;  %v12150_v49 = vld [vmem:[#allocation79_spill] sm:$0xff] }
 0x502   : > { %v4144_v29 = vmax.f32 %v4143_v21, %v12145_v32  ;;  %v4165_v20 = vmax.f32 %v4164_v1, %v12146_v14  ;;  %v4186_v28 = vmax.f32 %v4185_v62, %v12147_v47  ;;  %v4207_v17 = vmax.f32 %v4206_v38, %v12148_v2  ;;  %v12149_v34 = vld [vmem:[#allocation78_spill] sm:$0xff]  ;;  %v12151_v7 = vld [vmem:[#allocation125_spill] sm:$0xff]  ;;  %v12152_v27 = vld [vmem:[#allocation56_spill] sm:$0xff] }
 0x503   : > { %v4228_v46 = vmax.f32 %v4227_v50, %v12149_v34  ;;  %v4249_v9 = vmax.f32 %v4248_v15, %v12150_v49  ;;  %v4270_v51 = vmax.f32 %v4269_v25, %v12151_v7  ;;  %v4291_v4 = vmax.f32 %v4290_v24, %v8666_v40  ;;  %v12153_v55 = vld [vmem:[#allocation57_spill] sm:$0xff]  ;;  %v12154_v44 = vld [vmem:[#allocation111_spill] sm:$0xff]  ;;  %v12155_v57 = vld [vmem:[#allocation112_spill] sm:$0xff] }
 0x504   : > { %v4145_v6 = vmax.f32 %v4144_v29, %v12152_v27  ;;  %v4166_v0 = vmax.f32 %v4165_v20, %v12153_v55  ;;  %v4187_v21 = vmax.f32 %v4186_v28, %v12154_v44  ;;  %v4208_v1 = vmax.f32 %v4207_v17, %v12155_v57  ;;  %v12156_v32 = vld [vmem:[#allocation81_spill] sm:$0xff]  ;;  %v12157_v14 = vld [vmem:[#allocation83_spill] sm:$0xff]  ;;  %v12158_v47 = vld [vmem:[#allocation128_spill] sm:$0xff] }
 0x505   : > { %v4229_v62 = vmax.f32 %v4228_v46, %v12156_v32  ;;  %v4250_v38 = vmax.f32 %v4249_v9, %v12157_v14  ;;  %v4271_v50 = vmax.f32 %v4270_v51, %v8669_v13  ;;  %v4292_v15 = vmax.f32 %v4291_v4, %v12158_v47 }
 0x506   : > { %v4146_v2 = vrot.slane %v4145_v6, 4  ;;  %v4167_v25 = vrot.slane %v4166_v0, 4  ;;  %v4188_v34 = vrot.slane %v4187_v21, 4  ;;  %v4209_v24 = vrot.slane %v4208_v1, 4 }
 0x507   : > { %v4230_v49 = vrot.slane %v4229_v62, 4  ;;  %v4251_v29 = vrot.slane %v4250_v38, 4  ;;  %v4272_v7 = vrot.slane %v4271_v50, 4  ;;  %v4293_v20 = vrot.slane %v4292_v15, 4 }
 0x508   : > { %v4147_v27 = vmax.f32 %v4145_v6, %v4146_v2  ;;  %v4168_v28 = vmax.f32 %v4166_v0, %v4167_v25  ;;  %v4189_v55 = vmax.f32 %v4187_v21, %v4188_v34  ;;  %v4210_v17 = vmax.f32 %v4208_v1, %v4209_v24  ;;  %v12174_v25 = vld [vmem:[#allocation162_spill] sm:$0xff] }
 0x509   : > { %v4231_v44 = vmax.f32 %v4229_v62, %v4230_v49  ;;  %v4252_v46 = vmax.f32 %v4250_v38, %v4251_v29  ;;  %v4273_v57 = vmax.f32 %v4271_v50, %v4272_v7  ;;  %v4294_v9 = vmax.f32 %v4292_v15, %v4293_v20  ;;  %v12160_v7 = vld [vmem:[#allocation130_spill] sm:$0xff]  ;;  %v12177_v15 = vld [vmem:[#allocation225_spill] sm:$0xff] }
 0x50a   : > { %v4148_v32 = vrot.slane %v4147_v27, 2  ;;  %v4169_v51 = vrot.slane %v4168_v28, 2  ;;  %v4190_v14 = vrot.slane %v4189_v55, 2  ;;  %v4211_v4 = vrot.slane %v4210_v17, 2 }
 0x50b   : > { %v4232_v47 = vrot.slane %v4231_v44, 2  ;;  %v4253_v13 = vrot.slane %v4252_v46, 2  ;;  %v4274_v31 = vrot.slane %v4273_v57, 2  ;;  %v4295_v42 = vrot.slane %v4294_v9, 2 }
 0x50c   : > { %v4149_v43 = vmax.f32 %v4147_v27, %v4148_v32  ;;  %v4170_v12 = vmax.f32 %v4168_v28, %v4169_v51  ;;  %v9210_v52 = vmax.f32 %v4189_v55, %v4190_v14  ;;  %v9212_v6 = vmax.f32 %v4210_v17, %v4211_v4  ;;  %v12161_v28 = vld [vmem:[#allocation160_spill] sm:$0xff]  ;;  %v12162_v55 = vld [vmem:[#allocation158_spill] sm:$0xff]  ;;  %v12167_v32 = vld [vmem:[#allocation223_spill] sm:$0xff] }
 0x50d   : > { %v9214_v0 = vmax.f32 %v4231_v44, %v4232_v47  ;;  %v9216_v21 = vmax.f32 %v4252_v46, %v4253_v13  ;;  %v9218_v1 = vmax.f32 %v4273_v57, %v4274_v31  ;;  %v9220_v62 = vmax.f32 %v4294_v9, %v4295_v42  ;;  %v12159_v42 = vld [vmem:[#allocation129_spill] sm:$0xff]  ;;  %v12165_v46 = vld [vmem:[#allocation192_spill] sm:$0xff]  ;;  %v12166_v57 = vld [vmem:[#allocation190_spill] sm:$0xff] }
 0x50e   : > { %v4150_v38 = vrot.slane %v4149_v43, 1  ;;  %v4171_v50 = vrot.slane %v4170_v12, 1  ;;  %v4299_v29 = vmax.f32 %v12159_v42, %v8686_v33  ;;  %v4320_v20 = vmax.f32 %v12160_v7, %v8688_v53  ;;  %v12164_v44 = vld [vmem:[#allocation189_spill] sm:$0xff]  ;;  %v12169_v4 = vld [vmem:[#allocation224_spill] sm:$0xff]  ;;  %v12170_v47 = vld [vmem:[#allocation222_spill] sm:$0xff] }
 0x50f   : > { %v4341_v27 = vmax.f32 %v8797_v18, %v8801_v30  ;;  %v4362_v17 = vmax.f32 %v12162_v55, %v12161_v28  ;;  %v4404_v9 = vmax.f32 %v12166_v57, %v12165_v46  ;;  %v12168_v51 = vld [vmem:[#allocation221_spill] sm:$0xff]  ;;  %v12172_v7 = vld [vmem:[#allocation134_spill] sm:$0xff]  ;;  %v12180_v18 = vld [vmem:[#allocation136_spill] sm:$0xff] }
 0x510   : > { %v9226_v24 = vmax.f32 %v4149_v43, %v4150_v38  ;;  %v9228_v49 = vmax.f32 %v4170_v12, %v4171_v50  ;;  %v12163_v43 = vld [vmem:[#allocation191_spill] sm:$0xff]  ;;  %v4425_v14 = vmax.f32 %v12168_v51, %v12167_v32  ;;  %v4446_v38 = vmax.f32 %v12170_v47, %v12169_v4  ;;  %v12171_v50 = vld [vmem:[#allocation133_spill] sm:$0xff]  ;;  %v12178_v57 = vld [vmem:[#allocation226_spill] sm:$0xff] }
 0x511   : > { %v4383_v12 = vmax.f32 %v12164_v44, %v12163_v43  ;;  %v4300_v42 = vmax.f32 %v4299_v29, %v12171_v50  ;;  %v4321_v31 = vmax.f32 %v4320_v20, %v12172_v7  ;;  %v12173_v13 = vld [vmem:[#allocation161_spill] sm:$0xff]  ;;  %v4363_v28 = vmax.f32 %v4362_v17, %v12174_v25  ;;  %v12176_v43 = vld [vmem:[#allocation194_spill] sm:$0xff]  ;;  %v12179_v32 = vld [vmem:[#allocation135_spill] sm:$0xff] }
 0x512   : > { %v4342_v34 = vmax.f32 %v4341_v27, %v12173_v13  ;;  %v12175_v55 = vld [vmem:[#allocation193_spill] sm:$0xff]  ;;  %v4405_v44 = vmax.f32 %v4404_v9, %v12176_v43  ;;  %v4426_v46 = vmax.f32 %v4425_v14, %v12177_v15  ;;  %v4447_v30 = vmax.f32 %v4446_v38, %v12178_v57  ;;  %v12181_v47 = vld [vmem:[#allocation163_spill] sm:$0xff]  ;;  %v12182_v50 = vld [vmem:[#allocation164_spill] sm:$0xff] }
 0x513   : > { %v4384_v2 = vmax.f32 %v4383_v12, %v12175_v55  ;;  %v4301_v51 = vmax.f32 %v4300_v42, %v12179_v32  ;;  %v4322_v4 = vmax.f32 %v4321_v31, %v12180_v18  ;;  %v4364_v20 = vmax.f32 %v4363_v28, %v12182_v50  ;;  %v12183_v7 = vld [vmem:[#allocation195_spill] sm:$0xff]  ;;  %v12184_v27 = vld [vmem:[#allocation196_spill] sm:$0xff]  ;;  %v12187_v43 = vld [vmem:[#allocation137_spill] sm:$0xff] }
 0x514   : > { %v4343_v29 = vmax.f32 %v4342_v34, %v12181_v47  ;;  %v4406_v25 = vmax.f32 %v4405_v44, %v12184_v27  ;;  %v12185_v17 = vld [vmem:[#allocation227_spill] sm:$0xff]  ;;  %v12186_v55 = vld [vmem:[#allocation228_spill] sm:$0xff]  ;;  %v12188_v14 = vld [vmem:[#allocation9_spill] sm:$0xff] }
 0x515   : > { %v4385_v13 = vmax.f32 %v4384_v2, %v12183_v7  ;;  %v4427_v12 = vmax.f32 %v4426_v46, %v12185_v17  ;;  %v4448_v9 = vmax.f32 %v4447_v30, %v12186_v55  ;;  %v4302_v15 = vmax.f32 %v4301_v51, %v12187_v43  ;;  %v12189_v57 = vld [vmem:[#allocation165_spill] sm:$0xff]  ;;  %v12190_v32 = vld [vmem:[#allocation166_spill] sm:$0xff]  ;;  %v12195_v27 = vld [vmem:[#allocation8_spill] sm:$0xff] }
 0x516   : > { %v4323_v38 = vmax.f32 %v4322_v4, %v12188_v14  ;;  %v4344_v42 = vmax.f32 %v4343_v29, %v12189_v57  ;;  %v4365_v18 = vmax.f32 %v4364_v20, %v12190_v32  ;;  %v12191_v31 = vld [vmem:[#allocation197_spill] sm:$0xff]  ;;  %v12192_v47 = vld [vmem:[#allocation198_spill] sm:$0xff]  ;;  %v12197_v55 = vld [vmem:[#allocation167_spill] sm:$0xff] }
 0x517   : > { %v4386_v34 = vmax.f32 %v4385_v13, %v12191_v31  ;;  %v4407_v28 = vmax.f32 %v4406_v25, %v12192_v47  ;;  %v12193_v50 = vld [vmem:[#allocation229_spill] sm:$0xff]  ;;  %v12194_v7 = vld [vmem:[#allocation230_spill] sm:$0xff]  ;;  %v4303_v46 = vmax.f32 %v4302_v15, %v12195_v27  ;;  %v12198_v43 = vld [vmem:[#allocation168_spill] sm:$0xff] }
 0x518   : > { %v4428_v2 = vmax.f32 %v4427_v12, %v12193_v50  ;;  %v4449_v44 = vmax.f32 %v4448_v9, %v12194_v7  ;;  %v12196_v17 = vld [vmem:[#allocation138_spill] sm:$0xff]  ;;  %v4345_v51 = vmax.f32 %v4344_v42, %v12197_v55  ;;  %v4366_v4 = vmax.f32 %v4365_v18, %v12198_v43  ;;  %v12199_v14 = vld [vmem:[#allocation199_spill] sm:$0xff]  ;;  %v12200_v57 = vld [vmem:[#allocation200_spill] sm:$0xff] }
 0x519   : > { %v4324_v30 = vmax.f32 %v4323_v38, %v12196_v17  ;;  %v4387_v29 = vmax.f32 %v4386_v34, %v12199_v14  ;;  %v4408_v20 = vmax.f32 %v4407_v28, %v12200_v57  ;;  %v12201_v32 = vld [vmem:[#allocation231_spill] sm:$0xff]  ;;  %v12202_v31 = vld [vmem:[#allocation232_spill] sm:$0xff]  ;;  %v12205_v7 = vld [vmem:[#allocation169_spill] sm:$0xff] }
 0x51a   : > { %v4429_v13 = vmax.f32 %v4428_v2, %v12201_v32  ;;  %v4450_v25 = vmax.f32 %v4449_v44, %v12202_v31  ;;  %v12203_v47 = vld [vmem:[#allocation139_spill] sm:$0xff]  ;;  %v12204_v50 = vld [vmem:[#allocation140_spill] sm:$0xff]  ;;  %v4346_v15 = vmax.f32 %v4345_v51, %v12205_v7  ;;  %v12206_v27 = vld [vmem:[#allocation170_spill] sm:$0xff] }
 0x51b   : > { %v4304_v12 = vmax.f32 %v4303_v46, %v12203_v47  ;;  %v4325_v9 = vmax.f32 %v4324_v30, %v12204_v50  ;;  %v4367_v38 = vmax.f32 %v4366_v4, %v12206_v27  ;;  %v12207_v17 = vld [vmem:[#allocation201_spill] sm:$0xff]  ;;  %v12208_v55 = vld [vmem:[#allocation202_spill] sm:$0xff]  ;;  %v12213_v31 = vld [vmem:[#allocation171_spill] sm:$0xff] }
 0x51c   : > { %v4388_v42 = vmax.f32 %v4387_v29, %v12207_v17  ;;  %v4409_v18 = vmax.f32 %v4408_v20, %v12208_v55  ;;  %v12209_v43 = vld [vmem:[#allocation233_spill] sm:$0xff]  ;;  %v12210_v14 = vld [vmem:[#allocation234_spill] sm:$0xff]  ;;  %v4347_v46 = vmax.f32 %v4346_v15, %v12213_v31  ;;  %v12214_v47 = vld [vmem:[#allocation172_spill] sm:$0xff] }
 0x51d   : > { %v4430_v34 = vmax.f32 %v4429_v13, %v12209_v43  ;;  %v4451_v28 = vmax.f32 %v4450_v25, %v12210_v14  ;;  %v12211_v57 = vld [vmem:[#allocation141_spill] sm:$0xff]  ;;  %v12212_v32 = vld [vmem:[#allocation142_spill] sm:$0xff]  ;;  %v4368_v30 = vmax.f32 %v4367_v38, %v12214_v47  ;;  %v12215_v50 = vld [vmem:[#allocation203_spill] sm:$0xff] }
 0x51e   : > { %v4305_v2 = vmax.f32 %v4304_v12, %v12211_v57  ;;  %v4326_v44 = vmax.f32 %v4325_v9, %v12212_v32  ;;  %v4389_v51 = vmax.f32 %v4388_v42, %v12215_v50  ;;  %v12216_v7 = vld [vmem:[#allocation204_spill] sm:$0xff]  ;;  %v12217_v27 = vld [vmem:[#allocation235_spill] sm:$0xff]  ;;  %v12221_v14 = vld [vmem:[#allocation173_spill] sm:$0xff] }
 0x51f   : > { %v4410_v4 = vmax.f32 %v4409_v18, %v12216_v7  ;;  %v4431_v29 = vmax.f32 %v4430_v34, %v12217_v27  ;;  %v12218_v17 = vld [vmem:[#allocation236_spill] sm:$0xff]  ;;  %v12219_v55 = vld [vmem:[#allocation143_spill] sm:$0xff]  ;;  %v4348_v12 = vmax.f32 %v4347_v46, %v12221_v14  ;;  %v12222_v57 = vld [vmem:[#allocation174_spill] sm:$0xff] }
 0x520   : > { %v4452_v20 = vmax.f32 %v4451_v28, %v12218_v17  ;;  %v4306_v13 = vmax.f32 %v4305_v2, %v12219_v55  ;;  %v12220_v43 = vld [vmem:[#allocation11_spill] sm:$0xff]  ;;  %v4369_v9 = vmax.f32 %v4368_v30, %v12222_v57  ;;  %v12223_v32 = vld [vmem:[#allocation205_spill] sm:$0xff]  ;;  %v12224_v31 = vld [vmem:[#allocation206_spill] sm:$0xff] }
 0x521   : > { %v4327_v25 = vmax.f32 %v4326_v44, %v12220_v43  ;;  %v4390_v15 = vmax.f32 %v4389_v51, %v12223_v32  ;;  %v4411_v38 = vmax.f32 %v4410_v4, %v12224_v31  ;;  %v12225_v47 = vld [vmem:[#allocation237_spill] sm:$0xff]  ;;  %v12226_v50 = vld [vmem:[#allocation238_spill] sm:$0xff]  ;;  %v12228_v27 = vld [vmem:[#allocation144_spill] sm:$0xff] }
 0x522   : > { %v4432_v42 = vmax.f32 %v4431_v29, %v12225_v47  ;;  %v4453_v18 = vmax.f32 %v4452_v20, %v12226_v50  ;;  %v12227_v7 = vld [vmem:[#allocation10_spill] sm:$0xff]  ;;  %v12229_v17 = vld [vmem:[#allocation175_spill] sm:$0xff]  ;;  %v12230_v55 = vld [vmem:[#allocation176_spill] sm:$0xff] }
 0x523   : > { %v4307_v34 = vmax.f32 %v4306_v13, %v12227_v7  ;;  %v4328_v28 = vmax.f32 %v4327_v25, %v12228_v27  ;;  %v4349_v2 = vmax.f32 %v4348_v12, %v12229_v17  ;;  %v4370_v44 = vmax.f32 %v4369_v9, %v12230_v55  ;;  %v12231_v43 = vld [vmem:[#allocation207_spill] sm:$0xff]  ;;  %v12232_v14 = vld [vmem:[#allocation208_spill] sm:$0xff]  ;;  %v12235_v31 = vld [vmem:[#allocation145_spill] sm:$0xff] }
 0x524   : > { %v4391_v46 = vmax.f32 %v4390_v15, %v12231_v43  ;;  %v4412_v30 = vmax.f32 %v4411_v38, %v12232_v14  ;;  %v12233_v57 = vld [vmem:[#allocation239_spill] sm:$0xff]  ;;  %v12234_v32 = vld [vmem:[#allocation240_spill] sm:$0xff]  ;;  %v12236_v47 = vld [vmem:[#allocation146_spill] sm:$0xff] }
 0x525   : > { %v4433_v51 = vmax.f32 %v4432_v42, %v12233_v57  ;;  %v4454_v4 = vmax.f32 %v4453_v18, %v12234_v32  ;;  %v4308_v29 = vmax.f32 %v4307_v34, %v12235_v31  ;;  %v4329_v20 = vmax.f32 %v4328_v28, %v12236_v47  ;;  %v12237_v50 = vld [vmem:[#allocation177_spill] sm:$0xff]  ;;  %v12238_v7 = vld [vmem:[#allocation178_spill] sm:$0xff]  ;;  %v12243_v14 = vld [vmem:[#allocation147_spill] sm:$0xff] }
 0x526   : > { %v4350_v13 = vmax.f32 %v4349_v2, %v12237_v50  ;;  %v4371_v25 = vmax.f32 %v4370_v44, %v12238_v7  ;;  %v12239_v27 = vld [vmem:[#allocation209_spill] sm:$0xff]  ;;  %v12240_v17 = vld [vmem:[#allocation210_spill] sm:$0xff]  ;;  %v12244_v57 = vld [vmem:[#allocation148_spill] sm:$0xff] }
 0x527   : > { %v4392_v12 = vmax.f32 %v4391_v46, %v12239_v27  ;;  %v4413_v9 = vmax.f32 %v4412_v30, %v12240_v17  ;;  %v12241_v55 = vld [vmem:[#allocation241_spill] sm:$0xff]  ;;  %v12242_v43 = vld [vmem:[#allocation242_spill] sm:$0xff]  ;;  %v4309_v42 = vmax.f32 %v4308_v29, %v12243_v14  ;;  %v4330_v18 = vmax.f32 %v4329_v20, %v12244_v57  ;;  %v12245_v32 = vld [vmem:[#allocation179_spill] sm:$0xff] }
 0x528   : > { %v4434_v15 = vmax.f32 %v4433_v51, %v12241_v55  ;;  %v4455_v38 = vmax.f32 %v4454_v4, %v12242_v43  ;;  %v4351_v34 = vmax.f32 %v4350_v13, %v12245_v32  ;;  %v12246_v31 = vld [vmem:[#allocation180_spill] sm:$0xff]  ;;  %v12247_v47 = vld [vmem:[#allocation211_spill] sm:$0xff]  ;;  %v12251_v17 = vld [vmem:[#allocation149_spill] sm:$0xff] }
 0x529   : > { %v4372_v28 = vmax.f32 %v4371_v25, %v12246_v31  ;;  %v4393_v2 = vmax.f32 %v4392_v12, %v12247_v47  ;;  %v12248_v50 = vld [vmem:[#allocation212_spill] sm:$0xff]  ;;  %v12249_v7 = vld [vmem:[#allocation243_spill] sm:$0xff]  ;;  %v4310_v51 = vmax.f32 %v4309_v42, %v12251_v17  ;;  %v12252_v55 = vld [vmem:[#allocation150_spill] sm:$0xff] }
 0x52a   : > { %v4414_v44 = vmax.f32 %v4413_v9, %v12248_v50  ;;  %v4435_v46 = vmax.f32 %v4434_v15, %v12249_v7  ;;  %v12250_v27 = vld [vmem:[#allocation244_spill] sm:$0xff]  ;;  %v4331_v4 = vmax.f32 %v4330_v18, %v12252_v55  ;;  %v12253_v43 = vld [vmem:[#allocation181_spill] sm:$0xff]  ;;  %v12254_v14 = vld [vmem:[#allocation182_spill] sm:$0xff] }
 0x52b   : > { %v4456_v30 = vmax.f32 %v4455_v38, %v12250_v27  ;;  %v4352_v29 = vmax.f32 %v4351_v34, %v12253_v43  ;;  %v4373_v20 = vmax.f32 %v4372_v28, %v12254_v14  ;;  %v12255_v57 = vld [vmem:[#allocation213_spill] sm:$0xff]  ;;  %v12256_v32 = vld [vmem:[#allocation214_spill] sm:$0xff]  ;;  %v12257_v31 = vld [vmem:[#allocation151_spill] sm:$0xff] }
 0x52c   : > { %v4394_v13 = vmax.f32 %v4393_v2, %v12255_v57  ;;  %v4415_v25 = vmax.f32 %v4414_v44, %v12256_v32  ;;  %v4436_v12 = vmax.f32 %v4435_v46, %v9061_v60  ;;  %v4311_v15 = vmax.f32 %v4310_v51, %v12257_v31  ;;  %v12258_v47 = vld [vmem:[#allocation152_spill] sm:$0xff]  ;;  %v12259_v50 = vld [vmem:[#allocation183_spill] sm:$0xff]  ;;  %v12263_v55 = vld [vmem:[#allocation153_spill] sm:$0xff] }
 0x52d   : > { %v4457_v9 = vmax.f32 %v4456_v30, %v9063_v41  ;;  %v4332_v38 = vmax.f32 %v4331_v4, %v12258_v47  ;;  %v4353_v42 = vmax.f32 %v4352_v29, %v12259_v50  ;;  %v12260_v7 = vld [vmem:[#allocation184_spill] sm:$0xff]  ;;  %v12261_v27 = vld [vmem:[#allocation215_spill] sm:$0xff]  ;;  %v12264_v43 = vld [vmem:[#allocation154_spill] sm:$0xff] }
 0x52e   : > { %v4374_v18 = vmax.f32 %v4373_v20, %v12260_v7  ;;  %v4395_v34 = vmax.f32 %v4394_v13, %v12261_v27  ;;  %v12262_v17 = vld [vmem:[#allocation216_spill] sm:$0xff]  ;;  %v4437_v2 = vmax.f32 %v4436_v12, %v9065_v19  ;;  %v4312_v46 = vmax.f32 %v4311_v15, %v12263_v55  ;;  %v12265_v14 = vld [vmem:[#allocation185_spill] sm:$0xff]  ;;  %v12266_v57 = vld [vmem:[#allocation186_spill] sm:$0xff] }
 0x52f   : > { %v4416_v28 = vmax.f32 %v4415_v25, %v12262_v17  ;;  %v4458_v44 = vmax.f32 %v4457_v9, %v9067_v56  ;;  %v4333_v30 = vmax.f32 %v4332_v38, %v12264_v43  ;;  %v4354_v51 = vmax.f32 %v4353_v42, %v12265_v14  ;;  %v12267_v32 = vld [vmem:[#allocation217_spill] sm:$0xff]  ;;  %v12268_v31 = vld [vmem:[#allocation218_spill] sm:$0xff]  ;;  %v12269_v47 = vld [vmem:[#allocation155_spill] sm:$0xff] }
 0x530   : > { %v4375_v4 = vmax.f32 %v4374_v18, %v12266_v57  ;;  %v4396_v29 = vmax.f32 %v4395_v34, %v12267_v32  ;;  %v4438_v13 = vmax.f32 %v4437_v2, %v9073_v59  ;;  %v4313_v12 = vmax.f32 %v4312_v46, %v12269_v47  ;;  %v12270_v50 = vld [vmem:[#allocation156_spill] sm:$0xff]  ;;  %v12271_v7 = vld [vmem:[#allocation187_spill] sm:$0xff] }
 0x531   : > { %v4417_v20 = vmax.f32 %v4416_v28, %v12268_v31  ;;  %v4459_v25 = vmax.f32 %v4458_v44, %v9075_v26  ;;  %v4334_v9 = vmax.f32 %v4333_v30, %v12270_v50  ;;  %v4355_v15 = vmax.f32 %v4354_v51, %v12271_v7  ;;  %v12272_v27 = vld [vmem:[#allocation188_spill] sm:$0xff]  ;;  %v12273_v17 = vld [vmem:[#allocation219_spill] sm:$0xff] }
 0x532   : > { %v4376_v38 = vmax.f32 %v4375_v4, %v12272_v27  ;;  %v4397_v42 = vmax.f32 %v4396_v29, %v12273_v17  ;;  %v12274_v55 = vld [vmem:[#allocation220_spill] sm:$0xff]  ;;  %v4439_v34 = vmax.f32 %v4438_v13, %v9077_v58  ;;  %v4314_v43 = vrot.slane %v4313_v12, 4 }
 0x533   : > { %v4418_v18 = vmax.f32 %v4417_v20, %v12274_v55  ;;  %v4460_v28 = vmax.f32 %v4459_v25, %v9079_v39  ;;  %v4335_v2 = vrot.slane %v4334_v9, 4  ;;  %v4356_v14 = vrot.slane %v4355_v15, 4 }
 0x534   : > { %v4377_v44 = vrot.slane %v4376_v38, 4  ;;  %v4398_v57 = vrot.slane %v4397_v42, 4  ;;  %v4440_v32 = vrot.slane %v4439_v34, 4  ;;  %v4315_v31 = vmax.f32 %v4313_v12, %v4314_v43 }
 0x535   : > { %v4419_v46 = vrot.slane %v4418_v18, 4  ;;  %v4461_v30 = vrot.slane %v4460_v28, 4  ;;  %v4336_v51 = vmax.f32 %v4334_v9, %v4335_v2  ;;  %v4357_v47 = vmax.f32 %v4355_v15, %v4356_v14 }
 0x536   : > { %v4378_v4 = vmax.f32 %v4376_v38, %v4377_v44  ;;  %v4399_v50 = vmax.f32 %v4397_v42, %v4398_v57  ;;  %v4441_v7 = vmax.f32 %v4439_v34, %v4440_v32  ;;  %v4316_v27 = vrot.slane %v4315_v31, 2 }
 0x537   : > { %v4420_v29 = vmax.f32 %v4418_v18, %v4419_v46  ;;  %v4462_v20 = vmax.f32 %v4460_v28, %v4461_v30  ;;  %v4337_v13 = vrot.slane %v4336_v51, 2  ;;  %v4358_v17 = vrot.slane %v4357_v47, 2 }
 0x538   : > { %v4379_v25 = vrot.slane %v4378_v4, 2  ;;  %v4400_v55 = vrot.slane %v4399_v50, 2  ;;  %v4442_v59 = vrot.slane %v4441_v7, 2  ;;  %v4317_v60 = vmax.f32 %v4315_v31, %v4316_v27 }
 0x539   : > { %v4421_v58 = vrot.slane %v4420_v29, 2  ;;  %v4463_v19 = vrot.slane %v4462_v20, 2  ;;  %v4338_v33 = vmax.f32 %v4336_v51, %v4337_v13  ;;  %v4359_v63 = vmax.f32 %v4357_v47, %v4358_v17 }
 0x53a   : > { %v4380_v39 = vmax.f32 %v4378_v4, %v4379_v25  ;;  %v4401_v12 = vmax.f32 %v4399_v50, %v4400_v55  ;;  %v4443_v15 = vmax.f32 %v4441_v7, %v4442_v59  ;;  %v12275_v42 = vrot.slane %v9210_v52, 1 }
 0x53b   : > { %v4422_v9 = vmax.f32 %v4420_v29, %v4421_v58  ;;  %v4464_v38 = vmax.f32 %v4462_v20, %v4463_v19  ;;  %v4318_v34 = vrot.slane %v4317_v60, 1  ;;  %v4339_v28 = vrot.slane %v4338_v33, 1 }
 0x53c   : > { %v4193_v18 = vmax.f32 %v9210_v52, %v12275_v42  ;;  %v4360_v43 = vrot.slane %v4359_v63, 1  ;;  %v12276_v2 = vrot.slane %v9212_v6, 1  ;;  %v12277_v44 = vrot.slane %v9214_v0, 1 }
 0x53d   : > { %v4381_v46 = vrot.slane %v4380_v39, 1  ;;  %v4402_v32 = vrot.slane %v4401_v12, 1  ;;  %v12278_v59 = vrot.slane %v9216_v21, 1  ;;  %v12279_v58 = vrot.slane %v9218_v1, 1 }
 0x53e   : > { %v4214_v14 = vmax.f32 %v9212_v6, %v12276_v2  ;;  %v4235_v57 = vmax.f32 %v9214_v0, %v12277_v44  ;;  %v12280_v30 = vrot.slane %v9220_v62, 1  ;;  %v4423_v51 = vrot.slane %v4422_v9, 1 }
 0x53f   : > { %v4256_v19 = vmax.f32 %v9216_v21, %v12278_v59  ;;  %v4277_v52 = vmax.f32 %v9218_v1, %v12279_v58  ;;  %v4319_v6 = vmax.f32 %v4317_v60, %v4318_v34  ;;  %v4340_v47 = vmax.f32 %v4338_v33, %v4339_v28 }
 0x540   : > { %v4298_v31 = vmax.f32 %v9220_v62, %v12280_v30  ;;  %v4444_v4 = vrot.slane %v4443_v15, 1  ;;  %v4465_v50 = vrot.slane %v4464_v38, 1  ;;  %v4361_v0 = vmax.f32 %v4359_v63, %v4360_v43 }
 0x541   : > { %v4382_v29 = vmax.f32 %v4380_v39, %v4381_v46  ;;  %v4403_v7 = vmax.f32 %v4401_v12, %v4402_v32  ;;  %v4484_v21 = vsel %vm4483_vm3, %v4193_v18, %v9226_v24  ;;  %v4424_v20 = vmax.f32 %v4422_v9, %v4423_v51  ;;  %v4129_v39 = vld [vmem:[#allocation2] sm:$0xff]  ;;  %v4130_v24 = vld [vmem:[#allocation2 + $0x8] sm:$0xff] }
 0x542   : > { %v4486_v1 = vsel %vm4485_vm4, %v4235_v57, %v4484_v21  ;;  %v4497_v27 = vsel %vm4483_vm3, %v4214_v14, %v9228_v49  ;;  %v4445_v62 = vmax.f32 %v4443_v15, %v4444_v4  ;;  %v4466_v13 = vmax.f32 %v4464_v38, %v4465_v50 }
 0x543   : > { %v4488_v60 = vsel %vm4487_vm5, %v4277_v52, %v4486_v1  ;;  %v4498_v33 = vsel %vm4485_vm4, %v4256_v19, %v4497_v27 }
 0x544   : > { %v4490_v63 = vsel %vm4489_vm6, %v4319_v6, %v4488_v60  ;;  %v4499_v17 = vsel %vm4487_vm5, %v4298_v31, %v4498_v33 }
 0x545   : > { %v4492_v25 = vsel %vm4491_vm7, %v4361_v0, %v4490_v63  ;;  %v4500_v55 = vsel %vm4489_vm6, %v4340_v47, %v4499_v17 }
 0x546   : > { %v4494_v12 = vsel %vm4493_vm8, %v4403_v7, %v4492_v25  ;;  %v4501_v9 = vsel %vm4491_vm7, %v4382_v29, %v4500_v55 }
 0x547   : > { %v4496_v42 = vsel %vm4495_vm9, %v4445_v62, %v4494_v12  ;;  %v4502_v18 = vsel %vm4493_vm8, %v4424_v20, %v4501_v9 }
 0x548   : > { %v4503_v34 = vsel %vm4495_vm9, %v4466_v13, %v4502_v18  ;;  %v4506_v49 = vmax.f32 %v4129_v39, %v4496_v42 }
 0x549   : > { %v4507_v15 = vmax.f32 %v4130_v24, %v4503_v34 }
 0x54a   : > { %4508 = vst [vmem:[#allocation2] sm:$0xff] %v4506_v49 }
 0x54b   : > { %4509 = vst [vmem:[#allocation2 + $0x8] sm:$0xff] %v4507_v15 }
 0x54c PF: > { %p6162_p13 = scmp.ne.s32.totalorder %s6815_s27, 1 }
 0x54e   : > { %4512 = sbr.rel (%p6162_p13) target bundleno = 2297 (0x8f9), region = 125 }
 0x555   : > { %v5236_v38 = vld [vmem:[%s11675_s7 + $0x8] sm:$0xff]  ;;  %v5235_v43 = vld [vmem:[%s11675_s7] sm:$0xff]  ;;  %v12281_v46 = vld [vmem:[#allocation5_spill] sm:$0xff]  ;;  %s6163_s15 = sshll.u32 %s6815_s27, 7  ;;  %s12667_s18 = sld [smem:[#allocation286_spill]] }
 0x556   : > { %v5240_v28 = vld [vmem:[%s11675_s7 + $0x28] sm:$0xff]  ;;  %v5239_v14 = vld [vmem:[%s11675_s7 + $0x20] sm:$0xff]  ;;  %v4516_v32 = vadd.s32 8, %v12281_v46  ;;  %v4517_v59 = vadd.s32 16, %v12281_v46  ;;  %v4518_v51 = vadd.s32 24, %v12281_v46  ;;  %v4519_v6 = vadd.s32 32, %v12281_v46 }
 0x557   : > { %v6401_v2 = vpack.c.bf16 %v5240_v28, %v5236_v38  ;;  %v5244_v44 = vld [vmem:[%s11675_s7 + $0x48] sm:$0xff]  ;;  %v6403_v19 = vpack.c.bf16 %v5239_v14, %v5235_v43  ;;  %v5243_v52 = vld [vmem:[%s11675_s7 + $0x40] sm:$0xff]  ;;  %v4520_v29 = vadd.s32 40, %v12281_v46  ;;  %v4521_v7 = vadd.s32 48, %v12281_v46  ;;  %s12672_s10 = sld [smem:[#allocation288_spill]] }
 0x558   : > { %v5248_v57 = vld [vmem:[%s11675_s7 + $0x68] sm:$0xff]  ;;  %v5247_v30 = vld [vmem:[%s11675_s7 + $0x60] sm:$0xff]  ;;  %v4522_v21 = vadd.s32 56, %v12281_v46  ;;  %v4523_v60 = vadd.s32 64, %v12281_v46  ;;  %v4524_v33 = vadd.s32 72, %v12281_v46  ;;  %v4525_v13 = vadd.s32 80, %v12281_v46 }
 0x559   : > { %v6405_v58 = vpack.c.bf16 %v5248_v57, %v5244_v44  ;;  %v5252_v31 = vld [vmem:[%s11675_s7 + $0x88] sm:$0xff]  ;;  %6402 = vmatprep.subr.bf16.mxu1 %v6401_v2  ;;  %v6407_v47 = vpack.c.bf16 %v5247_v30, %v5243_v52  ;;  %v9421_v50 = vld [vmem:[%s11675_s7 + $0x80] sm:$0xff]  ;;  %v4526_v24 = vadd.s32 88, %v12281_v46  ;;  %v4527_v12 = vadd.s32 96, %v12281_v46 }
 0x55a   : > { %v5256_v4 = vld [vmem:[%s11675_s7 + $0xa8] sm:$0xff]  ;;  %v9426_v0 = vld [vmem:[%s11675_s7 + $0xa0] sm:$0xff]  ;;  %6404 = vmatpush1.bf16.msra.mxu1 %v6403_v19  ;;  %v4528_v34 = vadd.s32 104, %v12281_v46  ;;  %v4529_v49 = vadd.s32 112, %v12281_v46  ;;  %v4530_v15 = vadd.s32 120, %v12281_v46  ;;  %v4531_v38 = vstv %s6163_s15 }
 0x55b   : > { %v6409_v20 = vpack.c.bf16 %v5256_v4, %v5252_v31  ;;  %v9434_v1 = vld [vmem:[%s11675_s7 + $0xc8] sm:$0xff]  ;;  %v9444_v62 = vld [vmem:[%s11675_s7 + $0xc0] sm:$0xff]  ;;  %6406 = vmatprep.subr.bf16.mxu1 %v6405_v58  ;;  %v6411_v63 = vpack.c.bf16 %v9426_v0, %v9421_v50  ;;  %v9512_v19 = vadd.s32 %v4531_v38, %v12281_v46  ;;  %v9533_v4 = vadd.s32 %v4531_v38, %v4516_v32 }
 0x55c   : > { %v9439_v27 = vld [vmem:[%s11675_s7 + $0xe8] sm:$0xff]  ;;  %v9456_v39 = vld [vmem:[%s11675_s7 + $0xe0] sm:$0xff]  ;;  %v9535_v50 = vadd.s32 %v4531_v38, %v4517_v59  ;;  %v9554_v59 = vadd.s32 %v4531_v38, %v4518_v51  ;;  %v9558_v0 = vadd.s32 %v4531_v38, %v4520_v29  ;;  %v9579_v29 = vadd.s32 %v4531_v38, %v4521_v7 }
 0x55d   : > { %v6413_v17 = vpack.c.bf16 %v9439_v27, %v9434_v1  ;;  %v9461_v25 = vld [vmem:[%s11675_s7 + $0x108] sm:$0xff]  ;;  %v9473_v9 = vld [vmem:[%s11675_s7 + $0x100] sm:$0xff]  ;;  %12282 = vst [vmem:[#allocation253_spill] sm:$0xff] %v9533_v4  ;;  %v9581_v52 = vadd.s32 %v4531_v38, %v4522_v21  ;;  %v9600_v21 = vadd.s32 %v4531_v38, %v4523_v60  ;;  %v9602_v46 = vadd.s32 %v4531_v38, %v4524_v33 }
 0x55e   : > { %v9466_v55 = vld [vmem:[%s11675_s7 + $0x128] sm:$0xff]  ;;  %v9478_v42 = vld [vmem:[%s11675_s7 + $0x120] sm:$0xff]  ;;  %6408 = vmatpush1.bf16.msra.mxu1 %v6407_v47  ;;  %12283 = vst [vmem:[#allocation254_spill] sm:$0xff] %v9554_v59  ;;  %v9604_v58 = vadd.s32 %v4531_v38, %v4525_v13  ;;  %v9625_v13 = vadd.s32 %v4531_v38, %v4526_v24  ;;  %v9650_v56 = vadd.s32 %v4531_v38, %v4530_v15  ;;  %vm4548_vm10 = vcmp.lt.s32.totalorder %v9512_v19, 200 }
 0x55f   : > { %v9483_v18 = vld [vmem:[%s11675_s7 + $0x148] sm:$0xff]  ;;  %v9504_v44 = vld [vmem:[%s11675_s7 + $0x140] sm:$0xff]  ;;  %6410 = vmatprep.subr.bf16.mxu1 %v6409_v20  ;;  %v9556_v20 = vadd.s32 %v4531_v38, %v4519_v6  ;;  %vm4549_vm11 = vcmp.lt.s32.totalorder %v9533_v4, 200  ;;  %vm4550_vm12 = vcmp.lt.s32.totalorder %v9535_v50, 200  ;;  %vm4551_vm13 = vcmp.lt.s32.totalorder %v9554_v59, 200 }
 0x560   : > { %v9499_v14 = vld [vmem:[%s11675_s7 + $0x168] sm:$0xff]  ;;  %v9509_v57 = vld [vmem:[%s11675_s7 + $0x160] sm:$0xff]  ;;  %12284 = vst [vmem:[#allocation255_spill] sm:$0xff] %v9625_v13  ;;  %12286 = vst [vmem:[#allocation257_spill] sm:$0xff] %v9650_v56  ;;  %v12292_v15 = vpack.c.bf16 %v9456_v39, %v9444_v62  ;;  %vm4553_vm15 = vcmp.lt.s32.totalorder %v9558_v0, 200  ;;  %vm4554_vm0 = vcmp.lt.s32.totalorder %v9579_v29, 200  ;;  %v12296_v39 = vpack.c.bf16 %v9466_v55, %v9461_v25 }
 0x561   : > { %v9521_v30 = vld [vmem:[%s11675_s7 + $0x188] sm:$0xff]  ;;  %v9531_v47 = vld [vmem:[%s11675_s7 + $0x180] sm:$0xff]  ;;  %vm4552_vm14 = vcmp.lt.s32.totalorder %v9556_v20, 200  ;;  %vm4555_vm1 = vcmp.lt.s32.totalorder %v9581_v52, 200  ;;  %vm4556_vm2 = vcmp.lt.s32.totalorder %v9600_v21, 200  ;;  %vm4557_vm3 = vcmp.lt.s32.totalorder %v9602_v46, 200 }
 0x562   : > { %v9526_v31 = vld [vmem:[%s11675_s7 + $0x1a8] sm:$0xff]  ;;  %v9542_v1 = vld [vmem:[%s11675_s7 + $0x1a0] sm:$0xff]  ;;  %6412 = vmatpush1.bf16.msra.mxu1 %v6411_v63  ;;  %v9627_v63 = vadd.s32 %v4531_v38, %v4527_v12  ;;  %v9646_v12 = vadd.s32 %v4531_v38, %v4528_v34  ;;  %vm11774_vm4 = vcmp.lt.s32.totalorder %v9604_v58, 200  ;;  %vm11773_vm5 = vcmp.lt.s32.totalorder %v9625_v13, 200 }
 0x563   : > { %v9547_v27 = vld [vmem:[%s11675_s7 + $0x1c8] sm:$0xff]  ;;  %v9567_v2 = vld [vmem:[%s11675_s7 + $0x1c0] sm:$0xff]  ;;  %6414 = vmatprep.subr.bf16.mxu1 %v6413_v17  ;;  %v9648_v17 = vadd.s32 %v4531_v38, %v4529_v49  ;;  %v12306_v55 = vpack.c.bf16 %v9478_v42, %v9473_v9  ;;  %vm11775_vm9 = vcmp.lt.s32.totalorder %v9650_v56, 200  ;;  %v12310_v9 = vld [vmem:[#allocation13_spill] sm:$0xff] }
 0x564   : > { %v9552_v32 = vld [vmem:[%s11675_s7 + $0x1e8] sm:$0xff]  ;;  %v9572_v51 = vld [vmem:[%s11675_s7 + $0x1e0] sm:$0xff]  ;;  %12285 = vst [vmem:[#allocation256_spill] sm:$0xff] %v9627_v63  ;;  %vm11772_vm6 = vcmp.lt.s32.totalorder %v9627_v63, 200  ;;  %vm11770_vm7 = vcmp.lt.s32.totalorder %v9646_v12, 200  ;;  %v9805_v42 = vsel %vm4548_vm10, %v12310_v9, -inf }
 0x565   : > { %v9577_v6 = vld [vmem:[%s11675_s7 + $0x208] sm:$0xff]  ;;  %v9593_v28 = vld [vmem:[%s11675_s7 + $0x200] sm:$0xff]  ;;  %vm11771_vm8 = vcmp.lt.s32.totalorder %v9648_v17, 200  ;;  %12311 = vst [vmem:[#allocation278_spill] sm:$0xff] %v9805_v42  ;;  %v9823_v9 = vsel %vm4549_vm11, %v8204_v11, -inf  ;;  %v12316_v42 = vld [vmem:[#allocation18_spill] sm:$0xff] }
 0x566   : > { %v9588_v43 = vld [vmem:[%s11675_s7 + $0x228] sm:$0xff]  ;;  %v9598_v7 = vld [vmem:[%s11675_s7 + $0x220] sm:$0xff]  ;;  %6416 = vmatpush1.bf16.msra.mxu1 %v12292_v15  ;;  %12315 = vst [vmem:[#allocation280_spill] sm:$0xff] %v9823_v9 }
 0x567   : > { %v9613_v41 = vld [vmem:[%s11675_s7 + $0x248] sm:$0xff]  ;;  %v9623_v33 = vld [vmem:[%s11675_s7 + $0x240] sm:$0xff]  ;;  %6418 = vmatprep.subr.bf16.mxu1 %v12296_v39 }
 0x568   : > { %v9618_v60 = vld [vmem:[%s11675_s7 + $0x268] sm:$0xff]  ;;  %v9634_v26 = vld [vmem:[%s11675_s7 + $0x260] sm:$0xff] }
 0x569   : > { %v9639_v53 = vld [vmem:[%s11675_s7 + $0x288] sm:$0xff]  ;;  %v9659_v10 = vld [vmem:[%s11675_s7 + $0x280] sm:$0xff] }
 0x56a   : > { %v9644_v24 = vld [vmem:[%s11675_s7 + $0x2a8] sm:$0xff]  ;;  %12287 = vst [vmem:[#allocation258_spill] sm:$0xff] %v9659_v10  ;;  %v9664_v34 = vld [vmem:[%s11675_s7 + $0x2a0] sm:$0xff]  ;;  %6420 = vmatpush1.bf16.msra.mxu1 %v12306_v55 }
 0x56b   : > { %12288 = vst [vmem:[#allocation259_spill] sm:$0xff] %v9664_v34  ;;  %v9669_v49 = vld [vmem:[%s11675_s7 + $0x2c8] sm:$0xff]  ;;  %v9683_v54 = vld [vmem:[%s11675_s7 + $0x2c0] sm:$0xff] }
 0x56c   : > { %12289 = vst [vmem:[#allocation260_spill] sm:$0xff] %v9669_v49  ;;  %v9678_v38 = vld [vmem:[%s11675_s7 + $0x2e8] sm:$0xff]  ;;  %12290 = vst [vmem:[#allocation261_spill] sm:$0xff] %v9683_v54  ;;  %v9688_v40 = vld [vmem:[%s11675_s7 + $0x2e0] sm:$0xff] }
 0x56d   : > { %12291 = vst [vmem:[#allocation262_spill] sm:$0xff] %v9688_v40  ;;  %v9703_v36 = vld [vmem:[%s11675_s7 + $0x308] sm:$0xff]  ;;  %v9713_v62 = vld [vmem:[%s11675_s7 + $0x300] sm:$0xff] }
 0x56e   : > { %12293 = vst [vmem:[#allocation263_spill] sm:$0xff] %v9703_v36  ;;  %v9708_v8 = vld [vmem:[%s11675_s7 + $0x328] sm:$0xff]  ;;  %12295 = vst [vmem:[#allocation265_spill] sm:$0xff] %v9713_v62  ;;  %v9725_v34 = vld [vmem:[%s11675_s7 + $0x320] sm:$0xff] }
 0x56f   : > { %12294 = vst [vmem:[#allocation264_spill] sm:$0xff] %v9708_v8  ;;  %12297 = vst [vmem:[#allocation266_spill] sm:$0xff] %v9725_v34  ;;  %v9730_v10 = vld [vmem:[%s11675_s7 + $0x348] sm:$0xff]  ;;  %v9747_v39 = vld [vmem:[%s11675_s7 + $0x340] sm:$0xff] }
 0x570   : > { %12298 = vst [vmem:[#allocation267_spill] sm:$0xff] %v9730_v10  ;;  %v9735_v54 = vld [vmem:[%s11675_s7 + $0x368] sm:$0xff]  ;;  %12300 = vst [vmem:[#allocation269_spill] sm:$0xff] %v9747_v39  ;;  %v9752_v15 = vld [vmem:[%s11675_s7 + $0x360] sm:$0xff] }
 0x571   : > { %12299 = vst [vmem:[#allocation268_spill] sm:$0xff] %v9735_v54  ;;  %12301 = vst [vmem:[#allocation270_spill] sm:$0xff] %v9752_v15  ;;  %v9757_v36 = vld [vmem:[%s11675_s7 + $0x388] sm:$0xff]  ;;  %v9771_v10 = vld [vmem:[%s11675_s7 + $0x380] sm:$0xff] }
 0x572   : > { %12302 = vst [vmem:[#allocation271_spill] sm:$0xff] %v9757_v36  ;;  %v9766_v25 = vld [vmem:[%s11675_s7 + $0x3a8] sm:$0xff]  ;;  %12304 = vst [vmem:[#allocation273_spill] sm:$0xff] %v9771_v10  ;;  %v9776_v54 = vld [vmem:[%s11675_s7 + $0x3a0] sm:$0xff]  ;;  %v12313_v36 = vpack.c.bf16 %v9499_v14, %v9483_v18 }
 0x573   : > { %12303 = vst [vmem:[#allocation272_spill] sm:$0xff] %v9766_v25  ;;  %12305 = vst [vmem:[#allocation274_spill] sm:$0xff] %v9776_v54  ;;  %v9789_v15 = vld [vmem:[%s11675_s7 + $0x3c8] sm:$0xff]  ;;  %v9799_v34 = vld [vmem:[%s11675_s7 + $0x3c0] sm:$0xff] }
 0x574   : > { %12307 = vst [vmem:[#allocation275_spill] sm:$0xff] %v9789_v15  ;;  %v9794_v62 = vld [vmem:[%s11675_s7 + $0x3e8] sm:$0xff]  ;;  %12309 = vst [vmem:[#allocation277_spill] sm:$0xff] %v9799_v34  ;;  %6422 = vmatprep.subr.bf16.mxu1 %v12313_v36  ;;  %v9818_v8 = vld [vmem:[%s11675_s7 + $0x3e0] sm:$0xff] }
 0x575   : > { %12308 = vst [vmem:[#allocation276_spill] sm:$0xff] %v9794_v62  ;;  %v12312_v55 = vld [vmem:[#allocation16_spill] sm:$0xff]  ;;  %12314 = vst [vmem:[#allocation279_spill] sm:$0xff] %v9818_v8  ;;  %v12318_v10 = vld [vmem:[#allocation22_spill] sm:$0xff] }
 0x576   : > { %v4601_v39 = vsel %vm4550_vm12, %v12312_v55, -inf  ;;  %v4603_v55 = vsel %vm4551_vm13, %v12316_v42, -inf  ;;  %v12317_v40 = vld [vmem:[#allocation20_spill] sm:$0xff]  ;;  %v4607_v11 = vsel %vm4553_vm15, %v12318_v10, -inf  ;;  %v12320_v42 = vld [vmem:[#allocation26_spill] sm:$0xff]  ;;  %v12325_v34 = vld [vmem:[#allocation41_spill] sm:$0xff] }
 0x577   : > { %v4605_v36 = vsel %vm4552_vm14, %v12317_v40, -inf  ;;  %v4876_v25 = vmax.f32 %v4603_v55, %v4601_v39  ;;  %v12319_v9 = vld [vmem:[#allocation24_spill] sm:$0xff]  ;;  %v4611_v49 = vsel %vm4555_vm1, %v12320_v42, -inf  ;;  %v12321_v40 = vld [vmem:[#allocation31_spill] sm:$0xff]  ;;  %v12322_v15 = vld [vmem:[#allocation34_spill] sm:$0xff]  ;;  %v12323_v55 = vpack.c.bf16 %v9509_v57, %v9504_v44 }
 0x578   : > { %v4609_v54 = vsel %vm4554_vm0, %v12319_v9, -inf  ;;  %v4613_v18 = vsel %vm4556_vm2, %v12321_v40, -inf  ;;  %v4615_v39 = vsel %vm4557_vm3, %v12322_v15, -inf  ;;  %v12324_v14 = vld [vmem:[#allocation38_spill] sm:$0xff]  ;;  %v9859_v42 = vsel %vm11773_vm5, %v12325_v34, -inf  ;;  %v12328_v44 = vld [vmem:[#allocation49_spill] sm:$0xff] }
 0x579   : > { %6424 = vmatpush1.bf16.msra.mxu1 %v12323_v55  ;;  %v4877_v10 = vmax.f32 %v4876_v25, %v4605_v36  ;;  %v4617_v9 = vsel %vm11774_vm4, %v12324_v14, -inf  ;;  %v12326_v8 = vld [vmem:[#allocation46_spill] sm:$0xff]  ;;  %v12327_v15 = vpack.c.bf16 %v9526_v31, %v9521_v30  ;;  %v9872_v57 = vsel %vm11770_vm7, %v12328_v44, -inf  ;;  %v12330_v34 = vld [vmem:[#allocation57_spill] sm:$0xff]  ;;  %v12475_v4 = vld [vmem:[#allocation240_spill] sm:$0xff] }
 0x57a   : > { %v9864_v40 = vsel %vm11772_vm6, %v12326_v8, -inf  ;;  %v12329_v25 = vld [vmem:[#allocation54_spill] sm:$0xff]  ;;  %v9882_v14 = vsel %vm11775_vm9, %v12330_v34, -inf  ;;  %v4633_v8 = vsel %vm4550_vm12, %v8423_v16, -inf  ;;  %v9890_v31 = vsel %vm4548_vm10, %v8394_v3, -inf  ;;  %v12634_v20 = vld [vmem:[#allocation231_spill] sm:$0xff] }
 0x57b   : > { %6426 = vmatprep.subr.bf16.mxu1 %v12327_v15  ;;  %v9877_v36 = vsel %vm11771_vm8, %v12329_v25, -inf  ;;  %12331 = vst [vmem:[#allocation281_spill] sm:$0xff] %v9882_v14  ;;  %v4878_v30 = vmax.f32 %v4877_v10, %v4607_v11  ;;  %12332 = vst [vmem:[#allocation282_spill] sm:$0xff] %v9890_v31  ;;  %v4635_v55 = vsel %vm4551_vm13, %v8432_v48, -inf  ;;  %v12333_v15 = vld [vmem:[#allocation74_spill] sm:$0xff]  ;;  %v9901_v25 = vsel %vm4549_vm11, %v8403_v23, -inf }
 0x57c   : > { %v4637_v44 = vsel %vm4552_vm14, %v12333_v15, -inf  ;;  %12334 = vst [vmem:[#allocation283_spill] sm:$0xff] %v9901_v25  ;;  %v4918_v16 = vmax.f32 %v4635_v55, %v4633_v8  ;;  %v12335_v11 = vld [vmem:[#allocation77_spill] sm:$0xff]  ;;  %v12336_v3 = vld [vmem:[#allocation82_spill] sm:$0xff]  ;;  %v12337_v48 = vpack.c.bf16 %v9542_v1, %v9531_v47  ;;  %v12343_v1 = vld [vmem:[#allocation99_spill] sm:$0xff] }
 0x57d   : > { %v4639_v10 = vsel %vm4553_vm15, %v12335_v11, -inf  ;;  %v4641_v34 = vsel %vm4554_vm0, %v12336_v3, -inf  ;;  %v4879_v31 = vmax.f32 %v4878_v30, %v4609_v54  ;;  %v12338_v15 = vld [vmem:[#allocation85_spill] sm:$0xff]  ;;  %v12339_v23 = vld [vmem:[#allocation90_spill] sm:$0xff]  ;;  %v12341_v3 = vpack.c.bf16 %v9552_v32, %v9547_v27  ;;  %v12356_v14 = vld [vmem:[#allocation47_spill] sm:$0xff] }
 0x57e   : > { %6428 = vmatpush1.bf16.msra.mxu1 %v12337_v48  ;;  %v4643_v62 = vsel %vm4555_vm1, %v12338_v15, -inf  ;;  %v4645_v8 = vsel %vm4556_vm2, %v12339_v23, -inf  ;;  %v12340_v55 = vld [vmem:[#allocation93_spill] sm:$0xff]  ;;  %v4919_v25 = vmax.f32 %v4918_v16, %v4637_v44  ;;  %v9930_v30 = vsel %vm11773_vm5, %v12343_v1, -inf  ;;  %v12344_v48 = vld [vmem:[#allocation103_spill] sm:$0xff]  ;;  %v12346_v32 = vld [vmem:[#allocation110_spill] sm:$0xff] }
 0x57f   : > { %v4647_v11 = vsel %vm4557_vm3, %v12340_v55, -inf  ;;  %6430 = vmatprep.subr.bf16.mxu1 %v12341_v3  ;;  %v12342_v47 = vld [vmem:[#allocation97_spill] sm:$0xff]  ;;  %v9935_v15 = vsel %vm11772_vm6, %v12344_v48, -inf  ;;  %v4880_v23 = vmax.f32 %v4879_v31, %v4611_v49  ;;  %v12345_v55 = vld [vmem:[#allocation106_spill] sm:$0xff]  ;;  %v9945_v44 = vsel %vm11771_vm8, %v12346_v32, -inf  ;;  %v12348_v16 = vld [vmem:[#allocation112_spill] sm:$0xff] }
 0x580   : > { %v4649_v54 = vsel %vm11774_vm4, %v12342_v47, -inf  ;;  %v9940_v27 = vsel %vm11770_vm7, %v12345_v55, -inf  ;;  %12347 = vst [vmem:[#allocation284_spill] sm:$0xff] %v9945_v44  ;;  %v9950_v3 = vsel %vm11775_vm9, %v12348_v16, -inf  ;;  %v4920_v47 = vmax.f32 %v4919_v25, %v4639_v10  ;;  %v12350_v31 = vld [vmem:[#allocation39_spill] sm:$0xff]  ;;  %v12353_v16 = vld [vmem:[#allocation28_spill] sm:$0xff] }
 0x581   : > { %12349 = vst [vmem:[#allocation285_spill] sm:$0xff] %v9950_v3  ;;  %v4665_v49 = vsel %vm4550_vm12, %v8297_v5, -inf  ;;  %v4667_v1 = vsel %vm4551_vm13, %v12350_v31, -inf  ;;  %v12351_v48 = vld [vmem:[#allocation43_spill] sm:$0xff]  ;;  %v12352_v32 = vpack.c.bf16 %v9572_v51, %v9567_v2  ;;  %v4881_v44 = vmax.f32 %v4880_v23, %v4613_v18  ;;  %v12354_v10 = vld [vmem:[#allocation32_spill] sm:$0xff] }
 0x582   : > { %v4669_v55 = vsel %vm4552_vm14, %v12351_v48, -inf  ;;  %v9967_v25 = vsel %vm4548_vm10, %v12353_v16, -inf  ;;  %v9972_v5 = vsel %vm4549_vm11, %v12354_v10, -inf  ;;  %v4960_v31 = vmax.f32 %v4667_v1, %v4665_v49  ;;  %v12357_v51 = vld [vmem:[#allocation51_spill] sm:$0xff]  ;;  %v12362_v1 = vld [vmem:[#allocation68_spill] sm:$0xff] }
 0x583   : > { %6432 = vmatpush1.bf16.msra.mxu1 %v12352_v32  ;;  %v12355_v3 = vpack.c.bf16 %v9588_v43, %v9577_v6  ;;  %v4921_v48 = vmax.f32 %v4920_v47, %v4641_v34  ;;  %v4671_v2 = vsel %vm4553_vm15, %v12356_v14, -inf  ;;  %v4673_v18 = vsel %vm4554_vm0, %v12357_v51, -inf  ;;  %v12358_v23 = vld [vmem:[#allocation55_spill] sm:$0xff]  ;;  %v12360_v6 = vld [vmem:[#allocation62_spill] sm:$0xff]  ;;  %v12361_v14 = vld [vmem:[#allocation65_spill] sm:$0xff] }
 0x584   : > { %v4675_v32 = vsel %vm4555_vm1, %v12358_v23, -inf  ;;  %v4882_v16 = vmax.f32 %v4881_v44, %v4615_v39  ;;  %v4961_v10 = vmax.f32 %v4960_v31, %v4669_v55  ;;  %v12359_v49 = vld [vmem:[#allocation59_spill] sm:$0xff]  ;;  %v4679_v34 = vsel %vm4557_vm3, %v12360_v6, -inf }
 0x585   : > { %6434 = vmatprep.subr.bf16.mxu1 %v12355_v3  ;;  %v4677_v43 = vsel %vm4556_vm2, %v12359_v49, -inf  ;;  %v4922_v3 = vmax.f32 %v4921_v48, %v4643_v62  ;;  %v4681_v47 = vsel %vm11774_vm4, %v12361_v14, -inf  ;;  %v9998_v51 = vsel %vm11773_vm5, %v12362_v1, -inf  ;;  %v12363_v39 = vld [vmem:[#allocation71_spill] sm:$0xff] }
 0x586   : > { %v10003_v44 = vsel %vm11772_vm6, %v12363_v39, -inf  ;;  %v12364_v55 = vpack.c.bf16 %v9598_v7, %v9593_v28  ;;  %v4883_v31 = vmax.f32 %v4882_v16, %v4617_v9  ;;  %v4962_v62 = vmax.f32 %v4961_v10, %v4671_v2  ;;  %v12365_v48 = vld [vmem:[#allocation75_spill] sm:$0xff] }
 0x587   : > { %v10011_v23 = vsel %vm11770_vm7, %v12365_v48, -inf  ;;  %v12366_v49 = vld [vmem:[#allocation79_spill] sm:$0xff]  ;;  %v12367_v14 = vpack.c.bf16 %v9618_v60, %v9613_v41  ;;  %v4923_v1 = vmax.f32 %v4922_v3, %v4645_v8  ;;  %v4697_v7 = vsel %vm4550_vm12, %v8529_v22, -inf }
 0x588   : > { %6436 = vmatpush1.bf16.msra.mxu1 %v12364_v55  ;;  %v10016_v6 = vsel %vm11771_vm8, %v12366_v49, -inf  ;;  %v12368_v39 = vld [vmem:[#allocation83_spill] sm:$0xff]  ;;  %v4699_v9 = vsel %vm4551_vm13, %v8542_v37, -inf  ;;  %v4884_v2 = vmax.f32 %v4883_v31, %v9859_v42  ;;  %v4963_v16 = vmax.f32 %v4962_v62, %v4673_v18  ;;  %v12371_v37 = vld [vmem:[#allocation104_spill] sm:$0xff] }
 0x589   : > { %6438 = vmatprep.subr.bf16.mxu1 %v12367_v14  ;;  %v10024_v28 = vsel %vm11775_vm9, %v12368_v39, -inf  ;;  %v5002_v10 = vmax.f32 %v4699_v9, %v4697_v7  ;;  %v4701_v41 = vsel %vm4552_vm14, %v8558_v45, -inf  ;;  %v4924_v60 = vmax.f32 %v4923_v1, %v4647_v11  ;;  %v12369_v8 = vld [vmem:[#allocation87_spill] sm:$0xff]  ;;  %v12374_v1 = vld [vmem:[#allocation114_spill] sm:$0xff] }
 0x58a   : > { %v10039_v3 = vsel %vm4548_vm10, %v12369_v8, -inf  ;;  %v12370_v55 = vld [vmem:[#allocation91_spill] sm:$0xff]  ;;  %v4703_v42 = vsel %vm4553_vm15, %v12371_v37, -inf  ;;  %v12372_v18 = vpack.c.bf16 %v9634_v26, %v9623_v33  ;;  %v4885_v45 = vmax.f32 %v4884_v2, %v9864_v40  ;;  %v12375_v33 = vld [vmem:[#allocation116_spill] sm:$0xff]  ;;  %v12376_v7 = vld [vmem:[#allocation118_spill] sm:$0xff] }
 0x58b   : > { %v10044_v22 = vsel %vm4549_vm11, %v12370_v55, -inf  ;;  %v4964_v11 = vmax.f32 %v4963_v16, %v4675_v32  ;;  %v5003_v31 = vmax.f32 %v5002_v10, %v4701_v41  ;;  %v4705_v62 = vsel %vm4554_vm0, %v8587_v61, -inf  ;;  %v12378_v9 = vld [vmem:[#allocation122_spill] sm:$0xff]  ;;  %v12379_v16 = vld [vmem:[#allocation124_spill] sm:$0xff] }
 0x58c   : > { %6440 = vmatpush1.bf16.msra.mxu1 %v12372_v18  ;;  %v12373_v48 = vpack.c.bf16 %v9644_v24, %v9639_v53  ;;  %v4925_v49 = vmax.f32 %v4924_v60, %v4649_v54  ;;  %v4707_v14 = vsel %vm4555_vm1, %v8600_v35, -inf  ;;  %v4709_v26 = vsel %vm4556_vm2, %v12374_v1, -inf  ;;  %v12377_v54 = vld [vmem:[#allocation120_spill] sm:$0xff]  ;;  %v12381_v10 = vld [vmem:[#allocation258_spill] sm:$0xff] }
 0x58d   : > { %v4711_v40 = vsel %vm4557_vm3, %v12375_v33, -inf  ;;  %v4886_v32 = vmax.f32 %v4885_v45, %v9872_v57  ;;  %v4965_v61 = vmax.f32 %v4964_v11, %v4677_v43  ;;  %v5004_v39 = vmax.f32 %v5003_v31, %v4703_v42  ;;  %v12380_v43 = vld [vmem:[#allocation259_spill] sm:$0xff]  ;;  %v12383_v55 = vld [vmem:[#allocation126_spill] sm:$0xff]  ;;  %v12384_v42 = vld [vmem:[#allocation260_spill] sm:$0xff] }
 0x58e   : > { %6442 = vmatprep.subr.bf16.mxu1 %v12373_v48  ;;  %v4713_v53 = vsel %vm11774_vm4, %v12376_v7, -inf  ;;  %v4926_v24 = vmax.f32 %v4925_v49, %v9930_v30  ;;  %v4715_v35 = vsel %vm11773_vm5, %v12377_v54, -inf  ;;  %v4717_v2 = vsel %vm11772_vm6, %v12378_v9, -inf  ;;  %v12386_v11 = vld [vmem:[#allocation128_spill] sm:$0xff]  ;;  %v12389_v33 = vld [vmem:[#allocation130_spill] sm:$0xff]  ;;  %v12391_v7 = vld [vmem:[#allocation9_spill] sm:$0xff] }
 0x58f   : > { %v10082_v57 = vsel %vm11770_vm7, %v12379_v16, -inf  ;;  %v12382_v41 = vpack.c.bf16 %v12380_v43, %v12381_v10  ;;  %v10088_v60 = vmax.f32 %v4886_v32, %v9877_v36  ;;  %v4966_v30 = vmax.f32 %v4965_v61, %v4679_v34  ;;  %v12387_v36 = vld [vmem:[#allocation134_spill] sm:$0xff]  ;;  %v12390_v61 = vld [vmem:[#allocation132_spill] sm:$0xff]  ;;  %v12394_v9 = vld [vmem:[#allocation261_spill] sm:$0xff] }
 0x590   : > { %v5005_v8 = vmax.f32 %v5004_v39, %v4705_v62  ;;  %v10093_v37 = vsel %vm11771_vm8, %v12383_v55, -inf  ;;  %v12385_v18 = vpack.c.bf16 %v9678_v38, %v12384_v42  ;;  %v4927_v45 = vmax.f32 %v4926_v24, %v9935_v15  ;;  %v12388_v62 = vld [vmem:[#allocation136_spill] sm:$0xff]  ;;  %v12392_v54 = vld [vmem:[#allocation138_spill] sm:$0xff]  ;;  %v12396_v43 = vld [vmem:[#allocation281_spill] sm:$0xff] }
 0x591   : > { %6444 = vmatpush1.bf16.msra.mxu1 %v12382_v41  ;;  %v10102_v31 = vsel %vm11775_vm9, %v12386_v11, -inf  ;;  %v4729_v34 = vsel %vm4550_vm12, %v12387_v36, -inf  ;;  %v4731_v48 = vsel %vm4551_vm13, %v12388_v62, -inf  ;;  %v4967_v49 = vmax.f32 %v4966_v30, %v4681_v47  ;;  %v12398_v55 = vld [vmem:[#allocation263_spill] sm:$0xff]  ;;  %v12401_v11 = vld [vmem:[#allocation140_spill] sm:$0xff] }
 0x592   : > { %6446 = vmatprep.subr.bf16.mxu1 %v12385_v18  ;;  %v5006_v1 = vmax.f32 %v5005_v8, %v4707_v14  ;;  %v10113_v38 = vsel %vm4548_vm10, %v12389_v33, -inf  ;;  %v5044_v15 = vmax.f32 %v4731_v48, %v4729_v34  ;;  %v4928_v32 = vmax.f32 %v4927_v45, %v9940_v27  ;;  %v12393_v14 = vld [vmem:[#allocation262_spill] sm:$0xff]  ;;  %v12397_v8 = vld [vmem:[#allocation264_spill] sm:$0xff]  ;;  %v12403_v48 = vld [vmem:[#allocation11_spill] sm:$0xff] }
 0x593   : > { %v10119_v39 = vsel %vm4549_vm11, %v12390_v61, -inf  ;;  %v4733_v24 = vsel %vm4552_vm14, %v12391_v7, -inf  ;;  %v4735_v47 = vsel %vm4553_vm15, %v12392_v54, -inf  ;;  %v12395_v16 = vpack.c.bf16 %v12393_v14, %v12394_v9  ;;  %v12400_v18 = vld [vmem:[#allocation284_spill] sm:$0xff]  ;;  %v12402_v34 = vld [vmem:[#allocation142_spill] sm:$0xff] }
 0x594   : > { %v4968_v10 = vmax.f32 %v4967_v49, %v9998_v51  ;;  %v5007_v41 = vmax.f32 %v5006_v1, %v4709_v26  ;;  %v5045_v30 = vmax.f32 %v5044_v15, %v4733_v24  ;;  %v12399_v42 = vpack.c.bf16 %v12397_v8, %v12398_v55  ;;  %v12404_v33 = vld [vmem:[#allocation144_spill] sm:$0xff]  ;;  %v12406_v7 = vld [vmem:[#allocation146_spill] sm:$0xff] }
 0x595   : > { %6448 = vmatpush1.bf16.msra.mxu1 %v12395_v16  ;;  %v10137_v45 = vmax.f32 %v4928_v32, %v12400_v18  ;;  %v4737_v36 = vsel %vm4554_vm0, %v12401_v11, -inf  ;;  %v4739_v62 = vsel %vm4555_vm1, %v12402_v34, -inf  ;;  %v4741_v51 = vsel %vm4556_vm2, %v12403_v48, -inf  ;;  %v12405_v32 = vld [vmem:[#allocation285_spill] sm:$0xff]  ;;  %v12407_v54 = vld [vmem:[#allocation148_spill] sm:$0xff]  ;;  %v12408_v9 = vld [vmem:[#allocation150_spill] sm:$0xff] }
 0x596   : > { %6450 = vmatprep.subr.bf16.mxu1 %v12399_v42  ;;  %v4969_v26 = vmax.f32 %v4968_v10, %v10003_v44  ;;  %v5008_v49 = vmax.f32 %v5007_v41, %v4711_v40  ;;  %v5046_v1 = vmax.f32 %v5045_v30, %v4735_v47  ;;  %v4743_v15 = vsel %vm4557_vm3, %v12404_v33, -inf  ;;  %v12409_v40 = vld [vmem:[#allocation266_spill] sm:$0xff]  ;;  %v12410_v47 = vld [vmem:[#allocation265_spill] sm:$0xff]  ;;  %v12412_v8 = vld [vmem:[#allocation152_spill] sm:$0xff] }
 0x597   : > { %v4745_v24 = vsel %vm11774_vm4, %v12406_v7, -inf  ;;  %v4747_v14 = vsel %vm11773_vm5, %v12407_v54, -inf  ;;  %v4749_v44 = vsel %vm11772_vm6, %v12408_v9, -inf  ;;  %v12411_v16 = vpack.c.bf16 %v12409_v40, %v12410_v47  ;;  %v12413_v42 = vld [vmem:[#allocation268_spill] sm:$0xff]  ;;  %v12414_v18 = vld [vmem:[#allocation267_spill] sm:$0xff]  ;;  %v12416_v34 = vld [vmem:[#allocation154_spill] sm:$0xff] }
 0x598   : > { %v4970_v10 = vmax.f32 %v4969_v26, %v10011_v23  ;;  %v5009_v41 = vmax.f32 %v5008_v49, %v4713_v53  ;;  %v5047_v30 = vmax.f32 %v5046_v1, %v4737_v36  ;;  %v10170_v55 = vsel %vm11770_vm7, %v12412_v8, -inf  ;;  %v12417_v33 = vld [vmem:[#allocation156_spill] sm:$0xff]  ;;  %v12418_v53 = vld [vmem:[#allocation162_spill] sm:$0xff] }
 0x599   : > { %6452 = vmatpush1.bf16.msra.mxu1 %v12411_v16  ;;  %v12415_v11 = vpack.c.bf16 %v12413_v42, %v12414_v18  ;;  %v10178_v48 = vsel %vm11771_vm8, %v12416_v34, -inf  ;;  %v10183_v23 = vsel %vm11775_vm9, %v12417_v33, -inf  ;;  %v4761_v36 = vsel %vm4550_vm12, %v12418_v53, -inf  ;;  %v12419_v26 = vld [vmem:[#allocation164_spill] sm:$0xff]  ;;  %v12420_v40 = vld [vmem:[#allocation158_spill] sm:$0xff] }
 0x59a   : > { %v4763_v49 = vsel %vm4551_vm13, %v12419_v26, -inf  ;;  %v10192_v1 = vmax.f32 %v4970_v10, %v10016_v6  ;;  %v5010_v7 = vmax.f32 %v5009_v41, %v4715_v35  ;;  %v5048_v54 = vmax.f32 %v5047_v30, %v4739_v62  ;;  %v12421_v16 = vld [vmem:[#allocation160_spill] sm:$0xff]  ;;  %v12422_v42 = vld [vmem:[#allocation166_spill] sm:$0xff]  ;;  %v12425_v62 = vld [vmem:[#allocation269_spill] sm:$0xff] }
 0x59b   : > { %6454 = vmatprep.subr.bf16.mxu1 %v12415_v11  ;;  %v5086_v9 = vmax.f32 %v4763_v49, %v4761_v36  ;;  %v10197_v47 = vsel %vm4548_vm10, %v12420_v40, -inf  ;;  %v10202_v8 = vsel %vm4549_vm11, %v12421_v16, -inf  ;;  %v4765_v18 = vsel %vm4552_vm14, %v12422_v42, -inf  ;;  %v12423_v11 = vld [vmem:[#allocation168_spill] sm:$0xff]  ;;  %v12424_v35 = vld [vmem:[#allocation270_spill] sm:$0xff]  ;;  %v12429_v26 = vld [vmem:[#allocation271_spill] sm:$0xff] }
 0x59c   : > { %v4767_v6 = vsel %vm4553_vm15, %v12423_v11, -inf  ;;  %v12426_v10 = vpack.c.bf16 %v12424_v35, %v12425_v62  ;;  %v5011_v41 = vmax.f32 %v5010_v7, %v4717_v2  ;;  %v5049_v30 = vmax.f32 %v5048_v54, %v4741_v51  ;;  %v12427_v33 = vld [vmem:[#allocation170_spill] sm:$0xff]  ;;  %v12428_v36 = vld [vmem:[#allocation272_spill] sm:$0xff] }
 0x59d   : > { %v5087_v34 = vmax.f32 %v5086_v9, %v4765_v18  ;;  %v4769_v53 = vsel %vm4554_vm0, %v12427_v33, -inf  ;;  %v12430_v49 = vpack.c.bf16 %v12428_v36, %v12429_v26  ;;  %v12431_v16 = vld [vmem:[#allocation172_spill] sm:$0xff]  ;;  %v12432_v11 = vld [vmem:[#allocation174_spill] sm:$0xff] }
 0x59e   : > { %6456 = vmatpush1.bf16.msra.mxu1 %v12426_v10  ;;  %v4771_v42 = vsel %vm4555_vm1, %v12431_v16, -inf  ;;  %v4773_v2 = vsel %vm4556_vm2, %v12432_v11, -inf  ;;  %v12433_v51 = vld [vmem:[#allocation176_spill] sm:$0xff]  ;;  %v5012_v54 = vmax.f32 %v5011_v41, %v10082_v57  ;;  %v5050_v9 = vmax.f32 %v5049_v30, %v4743_v15  ;;  %v12434_v35 = vld [vmem:[#allocation178_spill] sm:$0xff]  ;;  %v12440_v41 = vld [vmem:[#allocation273_spill] sm:$0xff] }
 0x59f   : > { %6458 = vmatprep.subr.bf16.mxu1 %v12430_v49  ;;  %v4775_v7 = vsel %vm4557_vm3, %v12433_v51, -inf  ;;  %v5088_v18 = vmax.f32 %v5087_v34, %v4767_v6  ;;  %v4777_v62 = vsel %vm11774_vm4, %v12434_v35, -inf  ;;  %v12435_v10 = vld [vmem:[#allocation180_spill] sm:$0xff]  ;;  %v12436_v36 = vld [vmem:[#allocation182_spill] sm:$0xff] }
 0x5a0   : > { %v4779_v33 = vsel %vm11773_vm5, %v12435_v10, -inf  ;;  %v4781_v26 = vsel %vm11772_vm6, %v12436_v36, -inf  ;;  %v12437_v49 = vld [vmem:[#allocation184_spill] sm:$0xff]  ;;  %v12438_v57 = vld [vmem:[#allocation186_spill] sm:$0xff]  ;;  %v10254_v34 = vmax.f32 %v5012_v54, %v10093_v37  ;;  %v5051_v11 = vmax.f32 %v5050_v9, %v4745_v24 }
 0x5a1   : > { %v10243_v16 = vsel %vm11770_vm7, %v12437_v49, -inf  ;;  %v10248_v15 = vsel %vm11771_vm8, %v12438_v57, -inf  ;;  %v12439_v6 = vld [vmem:[#allocation274_spill] sm:$0xff]  ;;  %v5089_v51 = vmax.f32 %v5088_v18, %v4769_v53  ;;  %v12442_v35 = vld [vmem:[#allocation188_spill] sm:$0xff]  ;;  %v12444_v49 = vld [vmem:[#allocation275_spill] sm:$0xff] }
 0x5a2   : > { %v12441_v30 = vpack.c.bf16 %v12439_v6, %v12440_v41  ;;  %v10259_v10 = vsel %vm11775_vm9, %v12442_v35, -inf  ;;  %v12443_v36 = vld [vmem:[#allocation276_spill] sm:$0xff]  ;;  %v12446_v57 = vld [vmem:[#allocation190_spill] sm:$0xff]  ;;  %v5052_v18 = vmax.f32 %v5051_v11, %v4747_v14  ;;  %v12456_v11 = vld [vmem:[#allocation277_spill] sm:$0xff] }
 0x5a3   : > { %v12445_v40 = vpack.c.bf16 %v12443_v36, %v12444_v49  ;;  %v10267_v61 = vsel %vm4548_vm10, %v12446_v57, -inf  ;;  %v12448_v6 = vld [vmem:[#allocation194_spill] sm:$0xff]  ;;  %v12449_v24 = vld [vmem:[#allocation196_spill] sm:$0xff]  ;;  %v5090_v41 = vmax.f32 %v5089_v51, %v4771_v42  ;;  %v5014_v36 = vmax.f32 %v10254_v34, %v10102_v31  ;;  %v12455_v42 = vld [vmem:[#allocation279_spill] sm:$0xff] }
 0x5a4   : > { %6460 = vmatpush1.bf16.msra.mxu1 %v12441_v30  ;;  %12447 = vst [vmem:[#allocation259_spill] sm:$0xff] %v10267_v61  ;;  %v4793_v37 = vsel %vm4550_vm12, %v12448_v6, -inf  ;;  %v4795_v53 = vsel %vm4551_vm13, %v12449_v24, -inf  ;;  %v12450_v54 = vld [vmem:[#allocation198_spill] sm:$0xff]  ;;  %v12452_v49 = vld [vmem:[#allocation200_spill] sm:$0xff]  ;;  %v12457_v51 = vpack.c.bf16 %v12455_v42, %v12456_v11 }
 0x5a5   : > { %6462 = vmatprep.subr.bf16.mxu1 %v12445_v40  ;;  %v4797_v9 = vsel %vm4552_vm14, %v12450_v54, -inf  ;;  %v12451_v40 = vld [vmem:[#allocation192_spill] sm:$0xff]  ;;  %v5128_v35 = vmax.f32 %v4795_v53, %v4793_v37  ;;  %v4799_v57 = vsel %vm4553_vm15, %v12452_v49, -inf  ;;  %v12453_v6 = vld [vmem:[#allocation202_spill] sm:$0xff]  ;;  %v5053_v37 = vmax.f32 %v5052_v18, %v4749_v44 }
 0x5a6   : > { %v10281_v30 = vsel %vm4549_vm11, %v12451_v40, -inf  ;;  %v4801_v24 = vsel %vm4554_vm0, %v12453_v6, -inf  ;;  %v12454_v54 = vld [vmem:[#allocation204_spill] sm:$0xff]  ;;  %v5091_v53 = vmax.f32 %v5090_v41, %v4773_v2  ;;  %v12458_v31 = vld [vmem:[#allocation206_spill] sm:$0xff] }
 0x5a7   : > { %v4803_v14 = vsel %vm4555_vm1, %v12454_v54, -inf  ;;  %v5129_v40 = vmax.f32 %v5128_v35, %v4797_v9  ;;  %v4805_v34 = vsel %vm4556_vm2, %v12458_v31, -inf  ;;  %v12459_v49 = vld [vmem:[#allocation208_spill] sm:$0xff]  ;;  %v12460_v6 = vld [vmem:[#allocation210_spill] sm:$0xff]  ;;  %v5054_v2 = vmax.f32 %v5053_v37, %v10170_v55 }
 0x5a8   : > { %6464 = vmatpush1.bf16.msra.mxu1 %v12457_v51  ;;  %v4807_v27 = vsel %vm4557_vm3, %v12459_v49, -inf  ;;  %v4809_v61 = vsel %vm11774_vm4, %v12460_v6, -inf  ;;  %v12461_v54 = vld [vmem:[#allocation212_spill] sm:$0xff]  ;;  %v12462_v11 = vld [vmem:[#allocation214_spill] sm:$0xff]  ;;  %v5092_v9 = vmax.f32 %v5091_v53, %v4775_v7 }
 0x5a9   : > { %v4811_v42 = vsel %vm11773_vm5, %v12461_v54, -inf  ;;  %v4813_v44 = vsel %vm11772_vm6, %v12462_v11, -inf  ;;  %v5130_v18 = vmax.f32 %v5129_v40, %v4799_v57  ;;  %v12463_v41 = vld [vmem:[#allocation216_spill] sm:$0xff]  ;;  %v12464_v51 = vld [vmem:[#allocation218_spill] sm:$0xff]  ;;  %v5055_v37 = vmax.f32 %v5054_v2, %v10178_v48 }
 0x5aa   : > { %v10316_v35 = vsel %vm11770_vm7, %v12463_v41, -inf  ;;  %v10321_v31 = vsel %vm11771_vm8, %v12464_v51, -inf  ;;  %v12465_v49 = vld [vmem:[#allocation220_spill] sm:$0xff]  ;;  %v12466_v54 = vld [vmem:[#allocation226_spill] sm:$0xff]  ;;  %v5093_v53 = vmax.f32 %v5092_v9, %v4777_v62 }
 0x5ab   : > { %v10326_v6 = vsel %vm11775_vm9, %v12465_v49, -inf  ;;  %v4825_v55 = vsel %vm4550_vm12, %v12466_v54, -inf  ;;  %v12467_v7 = vld [vmem:[#allocation228_spill] sm:$0xff]  ;;  %v5131_v40 = vmax.f32 %v5130_v18, %v4801_v24  ;;  %v12468_v41 = vld [vmem:[#allocation222_spill] sm:$0xff] }
 0x5ac   : > { %v4827_v57 = vsel %vm4551_vm13, %v12467_v7, -inf  ;;  %v10338_v51 = vsel %vm4548_vm10, %v12468_v41, -inf  ;;  %v12469_v49 = vld [vmem:[#allocation224_spill] sm:$0xff]  ;;  %v12470_v54 = vld [vmem:[#allocation230_spill] sm:$0xff]  ;;  %v5094_v62 = vmax.f32 %v5093_v53, %v4779_v33  ;;  %v4839_v33 = vsel %vm4557_vm3, %v12475_v4, -inf }
 0x5ad   : > { %v5170_v11 = vmax.f32 %v4827_v57, %v4825_v55  ;;  %v10343_v56 = vsel %vm4549_vm11, %v12469_v49, -inf  ;;  %v4829_v59 = vsel %vm4552_vm14, %v12470_v54, -inf  ;;  %v12471_v7 = vld [vmem:[#allocation232_spill] sm:$0xff]  ;;  %v5132_v24 = vmax.f32 %v5131_v40, %v4803_v14  ;;  %v12472_v9 = vld [vmem:[#allocation234_spill] sm:$0xff] }
 0x5ae   : > { %v4831_v48 = vsel %vm4553_vm15, %v12471_v7, -inf  ;;  %v4833_v18 = vsel %vm4554_vm0, %v12472_v9, -inf  ;;  %v5056_v55 = vmax.f32 %v5055_v37, %v10183_v23  ;;  %v12473_v57 = vld [vmem:[#allocation236_spill] sm:$0xff]  ;;  %v12474_v49 = vld [vmem:[#allocation238_spill] sm:$0xff]  ;;  %v5095_v14 = vmax.f32 %v5094_v62, %v4781_v26 }
 0x5af   : > { %v5171_v2 = vmax.f32 %v5170_v11, %v4829_v59  ;;  %v4835_v41 = vsel %vm4555_vm1, %v12473_v57, -inf  ;;  %v4837_v54 = vsel %vm4556_vm2, %v12474_v49, -inf  ;;  %v5133_v59 = vmax.f32 %v5132_v24, %v4805_v34  ;;  %v12476_v40 = vld [vmem:[#allocation242_spill] sm:$0xff]  ;;  %v12477_v23 = vld [vmem:[#allocation244_spill] sm:$0xff] }
 0x5b0   : > { %v4841_v11 = vsel %vm11774_vm4, %v12476_v40, -inf  ;;  %v4843_v37 = vsel %vm11773_vm5, %v12477_v23, -inf  ;;  %v12478_v7 = vld [vmem:[#allocation246_spill] sm:$0xff]  ;;  %v12479_v57 = vld [vmem:[#allocation248_spill] sm:$0xff]  ;;  %v12484_v23 = vmax.f32 %v10088_v60, %v12396_v43  ;;  %v12486_v60 = vmax.f32 %v10192_v1, %v10024_v28 }
 0x5b1   : > { %v5172_v53 = vmax.f32 %v5171_v2, %v4831_v48  ;;  %v4845_v9 = vsel %vm11772_vm6, %v12478_v7, -inf  ;;  %v10376_v49 = vsel %vm11770_vm7, %v12479_v57, -inf  ;;  %v12480_v4 = vld [vmem:[#allocation280_spill] sm:$0xff]  ;;  %v12481_v26 = vld [vmem:[#allocation278_spill] sm:$0xff]  ;;  %v5096_v48 = vmax.f32 %v5095_v14, %v10243_v16  ;;  %v12482_v2 = vld [vmem:[#allocation283_spill] sm:$0xff] }
 0x5b2   : > { %v4875_v34 = vmax.f32 %v12481_v26, %v12480_v4  ;;  %v5134_v62 = vmax.f32 %v5133_v59, %v4807_v27  ;;  %v12483_v40 = vld [vmem:[#allocation282_spill] sm:$0xff]  ;;  %v4959_v7 = vmax.f32 %v9967_v25, %v9972_v5  ;;  %v5001_v57 = vmax.f32 %v10039_v3, %v10044_v22 }
 0x5b3   : > { %v5173_v24 = vmax.f32 %v5172_v53, %v4833_v18  ;;  %v4917_v13 = vmax.f32 %v12483_v40, %v12482_v2  ;;  %v5043_v4 = vmax.f32 %v10113_v38, %v10119_v39  ;;  %v5097_v16 = vmax.f32 %v5096_v48, %v10248_v15 }
 0x5b4   : > { %v4889_v63 = vmax.f32 %v12484_v23, %v4875_v34  ;;  %v5135_v27 = vmax.f32 %v5134_v62, %v4809_v61  ;;  %v12485_v14 = vmax.f32 %v10137_v45, %v12405_v32  ;;  %v4973_v43 = vmax.f32 %v12486_v60, %v4959_v7  ;;  %v12488_v60 = vld [vmem:[#allocation259_spill] sm:$0xff] }
 0x5b5   : > { %v5174_v18 = vmax.f32 %v5173_v24, %v4835_v41  ;;  %v5015_v25 = vmax.f32 %v5014_v36, %v5001_v57  ;;  %v5057_v5 = vmax.f32 %v5056_v55, %v5043_v4  ;;  %v5098_v3 = vmax.f32 %v5097_v16, %v10259_v10 }
 0x5b6   : > { %v4931_v59 = vmax.f32 %v12485_v14, %v4917_v13  ;;  %v4890_v53 = vrot.slane %v4889_v63, 4  ;;  %v5136_v22 = vmax.f32 %v5135_v27, %v4811_v42  ;;  %v4974_v15 = vrot.slane %v4973_v43, 4  ;;  %v12487_v27 = vld [vmem:[#allocation250_spill] sm:$0xff] }
 0x5b7   : > { %v5175_v26 = vmax.f32 %v5174_v18, %v4837_v54  ;;  %v5016_v61 = vrot.slane %v5015_v25, 4  ;;  %v5058_v41 = vrot.slane %v5057_v5, 4  ;;  %v5085_v13 = vmax.f32 %v10197_v47, %v10202_v8 }
 0x5b8   : > { %v4932_v38 = vrot.slane %v4931_v59, 4  ;;  %v4891_v39 = vmax.f32 %v4889_v63, %v4890_v53  ;;  %v5137_v34 = vmax.f32 %v5136_v22, %v4813_v44  ;;  %v4975_v28 = vmax.f32 %v4973_v43, %v4974_v15 }
 0x5b9   : > { %v5176_v48 = vmax.f32 %v5175_v26, %v4839_v33  ;;  %v5017_v1 = vmax.f32 %v5015_v25, %v5016_v61  ;;  %v5059_v36 = vmax.f32 %v5057_v5, %v5058_v41  ;;  %v5099_v54 = vmax.f32 %v5098_v3, %v5085_v13  ;;  %v12489_v25 = vld [vmem:[#allocation252_spill] sm:$0xff]  ;;  %v12490_v5 = vld [vmem:[#allocation257_spill] sm:$0xff] }
 0x5ba   : > { %v4933_v45 = vmax.f32 %v4931_v59, %v4932_v38  ;;  %v4892_v32 = vrot.slane %v4891_v39, 2  ;;  %v5138_v55 = vmax.f32 %v5137_v34, %v10316_v35  ;;  %v4976_v63 = vrot.slane %v4975_v28, 2 }
 0x5bb   : > { %v5177_v10 = vmax.f32 %v5176_v48, %v4841_v11  ;;  %v5018_v24 = vrot.slane %v5017_v1, 2  ;;  %v5060_v2 = vrot.slane %v5059_v36, 2  ;;  %v5100_v23 = vrot.slane %v5099_v54, 4 }
 0x5bc   : > { %v4934_v42 = vrot.slane %v4933_v45, 2  ;;  %v4893_v62 = vmax.f32 %v4891_v39, %v4892_v32  ;;  %v5139_v44 = vmax.f32 %v5138_v55, %v10321_v31  ;;  %v4977_v47 = vmax.f32 %v4975_v28, %v4976_v63  ;;  %v12633_v55 = vld [vmem:[#allocation223_spill] sm:$0xff] }
 0x5bd   : > { %v5178_v33 = vmax.f32 %v5177_v10, %v4843_v37  ;;  %v5019_v8 = vmax.f32 %v5017_v1, %v5018_v24  ;;  %v5061_v57 = vmax.f32 %v5059_v36, %v5060_v2  ;;  %v5101_v11 = vmax.f32 %v5099_v54, %v5100_v23  ;;  %v12492_v36 = vld [vmem:[#allocation17_spill] sm:$0xff]  ;;  %v12496_v23 = vld [vmem:[#allocation14_spill] sm:$0xff] }
 0x5be   : > { %v4935_v40 = vmax.f32 %v4933_v45, %v4934_v42  ;;  %v4894_v7 = vrot.slane %v4893_v62, 1  ;;  %v5140_v4 = vmax.f32 %v5139_v44, %v10326_v6  ;;  %v4849_v18 = vsel %vm11771_vm8, %v12487_v27, -inf  ;;  %v12491_v45 = vld [vmem:[#allocation15_spill] sm:$0xff] }
 0x5bf   : > { %v5179_v16 = vmax.f32 %v5178_v33, %v4845_v9  ;;  %v4978_v14 = vrot.slane %v4977_v47, 1  ;;  %v5020_v59 = vrot.slane %v5019_v8, 1  ;;  %v5062_v53 = vrot.slane %v5061_v57, 1  ;;  %v12494_v42 = vld [vmem:[#allocation19_spill] sm:$0xff]  ;;  %v12495_v33 = vld [vmem:[#allocation12_spill] sm:$0xff] }
 0x5c0   : > { %v4936_v35 = vrot.slane %v4935_v40, 1  ;;  %v5102_v37 = vrot.slane %v5101_v11, 2  ;;  %v5127_v43 = vmax.f32 %v12488_v60, %v10281_v30  ;;  %vm11776_vm7 = vcmask 1041409   ;;  %v12503_v60 = vld [vmem:[#allocation36_spill] sm:$0xff] }
 0x5c1   : > { %v5180_v31 = vmax.f32 %v5179_v16, %v10376_v49  ;;  %v4851_v6 = vsel %vm11775_vm9, %v12489_v25, -inf  ;;  %v4895_v9 = vmax.f32 %v4893_v62, %v4894_v7  ;;  %v4979_v22 = vmax.f32 %v4977_v47, %v4978_v14  ;;  %v12637_v7 = vld [vmem:[#allocation237_spill] sm:$0xff] }
 0x5c2   : > { %v4937_v3 = vmax.f32 %v4935_v40, %v4936_v35  ;;  %v5103_v38 = vmax.f32 %v5101_v11, %v5102_v37  ;;  %v5141_v39 = vmax.f32 %v5140_v4, %v5127_v43  ;;  %v5169_v15 = vmax.f32 %v10338_v51, %v10343_v56  ;;  %v12499_v11 = vld [vmem:[#allocation23_spill] sm:$0xff] }
 0x5c3   : > { %v5181_v26 = vmax.f32 %v5180_v31, %v4849_v18  ;;  %v5021_v61 = vmax.f32 %v5019_v8, %v5020_v59  ;;  %v5063_v49 = vmax.f32 %v5061_v57, %v5062_v53  ;;  %vm11780_vm8 = vcmask 1042434   ;;  %v12498_v8 = vld [vmem:[#allocation21_spill] sm:$0xff] }
 0x5c4   : > { %v5104_v34 = vrot.slane %v5103_v38, 1  ;;  %v5142_v30 = vrot.slane %v5141_v39, 4  ;;  %vm11779_vm6 = vcmask 1043459   ;;  %vm11778_vm5 = vcmask 1044484   ;;  %v12500_v18 = vld [vmem:[#allocation25_spill] sm:$0xff] }
 0x5c5   : > { %v5182_v41 = vmax.f32 %v5181_v26, %v4851_v6  ;;  %vm11777_vm4 = vcmask 1045509   ;;  %v5220_v48 = vsel %vm11776_vm7, %v4937_v3, %v4895_v9  ;;  %v4600_v13 = vsel %vm4550_vm12, %v12491_v45, -inf  ;;  %v12501_v59 = vld [vmem:[#allocation29_spill] sm:$0xff]  ;;  %v12505_v3 = vld [vmem:[#allocation40_spill] sm:$0xff] }
 0x5c6   : > { %v5105_v32 = vmax.f32 %v5103_v38, %v5104_v34  ;;  %v5143_v28 = vmax.f32 %v5141_v39, %v5142_v30  ;;  %v5221_v56 = vsel %vm11780_vm8, %v4979_v22, %v5220_v48  ;;  %vm11781_vm9 = vcmask 1046534   ;;  %v12502_v31 = vld [vmem:[#allocation33_spill] sm:$0xff]  ;;  %v12506_v22 = vld [vmem:[#allocation255_spill] sm:$0xff]  ;;  %v12508_v38 = vld [vmem:[#allocation44_spill] sm:$0xff] }
 0x5c7   : > { %v5183_v1 = vmax.f32 %v5182_v41, %v5169_v15  ;;  %v5222_v51 = vsel %vm11779_vm6, %v5021_v61, %v5221_v56  ;;  %v4602_v10 = vsel %vm4551_vm13, %v12492_v36, -inf  ;;  %v4604_v54 = vsel %vm4552_vm14, %v12494_v42, -inf  ;;  %v12509_v39 = vld [vmem:[#allocation256_spill] sm:$0xff]  ;;  %v12515_v30 = vld [vmem:[#allocation66_spill] sm:$0xff] }
 0x5c8   : > { %v5144_v62 = vrot.slane %v5143_v28, 2  ;;  %v5223_v24 = vsel %vm11778_vm5, %v5063_v49, %v5222_v51  ;;  %v4855_v2 = vmax.f32 %v4602_v10, %v4600_v13  ;;  %v10433_v40 = vsel %vm4548_vm10, %v12495_v33, -inf  ;;  %v12511_v61 = vld [vmem:[#allocation48_spill] sm:$0xff] }
 0x5c9   : > { %v5184_v63 = vrot.slane %v5183_v1, 4  ;;  %v5224_v44 = vsel %vm11777_vm4, %v5105_v32, %v5223_v24  ;;  %v10438_v47 = vsel %vm4549_vm11, %v12496_v23, -inf  ;;  %v4606_v57 = vsel %vm4553_vm15, %v12498_v8, -inf  ;;  %v12513_v41 = vld [vmem:[#allocation52_spill] sm:$0xff] }
 0x5ca   : > { %v5145_v4 = vmax.f32 %v5143_v28, %v5144_v62  ;;  %v4856_v35 = vmax.f32 %v4855_v2, %v4604_v54  ;;  %v4608_v27 = vsel %vm4554_vm0, %v12499_v11, -inf  ;;  %v4610_v14 = vsel %vm4555_vm1, %v12500_v18, -inf  ;;  %v12516_v28 = vld [vmem:[#allocation69_spill] sm:$0xff]  ;;  %v12517_v56 = vld [vmem:[#allocation56_spill] sm:$0xff]  ;;  %v12521_v2 = vld [vmem:[#allocation63_spill] sm:$0xff] }
 0x5cb   : > { %v5185_v16 = vmax.f32 %v5183_v1, %v5184_v63  ;;  %v4612_v53 = vsel %vm4556_vm2, %v12501_v59, -inf  ;;  %v4614_v37 = vsel %vm4557_vm3, %v12502_v31, -inf  ;;  %vm12504_vm4 = vcmp.lt.s32.totalorder %v9604_v58, 200  ;;  %v12519_v36 = vld [vmem:[#allocation60_spill] sm:$0xff] }
 0x5cc   : > { %v4616_v43 = vsel %vm12504_vm4, %v12503_v60, -inf  ;;  %v5146_v25 = vrot.slane %v5145_v4, 1  ;;  %v4857_v9 = vmax.f32 %v4856_v35, %v4606_v57  ;;  %vm12507_vm5 = vcmp.lt.s32.totalorder %v12506_v22, 200  ;;  %v12520_v54 = vld [vmem:[#allocation72_spill] sm:$0xff] }
 0x5cd   : > { %v5186_v6 = vrot.slane %v5185_v16, 2  ;;  %v4618_v26 = vsel %vm12507_vm5, %v12505_v3, -inf  ;;  %vm12510_vm6 = vcmp.lt.s32.totalorder %v12509_v39, 200  ;;  %vm12512_vm8 = vcmp.lt.s32.totalorder %v9646_v12, 200  ;;  %v12522_v23 = vld [vmem:[#allocation76_spill] sm:$0xff] }
 0x5ce   : > { %v4620_v15 = vsel %vm12510_vm6, %v12508_v38, -inf  ;;  %v10467_v49 = vsel %vm12512_vm8, %v12511_v61, -inf  ;;  %vm12514_vm7 = vcmp.lt.s32.totalorder %v9648_v17, 200  ;;  %v4632_v48 = vsel %vm4550_vm12, %v12515_v30, -inf  ;;  %v12524_v11 = vld [vmem:[#allocation84_spill] sm:$0xff]  ;;  %v12529_v38 = vld [vmem:[#allocation98_spill] sm:$0xff] }
 0x5cf   : > { %v10472_v34 = vsel %vm12514_vm7, %v12513_v41, -inf  ;;  %v5147_v45 = vmax.f32 %v5145_v4, %v5146_v25  ;;  %v5187_v13 = vmax.f32 %v5185_v16, %v5186_v6  ;;  %v4858_v32 = vmax.f32 %v4857_v9, %v4608_v27  ;;  %v12523_v16 = vld [vmem:[#allocation80_spill] sm:$0xff]  ;;  %v12527_v9 = vld [vmem:[#allocation95_spill] sm:$0xff]  ;;  %v12531_v41 = vld [vmem:[#allocation101_spill] sm:$0xff] }
 0x5d0   : > { %v4634_v1 = vsel %vm4551_vm13, %v12516_v28, -inf  ;;  %vm12518_vm4 = vcmp.lt.s32.totalorder %v12490_v5, 200  ;;  %v10488_v10 = vsel %vm4548_vm10, %v12519_v36, -inf  ;;  %v4636_v62 = vsel %vm4552_vm14, %v12520_v54, -inf  ;;  %v4853_v18 = vld [vmem:[#allocation2 + $0x8] sm:$0xff]  ;;  %v12539_v36 = vld [vmem:[#allocation35_spill] sm:$0xff] }
 0x5d1   : > { %v10483_v51 = vsel %vm12518_vm4, %v12517_v56, -inf  ;;  %v4897_v42 = vmax.f32 %v4634_v1, %v4632_v48  ;;  %v5188_v63 = vrot.slane %v5187_v13, 1  ;;  %v4859_v24 = vmax.f32 %v4858_v32, %v4610_v14  ;;  %v12525_v31 = vld [vmem:[#allocation88_spill] sm:$0xff]  ;;  %v12540_v54 = vld [vmem:[#allocation37_spill] sm:$0xff] }
 0x5d2   : > { %v10496_v33 = vsel %vm4549_vm11, %v12521_v2, -inf  ;;  %v4638_v8 = vsel %vm4553_vm15, %v12522_v23, -inf  ;;  %v5225_v57 = vsel %vm11781_vm9, %v5147_v45, %v5224_v44  ;;  %v4640_v35 = vsel %vm4554_vm0, %v12523_v16, -inf  ;;  %v12526_v25 = vld [vmem:[#allocation92_spill] sm:$0xff]  ;;  %v12534_v45 = vld [vmem:[#allocation105_spill] sm:$0xff]  ;;  %v12543_v23 = vld [vmem:[#allocation42_spill] sm:$0xff] }
 0x5d3   : > { %v4898_v4 = vmax.f32 %v4897_v42, %v4636_v62  ;;  %v4642_v27 = vsel %vm4555_vm1, %v12524_v11, -inf  ;;  %v5189_v14 = vmax.f32 %v5187_v13, %v5188_v63  ;;  %v4860_v59 = vmax.f32 %v4859_v24, %v4612_v53  ;;  %v12536_v32 = vld [vmem:[#allocation108_spill] sm:$0xff]  ;;  %v12541_v63 = vld [vmem:[#allocation111_spill] sm:$0xff]  ;;  %v12546_v11 = vld [vmem:[#allocation45_spill] sm:$0xff] }
 0x5d4   : > { %v4644_v60 = vsel %vm4556_vm2, %v12525_v31, -inf  ;;  %v4646_v44 = vsel %vm4557_vm3, %v12526_v25, -inf  ;;  %vm12528_vm5 = vcmp.lt.s32.totalorder %v9604_v58, 200  ;;  %vm12530_vm6 = vcmp.lt.s32.totalorder %v12506_v22, 200  ;;  %v12547_v31 = vld [vmem:[#allocation50_spill] sm:$0xff]  ;;  %v12548_v25 = vld [vmem:[#allocation53_spill] sm:$0xff] }
 0x5d5   : > { %v4899_v6 = vmax.f32 %v4898_v4, %v4638_v8  ;;  %v4648_v3 = vsel %vm12528_vm5, %v12527_v9, -inf  ;;  %v4650_v61 = vsel %vm12530_vm6, %v12529_v38, -inf  ;;  %vm12532_vm7 = vcmp.lt.s32.totalorder %v12509_v39, 200  ;;  %v12544_v4 = vld [vmem:[#allocation27_spill] sm:$0xff]  ;;  %v12549_v38 = vld [vmem:[#allocation58_spill] sm:$0xff] }
 0x5d6   : > { %v4652_v53 = vsel %vm12532_vm7, %v12531_v41, -inf  ;;  %vm12533_vm8 = vcmask 1047559   ;;  %v4861_v48 = vmax.f32 %v4860_v59, %v4614_v37  ;;  %vm12535_vm4 = vcmp.lt.s32.totalorder %v9646_v12, 200  ;;  %v5238_v12 = vld [vmem:[%s11675_s7 + $0x18] sm:$0xff] }
 0x5d7   : > { %v5226_v30 = vsel %vm12533_vm8, %v5189_v14, %v5225_v57  ;;  %v10527_v13 = vsel %vm12535_vm4, %v12534_v45, -inf  ;;  %vm12537_vm9 = vcmp.lt.s32.totalorder %v9648_v17, 200  ;;  %v4900_v56 = vmax.f32 %v4899_v6, %v4640_v35  ;;  %v12551_v45 = vld [vmem:[#allocation64_spill] sm:$0xff]  ;;  %vm12556_vm8 = vmmov %vm12535_vm4 }
 0x5d8   : > { %v10532_v28 = vsel %vm12537_vm9, %v12536_v32, -inf  ;;  %v10534_v1 = vmax.f32 %v4853_v18, %v5226_v30  ;;  %v4664_v42 = vsel %vm4550_vm12, %v12539_v36, -inf  ;;  %v4666_v37 = vsel %vm4551_vm13, %v12540_v54, -inf  ;;  %v12550_v30 = vld [vmem:[#allocation61_spill] sm:$0xff]  ;;  %v12553_v36 = vld [vmem:[#allocation67_spill] sm:$0xff]  ;;  %v12554_v54 = vld [vmem:[#allocation70_spill] sm:$0xff] }
 0x5d9   : > { %v4862_v62 = vmax.f32 %v4861_v48, %v4616_v43  ;;  %vm12542_vm5 = vcmp.lt.s32.totalorder %v12490_v5, 200  ;;  %v4939_v2 = vmax.f32 %v4666_v37, %v4664_v42  ;;  %v4668_v8 = vsel %vm4552_vm14, %v12543_v23, -inf  ;;  %v12545_v43 = vld [vmem:[#allocation30_spill] sm:$0xff] }
 0x5da   : > { %12538 = vst [vmem:[#allocation258_spill] sm:$0xff] %v10534_v1  ;;  %v10545_v24 = vsel %vm12542_vm5, %v12541_v63, -inf  ;;  %5232 = vst [vmem:[#allocation2 + $0x8] sm:$0xff] %v10534_v1  ;;  %5449 = vmatprep.mubr.f32.mxu1 %v10534_v1  ;;  %v4901_v57 = vmax.f32 %v4900_v56, %v4642_v27  ;;  %v10555_v16 = vsel %vm4548_vm10, %v12544_v4, -inf  ;;  %v10560_v35 = vsel %vm4549_vm11, %v12545_v43, -inf  ;;  %v12560_v43 = vld [vmem:[#allocation96_spill] sm:$0xff] }
 0x5db   : > { %v4670_v18 = vsel %vm4553_vm15, %v12546_v11, -inf  ;;  %v4863_v14 = vmax.f32 %v4862_v62, %v4618_v26  ;;  %v4940_v59 = vmax.f32 %v4939_v2, %v4668_v8  ;;  %v4672_v27 = vsel %vm4554_vm0, %v12547_v31, -inf  ;;  %v12555_v62 = vld [vmem:[#allocation73_spill] sm:$0xff]  ;;  %v12557_v2 = vld [vmem:[#allocation78_spill] sm:$0xff]  ;;  %v12561_v11 = vld [vmem:[#allocation100_spill] sm:$0xff] }
 0x5dc   : > { %v4674_v6 = vsel %vm4555_vm1, %v12548_v25, -inf  ;;  %v4902_v9 = vmax.f32 %v4901_v57, %v4644_v60  ;;  %v4676_v41 = vsel %vm4556_vm2, %v12549_v38, -inf  ;;  %v4678_v48 = vsel %vm4557_vm3, %v12550_v30, -inf  ;;  %v12564_v25 = vld [vmem:[#allocation86_spill] sm:$0xff]  ;;  %v12565_v30 = vld [vmem:[#allocation89_spill] sm:$0xff] }
 0x5dd   : > { %vm12552_vm9 = vcmp.lt.s32.totalorder %v9604_v58, 200  ;;  %v4864_v32 = vmax.f32 %v4863_v14, %v4620_v15  ;;  %v4941_v56 = vmax.f32 %v4940_v59, %v4670_v18  ;;  %v4682_v42 = vsel %vm12530_vm6, %v12553_v36, -inf  ;;  %v12559_v15 = vld [vmem:[#allocation94_spill] sm:$0xff]  ;;  %v12562_v59 = vld [vmem:[#allocation81_spill] sm:$0xff] }
 0x5de   : > { %v4680_v26 = vsel %vm12552_vm9, %v12551_v45, -inf  ;;  %v4684_v60 = vsel %vm12532_vm7, %v12554_v54, -inf  ;;  %v4903_v37 = vmax.f32 %v4902_v9, %v4646_v44  ;;  %v10589_v63 = vsel %vm12556_vm8, %v12555_v62, -inf  ;;  %v12567_v54 = vld [vmem:[#allocation107_spill] sm:$0xff]  ;;  %v12568_v62 = vld [vmem:[#allocation109_spill] sm:$0xff] }
 0x5df   : > { %vm12558_vm4 = vcmp.lt.s32.totalorder %v9648_v17, 200  ;;  %v4696_v8 = vsel %vm4550_vm12, %v12559_v15, -inf  ;;  %v4865_v57 = vmax.f32 %v4864_v32, %v10467_v49  ;;  %v4942_v4 = vmax.f32 %v4941_v56, %v4672_v27  ;;  %v12605_v1 = vld [vmem:[#allocation177_spill] sm:$0xff] }
 0x5e0   : > { %v10594_v23 = vsel %vm12558_vm4, %v12557_v2, -inf  ;;  %v4698_v44 = vsel %vm4551_vm13, %v12560_v43, -inf  ;;  %v4700_v18 = vsel %vm4552_vm14, %v12561_v11, -inf  ;;  %v4904_v14 = vmax.f32 %v4903_v37, %v4648_v3  ;;  %v12566_v3 = vld [vmem:[#allocation102_spill] sm:$0xff]  ;;  %v12569_v2 = vld [vmem:[#allocation113_spill] sm:$0xff] }
 0x5e1   : > { %v10609_v31 = vsel %vm12542_vm5, %v12562_v59, -inf  ;;  %v10614_v9 = vsel %vm4548_vm10, %v12564_v25, -inf  ;;  %v4981_v49 = vmax.f32 %v4698_v44, %v4696_v8  ;;  %v10617_v27 = vmax.f32 %v4865_v57, %v10472_v34  ;;  %v12570_v8 = vld [vmem:[#allocation115_spill] sm:$0xff]  ;;  %v12573_v59 = vld [vmem:[#allocation121_spill] sm:$0xff] }
 0x5e2   : > { %12563 = vst [vmem:[#allocation260_spill] sm:$0xff] %v10609_v31  ;;  %v4943_v38 = vmax.f32 %v4942_v4, %v4674_v6  ;;  %v10622_v45 = vsel %vm4549_vm11, %v12565_v30, -inf  ;;  %v4702_v32 = vsel %vm4553_vm15, %v12566_v3, -inf  ;;  %v4905_v56 = vmax.f32 %v4904_v14, %v4650_v61  ;;  %v12571_v4 = vld [vmem:[#allocation117_spill] sm:$0xff]  ;;  %v12620_v31 = vld [vmem:[#allocation203_spill] sm:$0xff] }
 0x5e3   : > { %v4982_v36 = vmax.f32 %v4981_v49, %v4700_v18  ;;  %v4704_v37 = vsel %vm4554_vm0, %v12567_v54, -inf  ;;  %v4706_v34 = vsel %vm4555_vm1, %v12568_v62, -inf  ;;  %v4708_v15 = vsel %vm4556_vm2, %v12569_v2, -inf  ;;  %v12572_v18 = vld [vmem:[#allocation119_spill] sm:$0xff]  ;;  %v12575_v30 = vld [vmem:[#allocation125_spill] sm:$0xff] }
 0x5e4   : > { %v4944_v6 = vmax.f32 %v4943_v38, %v4676_v41  ;;  %v4710_v57 = vsel %vm4557_vm3, %v12570_v8, -inf  ;;  %v4712_v61 = vsel %vm12552_vm9, %v12571_v4, -inf  ;;  %v4906_v44 = vmax.f32 %v4905_v56, %v4652_v53  ;;  %v12574_v49 = vld [vmem:[#allocation123_spill] sm:$0xff]  ;;  %v12576_v56 = vld [vmem:[#allocation133_spill] sm:$0xff] }
 0x5e5   : > { %v4983_v11 = vmax.f32 %v4982_v36, %v4702_v32  ;;  %v4714_v41 = vsel %vm12530_vm6, %v12572_v18, -inf  ;;  %v4716_v25 = vsel %vm12532_vm7, %v12573_v59, -inf  ;;  %v10653_v38 = vsel %vm12556_vm8, %v12574_v49, -inf  ;;  %v12577_v36 = vld [vmem:[#allocation135_spill] sm:$0xff]  ;;  %v12579_v4 = vld [vmem:[#allocation137_spill] sm:$0xff] }
 0x5e6   : > { %v4945_v14 = vmax.f32 %v4944_v6, %v4678_v48  ;;  %v10658_v3 = vsel %vm12558_vm4, %v12575_v30, -inf  ;;  %v4907_v53 = vmax.f32 %v4906_v44, %v10527_v13  ;;  %v4728_v48 = vsel %vm4550_vm12, %v12576_v56, -inf  ;;  %v12578_v6 = vld [vmem:[#allocation127_spill] sm:$0xff]  ;;  %v12601_v43 = vld [vmem:[#allocation169_spill] sm:$0xff] }
 0x5e7   : > { %v4984_v32 = vmax.f32 %v4983_v11, %v4704_v37  ;;  %v4730_v54 = vsel %vm4551_vm13, %v12577_v36, -inf  ;;  %v10670_v2 = vsel %vm12542_vm5, %v12578_v6, -inf  ;;  %v4732_v13 = vsel %vm4552_vm14, %v12579_v4, -inf  ;;  %v12580_v11 = vld [vmem:[#allocation129_spill] sm:$0xff]  ;;  %v12582_v49 = vld [vmem:[#allocation131_spill] sm:$0xff] }
 0x5e8   : > { %v4946_v62 = vmax.f32 %v4945_v14, %v4680_v26  ;;  %v5023_v8 = vmax.f32 %v4730_v54, %v4728_v48  ;;  %v10676_v37 = vmax.f32 %v4907_v53, %v10532_v28  ;;  %v10681_v18 = vsel %vm4548_vm10, %v12580_v11, -inf  ;;  %v12581_v26 = vld [vmem:[#allocation8_spill] sm:$0xff]  ;;  %v12583_v48 = vld [vmem:[#allocation139_spill] sm:$0xff]  ;;  %v12584_v53 = vld [vmem:[#allocation141_spill] sm:$0xff] }
 0x5e9   : > { %v4985_v44 = vmax.f32 %v4984_v32, %v4706_v34  ;;  %v4734_v14 = vsel %vm4553_vm15, %v12581_v26, -inf  ;;  %v10689_v30 = vsel %vm4549_vm11, %v12582_v49, -inf  ;;  %v4736_v28 = vsel %vm4554_vm0, %v12583_v48, -inf  ;;  %v12585_v36 = vld [vmem:[#allocation143_spill] sm:$0xff]  ;;  %v12589_v49 = vld [vmem:[#allocation149_spill] sm:$0xff] }
 0x5ea   : > { %v4947_v59 = vmax.f32 %v4946_v62, %v4682_v42  ;;  %v5024_v56 = vmax.f32 %v5023_v8, %v4732_v13  ;;  %v4738_v32 = vsel %vm4555_vm1, %v12584_v53, -inf  ;;  %v4740_v54 = vsel %vm4556_vm2, %v12585_v36, -inf  ;;  %v12586_v42 = vld [vmem:[#allocation10_spill] sm:$0xff]  ;;  %v12587_v13 = vld [vmem:[#allocation145_spill] sm:$0xff]  ;;  %v12588_v11 = vld [vmem:[#allocation147_spill] sm:$0xff] }
 0x5eb   : > { %v4986_v34 = vmax.f32 %v4985_v44, %v4708_v15  ;;  %v4742_v62 = vsel %vm4557_vm3, %v12586_v42, -inf  ;;  %v4744_v15 = vsel %vm12552_vm9, %v12587_v13, -inf  ;;  %v4746_v26 = vsel %vm12530_vm6, %v12588_v11, -inf  ;;  %v12590_v53 = vld [vmem:[#allocation151_spill] sm:$0xff] }
 0x5ec   : > { %v4948_v8 = vmax.f32 %v4947_v59, %v4684_v60  ;;  %v5025_v4 = vmax.f32 %v5024_v56, %v4734_v14  ;;  %v4748_v48 = vsel %vm12532_vm7, %v12589_v49, -inf  ;;  %v10717_v36 = vsel %vm12556_vm8, %v12590_v53, -inf  ;;  %v12591_v59 = vld [vmem:[#allocation153_spill] sm:$0xff]  ;;  %v12593_v13 = vld [vmem:[#allocation155_spill] sm:$0xff] }
 0x5ed   : > { %v4987_v44 = vmax.f32 %v4986_v34, %v4710_v57  ;;  %v4752_v57 = vsel %vm12558_vm4, %v12591_v59, -inf  ;;  %v12592_v56 = vld [vmem:[#allocation161_spill] sm:$0xff]  ;;  %v10729_v11 = vsel %vm12542_vm5, %v12593_v13, -inf  ;;  %v12594_v49 = vld [vmem:[#allocation163_spill] sm:$0xff]  ;;  %v4896_v46 = vmax.f32 %v10488_v10, %v10496_v33 }
 0x5ee   : > { %v4949_v60 = vmax.f32 %v4948_v8, %v10589_v63  ;;  %v5026_v14 = vmax.f32 %v5025_v4, %v4736_v28  ;;  %v4760_v34 = vsel %vm4550_vm12, %v12592_v56, -inf  ;;  %v4762_v53 = vsel %vm4551_vm13, %v12594_v49, -inf  ;;  %v12595_v63 = vld [vmem:[#allocation165_spill] sm:$0xff]  ;;  %v12598_v13 = vld [vmem:[#allocation159_spill] sm:$0xff] }
 0x5ef   : > { %v4988_v42 = vmax.f32 %v4987_v44, %v4712_v61  ;;  %v4764_v28 = vsel %vm4552_vm14, %v12595_v63, -inf  ;;  %v12596_v59 = vld [vmem:[#allocation157_spill] sm:$0xff]  ;;  %v5065_v44 = vmax.f32 %v4762_v53, %v4760_v34  ;;  %v10748_v6 = vsel %vm4549_vm11, %v12598_v13, -inf  ;;  %v12600_v49 = vld [vmem:[#allocation167_spill] sm:$0xff] }
 0x5f0   : > { %v10738_v8 = vmax.f32 %v4949_v60, %v10594_v23  ;;  %v5027_v4 = vmax.f32 %v5026_v14, %v4738_v32  ;;  %v10743_v61 = vsel %vm4548_vm10, %v12596_v59, -inf  ;;  %12599 = vst [vmem:[#allocation261_spill] sm:$0xff] %v10748_v6  ;;  %v4766_v63 = vsel %vm4553_vm15, %v12600_v49, -inf  ;;  %v12602_v14 = vld [vmem:[#allocation171_spill] sm:$0xff]  ;;  %v12609_v53 = vld [vmem:[#allocation185_spill] sm:$0xff] }
 0x5f1   : > { %12597 = vst [vmem:[#allocation262_spill] sm:$0xff] %v10743_v61  ;;  %v4989_v56 = vmax.f32 %v4988_v42, %v4714_v41  ;;  %v4768_v23 = vsel %vm4554_vm0, %v12601_v43, -inf  ;;  %v5066_v60 = vmax.f32 %v5065_v44, %v4764_v28  ;;  %v4770_v34 = vsel %vm4555_vm1, %v12602_v14, -inf  ;;  %v12603_v41 = vld [vmem:[#allocation173_spill] sm:$0xff]  ;;  %v12604_v13 = vld [vmem:[#allocation175_spill] sm:$0xff] }
 0x5f2   : > { %v5028_v32 = vmax.f32 %v5027_v4, %v4740_v54  ;;  %v4772_v42 = vsel %vm4556_vm2, %v12603_v41, -inf  ;;  %v4774_v49 = vsel %vm4557_vm3, %v12604_v13, -inf  ;;  %v4776_v43 = vsel %vm12552_vm9, %v12605_v1, -inf  ;;  %v12606_v4 = vld [vmem:[#allocation179_spill] sm:$0xff]  ;;  %v12607_v14 = vld [vmem:[#allocation181_spill] sm:$0xff] }
 0x5f3   : > { %v4990_v59 = vmax.f32 %v4989_v56, %v4716_v25  ;;  %v5067_v28 = vmax.f32 %v5066_v60, %v4766_v63  ;;  %v4778_v44 = vsel %vm12530_vm6, %v12606_v4, -inf  ;;  %v4780_v41 = vsel %vm12532_vm7, %v12607_v14, -inf  ;;  %v12608_v56 = vld [vmem:[#allocation183_spill] sm:$0xff]  ;;  %v12615_v6 = vld [vmem:[#allocation189_spill] sm:$0xff] }
 0x5f4   : > { %v5029_v54 = vmax.f32 %v5028_v32, %v4742_v62  ;;  %v10780_v13 = vsel %vm12556_vm8, %v12608_v56, -inf  ;;  %v10785_v1 = vsel %vm12558_vm4, %v12609_v53, -inf  ;;  %v12610_v62 = vld [vmem:[#allocation193_spill] sm:$0xff]  ;;  %v12611_v4 = vld [vmem:[#allocation195_spill] sm:$0xff]  ;;  %v4938_v58 = vmax.f32 %v10555_v16, %v10560_v35  ;;  %v12647_v16 = vld [vmem:[#allocation260_spill] sm:$0xff] }
 0x5f5   : > { %v4991_v25 = vmax.f32 %v4990_v59, %v10653_v38  ;;  %v4792_v63 = vsel %vm4550_vm12, %v12610_v62, -inf  ;;  %v5068_v60 = vmax.f32 %v5067_v28, %v4768_v23  ;;  %v4794_v38 = vsel %vm4551_vm13, %v12611_v4, -inf  ;;  %v12612_v59 = vld [vmem:[#allocation197_spill] sm:$0xff]  ;;  %v12613_v61 = vld [vmem:[#allocation187_spill] sm:$0xff] }
 0x5f6   : > { %v5030_v32 = vmax.f32 %v5029_v54, %v4744_v15  ;;  %v4796_v14 = vsel %vm4552_vm14, %v12612_v59, -inf  ;;  %v10802_v53 = vsel %vm12542_vm5, %v12613_v61, -inf  ;;  %v10807_v15 = vsel %vm4548_vm10, %v12615_v6, -inf  ;;  %v12617_v62 = vld [vmem:[#allocation191_spill] sm:$0xff]  ;;  %v12619_v61 = vld [vmem:[#allocation201_spill] sm:$0xff] }
 0x5f7   : > { %v10797_v56 = vmax.f32 %v4991_v25, %v10658_v3  ;;  %12614 = vst [vmem:[#allocation281_spill] sm:$0xff] %v10802_v53  ;;  %12616 = vst [vmem:[#allocation264_spill] sm:$0xff] %v10807_v15  ;;  %v5107_v23 = vmax.f32 %v4794_v38, %v4792_v63  ;;  %v5069_v28 = vmax.f32 %v5068_v60, %v4770_v34  ;;  %v10812_v4 = vsel %vm4549_vm11, %v12617_v62, -inf  ;;  %v12618_v3 = vld [vmem:[#allocation199_spill] sm:$0xff]  ;;  %v12623_v62 = vld [vmem:[#allocation209_spill] sm:$0xff] }
 0x5f8   : > { %v5031_v54 = vmax.f32 %v5030_v32, %v4746_v26  ;;  %v4798_v25 = vsel %vm4553_vm15, %v12618_v3, -inf  ;;  %v4800_v53 = vsel %vm4554_vm0, %v12619_v61, -inf  ;;  %v4802_v6 = vsel %vm4555_vm1, %v12620_v31, -inf  ;;  %v12621_v26 = vld [vmem:[#allocation205_spill] sm:$0xff]  ;;  %v12622_v38 = vld [vmem:[#allocation207_spill] sm:$0xff] }
 0x5f9   : > { %v5108_v59 = vmax.f32 %v5107_v23, %v4796_v14  ;;  %v4804_v34 = vsel %vm4556_vm2, %v12621_v26, -inf  ;;  %v4993_v63 = vmax.f32 %v10797_v56, %v10670_v2  ;;  %v5070_v60 = vmax.f32 %v5069_v28, %v4772_v42  ;;  %v12624_v61 = vld [vmem:[#allocation211_spill] sm:$0xff]  ;;  %v12625_v15 = vld [vmem:[#allocation213_spill] sm:$0xff] }
 0x5fa   : > { %v5032_v32 = vmax.f32 %v5031_v54, %v4748_v48  ;;  %v4806_v14 = vsel %vm4557_vm3, %v12622_v38, -inf  ;;  %v4808_v3 = vsel %vm12552_vm9, %v12623_v62, -inf  ;;  %v4810_v31 = vsel %vm12530_vm6, %v12624_v61, -inf  ;;  %v12626_v42 = vld [vmem:[#allocation215_spill] sm:$0xff]  ;;  %v12627_v54 = vld [vmem:[#allocation217_spill] sm:$0xff] }
 0x5fb   : > { %v5109_v23 = vmax.f32 %v5108_v59, %v4798_v25  ;;  %v4812_v26 = vsel %vm12532_vm7, %v12625_v15, -inf  ;;  %v5071_v48 = vmax.f32 %v5070_v60, %v4774_v49  ;;  %v10844_v56 = vsel %vm12556_vm8, %v12626_v42, -inf  ;;  %v12628_v59 = vld [vmem:[#allocation225_spill] sm:$0xff]  ;;  %v12629_v62 = vld [vmem:[#allocation227_spill] sm:$0xff] }
 0x5fc   : > { %v5033_v2 = vmax.f32 %v5032_v32, %v10717_v36  ;;  %v10849_v28 = vsel %vm12558_vm4, %v12627_v54, -inf  ;;  %v4824_v38 = vsel %vm4550_vm12, %v12628_v59, -inf  ;;  %v4826_v36 = vsel %vm4551_vm13, %v12629_v62, -inf  ;;  %v12630_v49 = vld [vmem:[#allocation229_spill] sm:$0xff]  ;;  %v12631_v61 = vld [vmem:[#allocation219_spill] sm:$0xff]  ;;  %vm12644_vm12 = vmmov %vm12532_vm7 }
 0x5fd   : > { %v5110_v25 = vmax.f32 %v5109_v23, %v4800_v53  ;;  %v4828_v15 = vsel %vm4552_vm14, %v12630_v49, -inf  ;;  %v5072_v60 = vmax.f32 %v5071_v48, %v4776_v43  ;;  %v10863_v42 = vsel %vm12542_vm5, %v12631_v61, -inf  ;;  %v12632_v54 = vld [vmem:[#allocation221_spill] sm:$0xff]  ;;  %v12638_v49 = vld [vmem:[#allocation239_spill] sm:$0xff]  ;;  %vm12653_vm13 = vmmov %vm12556_vm8 }
 0x5fe   : > { %v5034_v32 = vmax.f32 %v5033_v2, %v4752_v57  ;;  %v5149_v53 = vmax.f32 %v4826_v36, %v4824_v38  ;;  %v10868_v50 = vsel %vm4548_vm10, %v12632_v54, -inf  ;;  %v10873_v59 = vsel %vm4549_vm11, %v12633_v55, -inf  ;;  %v12635_v48 = vld [vmem:[#allocation233_spill] sm:$0xff]  ;;  %vm12640_vm10 = vmmov %vm12552_vm9  ;;  %v12641_v61 = vld [vmem:[#allocation243_spill] sm:$0xff] }
 0x5ff   : > { %v5111_v23 = vmax.f32 %v5110_v25, %v4802_v6  ;;  %v4830_v57 = vsel %vm4553_vm15, %v12634_v20, -inf  ;;  %v5073_v43 = vmax.f32 %v5072_v60, %v4778_v44  ;;  %v4832_v6 = vsel %vm4554_vm0, %v12635_v48, -inf  ;;  %v12636_v25 = vld [vmem:[#allocation235_spill] sm:$0xff]  ;;  %v12639_v60 = vld [vmem:[#allocation241_spill] sm:$0xff]  ;;  %vm12642_vm11 = vmmov %vm12530_vm6 }
 0x600   : > { %v5150_v2 = vmax.f32 %v5149_v53, %v4828_v15  ;;  %v4834_v19 = vsel %vm4555_vm1, %v12636_v25, -inf  ;;  %v5035_v38 = vmax.f32 %v5034_v32, %v10729_v11  ;;  %v4836_v36 = vsel %vm4556_vm2, %v12637_v7, -inf  ;;  %v12650_v25 = vld [vmem:[#allocation261_spill] sm:$0xff]  ;;  %vm12655_vm14 = vmmov %vm12558_vm4 }
 0x601   : > { %v5112_v62 = vmax.f32 %v5111_v23, %v4804_v34  ;;  %v4838_v0 = vsel %vm4557_vm3, %v12638_v49, -inf  ;;  %v5074_v44 = vmax.f32 %v5073_v43, %v4780_v41  ;;  %v4840_v29 = vsel %vm12640_vm10, %v12639_v60, -inf  ;;  %v12643_v34 = vld [vmem:[#allocation245_spill] sm:$0xff]  ;;  %vm12658_vm15 = vmmov %vm12542_vm5 }
 0x602   : > { %v5151_v15 = vmax.f32 %v5150_v2, %v4830_v57  ;;  %v4842_v52 = vsel %vm12642_vm11, %v12641_v61, -inf  ;;  %v4844_v21 = vsel %vm12644_vm12, %v12643_v34, -inf  ;;  %v4854_v32 = vmax.f32 %v10433_v40, %v10438_v47 }
 0x603   : > { %v5113_v11 = vmax.f32 %v5112_v62, %v4806_v14  ;;  %v5075_v41 = vmax.f32 %v5074_v44, %v10780_v13  ;;  %v4980_v22 = vmax.f32 %v10614_v9, %v10622_v45  ;;  %v12645_v39 = vmax.f32 %v10617_v27, %v10483_v51  ;;  %v12649_v27 = vld [vmem:[#allocation281_spill] sm:$0xff] }
 0x604   : > { %v5152_v53 = vmax.f32 %v5151_v15, %v4832_v6  ;;  %v12646_v40 = vmax.f32 %v10676_v37, %v10545_v24  ;;  %v5022_v10 = vmax.f32 %v10681_v18, %v10689_v30  ;;  %v12648_v35 = vmax.f32 %v10738_v8, %v12647_v16  ;;  %v12651_v8 = vld [vmem:[#allocation262_spill] sm:$0xff] }
 0x605   : > { %v5114_v14 = vmax.f32 %v5113_v11, %v4808_v3  ;;  %v4868_v23 = vmax.f32 %v12645_v39, %v4854_v32  ;;  %v5076_v33 = vmax.f32 %v5075_v41, %v10785_v1  ;;  %v4994_v9 = vmax.f32 %v4993_v63, %v4980_v22  ;;  %v12652_v41 = vld [vmem:[#allocation247_spill] sm:$0xff]  ;;  %v12654_v22 = vld [vmem:[#allocation249_spill] sm:$0xff] }
 0x606   : > { %v4910_v47 = vmax.f32 %v12646_v40, %v4896_v46  ;;  %v5153_v13 = vmax.f32 %v5152_v53, %v4834_v19  ;;  %v4952_v54 = vmax.f32 %v12648_v35, %v4938_v58  ;;  %v5036_v51 = vmax.f32 %v5035_v38, %v5022_v10 }
 0x607   : > { %v5115_v45 = vmax.f32 %v5114_v14, %v4810_v31  ;;  %v4869_v3 = vrot.slane %v4868_v23, 4  ;;  %v5077_v20 = vmax.f32 %v5076_v33, %v12649_v27  ;;  %v4995_v37 = vrot.slane %v4994_v9, 4 }
 0x608   : > { %v4911_v55 = vrot.slane %v4910_v47, 4  ;;  %v5154_v57 = vmax.f32 %v5153_v13, %v4836_v36  ;;  %v4953_v24 = vrot.slane %v4952_v54, 4  ;;  %v5037_v30 = vrot.slane %v5036_v51, 4  ;;  %v12657_v13 = vld [vmem:[#allocation251_spill] sm:$0xff] }
 0x609   : > { %v5116_v43 = vmax.f32 %v5115_v45, %v4812_v26  ;;  %v4870_v2 = vmax.f32 %v4868_v23, %v4869_v3  ;;  %v4996_v6 = vmax.f32 %v4994_v9, %v4995_v37  ;;  %v5064_v19 = vmax.f32 %v12651_v8, %v12650_v25  ;;  %v5540_v8 = vld [vmem:[%s11677_s9 + $0x8] sm:$0xff] }
 0x60a   : > { %v4912_v18 = vmax.f32 %v4910_v47, %v4911_v55  ;;  %v5155_v1 = vmax.f32 %v5154_v57, %v4838_v0  ;;  %v4954_v48 = vmax.f32 %v4952_v54, %v4953_v24  ;;  %v5038_v38 = vmax.f32 %v5036_v51, %v5037_v30  ;;  %v12656_v47 = vld [vmem:[#allocation264_spill] sm:$0xff] }
 0x60b   : > { %v5117_v63 = vmax.f32 %v5116_v43, %v10844_v56  ;;  %v4871_v31 = vrot.slane %v4870_v2, 2  ;;  %v4997_v36 = vrot.slane %v4996_v6, 2  ;;  %v5078_v44 = vmax.f32 %v5077_v20, %v5064_v19  ;;  %v5542_v19 = vld [vmem:[%s11677_s9 + $0x18] sm:$0xff] }
 0x60c   : > { %v4913_v62 = vrot.slane %v4912_v18, 2  ;;  %v5156_v7 = vmax.f32 %v5155_v1, %v4840_v29  ;;  %v4955_v49 = vrot.slane %v4954_v48, 2  ;;  %v5039_v61 = vrot.slane %v5038_v38, 2 }
 0x60d   : > { %v5118_v26 = vmax.f32 %v5117_v63, %v10849_v28  ;;  %v4872_v15 = vmax.f32 %v4870_v2, %v4871_v31  ;;  %v4998_v34 = vmax.f32 %v4996_v6, %v4997_v36  ;;  %v5079_v32 = vrot.slane %v5078_v44, 4  ;;  %v5539_v63 = vld [vmem:[%s11677_s9] sm:$0xff] }
 0x60e   : > { %v4914_v60 = vmax.f32 %v4912_v18, %v4913_v62  ;;  %v5157_v0 = vmax.f32 %v5156_v7, %v4842_v52  ;;  %v4956_v11 = vmax.f32 %v4954_v48, %v4955_v49  ;;  %v4846_v56 = vsel %vm12653_vm13, %v12652_v41, -inf  ;;  %v5541_v62 = vld [vmem:[%s11677_s9 + $0x10] sm:$0xff]  ;;  %v5546_v7 = vld [vmem:[%s11677_s9 + $0x38] sm:$0xff] }
 0x60f   : > { %v5119_v46 = vmax.f32 %v5118_v26, %v10863_v42  ;;  %v4873_v53 = vrot.slane %v4872_v15, 1  ;;  %v4848_v28 = vsel %vm12655_vm14, %v12654_v22, -inf  ;;  %v5080_v39 = vmax.f32 %v5078_v44, %v5079_v32  ;;  %v5242_v42 = vld [vmem:[%s11675_s7 + $0x38] sm:$0xff]  ;;  %v5237_v41 = vld [vmem:[%s11675_s7 + $0x10] sm:$0xff] }
 0x610   : > { %v4915_v29 = vrot.slane %v4914_v60, 1  ;;  %v5158_v58 = vmax.f32 %v5157_v0, %v4844_v21  ;;  %v4957_v14 = vrot.slane %v4956_v11, 1  ;;  %v5040_v40 = vmax.f32 %v5038_v38, %v5039_v61  ;;  %v5544_v38 = vld [vmem:[%s11677_s9 + $0x28] sm:$0xff]  ;;  %v5543_v61 = vld [vmem:[%s11677_s9 + $0x20] sm:$0xff]  ;;  %v5545_v0 = vld [vmem:[%s11677_s9 + $0x30] sm:$0xff] }
 0x611   : > { %v4874_v23 = vmax.f32 %v4872_v15, %v4873_v53  ;;  %v5106_v10 = vmax.f32 %v12656_v47, %v10812_v4  ;;  %v4999_v33 = vrot.slane %v4998_v34, 1  ;;  %v5081_v17 = vrot.slane %v5080_v39, 2  ;;  %v5550_v32 = vld [vmem:[%s11677_s9 + $0x58] sm:$0xff]  ;;  %v4852_v53 = vld [vmem:[#allocation2] sm:$0xff]  ;;  %v5552_v47 = vld [vmem:[%s11677_s9 + $0x68] sm:$0xff] }
 0x612   : > { %v4916_v52 = vmax.f32 %v4914_v60, %v4915_v29  ;;  %v5159_v21 = vmax.f32 %v5158_v58, %v4846_v56  ;;  %v4850_v16 = vsel %vm12658_vm15, %v12657_v13, -inf  ;;  %v4958_v35 = vmax.f32 %v4956_v11, %v4957_v14  ;;  %v5241_v56 = vld [vmem:[%s11675_s7 + $0x30] sm:$0xff]  ;;  %v5246_v58 = vld [vmem:[%s11675_s7 + $0x58] sm:$0xff] }
 0x613   : > { %v5120_v54 = vmax.f32 %v5119_v46, %v5106_v10  ;;  %v5148_v4 = vmax.f32 %v10868_v50, %v10873_v59  ;;  %v5082_v45 = vmax.f32 %v5080_v39, %v5081_v17  ;;  %vm12659_vm0 = vcmask 1041409   ;;  %v5250_v22 = vld [vmem:[%s11675_s7 + $0x78] sm:$0xff]  ;;  %v5547_v39 = vld [vmem:[%s11677_s9 + $0x40] sm:$0xff] }
 0x614   : > { %v5160_v9 = vmax.f32 %v5159_v21, %v4848_v28  ;;  %v5207_v3 = vsel %vm12659_vm0, %v4916_v52, %v4874_v23  ;;  %v6465_v55 = vpack.c.bf16 %v5242_v42, %v5238_v12  ;;  %v5041_v51 = vrot.slane %v5040_v40, 1  ;;  %v5549_v23 = vld [vmem:[%s11677_s9 + $0x50] sm:$0xff]  ;;  %v5554_v10 = vld [vmem:[%s11677_s9 + $0x78] sm:$0xff] }
 0x615   : > { %v5121_v27 = vrot.slane %v5120_v54, 4  ;;  %v5000_v57 = vmax.f32 %v4998_v34, %v4999_v33  ;;  %vm12660_vm1 = vcmask 1042434   ;;  %v5083_v5 = vrot.slane %v5082_v45, 1  ;;  %v5548_v34 = vld [vmem:[%s11677_s9 + $0x48] sm:$0xff]  ;;  %v5245_v21 = vld [vmem:[%s11675_s7 + $0x50] sm:$0xff]  ;;  %v5254_v17 = vld [vmem:[%s11675_s7 + $0x98] sm:$0xff] }
 0x616   : > { %v5161_v20 = vmax.f32 %v5160_v9, %v4850_v16  ;;  %6466 = vmatprep.subr.bf16.mxu1 %v6465_v55  ;;  %v5209_v37 = vsel %vm12660_vm1, %v4958_v35, %v5207_v3  ;;  %v5042_v2 = vmax.f32 %v5040_v40, %v5041_v51  ;;  %vm12661_vm2 = vcmask 1043459   ;;  %v5249_v33 = vld [vmem:[%s11675_s7 + $0x70] sm:$0xff]  ;;  %v5258_v13 = vld [vmem:[%s11675_s7 + $0xb8] sm:$0xff]  ;;  %v5556_v3 = vld [vmem:[%s11677_s9 + $0x88] sm:$0xff] }
 0x617   : > { %v5122_v24 = vmax.f32 %v5120_v54, %v5121_v27  ;;  %v5211_v50 = vsel %vm12661_vm2, %v5000_v57, %v5209_v37  ;;  %v5084_v1 = vmax.f32 %v5082_v45, %v5083_v5  ;;  %vm12662_vm3 = vcmask 1044484   ;;  %v5551_v54 = vld [vmem:[%s11677_s9 + $0x60] sm:$0xff]  ;;  %v12666_v45 = vld [vmem:[#allocation258_spill] sm:$0xff]  ;;  %v5253_v27 = vld [vmem:[%s11675_s7 + $0x90] sm:$0xff] }
 0x618   : > { %v5162_v43 = vmax.f32 %v5161_v20, %v5148_v4  ;;  %v5213_v25 = vsel %vm12662_vm3, %v5042_v2, %v5211_v50  ;;  %vm12663_vm9 = vcmask 1045509   ;;  %v6529_v26 = vpack.c.bf16 %v5542_v19, %v5540_v8  ;;  %v5553_v4 = vld [vmem:[%s11677_s9 + $0x70] sm:$0xff]  ;;  %v5558_v55 = vld [vmem:[%s11677_s9 + $0x98] sm:$0xff] }
 0x619   : > { %v5123_v18 = vrot.slane %v5122_v24, 2  ;;  %v5215_v44 = vsel %vm12663_vm9, %v5084_v1, %v5213_v25  ;;  %v6531_v15 = vpack.c.bf16 %v5541_v62, %v5539_v63  ;;  %v6533_v60 = vpack.c.bf16 %v5546_v7, %v5544_v38  ;;  %v5257_v20 = vld [vmem:[%s11675_s7 + $0xb0] sm:$0xff]  ;;  %v5262_v57 = vld [vmem:[%s11675_s7 + $0xd8] sm:$0xff]  ;;  %v5559_v63 = vld [vmem:[%s11677_s9 + $0xa0] sm:$0xff] }
 0x61a   : > { %v5163_v30 = vrot.slane %v5162_v43, 4  ;;  %vm12664_vm6 = vcmask 1046534   ;;  %6530 = vmatprep.subr.bf16.mxu0 %v6529_v26  ;;  %v6535_v28 = vpack.c.bf16 %v5545_v0, %v5543_v61  ;;  %v6537_v14 = vpack.c.bf16 %v5550_v32, %v5548_v34  ;;  %v5557_v2 = vld [vmem:[%s11677_s9 + $0x90] sm:$0xff]  ;;  %v5562_v50 = vld [vmem:[%s11677_s9 + $0xb8] sm:$0xff]  ;;  %v5564_v38 = vld [vmem:[%s11677_s9 + $0xc8] sm:$0xff] }
 0x61b   : > { %v5124_v59 = vmax.f32 %v5122_v24, %v5123_v18  ;;  %6532 = vmatpush1.bf16.msra.mxu0 %v6531_v15  ;;  %vm12665_vm7 = vcmask 1047559   ;;  %v6467_v40 = vpack.c.bf16 %v5241_v56, %v5237_v41  ;;  %v6469_v42 = vpack.c.bf16 %v5250_v22, %v5246_v58  ;;  %v5266_v24 = vld [vmem:[%s11675_s7 + $0xf8] sm:$0xff]  ;;  %v5261_v1 = vld [vmem:[%s11675_s7 + $0xd0] sm:$0xff]  ;;  %v5563_v0 = vld [vmem:[%s11677_s9 + $0xc0] sm:$0xff] }
 0x61c   : > { %v5164_v48 = vmax.f32 %v5162_v43, %v5163_v30  ;;  %6534 = vmatprep.subr.bf16.mxu0 %v6533_v60  ;;  %v6539_v16 = vpack.c.bf16 %v5549_v23, %v5547_v39  ;;  %v6541_v35 = vpack.c.bf16 %v5554_v10, %v5552_v47  ;;  %v6471_v9 = vpack.c.bf16 %v5249_v33, %v5245_v21  ;;  %v5555_v43 = vld [vmem:[%s11677_s9 + $0x80] sm:$0xff]  ;;  %v5560_v30 = vld [vmem:[%s11677_s9 + $0xa8] sm:$0xff]  ;;  %v5274_v25 = vld [vmem:[%s11675_s7 + $0x138] sm:$0xff] }
 0x61d   : > { %v5125_v6 = vrot.slane %v5124_v59, 1  ;;  %v6473_v51 = vpack.c.bf16 %v5258_v13, %v5254_v17  ;;  %v6543_v37 = vpack.c.bf16 %v5553_v4, %v5551_v54  ;;  %v6545_v5 = vpack.c.bf16 %v5558_v55, %v5556_v3  ;;  %v5566_v7 = vld [vmem:[%s11677_s9 + $0xd8] sm:$0xff]  ;;  %v5568_v32 = vld [vmem:[%s11677_s9 + $0xe8] sm:$0xff]  ;;  %v5277_v56 = vld [vmem:[%s11675_s7 + $0x150] sm:$0xff] }
 0x61e   : > { %v5165_v31 = vrot.slane %v5164_v48, 2  ;;  %v6475_v18 = vpack.c.bf16 %v5257_v20, %v5253_v27  ;;  %v6547_v8 = vpack.c.bf16 %v5557_v2, %v5555_v43  ;;  %v6549_v19 = vpack.c.bf16 %v5562_v50, %v5560_v30  ;;  %v5278_v26 = vld [vmem:[%s11675_s7 + $0x158] sm:$0xff]  ;;  %v5569_v39 = vld [vmem:[%s11677_s9 + $0xf0] sm:$0xff]  ;;  %v5576_v4 = vld [vmem:[%s11677_s9 + $0x128] sm:$0xff] }
 0x61f   : > { %v5126_v49 = vmax.f32 %v5124_v59, %v5125_v6  ;;  %6536 = vmatpush1.bf16.msra.mxu0 %v6535_v28  ;;  %v6477_v59 = vpack.c.bf16 %v5266_v24, %v5262_v57  ;;  %v5270_v6 = vld [vmem:[%s11675_s7 + $0x118] sm:$0xff]  ;;  %v6553_v61 = vpack.c.bf16 %v5566_v7, %v5564_v38  ;;  %v5285_v10 = vld [vmem:[%s11675_s7 + $0x190] sm:$0xff]  ;;  %v5575_v24 = vld [vmem:[%s11677_s9 + $0x120] sm:$0xff]  ;;  %vm5936_vm13 = vcmask 31744  }
 0x620   : > { %v5166_v36 = vmax.f32 %v5164_v48, %v5165_v31  ;;  %6538 = vmatprep.subr.bf16.mxu0 %v6537_v14  ;;  %v5265_v48 = vld [vmem:[%s11675_s7 + $0xf0] sm:$0xff]  ;;  %v5282_v15 = vld [vmem:[%s11675_s7 + $0x178] sm:$0xff]  ;;  %v5567_v14 = vld [vmem:[%s11677_s9 + $0xe0] sm:$0xff] }
 0x621   : > { %v5217_v46 = vsel %vm12664_vm6, %v5126_v49, %v5215_v44  ;;  %v5561_v31 = vld [vmem:[%s11677_s9 + $0xb0] sm:$0xff]  ;;  %v6479_v62 = vpack.c.bf16 %v5265_v48, %v5261_v1  ;;  %v6481_v49 = vpack.c.bf16 %v5274_v25, %v5270_v6  ;;  %v6485_v41 = vpack.c.bf16 %v5282_v15, %v5278_v26  ;;  %v5290_v58 = vld [vmem:[%s11675_s7 + $0x1b8] sm:$0xff]  ;;  %v5580_v43 = vld [vmem:[%s11677_s9 + $0x148] sm:$0xff] }
 0x622   : > { %v5167_v11 = vrot.slane %v5166_v36, 1  ;;  %v5273_v44 = vld [vmem:[%s11675_s7 + $0x130] sm:$0xff]  ;;  %v6551_v60 = vpack.c.bf16 %v5561_v31, %v5559_v63  ;;  %v5294_v21 = vld [vmem:[%s11675_s7 + $0x1d8] sm:$0xff]  ;;  %v6559_v17 = vpack.c.bf16 %v5569_v39, %v5567_v14  ;;  %v5579_v25 = vld [vmem:[%s11677_s9 + $0x140] sm:$0xff] }
 0x623   : > { %6540 = vmatpush1.bf16.msra.mxu0 %v6539_v16  ;;  %v5298_v33 = vld [vmem:[%s11675_s7 + $0x1f8] sm:$0xff]  ;;  %v5571_v16 = vld [vmem:[%s11677_s9 + $0x100] sm:$0xff]  ;;  %v5293_v3 = vld [vmem:[%s11675_s7 + $0x1d0] sm:$0xff] }
 0x624   : > { %v5168_v29 = vmax.f32 %v5166_v36, %v5167_v11  ;;  %6542 = vmatprep.subr.bf16.mxu0 %v6541_v35  ;;  %v5269_v36 = vld [vmem:[%s11675_s7 + $0x110] sm:$0xff]  ;;  %v5306_v27 = vld [vmem:[%s11675_s7 + $0x238] sm:$0xff]  ;;  %v5584_v63 = vld [vmem:[%s11677_s9 + $0x168] sm:$0xff] }
 0x625   : > { %v5565_v11 = vld [vmem:[%s11677_s9 + $0xd0] sm:$0xff]  ;;  %v6483_v34 = vpack.c.bf16 %v5273_v44, %v5269_v36  ;;  %v5582_v2 = vld [vmem:[%s11677_s9 + $0x158] sm:$0xff]  ;;  %v5583_v15 = vld [vmem:[%s11677_s9 + $0x160] sm:$0xff] }
 0x626   : > { %v5219_v52 = vsel %vm12665_vm7, %v5168_v29, %v5217_v46  ;;  %v5570_v46 = vld [vmem:[%s11677_s9 + $0xf8] sm:$0xff]  ;;  %v6555_v22 = vpack.c.bf16 %v5565_v11, %v5563_v0  ;;  %v5573_v35 = vld [vmem:[%s11677_s9 + $0x110] sm:$0xff]  ;;  %v6569_v6 = vpack.c.bf16 %v5582_v2, %v5580_v43  ;;  %v5588_v0 = vld [vmem:[%s11677_s9 + $0x188] sm:$0xff] }
 0x627   : > { %v11007_v12 = vmax.f32 %v4852_v53, %v5219_v52  ;;  %6544 = vmatpush1.bf16.msra.mxu0 %v6543_v37  ;;  %v5281_v53 = vld [vmem:[%s11675_s7 + $0x170] sm:$0xff]  ;;  %v5286_v29 = vld [vmem:[%s11675_s7 + $0x198] sm:$0xff]  ;;  %v6557_v28 = vpack.c.bf16 %v5570_v46, %v5568_v32  ;;  %v5572_v52 = vld [vmem:[%s11677_s9 + $0x108] sm:$0xff]  ;;  %v6563_v20 = vpack.c.bf16 %v5573_v35, %v5571_v16 }
 0x628   : > { %6546 = vmatprep.subr.bf16.mxu0 %v6545_v5  ;;  %v6487_v23 = vpack.c.bf16 %v5281_v53, %v5277_v56  ;;  %v6489_v47 = vpack.c.bf16 %v5290_v58, %v5286_v29  ;;  %v5297_v55 = vld [vmem:[%s11675_s7 + $0x1f0] sm:$0xff]  ;;  %v5314_v1 = vld [vmem:[%s11675_s7 + $0x278] sm:$0xff]  ;;  %v5587_v58 = vld [vmem:[%s11677_s9 + $0x180] sm:$0xff] }
 0x629   : > { %5231 = vst [vmem:[#allocation2] sm:$0xff] %v11007_v12  ;;  %5450 = vmatmul.mubr.f32.vlgmr.msra.gmra.mrb[0].mxu1 %v11007_v12  ;;  %v5577_v37 = vld [vmem:[%s11677_s9 + $0x130] sm:$0xff]  ;;  %v6495_v5 = vpack.c.bf16 %v5297_v55, %v5293_v3  ;;  %v5586_v31 = vld [vmem:[%s11677_s9 + $0x178] sm:$0xff]  ;;  %v5592_v14 = vld [vmem:[%s11677_s9 + $0x1a8] sm:$0xff] }
 0x62a   : > { %6468 = vmatpush1.bf16.msra.mxu1 %v6467_v40  ;;  %5520 = vmatprep.mubr.f32.mxu1 %v12666_v45  ;;  %v5574_v40 = vld [vmem:[%s11677_s9 + $0x118] sm:$0xff]  ;;  %v6493_v45 = vpack.c.bf16 %v5298_v33, %v5294_v21  ;;  %v5301_v30 = vld [vmem:[%s11675_s7 + $0x210] sm:$0xff]  ;;  %v6567_v48 = vpack.c.bf16 %v5577_v37, %v5575_v24  ;;  %v6573_v26 = vpack.c.bf16 %v5586_v31, %v5584_v63  ;;  %v5591_v33 = vld [vmem:[%s11677_s9 + $0x1a0] sm:$0xff] }
 0x62b   : > { %6470 = vmatprep.subr.bf16.mxu1 %v6469_v42  ;;  %6548 = vmatpush1.bf16.msra.mxu0 %v6547_v8  ;;  %v5289_v42 = vld [vmem:[%s11675_s7 + $0x1b0] sm:$0xff]  ;;  %v6561_v13 = vpack.c.bf16 %v5574_v40, %v5572_v52  ;;  %v5322_v36 = vld [vmem:[%s11675_s7 + $0x2b8] sm:$0xff] }
 0x62c   : > { %6550 = vmatprep.subr.bf16.mxu0 %v6549_v19  ;;  %v6491_v54 = vpack.c.bf16 %v5289_v42, %v5285_v10  ;;  %v5305_v50 = vld [vmem:[%s11675_s7 + $0x230] sm:$0xff]  ;;  %v5590_v11 = vld [vmem:[%s11677_s9 + $0x198] sm:$0xff] }
 0x62d   : > { %v5581_v8 = vld [vmem:[%s11677_s9 + $0x150] sm:$0xff]  ;;  %v6499_v19 = vpack.c.bf16 %v5305_v50, %v5301_v30  ;;  %v5330_v56 = vld [vmem:[%s11675_s7 + $0x2f8] sm:$0xff]  ;;  %v6577_v29 = vpack.c.bf16 %v5590_v11, %v5588_v0  ;;  %v5827_v0 = vld [vmem:[%s11679_s11] sm:$0xff] }
 0x62e   : > { %6472 = vmatpush1.bf16.msra.mxu1 %v6471_v9  ;;  %v5578_v9 = vld [vmem:[%s11677_s9 + $0x138] sm:$0xff]  ;;  %v5309_v38 = vld [vmem:[%s11675_s7 + $0x250] sm:$0xff]  ;;  %v6571_v44 = vpack.c.bf16 %v5581_v8, %v5579_v25 }
 0x62f   : > { %6474 = vmatprep.subr.bf16.mxu1 %v6473_v51  ;;  %6552 = vmatpush1.bf16.msra.mxu0 %v6551_v60  ;;  %v5302_v51 = vld [vmem:[%s11675_s7 + $0x218] sm:$0xff]  ;;  %v6565_v57 = vpack.c.bf16 %v5578_v9, %v5576_v4  ;;  %v5313_v7 = vld [vmem:[%s11675_s7 + $0x270] sm:$0xff] }
 0x630   : > { %6554 = vmatprep.subr.bf16.mxu0 %v6553_v61  ;;  %v5585_v60 = vld [vmem:[%s11677_s9 + $0x170] sm:$0xff]  ;;  %v6503_v61 = vpack.c.bf16 %v5313_v7, %v5309_v38  ;;  %v5594_v39 = vld [vmem:[%s11677_s9 + $0x1b8] sm:$0xff]  ;;  %v5599_v7 = vld [vmem:[%s11677_s9 + $0x1e0] sm:$0xff] }
 0x631   : > { %v5317_v32 = vld [vmem:[%s11675_s7 + $0x290] sm:$0xff]  ;;  %v6575_v53 = vpack.c.bf16 %v5585_v60, %v5583_v15  ;;  %v5338_v10 = vld [vmem:[%s11675_s7 + $0x338] sm:$0xff]  ;;  %v6581_v21 = vpack.c.bf16 %v5594_v39, %v5592_v14  ;;  %v5843_v60 = vld [vmem:[%s11679_s11 + $0x80] sm:$0xff] }
 0x632   : > { %6476 = vmatpush1.bf16.msra.mxu1 %v6475_v18  ;;  %v6497_v18 = vpack.c.bf16 %v5306_v27, %v5302_v51  ;;  %v5321_v46 = vld [vmem:[%s11675_s7 + $0x2b0] sm:$0xff]  ;;  %v5342_v4 = vld [vmem:[%s11675_s7 + $0x358] sm:$0xff]  ;;  %v5831_v39 = vld [vmem:[%s11679_s11 + $0x20] sm:$0xff] }
 0x633   : > { %6478 = vmatprep.subr.bf16.mxu1 %v6477_v59  ;;  %6556 = vmatpush1.bf16.msra.mxu0 %v6555_v22  ;;  %v5310_v59 = vld [vmem:[%s11675_s7 + $0x258] sm:$0xff]  ;;  %v5589_v22 = vld [vmem:[%s11677_s9 + $0x190] sm:$0xff] }
 0x634   : > { %6558 = vmatprep.subr.bf16.mxu0 %v6557_v28  ;;  %v6507_v28 = vpack.c.bf16 %v5321_v46, %v5317_v32  ;;  %v5325_v52 = vld [vmem:[%s11675_s7 + $0x2d0] sm:$0xff]  ;;  %v6579_v42 = vpack.c.bf16 %v5589_v22, %v5587_v58  ;;  %v5346_v9 = vld [vmem:[%s11675_s7 + $0x378] sm:$0xff]  ;;  %v5847_v58 = vld [vmem:[%s11679_s11 + $0xa0] sm:$0xff] }
 0x635   : > { %v5329_v40 = vld [vmem:[%s11675_s7 + $0x2f0] sm:$0xff]  ;;  %v6517_v55 = vpack.c.bf16 %v5346_v9, %v5342_v4  ;;  %v5358_v2 = vld [vmem:[%s11675_s7 + $0x3d8] sm:$0xff]  ;;  %v5848_v22 = vld [vmem:[%s11679_s11 + $0xa8] sm:$0xff] }
 0x636   : > { %6480 = vmatpush1.bf16.msra.mxu1 %v6479_v62  ;;  %v6501_v62 = vpack.c.bf16 %v5314_v1, %v5310_v59  ;;  %v5333_v35 = vld [vmem:[%s11675_s7 + $0x310] sm:$0xff]  ;;  %v5598_v25 = vld [vmem:[%s11677_s9 + $0x1d8] sm:$0xff]  ;;  %v6665_v14 = vpack.c.bf16 %v5848_v22, %v5847_v58  ;;  %v5624_v58 = vld [vmem:[%s11677_s9 + $0x2a8] sm:$0xff] }
 0x637   : > { %6482 = vmatprep.subr.bf16.mxu1 %v6481_v49  ;;  %6560 = vmatpush1.bf16.msra.mxu0 %v6559_v17  ;;  %v5318_v49 = vld [vmem:[%s11675_s7 + $0x298] sm:$0xff]  ;;  %v5593_v17 = vld [vmem:[%s11677_s9 + $0x1b0] sm:$0xff] }
 0x638   : > { %6562 = vmatprep.subr.bf16.mxu0 %v6561_v13  ;;  %v6511_v13 = vpack.c.bf16 %v5329_v40, %v5325_v52  ;;  %v5341_v51 = vld [vmem:[%s11675_s7 + $0x350] sm:$0xff]  ;;  %v5846_v46 = vld [vmem:[%s11679_s11 + $0x98] sm:$0xff] }
 0x639   : > { %v5345_v27 = vld [vmem:[%s11675_s7 + $0x370] sm:$0xff]  ;;  %v5850_v40 = vld [vmem:[%s11679_s11 + $0xb8] sm:$0xff] }
 0x63a   : > { %6484 = vmatpush1.bf16.msra.mxu1 %v6483_v34  ;;  %v6505_v34 = vpack.c.bf16 %v5322_v36, %v5318_v49  ;;  %v6519_v24 = vpack.c.bf16 %v5345_v27, %v5341_v51  ;;  %v5353_v43 = vld [vmem:[%s11675_s7 + $0x3b0] sm:$0xff]  ;;  %v5854_v9 = vld [vmem:[%s11679_s11 + $0xd8] sm:$0xff] }
 0x63b   : > { %6486 = vmatprep.subr.bf16.mxu1 %v6485_v41  ;;  %6564 = vmatpush1.bf16.msra.mxu0 %v6563_v20  ;;  %v5326_v41 = vld [vmem:[%s11675_s7 + $0x2d8] sm:$0xff]  ;;  %v5357_v59 = vld [vmem:[%s11675_s7 + $0x3d0] sm:$0xff] }
 0x63c   : > { %6566 = vmatprep.subr.bf16.mxu0 %v6565_v57  ;;  %v5350_v20 = vld [vmem:[%s11675_s7 + $0x398] sm:$0xff]  ;;  %v5361_v1 = vld [vmem:[%s11675_s7 + $0x3f0] sm:$0xff] }
 0x63d   : > { %v5354_v57 = vld [vmem:[%s11675_s7 + $0x3b8] sm:$0xff]  ;;  %v5597_v63 = vld [vmem:[%s11677_s9 + $0x1d0] sm:$0xff] }
 0x63e   : > { %6488 = vmatpush1.bf16.msra.mxu1 %v6487_v23  ;;  %v6509_v23 = vpack.c.bf16 %v5330_v56, %v5326_v41  ;;  %v6521_v37 = vpack.c.bf16 %v5354_v57, %v5350_v20  ;;  %v5601_v49 = vld [vmem:[%s11677_s9 + $0x1f0] sm:$0xff]  ;;  %v5838_v51 = vld [vmem:[%s11679_s11 + $0x58] sm:$0xff]  ;;  %v11418_v20 = vld [vmem:[%s12667_s18] sm:$0xf]  ;;  %s12671_s18 = sld [smem:[#allocation287_spill]] }
 0x63f   : > { %6490 = vmatprep.subr.bf16.mxu1 %v6489_v47  ;;  %6568 = vmatpush1.bf16.msra.mxu0 %v6567_v48  ;;  %v5334_v47 = vld [vmem:[%s11675_s7 + $0x318] sm:$0xff]  ;;  %v6527_v48 = vpack.c.bf16 %v5361_v1, %v5357_v59  ;;  %v6591_v36 = vpack.c.bf16 %v5601_v49, %v5599_v7  ;;  %v5845_v32 = vld [vmem:[%s11679_s11 + $0x90] sm:$0xff] }
 0x640   : > { %6570 = vmatprep.subr.bf16.mxu0 %v6569_v6  ;;  %v6513_v16 = vpack.c.bf16 %v5338_v10, %v5334_v47  ;;  %v5596_v6 = vld [vmem:[%s11677_s9 + $0x1c8] sm:$0xff]  ;;  %v6661_v56 = vpack.c.bf16 %v5846_v46, %v5845_v32  ;;  %v5849_v52 = vld [vmem:[%s11679_s11 + $0xb0] sm:$0xff]  ;;  %v12668_v57 = vld [vmem:[#allocation6_spill] sm:$0xff] }
 0x641   : > { %v6585_v8 = vpack.c.bf16 %v5598_v25, %v5596_v6  ;;  %v6669_v10 = vpack.c.bf16 %v5850_v40, %v5849_v52  ;;  %v5853_v4 = vld [vmem:[%s11679_s11 + $0xd0] sm:$0xff]  ;;  %v5610_v6 = vld [vmem:[%s11677_s9 + $0x238] sm:$0xff]  ;;  %v5620_v32 = vld [vmem:[%s11677_s9 + $0x288] sm:$0xff] }
 0x642   : > { %6492 = vmatpush1.bf16.msra.mxu1 %v6491_v54  ;;  %v5337_v54 = vld [vmem:[%s11675_s7 + $0x330] sm:$0xff]  ;;  %v5614_v7 = vld [vmem:[%s11677_s9 + $0x258] sm:$0xff]  ;;  %v5628_v52 = vld [vmem:[%s11677_s9 + $0x2c8] sm:$0xff] }
 0x643   : > { %6494 = vmatprep.subr.bf16.mxu1 %v6493_v45  ;;  %6572 = vmatpush1.bf16.msra.mxu0 %v6571_v44  ;;  %v6583_v45 = vpack.c.bf16 %v5593_v17, %v5591_v33  ;;  %v6515_v3 = vpack.c.bf16 %v5337_v54, %v5333_v35  ;;  %v5604_v44 = vld [vmem:[%s11677_s9 + $0x208] sm:$0xff]  ;;  %v5851_v33 = vld [vmem:[%s11679_s11 + $0xc0] sm:$0xff]  ;;  %v5605_v59 = vld [vmem:[%s11677_s9 + $0x210] sm:$0xff] }
 0x644   : > { %6574 = vmatprep.subr.bf16.mxu0 %v6573_v26  ;;  %v5606_v26 = vld [vmem:[%s11677_s9 + $0x218] sm:$0xff]  ;;  %v5852_v17 = vld [vmem:[%s11679_s11 + $0xc8] sm:$0xff]  ;;  %v5835_v35 = vld [vmem:[%s11679_s11 + $0x40] sm:$0xff] }
 0x645   : > { %v6593_v15 = vpack.c.bf16 %v5606_v26, %v5604_v44  ;;  %v5836_v54 = vld [vmem:[%s11679_s11 + $0x48] sm:$0xff]  ;;  %v5611_v44 = vld [vmem:[%s11677_s9 + $0x240] sm:$0xff]  ;;  %v5613_v26 = vld [vmem:[%s11677_s9 + $0x250] sm:$0xff] }
 0x646   : > { %6496 = vmatpush1.bf16.msra.mxu1 %v6495_v5  ;;  %v5349_v5 = vld [vmem:[%s11675_s7 + $0x390] sm:$0xff]  ;;  %v5622_v46 = vld [vmem:[%s11677_s9 + $0x298] sm:$0xff] }
 0x647   : > { %6498 = vmatprep.subr.bf16.mxu1 %v6497_v18  ;;  %6576 = vmatpush1.bf16.msra.mxu0 %v6575_v53  ;;  %v5362_v18 = vld [vmem:[%s11675_s7 + $0x3f8] sm:$0xff]  ;;  %v6523_v30 = vpack.c.bf16 %v5353_v43, %v5349_v5  ;;  %v5829_v53 = vld [vmem:[%s11679_s11 + $0x10] sm:$0xff] }
 0x648   : > { %6578 = vmatprep.subr.bf16.mxu0 %v6577_v29  ;;  %v6525_v50 = vpack.c.bf16 %v5362_v18, %v5358_v2  ;;  %v5830_v29 = vld [vmem:[%s11679_s11 + $0x18] sm:$0xff] }
 0x649   : > { %v5626_v22 = vld [vmem:[%s11677_s9 + $0x2b8] sm:$0xff] }
 0x64a   : > { %6500 = vmatpush1.bf16.msra.mxu1 %v6499_v19  ;;  %v5595_v19 = vld [vmem:[%s11677_s9 + $0x1c0] sm:$0xff]  ;;  %v5630_v40 = vld [vmem:[%s11677_s9 + $0x2d8] sm:$0xff] }
 0x64b   : > { %6502 = vmatprep.subr.bf16.mxu1 %v6501_v62  ;;  %6580 = vmatpush1.bf16.msra.mxu0 %v6579_v42  ;;  %v6587_v31 = vpack.c.bf16 %v5597_v63, %v5595_v19  ;;  %v5602_v62 = vld [vmem:[%s11677_s9 + $0x1f8] sm:$0xff]  ;;  %v5833_v42 = vld [vmem:[%s11679_s11 + $0x30] sm:$0xff] }
 0x64c   : > { %6582 = vmatprep.subr.bf16.mxu0 %v6581_v21  ;;  %v5834_v21 = vld [vmem:[%s11679_s11 + $0x38] sm:$0xff] }
 0x64e   : > { %6504 = vmatpush1.bf16.msra.mxu1 %v6503_v61  ;;  %v5844_v61 = vld [vmem:[%s11679_s11 + $0x88] sm:$0xff] }
 0x64f   : > { %6506 = vmatprep.subr.bf16.mxu1 %v6505_v34  ;;  %6584 = vmatpush1.bf16.msra.mxu0 %v6583_v45  ;;  %v6657_v11 = vpack.c.bf16 %v5844_v61, %v5843_v60  ;;  %v5828_v34 = vld [vmem:[%s11679_s11 + $0x8] sm:$0xff]  ;;  %v6675_v45 = vpack.c.bf16 %v5836_v54, %v5835_v35  ;;  %v5618_v60 = vld [vmem:[%s11677_s9 + $0x278] sm:$0xff]  ;;  %v6603_v61 = vpack.c.bf16 %v5613_v26, %v5611_v44  ;;  %v5631_v35 = vld [vmem:[%s11677_s9 + $0x2e0] sm:$0xff] }
 0x650   : > { %6586 = vmatprep.subr.bf16.mxu0 %v6585_v8  ;;  %v6659_v41 = vpack.c.bf16 %v5828_v34, %v5827_v0  ;;  %v5617_v34 = vld [vmem:[%s11677_s9 + $0x270] sm:$0xff]  ;;  %v5656_v26 = vld [vmem:[%s11677_s9 + $0x3a8] sm:$0xff] }
 0x651   : > { %v5633_v54 = vld [vmem:[%s11677_s9 + $0x2f0] sm:$0xff] }
 0x652   : > { %6508 = vmatpush1.bf16.msra.mxu1 %v6507_v28  ;;  %v6663_v28 = vpack.c.bf16 %v5830_v29, %v5829_v53  ;;  %v5619_v53 = vld [vmem:[%s11677_s9 + $0x280] sm:$0xff]  ;;  %v5621_v29 = vld [vmem:[%s11677_s9 + $0x290] sm:$0xff] }
 0x653   : > { %6510 = vmatprep.subr.bf16.mxu1 %v6509_v23  ;;  %6588 = vmatpush1.bf16.msra.mxu0 %v6587_v31  ;;  %v5832_v23 = vld [vmem:[%s11679_s11 + $0x28] sm:$0xff]  ;;  %v5607_v31 = vld [vmem:[%s11677_s9 + $0x220] sm:$0xff]  ;;  %v5653_v44 = vld [vmem:[%s11677_s9 + $0x390] sm:$0xff] }
 0x654   : > { %v6667_v47 = vpack.c.bf16 %v5832_v23, %v5831_v39  ;;  %v5623_v39 = vld [vmem:[%s11677_s9 + $0x2a0] sm:$0xff]  ;;  %v5625_v23 = vld [vmem:[%s11677_s9 + $0x2b0] sm:$0xff] }
 0x656   : > { %6512 = vmatpush1.bf16.msra.mxu1 %v6511_v13  ;;  %v6671_v13 = vpack.c.bf16 %v5834_v21, %v5833_v42  ;;  %v5627_v42 = vld [vmem:[%s11677_s9 + $0x2c0] sm:$0xff]  ;;  %v5629_v21 = vld [vmem:[%s11677_s9 + $0x2d0] sm:$0xff] }
 0x657   : > { %6514 = vmatprep.subr.bf16.mxu1 %v6513_v16  ;;  %v6673_v16 = vpack.c.bf16 %v5852_v17, %v5851_v33  ;;  %v5632_v33 = vld [vmem:[%s11677_s9 + $0x2e8] sm:$0xff]  ;;  %v5634_v17 = vld [vmem:[%s11677_s9 + $0x2f8] sm:$0xff] }
 0x65a   : > { %6516 = vmatpush1.bf16.msra.mxu1 %v6515_v3  ;;  %v6677_v3 = vpack.c.bf16 %v5854_v9, %v5853_v4  ;;  %v5636_v4 = vld [vmem:[%s11677_s9 + $0x308] sm:$0xff]  ;;  %v5638_v9 = vld [vmem:[%s11677_s9 + $0x318] sm:$0xff] }
 0x65b   : > { %6518 = vmatprep.subr.bf16.mxu1 %v6517_v55  ;;  %v5837_v55 = vld [vmem:[%s11679_s11 + $0x50] sm:$0xff] }
 0x65c   : > { %v6679_v27 = vpack.c.bf16 %v5838_v51, %v5837_v55  ;;  %v5635_v55 = vld [vmem:[%s11677_s9 + $0x300] sm:$0xff]  ;;  %v5637_v51 = vld [vmem:[%s11677_s9 + $0x310] sm:$0xff] }
 0x65e   : > { %6520 = vmatpush1.bf16.msra.mxu1 %v6519_v24  ;;  %v5368_v24 = vrot.slane %v11418_v20, %v12668_v57 }
 0x65f   : > { %6522 = vmatprep.subr.bf16.mxu1 %v6521_v37  ;;  %v12669_v37 = vld [vmem:[#allocation7_spill] sm:$0xff] }
 0x660   : > { %v5372_v5 = vrot.slane %v11418_v20, %v12669_v37 }
 0x662   : > { %6524 = vmatpush1.bf16.msra.mxu1 %v6523_v30 }
 0x663   : > { %6526 = vmatprep.subr.bf16.mxu1 %v6525_v50  ;;  %v5603_v50 = vld [vmem:[%s11677_s9 + $0x200] sm:$0xff] }
 0x664   : > { %v6595_v8 = vpack.c.bf16 %v5605_v59, %v5603_v50  ;;  %v5646_v50 = vld [vmem:[%s11677_s9 + $0x358] sm:$0xff] }
 0x666   : > { %6528 = vmatpush1.bf16.msra.mxu1 %v6527_v48  ;;  %v5608_v48 = vld [vmem:[%s11677_s9 + $0x228] sm:$0xff] }
 0x667   : > { %6658 = vmatprep.subr.bf16.mxu1 %v6657_v11  ;;  %v6597_v63 = vpack.c.bf16 %v5610_v6, %v5608_v48  ;;  %v5615_v11 = vld [vmem:[%s11677_s9 + $0x260] sm:$0xff]  ;;  %v5645_v6 = vld [vmem:[%s11677_s9 + $0x350] sm:$0xff] }
 0x668   : > { %v5643_v48 = vld [vmem:[%s11677_s9 + $0x340] sm:$0xff] }
 0x669   : > { %5521 = vmatmul.mubr.f32.vlgmr.msra.gmra.mrb[2].mxu1 %v11007_v12  ;;  %v5600_v12 = vld [vmem:[%s11677_s9 + $0x1e8] sm:$0xff] }
 0x66a   : > { %v6589_v38 = vpack.c.bf16 %v5602_v62, %v5600_v12  ;;  %6660 = vmatpush3.bf16.msra.mxu1 %v6659_v41  ;;  %v5609_v12 = vld [vmem:[%s11677_s9 + $0x230] sm:$0xff]  ;;  %v6607_v41 = vpack.c.bf16 %v5617_v34, %v5615_v11  ;;  %v5660_v34 = vld [vmem:[%s11677_s9 + $0x3c8] sm:$0xff] }
 0x66b   : > { %6662 = vmatprep.subr.bf16.mxu1 %v6661_v56  ;;  %v6599_v49 = vpack.c.bf16 %v5609_v12, %v5607_v31  ;;  %v6609_v56 = vpack.c.bf16 %v5622_v46, %v5620_v32  ;;  %v5647_v31 = vld [vmem:[%s11677_s9 + $0x360] sm:$0xff]  ;;  %v5649_v12 = vld [vmem:[%s11677_s9 + $0x370] sm:$0xff]  ;;  %v5662_v32 = vld [vmem:[%s11677_s9 + $0x3d8] sm:$0xff] }
 0x66c   : > { %6590 = vmatprep.subr.bf16.mxu0 %v6589_v38  ;;  %v5612_v38 = vld [vmem:[%s11677_s9 + $0x248] sm:$0xff]  ;;  %v5657_v11 = vld [vmem:[%s11677_s9 + $0x3b0] sm:$0xff] }
 0x66d   : > { %6592 = vmatpush1.bf16.msra.mxu0 %v6591_v36  ;;  %v6601_v36 = vpack.c.bf16 %v5614_v7, %v5612_v38  ;;  %v5654_v38 = vld [vmem:[%s11677_s9 + $0x398] sm:$0xff]  ;;  %v6639_v7 = vpack.c.bf16 %v5649_v12, %v5647_v31 }
 0x66e   : > { %6594 = vmatprep.subr.bf16.mxu0 %v6593_v15  ;;  %6664 = vmatpush3.bf16.msra.mxu1 %v6663_v28  ;;  %v5616_v15 = vld [vmem:[%s11677_s9 + $0x268] sm:$0xff]  ;;  %v6611_v28 = vpack.c.bf16 %v5621_v29, %v5619_v53  ;;  %v6649_v53 = vpack.c.bf16 %v5662_v32, %v5660_v34 }
 0x66f   : > { %6666 = vmatprep.subr.bf16.mxu1 %v6665_v14  ;;  %v6605_v0 = vpack.c.bf16 %v5618_v60, %v5616_v15  ;;  %v6613_v14 = vpack.c.bf16 %v5626_v22, %v5624_v58  ;;  %v5658_v15 = vld [vmem:[%s11677_s9 + $0x3b8] sm:$0xff]  ;;  %v5659_v58 = vld [vmem:[%s11677_s9 + $0x3c0] sm:$0xff]  ;;  %v5661_v22 = vld [vmem:[%s11677_s9 + $0x3d0] sm:$0xff] }
 0x672   : > { %6668 = vmatpush3.bf16.msra.mxu1 %v6667_v47  ;;  %v6615_v47 = vpack.c.bf16 %v5625_v23, %v5623_v39  ;;  %v6651_v23 = vpack.c.bf16 %v5661_v22, %v5659_v58 }
 0x673   : > { %6670 = vmatprep.subr.bf16.mxu1 %v6669_v10  ;;  %v6617_v10 = vpack.c.bf16 %v5630_v40, %v5628_v52 }
 0x676   : > { %6672 = vmatpush3.bf16.msra.mxu1 %v6671_v13  ;;  %v6619_v13 = vpack.c.bf16 %v5629_v21, %v5627_v42 }
 0x677   : > { %6674 = vmatprep.subr.bf16.mxu1 %v6673_v16  ;;  %v6621_v16 = vpack.c.bf16 %v5634_v17, %v5632_v33 }
 0x67a   : > { %6676 = vmatpush3.bf16.msra.mxu1 %v6675_v45  ;;  %v6623_v45 = vpack.c.bf16 %v5633_v54, %v5631_v35 }
 0x67b   : > { %6678 = vmatprep.subr.bf16.mxu1 %v6677_v3  ;;  %v6625_v3 = vpack.c.bf16 %v5638_v9, %v5636_v4  ;;  %v5855_v4 = vld [vmem:[%s11679_s11 + $0xe0] sm:$0xff]  ;;  %v5856_v9 = vld [vmem:[%s11679_s11 + $0xe8] sm:$0xff] }
 0x67e   : > { %6680 = vmatpush3.bf16.msra.mxu1 %v6679_v27  ;;  %v5640_v27 = vld [vmem:[%s11677_s9 + $0x328] sm:$0xff] }
 0x6fc   : > { %v5451_v43 = vpop.f32.mrb[0].mxu1 }
 0x6fd   : > { %v5452_v2 = vadd.f32 %v5451_v43, %v5368_v24  ;;  %v5453_v18 = vpop.f32.mrb[1].mxu1  ;;  %v5642_v24 = vld [vmem:[%s11677_s9 + $0x338] sm:$0xff] }
 0x6fe   : > { %v5454_v30 = vadd.f32 %v5453_v18, %v5372_v5  ;;  %v6627_v5 = vpack.c.bf16 %v5637_v51, %v5635_v55  ;;  %v6629_v43 = vpack.c.bf16 %v5642_v24, %v5640_v27  ;;  %v5641_v18 = vld [vmem:[%s11677_s9 + $0x330] sm:$0xff]  ;;  %v5840_v55 = vld [vmem:[%s11679_s11 + $0x68] sm:$0xff]  ;;  %v5858_v24 = vld [vmem:[%s11679_s11 + $0xf8] sm:$0xff] }
 0x6ff   : > { %v5531_v1 = vmul.f32 0.01, %v5452_v2  ;;  %vm5527_vm4 = vcmp.ge.f32.partialorder %v5452_v2, 0.0  ;;  %v5857_v27 = vld [vmem:[%s11679_s11 + $0xf0] sm:$0xff] }
 0x700   : > { %vm5528_vm8 = vcmp.ge.f32.partialorder %v5454_v30, 0.0  ;;  %v5532_v25 = vmul.f32 0.01, %v5454_v30 }
 0x701   : > { %v5535_v62 = vsel %vm5527_vm4, %v5452_v2, %v5531_v1  ;;  %v5639_v2 = vld [vmem:[%s11677_s9 + $0x320] sm:$0xff] }
 0x702   : > { %v5536_v19 = vsel %vm5528_vm8, %v5454_v30, %v5532_v25  ;;  %v5644_v30 = vld [vmem:[%s11677_s9 + $0x348] sm:$0xff]  ;;  %v6631_v59 = vpack.c.bf16 %v5641_v18, %v5639_v2  ;;  %v5842_v2 = vld [vmem:[%s11679_s11 + $0x78] sm:$0xff] }
 0x703   : > { %5743 = vmatprep.mubr.f32.mxu0 %v5536_v19  ;;  %v6633_v1 = vpack.c.bf16 %v5646_v50, %v5644_v30  ;;  %v5648_v25 = vld [vmem:[%s11677_s9 + $0x368] sm:$0xff]  ;;  %v6635_v19 = vpack.c.bf16 %v5645_v6, %v5643_v48  ;;  %v5667_v30 = vld [vmem:[%s12671_s18] sm:$0x3] }
 0x704   : > { %5744 = vmatmul.mubr.f32.vlgmr.msra.gmra.mrb[0].mxu0 %v5535_v62  ;;  %v5652_v62 = vld [vmem:[%s11677_s9 + $0x388] sm:$0xff]  ;;  %v5672_v50 = vrot.slane %v5667_v30, %v12668_v57  ;;  %v6164_v57 = vld [vmem:[%s12672_s10] ss:$0 sm:$0xff] }
 0x705   : > { %6596 = vmatpush1.bf16.msra.mxu0 %v6595_v8  ;;  %v5650_v8 = vld [vmem:[%s11677_s9 + $0x378] sm:$0xff] }
 0x706   : > { %6598 = vmatprep.subr.bf16.mxu0 %v6597_v63  ;;  %v6637_v63 = vpack.c.bf16 %v5650_v8, %v5648_v25 }
 0x709   : > { %6600 = vmatpush1.bf16.msra.mxu0 %v6599_v49  ;;  %v6641_v49 = vpack.c.bf16 %v5654_v38, %v5652_v62 }
 0x70a   : > { %6602 = vmatprep.subr.bf16.mxu0 %v6601_v36  ;;  %v5651_v36 = vld [vmem:[%s11677_s9 + $0x380] sm:$0xff] }
 0x70b   : > { %v6643_v60 = vpack.c.bf16 %v5653_v44, %v5651_v36 }
 0x70d   : > { %6604 = vmatpush1.bf16.msra.mxu0 %v6603_v61  ;;  %v6645_v61 = vpack.c.bf16 %v5658_v15, %v5656_v26 }
 0x70e   : > { %6606 = vmatprep.subr.bf16.mxu0 %v6605_v0  ;;  %v5655_v0 = vld [vmem:[%s11677_s9 + $0x3a0] sm:$0xff] }
 0x70f   : > { %v6647_v46 = vpack.c.bf16 %v5657_v11, %v5655_v0 }
 0x711   : > { %6608 = vmatpush1.bf16.msra.mxu0 %v6607_v41  ;;  %v12670_v41 = vld [vmem:[#allocation5_spill] sm:$0xff] }
 0x712   : > { %6610 = vmatprep.subr.bf16.mxu0 %v6609_v56  ;;  %v5375_v56 = vsub.s32 2, %v12670_v41  ;;  %v5379_v29 = vsub.s32 3, %v12670_v41 }
 0x714   : > { %v5376_v39 = vrot.slane %v11418_v20, %v5375_v56  ;;  %v5380_v52 = vrot.slane %v11418_v20, %v5379_v29 }
 0x715   : > { %6612 = vmatpush1.bf16.msra.mxu0 %v6611_v28  ;;  %v5664_v28 = vld [vmem:[%s11677_s9 + $0x3e8] sm:$0xff] }
 0x716   : > { %6614 = vmatprep.subr.bf16.mxu0 %v6613_v14  ;;  %v5666_v14 = vld [vmem:[%s11677_s9 + $0x3f8] sm:$0xff] }
 0x717   : > { %v6653_v40 = vpack.c.bf16 %v5666_v14, %v5664_v28 }
 0x719   : > { %6616 = vmatpush1.bf16.msra.mxu0 %v6615_v47  ;;  %v5663_v47 = vld [vmem:[%s11677_s9 + $0x3e0] sm:$0xff] }
 0x71a   : > { %6618 = vmatprep.subr.bf16.mxu0 %v6617_v10  ;;  %v5665_v10 = vld [vmem:[%s11677_s9 + $0x3f0] sm:$0xff] }
 0x71b   : > { %v6655_v17 = vpack.c.bf16 %v5665_v10, %v5663_v47 }
 0x71d   : > { %6620 = vmatpush1.bf16.msra.mxu0 %v6619_v13 }
 0x71e   : > { %6622 = vmatprep.subr.bf16.mxu0 %v6621_v16 }
 0x721   : > { %6624 = vmatpush1.bf16.msra.mxu0 %v6623_v45  ;;  %v6681_v45 = vpack.c.bf16 %v5856_v9, %v5855_v4 }
 0x722   : > { %6626 = vmatprep.subr.bf16.mxu0 %v6625_v3  ;;  %v5839_v3 = vld [vmem:[%s11679_s11 + $0x60] sm:$0xff] }
 0x723   : > { %v6683_v51 = vpack.c.bf16 %v5840_v55, %v5839_v3  ;;  %6682 = vmatprep.subr.bf16.mxu1 %v6681_v45 }
 0x725   : > { %6628 = vmatpush1.bf16.msra.mxu0 %v6627_v5  ;;  %6684 = vmatpush3.bf16.msra.mxu1 %v6683_v51  ;;  %v6685_v5 = vpack.c.bf16 %v5858_v24, %v5857_v27 }
 0x726   : > { %6630 = vmatprep.subr.bf16.mxu0 %v6629_v43  ;;  %v5841_v43 = vld [vmem:[%s11679_s11 + $0x70] sm:$0xff] }
 0x727   : > { %v6687_v18 = vpack.c.bf16 %v5842_v2, %v5841_v43  ;;  %6686 = vmatprep.subr.bf16.mxu1 %v6685_v5 }
 0x729   : > { %6632 = vmatpush1.bf16.msra.mxu0 %v6631_v59  ;;  %6688 = vmatpush3.bf16.msra.mxu1 %v6687_v18  ;;  %v5676_v59 = vrot.slane %v5667_v30, %v12669_v37 }
 0x72a   : > { %6634 = vmatprep.subr.bf16.mxu0 %v6633_v1 }
 0x72d   : > { %6636 = vmatpush1.bf16.msra.mxu0 %v6635_v19 }
 0x72e   : > { %6638 = vmatprep.subr.bf16.mxu0 %v6637_v63 }
 0x731   : > { %6640 = vmatpush1.bf16.msra.mxu0 %v6639_v7 }
 0x732   : > { %6642 = vmatprep.subr.bf16.mxu0 %v6641_v49 }
 0x735   : > { %6644 = vmatpush1.bf16.msra.mxu0 %v6643_v60 }
 0x736   : > { %6646 = vmatprep.subr.bf16.mxu0 %v6645_v61 }
 0x739   : > { %6648 = vmatpush1.bf16.msra.mxu0 %v6647_v46 }
 0x73a   : > { %6650 = vmatprep.subr.bf16.mxu0 %v6649_v53 }
 0x73c   : > { %v5522_v42 = vpop.f32.mrb[2].mxu1 }
 0x73d   : > { %v5523_v21 = vadd.f32 %v5522_v42, %v5376_v39  ;;  %v5524_v33 = vpop.f32.mrb[3].mxu1  ;;  %6652 = vmatpush1.bf16.msra.mxu0 %v6651_v23 }
 0x73e   : > { %v5525_v13 = vadd.f32 %v5524_v33, %v5380_v52  ;;  %6654 = vmatprep.subr.bf16.mxu0 %v6653_v40 }
 0x73f   : > { %v5533_v16 = vmul.f32 0.01, %v5523_v21  ;;  %vm5529_vm5 = vcmp.ge.f32.partialorder %v5523_v21, 0.0 }
 0x740   : > { %v5534_v35 = vmul.f32 0.01, %v5525_v13  ;;  %vm5530_vm10 = vcmp.ge.f32.partialorder %v5525_v13, 0.0 }
 0x741   : > { %6656 = vmatpush1.bf16.msra.mxu0 %v6655_v17  ;;  %v5537_v54 = vsel %vm5529_vm5, %v5523_v21, %v5533_v16 }
 0x742   : > { %v5538_v20 = vsel %vm5530_vm10, %v5525_v13, %v5534_v35 }
 0x743   : > { %5814 = vmatprep.mubr.f32.mxu0 %v5538_v20 }
 0x744   : > { %5815 = vmatmul.mubr.f32.vlgmr.msra.gmra.mrb[0].mxu0 %v5537_v54 }
 0x817   : > { %v5816_v1 = vpop.f32.mrb[0].mxu0 }
 0x818   : > { %v6697_v48 = vadd.f32 %v5816_v1, %v5672_v50  ;;  %v5818_v6 = vpop.f32.mrb[1].mxu0 }
 0x819   : > { %v6698_v25 = vadd.f32 %v5818_v6, %v5676_v59 }
 0x81a   : > { %v5823_v8 = vmul.f32 0.01, %v6697_v48  ;;  %vm5821_vm11 = vcmp.ge.f32.partialorder %v6697_v48, 0.0 }
 0x81b   : > { %v5824_v19 = vmul.f32 0.01, %v6698_v25  ;;  %vm5822_vm12 = vcmp.ge.f32.partialorder %v6698_v25, 0.0 }
 0x81c   : > { %v5825_v31 = vsel %vm5821_vm11, %v6697_v48, %v5823_v8 }
 0x81d   : > { %v5826_v63 = vsel %vm5822_vm12, %v6698_v25, %v5824_v19 }
 0x81e   : > { %5930 = vmatprep.mubr.f32.mxu1 %v5826_v63 }
 0x81f   : > { %5931 = vmatmul.mubr.f32.vlgmr.msra.gmra.mrb[4].mxu1 %v5825_v31 }
 0x8f2   : > { %v6266_v12 = vpop.f32.mrb[4].mxu1 }
 0x8f3   : > { %v6267_v62 = vpop.f32.mrb[5].mxu1 }
 0x8f4   : > { %v6268_v37 = vadd.f32 %v6267_v62, %v6266_v12 }
 0x8f6   : > { %v5933_v38 = vadd.f32 %v6268_v37, %v6164_v57 }
 0x8f8   : > { %5937 = vst.msk [vmem:[%s6973_s20] sm:$0xff] %vm5936_vm13, %v5933_v38 }
 0x8f9 PF: > { %s23_s14 = sadd.s32 1, %s6831_s14   ;;  %s12673_s12 = sld [smem:[#allocation4_spill]] }
 0x8fa   : > { %p20_p0 = scmp.ge.s32.totalorder %s23_s14, 6   ;;  %s12674_s25 = smov %s6811_s26 }
 0x8fb   : > { %s12675_s26 = smov %s6956_s21  ;;  %s12676_s27 = smov %s6823_s29 }
 0x8fc   : > { %s12677_s28 = smov %s6827_s30  ;;  %s12679_s30 = smov %s12685_s16 }
 0x8fd   :  { %22 = sbr.rel (!%p20_p0) target bundleno = 8 (0x8), region = 160 }
 0x8ff   : > { %s12678_s29 = smov %s12673_s12 }

</bundles_post_ra>
